<compile_context>
chip_gen: v7x
topology: tpu7x:2x2x1
jax: 0.10.0
libtpu: 0.0.40
codegen_flags: <defaults>
</compile_context>

<pallas_src>
import math

import jax
import jax.numpy as jnp
import numpy as np
from jax.experimental import pallas as pl
from jax.experimental.pallas import tpu as pltpu

LANE = 128             # padded per-gate width = one full vreg lane span
NGATES = 4             # (i, f, o, g) after permutation from PyTorch (i, f, g, o)
GW = NGATES * LANE     # 512 gate lanes


def _lstm_step(pre_gates, h_prev, c_prev, whh_ref, hidden):
    """One LSTM cell step with 128-lane-aligned gate blocks.

    pre_gates : (1, 512) = x_t @ W_ih^T + (b_ih + b_hh), hoisted by the caller.
    h_prev/c_prev : (1, 128), exactly zero beyond `hidden`.
    whh_ref   : (hidden, 512) VMEM ref; gate columns at 128-lane offsets (i, f, o, g).

    Every gate slice sits on a vreg lane boundary, so no XLU realigns sit on the
    serial h->h chain.  Padded lanes stay exactly zero (pre-act 0 -> i=f=o=0.5,
    g=0 -> c_pad stays 0, h_pad stays 0), so numerics match the reference exactly.
    """
    gates = pre_gates + jnp.dot(h_prev[:, :hidden], whh_ref[...],
                                preferred_element_type=jnp.float32)      # (1, 512)
    sig = jax.nn.sigmoid(gates[:, :3 * LANE])          # i, f, o in one contiguous run
    i_g = sig[:, 0 * LANE:1 * LANE]
    f_g = sig[:, 1 * LANE:2 * LANE]
    o_g = sig[:, 2 * LANE:3 * LANE]
    g_g = jnp.tanh(gates[:, 3 * LANE:])
    c_new = f_g * c_prev + i_g * g_g
    h_new = o_g * jnp.tanh(c_new)
    return h_new, c_new


def _make_kernel(seq_len, n_features, embedding_dim):
    E = embedding_dim
    H2 = 2 * E
    T = seq_len
    f32 = jnp.float32

    def kernel(x_ref,
               wih1, whh1, b1,      # encoder rnn1: n_features -> 2E
               wih2, whh2, b2,      # encoder rnn2: 2E -> E
               wih3, whh3, b3,      # decoder rnn1: E -> E
               wih4, whh4, b4,      # decoder rnn2: E -> 2E
               wout, bout,          # output linear: 2E -> n_features (lane-padded row)
               recon_ref, emb_ref,
               xproj1_s,            # (T, 512) VMEM scratch: hoisted enc1 input projection
               dec_seq):            # (T, 128) VMEM scratch: decoder rnn2 hidden sequence

        # ---------------- Encoder: rnn1 + rnn2 fused over time ----------------
        # enc1 input projection + folded biases for all T, hoisted off the serial
        # chain and parked in VMEM (read back one row per step to cap live ranges).
        xproj1_s[...] = x_ref[...] * wih1[...] + b1[...]          # (T, 512)
        b2_v = b2[...]

        h1 = jnp.zeros((1, LANE), f32); c1 = jnp.zeros((1, LANE), f32)
        h2 = jnp.zeros((1, LANE), f32); c2 = jnp.zeros((1, LANE), f32)
        # Python-unrolled T=16: static slice indices, states live in vregs (1 vreg each).
        # Per review: only switch to lax.fori_loop(unroll=4) if the bundle shows spills.
        for t in range(T):
            h1, c1 = _lstm_step(xproj1_s[t:t + 1, :], h1, c1, whh1, H2)
            pre2 = jnp.dot(h1[:, :H2], wih2[...], preferred_element_type=f32) + b2_v
            h2, c2 = _lstm_step(pre2, h2, c2, whh2, E)

        emb_ref[...] = h2[:, :E]      # hidden_n.reshape((n_features, E)), n_features == 1

        # ---------------- Decoder: rnn1 + rnn2 fused over time ----------------
        # decoder input is the embedding repeated every step, so dec1's input
        # projection (+ biases) is one constant, hoisted out of the recurrence.
        pre3 = jnp.dot(h2[:, :E], wih3[...], preferred_element_type=f32) + b3[...]
        b4_v = b4[...]

        h3 = jnp.zeros((1, LANE), f32); c3 = jnp.zeros((1, LANE), f32)
        h4 = jnp.zeros((1, LANE), f32); c4 = jnp.zeros((1, LANE), f32)
        for t in range(T):
            h3, c3 = _lstm_step(pre3, h3, c3, whh3, E)
            pre4 = jnp.dot(h3[:, :E], wih4[...], preferred_element_type=f32) + b4_v
            h4, c4 = _lstm_step(pre4, h4, c4, whh4, H2)
            dec_seq[t:t + 1, :] = h4     # store is off the serial h->h chain

        # Output layer as VPU multiply + lane reduce (no degenerate N=1 MXU matmul).
        # Padded lanes of dec_seq are exactly zero, wout is zero there too.
        recon_ref[...] = (jnp.sum(dec_seq[...] * wout[...], axis=-1, keepdims=True)
                          + bout[...])

    return kernel


_GATE_PERM = (0, 1, 3, 2)    # PyTorch (i, f, g, o) -> kernel (i, f, o, g)


def _prep_lstm(lstm):
    """Transpose to (in, 4*128) with each gate block zero-padded to a full 128-lane
    boundary, biases pre-summed, gate order (i, f, o, g).  Rows (K dim) are kept at
    the real input/hidden size so the MXU weight latch is not inflated."""
    wih, whh, bih, bhh = [np.asarray(a, np.float32) for a in lstm]
    H = whh.shape[1]
    in_dim = wih.shape[1]
    b = bih + bhh
    wih_p = np.zeros((in_dim, GW), np.float32)
    whh_p = np.zeros((H, GW), np.float32)
    b_p = np.zeros((1, GW), np.float32)
    for k, s in enumerate(_GATE_PERM):
        src = slice(s * H, (s + 1) * H)
        dst = slice(k * LANE, k * LANE + H)
        wih_p[:, dst] = wih[src, :].T
        whh_p[:, dst] = whh[src, :].T
        b_p[0, dst] = b[src]
    return jnp.asarray(wih_p), jnp.asarray(whh_p), jnp.asarray(b_p)


def recurrent_autoencoder_forward(x, params, seq_len, n_features, embedding_dim):
    assert n_features == 1, "canonical RecurrentAutoencoder only supports n_features == 1"
    assert 2 * embedding_dim <= LANE, "hidden sizes must fit inside one 128-lane gate block"
    E = embedding_dim
    T = seq_len
    kernel = _make_kernel(T, n_features, E)

    args = [jnp.asarray(x, jnp.float32)]
    for name in ("enc1", "enc2", "dec1", "dec2"):
        args.extend(_prep_lstm(params[name]))
    w_out, b_out = params["out"]
    wout_p = np.zeros((1, LANE), np.float32)
    wout_p[:, :2 * E] = np.asarray(w_out, np.float32)        # (n_features=1, 2E) row
    args.append(jnp.asarray(wout_p))
    args.append(jnp.asarray(np.asarray(b_out, np.float32).reshape(1, n_features)))

    vmem = pl.BlockSpec(memory_space=pltpu.MemorySpace.VMEM)
    recon, emb = pl.pallas_call(
        kernel,
        out_shape=(jax.ShapeDtypeStruct((T, n_features), jnp.float32),
                   jax.ShapeDtypeStruct((n_features, E), jnp.float32)),
        in_specs=[vmem] * len(args),
        out_specs=(vmem, vmem),
        scratch_shapes=[
            pltpu.VMEM((T, GW), jnp.float32),     # hoisted enc1 input projection
            pltpu.VMEM((T, LANE), jnp.float32),   # decoder rnn2 hidden sequence
        ],
    )(*args)
    return recon, emb


# ---------------- deterministic parameter init (PyTorch-style uniform) ----------------
def init_lstm(key, in_dim, hidden):
    k = 1.0 / math.sqrt(hidden)
    k1, k2, k3, k4 = jax.random.split(key, 4)
    wih = jax.random.uniform(k1, (4 * hidden, in_dim), minval=-k, maxval=k, dtype=jnp.float32)
    whh = jax.random.uniform(k2, (4 * hidden, hidden), minval=-k, maxval=k, dtype=jnp.float32)
    bih = jax.random.uniform(k3, (4 * hidden,), minval=-k, maxval=k, dtype=jnp.float32)
    bhh = jax.random.uniform(k4, (4 * hidden,), minval=-k, maxval=k, dtype=jnp.float32)
    return wih, whh, bih, bhh


def init_linear(key, in_dim, out_dim):
    k = 1.0 / math.sqrt(in_dim)
    k1, k2 = jax.random.split(key)
    w = jax.random.uniform(k1, (out_dim, in_dim), minval=-k, maxval=k, dtype=jnp.float32)
    b = jax.random.uniform(k2, (out_dim,), minval=-k, maxval=k, dtype=jnp.float32)
    return w, b


# ---------------- pure-JAX reference (mirrors the PyTorch forward exactly) ----------------
def _lstm_ref(xs, wih, whh, bih, bhh):
    H = whh.shape[1]
    h = jnp.zeros((H,), jnp.float32)
    c = jnp.zeros((H,), jnp.float32)
    outs = []
    for t in range(xs.shape[0]):
        g = wih @ xs[t] + bih + whh @ h + bhh
        i = jax.nn.sigmoid(g[:H])
        f = jax.nn.sigmoid(g[H:2 * H])
        gg = jnp.tanh(g[2 * H:3 * H])
        o = jax.nn.sigmoid(g[3 * H:])
        c = f * c + i * gg
        h = o * jnp.tanh(c)
        outs.append(h)
    return jnp.stack(outs), h


def reference_forward(x, params, seq_len, n_features, embedding_dim):
    E = embedding_dim
    seq1, _ = _lstm_ref(x, *params["enc1"])
    _, h2 = _lstm_ref(seq1, *params["enc2"])
    emb = h2.reshape(n_features, E)
    dec_in = jnp.tile(emb, (seq_len, n_features)).reshape(n_features, seq_len, E)[0]
    seq3, _ = _lstm_ref(dec_in, *params["dec1"])
    seq4, _ = _lstm_ref(seq3, *params["dec2"])
    w_out, b_out = params["out"]
    recon = seq4 @ w_out.T + b_out
    return recon, emb


if __name__ == "__main__":
    seq_len, n_features, embedding_dim = 16, 1, 32

    key = jax.random.PRNGKey(0)
    keys = jax.random.split(key, 6)
    params = {
        "enc1": init_lstm(keys[0], n_features, 2 * embedding_dim),
        "enc2": init_lstm(keys[1], 2 * embedding_dim, embedding_dim),
        "dec1": init_lstm(keys[2], embedding_dim, embedding_dim),
        "dec2": init_lstm(keys[3], embedding_dim, 2 * embedding_dim),
        "out":  init_linear(keys[4], 2 * embedding_dim, n_features),
    }
    x = jax.random.normal(keys[5], (seq_len, n_features), dtype=jnp.float32)

    recon, emb = recurrent_autoencoder_forward(x, params, seq_len, n_features, embedding_dim)
    jax.block_until_ready((recon, emb))

    recon_ref, emb_ref = reference_forward(x, params, seq_len, n_features, embedding_dim)
    np.testing.assert_allclose(np.asarray(recon), np.asarray(recon_ref), rtol=2e-5, atol=2e-5)
    np.testing.assert_allclose(np.asarray(emb), np.asarray(emb_ref), rtol=2e-5, atol=2e-5)

    print("KERNEL_OK")
</pallas_src>

<mosaic_0001>
module attributes {stable_mosaic.version = 11 : i64} {
  func.func @kernel(%arg0: memref<16x1xf32, #tpu.memory_space<vmem>>, %arg1: memref<1x512xf32, #tpu.memory_space<vmem>>, %arg2: memref<64x512xf32, #tpu.memory_space<vmem>>, %arg3: memref<1x512xf32, #tpu.memory_space<vmem>>, %arg4: memref<64x512xf32, #tpu.memory_space<vmem>>, %arg5: memref<32x512xf32, #tpu.memory_space<vmem>>, %arg6: memref<1x512xf32, #tpu.memory_space<vmem>>, %arg7: memref<32x512xf32, #tpu.memory_space<vmem>>, %arg8: memref<32x512xf32, #tpu.memory_space<vmem>>, %arg9: memref<1x512xf32, #tpu.memory_space<vmem>>, %arg10: memref<32x512xf32, #tpu.memory_space<vmem>>, %arg11: memref<64x512xf32, #tpu.memory_space<vmem>>, %arg12: memref<1x512xf32, #tpu.memory_space<vmem>>, %arg13: memref<1x128xf32, #tpu.memory_space<vmem>>, %arg14: memref<1x1xf32, #tpu.memory_space<vmem>>, %arg15: memref<16x1xf32, #tpu.memory_space<vmem>>, %arg16: memref<1x32xf32, #tpu.memory_space<vmem>>, %arg17: memref<16x512xf32, #tpu.memory_space<vmem>>, %arg18: memref<16x128xf32, #tpu.memory_space<vmem>>) attributes {dimension_semantics = [], scalar_prefetch = 0 : i64, scratch_operands = 2 : i64, tpu.core_type = #tpu.core_type<tc>} {
    %c0 = arith.constant 0 : index
    %c0_0 = arith.constant 0 : index
    %0 = vector.load %arg0[%c0, %c0_0] : memref<16x1xf32, #tpu.memory_space<vmem>>, vector<16x1xf32>
    %c0_1 = arith.constant 0 : index
    %c0_2 = arith.constant 0 : index
    %1 = vector.load %arg1[%c0_1, %c0_2] : memref<1x512xf32, #tpu.memory_space<vmem>>, vector<1x512xf32>
    %2 = vector.broadcast %0 : vector<16x1xf32> to vector<16x512xf32>
    %3 = vector.broadcast %1 : vector<1x512xf32> to vector<16x512xf32>
    %4 = arith.mulf %2, %3 : vector<16x512xf32>
    %c0_3 = arith.constant 0 : index
    %c0_4 = arith.constant 0 : index
    %5 = vector.load %arg3[%c0_3, %c0_4] : memref<1x512xf32, #tpu.memory_space<vmem>>, vector<1x512xf32>
    %6 = vector.broadcast %5 : vector<1x512xf32> to vector<16x512xf32>
    %7 = arith.addf %4, %6 : vector<16x512xf32>
    %c0_5 = arith.constant 0 : index
    %c0_6 = arith.constant 0 : index
    %8 = vector.load %arg17[%c0_5, %c0_6] : memref<16x512xf32, #tpu.memory_space<vmem>>, vector<16x512xf32>
    tpu.vector_store %arg17[%c0_5, %c0_6], %7 {strides = array<i32>} : memref<16x512xf32, #tpu.memory_space<vmem>>, vector<16x512xf32>,
    %c0_7 = arith.constant 0 : index
    %c0_8 = arith.constant 0 : index
    %9 = vector.load %arg6[%c0_7, %c0_8] : memref<1x512xf32, #tpu.memory_space<vmem>>, vector<1x512xf32>
    %cst = arith.constant 0.000000e+00 : f32
    %10 = vector.broadcast %cst : f32 to vector<1x128xf32>
    %cst_9 = arith.constant 0.000000e+00 : f32
    %11 = vector.broadcast %cst_9 : f32 to vector<1x128xf32>
    %cst_10 = arith.constant 0.000000e+00 : f32
    %12 = vector.broadcast %cst_10 : f32 to vector<1x128xf32>
    %cst_11 = arith.constant 0.000000e+00 : f32
    %13 = vector.broadcast %cst_11 : f32 to vector<1x128xf32>
    %c0_12 = arith.constant 0 : index
    %c0_13 = arith.constant 0 : index
    %14 = vector.load %arg17[%c0_12, %c0_13] : memref<16x512xf32, #tpu.memory_space<vmem>>, vector<1x512xf32>
    %15 = vector.extract_strided_slice %10 {offsets = [0, 0], sizes = [1, 64], strides = [1, 1]} : vector<1x128xf32> to vector<1x64xf32>
    %c0_14 = arith.constant 0 : index
    %c0_15 = arith.constant 0 : index
    %16 = vector.load %arg2[%c0_14, %c0_15] : memref<64x512xf32, #tpu.memory_space<vmem>>, vector<64x512xf32>
    %cst_16 = arith.constant dense<0.000000e+00> : vector<1x512xf32>
    %17 = tpu.matmul %15, %16, %cst_16 {dimension_numbers = #tpu.dot_dimension_numbers<[1], [0], [0], [1], [0, 0, 1, 1], [], []>} : vector<1x64xf32>, vector<64x512xf32>, vector<1x512xf32> -> vector<1x512xf32>
    %18 = arith.addf %14, %17 : vector<1x512xf32>
    %19 = vector.extract_strided_slice %18 {offsets = [0, 0], sizes = [1, 384], strides = [1, 1]} : vector<1x512xf32> to vector<1x384xf32>
    %20 = arith.negf %19 : vector<1x384xf32>
    %21 = math.exp %20 : vector<1x384xf32>
    %cst_17 = arith.constant 1.000000e+00 : f32
    %22 = vector.broadcast %cst_17 : f32 to vector<1x384xf32>
    %23 = arith.addf %22, %21 : vector<1x384xf32>
    %24 = arith.divf %22, %23 : vector<1x384xf32>
    %25 = vector.extract_strided_slice %24 {offsets = [0, 0], sizes = [1, 128], strides = [1, 1]} : vector<1x384xf32> to vector<1x128xf32>
    %26 = vector.extract_strided_slice %24 {offsets = [0, 128], sizes = [1, 128], strides = [1, 1]} : vector<1x384xf32> to vector<1x128xf32>
    %27 = vector.extract_strided_slice %24 {offsets = [0, 256], sizes = [1, 128], strides = [1, 1]} : vector<1x384xf32> to vector<1x128xf32>
    %28 = vector.extract_strided_slice %18 {offsets = [0, 384], sizes = [1, 128], strides = [1, 1]} : vector<1x512xf32> to vector<1x128xf32>
    %29 = math.tanh %28 : vector<1x128xf32>
    %30 = arith.mulf %26, %11 : vector<1x128xf32>
    %31 = arith.mulf %25, %29 : vector<1x128xf32>
    %32 = arith.addf %30, %31 : vector<1x128xf32>
    %33 = math.tanh %32 : vector<1x128xf32>
    %34 = arith.mulf %27, %33 : vector<1x128xf32>
    %35 = vector.extract_strided_slice %34 {offsets = [0, 0], sizes = [1, 64], strides = [1, 1]} : vector<1x128xf32> to vector<1x64xf32>
    %c0_18 = arith.constant 0 : index
    %c0_19 = arith.constant 0 : index
    %36 = vector.load %arg4[%c0_18, %c0_19] : memref<64x512xf32, #tpu.memory_space<vmem>>, vector<64x512xf32>
    %cst_20 = arith.constant dense<0.000000e+00> : vector<1x512xf32>
    %37 = tpu.matmul %35, %36, %cst_20 {dimension_numbers = #tpu.dot_dimension_numbers<[1], [0], [0], [1], [0, 0, 1, 1], [], []>} : vector<1x64xf32>, vector<64x512xf32>, vector<1x512xf32> -> vector<1x512xf32>
    %38 = arith.addf %37, %9 : vector<1x512xf32>
    %39 = vector.extract_strided_slice %12 {offsets = [0, 0], sizes = [1, 32], strides = [1, 1]} : vector<1x128xf32> to vector<1x32xf32>
    %c0_21 = arith.constant 0 : index
    %c0_22 = arith.constant 0 : index
    %40 = vector.load %arg5[%c0_21, %c0_22] : memref<32x512xf32, #tpu.memory_space<vmem>>, vector<32x512xf32>
    %cst_23 = arith.constant dense<0.000000e+00> : vector<1x512xf32>
    %41 = tpu.matmul %39, %40, %cst_23 {dimension_numbers = #tpu.dot_dimension_numbers<[1], [0], [0], [1], [0, 0, 1, 1], [], []>} : vector<1x32xf32>, vector<32x512xf32>, vector<1x512xf32> -> vector<1x512xf32>
    %42 = arith.addf %38, %41 : vector<1x512xf32>
    %43 = vector.extract_strided_slice %42 {offsets = [0, 0], sizes = [1, 384], strides = [1, 1]} : vector<1x512xf32> to vector<1x384xf32>
    %44 = arith.negf %43 : vector<1x384xf32>
    %45 = math.exp %44 : vector<1x384xf32>
    %cst_24 = arith.constant 1.000000e+00 : f32
    %46 = vector.broadcast %cst_24 : f32 to vector<1x384xf32>
    %47 = arith.addf %46, %45 : vector<1x384xf32>
    %48 = arith.divf %46, %47 : vector<1x384xf32>
    %49 = vector.extract_strided_slice %48 {offsets = [0, 0], sizes = [1, 128], strides = [1, 1]} : vector<1x384xf32> to vector<1x128xf32>
    %50 = vector.extract_strided_slice %48 {offsets = [0, 128], sizes = [1, 128], strides = [1, 1]} : vector<1x384xf32> to vector<1x128xf32>
    %51 = vector.extract_strided_slice %48 {offsets = [0, 256], sizes = [1, 128], strides = [1, 1]} : vector<1x384xf32> to vector<1x128xf32>
    %52 = vector.extract_strided_slice %42 {offsets = [0, 384], sizes = [1, 128], strides = [1, 1]} : vector<1x512xf32> to vector<1x128xf32>
    %53 = math.tanh %52 : vector<1x128xf32>
    %54 = arith.mulf %50, %13 : vector<1x128xf32>
    %55 = arith.mulf %49, %53 : vector<1x128xf32>
    %56 = arith.addf %54, %55 : vector<1x128xf32>
    %57 = math.tanh %56 : vector<1x128xf32>
    %58 = arith.mulf %51, %57 : vector<1x128xf32>
    %c1 = arith.constant 1 : index
    %c0_25 = arith.constant 0 : index
    %59 = vector.load %arg17[%c1, %c0_25] : memref<16x512xf32, #tpu.memory_space<vmem>>, vector<1x512xf32>
    %60 = vector.extract_strided_slice %34 {offsets = [0, 0], sizes = [1, 64], strides = [1, 1]} : vector<1x128xf32> to vector<1x64xf32>
    %c0_26 = arith.constant 0 : index
    %c0_27 = arith.constant 0 : index
    %61 = vector.load %arg2[%c0_26, %c0_27] : memref<64x512xf32, #tpu.memory_space<vmem>>, vector<64x512xf32>
    %cst_28 = arith.constant dense<0.000000e+00> : vector<1x512xf32>
    %62 = tpu.matmul %60, %61, %cst_28 {dimension_numbers = #tpu.dot_dimension_numbers<[1], [0], [0], [1], [0, 0, 1, 1], [], []>} : vector<1x64xf32>, vector<64x512xf32>, vector<1x512xf32> -> vector<1x512xf32>
    %63 = arith.addf %59, %62 : vector<1x512xf32>
    %64 = vector.extract_strided_slice %63 {offsets = [0, 0], sizes = [1, 384], strides = [1, 1]} : vector<1x512xf32> to vector<1x384xf32>
    %65 = arith.negf %64 : vector<1x384xf32>
    %66 = math.exp %65 : vector<1x384xf32>
    %cst_29 = arith.constant 1.000000e+00 : f32
    %67 = vector.broadcast %cst_29 : f32 to vector<1x384xf32>
    %68 = arith.addf %67, %66 : vector<1x384xf32>
    %69 = arith.divf %67, %68 : vector<1x384xf32>
    %70 = vector.extract_strided_slice %69 {offsets = [0, 0], sizes = [1, 128], strides = [1, 1]} : vector<1x384xf32> to vector<1x128xf32>
    %71 = vector.extract_strided_slice %69 {offsets = [0, 128], sizes = [1, 128], strides = [1, 1]} : vector<1x384xf32> to vector<1x128xf32>
    %72 = vector.extract_strided_slice %69 {offsets = [0, 256], sizes = [1, 128], strides = [1, 1]} : vector<1x384xf32> to vector<1x128xf32>
    %73 = vector.extract_strided_slice %63 {offsets = [0, 384], sizes = [1, 128], strides = [1, 1]} : vector<1x512xf32> to vector<1x128xf32>
    %74 = math.tanh %73 : vector<1x128xf32>
    %75 = arith.mulf %71, %32 : vector<1x128xf32>
    %76 = arith.mulf %70, %74 : vector<1x128xf32>
    %77 = arith.addf %75, %76 : vector<1x128xf32>
    %78 = math.tanh %77 : vector<1x128xf32>
    %79 = arith.mulf %72, %78 : vector<1x128xf32>
    %80 = vector.extract_strided_slice %79 {offsets = [0, 0], sizes = [1, 64], strides = [1, 1]} : vector<1x128xf32> to vector<1x64xf32>
    %c0_30 = arith.constant 0 : index
    %c0_31 = arith.constant 0 : index
    %81 = vector.load %arg4[%c0_30, %c0_31] : memref<64x512xf32, #tpu.memory_space<vmem>>, vector<64x512xf32>
    %cst_32 = arith.constant dense<0.000000e+00> : vector<1x512xf32>
    %82 = tpu.matmul %80, %81, %cst_32 {dimension_numbers = #tpu.dot_dimension_numbers<[1], [0], [0], [1], [0, 0, 1, 1], [], []>} : vector<1x64xf32>, vector<64x512xf32>, vector<1x512xf32> -> vector<1x512xf32>
    %83 = arith.addf %82, %9 : vector<1x512xf32>
    %84 = vector.extract_strided_slice %58 {offsets = [0, 0], sizes = [1, 32], strides = [1, 1]} : vector<1x128xf32> to vector<1x32xf32>
    %c0_33 = arith.constant 0 : index
    %c0_34 = arith.constant 0 : index
    %85 = vector.load %arg5[%c0_33, %c0_34] : memref<32x512xf32, #tpu.memory_space<vmem>>, vector<32x512xf32>
    %cst_35 = arith.constant dense<0.000000e+00> : vector<1x512xf32>
    %86 = tpu.matmul %84, %85, %cst_35 {dimension_numbers = #tpu.dot_dimension_numbers<[1], [0], [0], [1], [0, 0, 1, 1], [], []>} : vector<1x32xf32>, vector<32x512xf32>, vector<1x512xf32> -> vector<1x512xf32>
    %87 = arith.addf %83, %86 : vector<1x512xf32>
    %88 = vector.extract_strided_slice %87 {offsets = [0, 0], sizes = [1, 384], strides = [1, 1]} : vector<1x512xf32> to vector<1x384xf32>
    %89 = arith.negf %88 : vector<1x384xf32>
    %90 = math.exp %89 : vector<1x384xf32>
    %cst_36 = arith.constant 1.000000e+00 : f32
    %91 = vector.broadcast %cst_36 : f32 to vector<1x384xf32>
    %92 = arith.addf %91, %90 : vector<1x384xf32>
    %93 = arith.divf %91, %92 : vector<1x384xf32>
    %94 = vector.extract_strided_slice %93 {offsets = [0, 0], sizes = [1, 128], strides = [1, 1]} : vector<1x384xf32> to vector<1x128xf32>
    %95 = vector.extract_strided_slice %93 {offsets = [0, 128], sizes = [1, 128], strides = [1, 1]} : vector<1x384xf32> to vector<1x128xf32>
    %96 = vector.extract_strided_slice %93 {offsets = [0, 256], sizes = [1, 128], strides = [1, 1]} : vector<1x384xf32> to vector<1x128xf32>
    %97 = vector.extract_strided_slice %87 {offsets = [0, 384], sizes = [1, 128], strides = [1, 1]} : vector<1x512xf32> to vector<1x128xf32>
    %98 = math.tanh %97 : vector<1x128xf32>
    %99 = arith.mulf %95, %56 : vector<1x128xf32>
    %100 = arith.mulf %94, %98 : vector<1x128xf32>
    %101 = arith.addf %99, %100 : vector<1x128xf32>
    %102 = math.tanh %101 : vector<1x128xf32>
    %103 = arith.mulf %96, %102 : vector<1x128xf32>
    %c2 = arith.constant 2 : index
    %c0_37 = arith.constant 0 : index
    %104 = vector.load %arg17[%c2, %c0_37] : memref<16x512xf32, #tpu.memory_space<vmem>>, vector<1x512xf32>
    %105 = vector.extract_strided_slice %79 {offsets = [0, 0], sizes = [1, 64], strides = [1, 1]} : vector<1x128xf32> to vector<1x64xf32>
    %c0_38 = arith.constant 0 : index
    %c0_39 = arith.constant 0 : index
    %106 = vector.load %arg2[%c0_38, %c0_39] : memref<64x512xf32, #tpu.memory_space<vmem>>, vector<64x512xf32>
    %cst_40 = arith.constant dense<0.000000e+00> : vector<1x512xf32>
    %107 = tpu.matmul %105, %106, %cst_40 {dimension_numbers = #tpu.dot_dimension_numbers<[1], [0], [0], [1], [0, 0, 1, 1], [], []>} : vector<1x64xf32>, vector<64x512xf32>, vector<1x512xf32> -> vector<1x512xf32>
    %108 = arith.addf %104, %107 : vector<1x512xf32>
    %109 = vector.extract_strided_slice %108 {offsets = [0, 0], sizes = [1, 384], strides = [1, 1]} : vector<1x512xf32> to vector<1x384xf32>
    %110 = arith.negf %109 : vector<1x384xf32>
    %111 = math.exp %110 : vector<1x384xf32>
    %cst_41 = arith.constant 1.000000e+00 : f32
    %112 = vector.broadcast %cst_41 : f32 to vector<1x384xf32>
    %113 = arith.addf %112, %111 : vector<1x384xf32>
    %114 = arith.divf %112, %113 : vector<1x384xf32>
    %115 = vector.extract_strided_slice %114 {offsets = [0, 0], sizes = [1, 128], strides = [1, 1]} : vector<1x384xf32> to vector<1x128xf32>
    %116 = vector.extract_strided_slice %114 {offsets = [0, 128], sizes = [1, 128], strides = [1, 1]} : vector<1x384xf32> to vector<1x128xf32>
    %117 = vector.extract_strided_slice %114 {offsets = [0, 256], sizes = [1, 128], strides = [1, 1]} : vector<1x384xf32> to vector<1x128xf32>
    %118 = vector.extract_strided_slice %108 {offsets = [0, 384], sizes = [1, 128], strides = [1, 1]} : vector<1x512xf32> to vector<1x128xf32>
    %119 = math.tanh %118 : vector<1x128xf32>
    %120 = arith.mulf %116, %77 : vector<1x128xf32>
    %121 = arith.mulf %115, %119 : vector<1x128xf32>
    %122 = arith.addf %120, %121 : vector<1x128xf32>
    %123 = math.tanh %122 : vector<1x128xf32>
    %124 = arith.mulf %117, %123 : vector<1x128xf32>
    %125 = vector.extract_strided_slice %124 {offsets = [0, 0], sizes = [1, 64], strides = [1, 1]} : vector<1x128xf32> to vector<1x64xf32>
    %c0_42 = arith.constant 0 : index
    %c0_43 = arith.constant 0 : index
    %126 = vector.load %arg4[%c0_42, %c0_43] : memref<64x512xf32, #tpu.memory_space<vmem>>, vector<64x512xf32>
    %cst_44 = arith.constant dense<0.000000e+00> : vector<1x512xf32>
    %127 = tpu.matmul %125, %126, %cst_44 {dimension_numbers = #tpu.dot_dimension_numbers<[1], [0], [0], [1], [0, 0, 1, 1], [], []>} : vector<1x64xf32>, vector<64x512xf32>, vector<1x512xf32> -> vector<1x512xf32>
    %128 = arith.addf %127, %9 : vector<1x512xf32>
    %129 = vector.extract_strided_slice %103 {offsets = [0, 0], sizes = [1, 32], strides = [1, 1]} : vector<1x128xf32> to vector<1x32xf32>
    %c0_45 = arith.constant 0 : index
    %c0_46 = arith.constant 0 : index
    %130 = vector.load %arg5[%c0_45, %c0_46] : memref<32x512xf32, #tpu.memory_space<vmem>>, vector<32x512xf32>
    %cst_47 = arith.constant dense<0.000000e+00> : vector<1x512xf32>
    %131 = tpu.matmul %129, %130, %cst_47 {dimension_numbers = #tpu.dot_dimension_numbers<[1], [0], [0], [1], [0, 0, 1, 1], [], []>} : vector<1x32xf32>, vector<32x512xf32>, vector<1x512xf32> -> vector<1x512xf32>
    %132 = arith.addf %128, %131 : vector<1x512xf32>
    %133 = vector.extract_strided_slice %132 {offsets = [0, 0], sizes = [1, 384], strides = [1, 1]} : vector<1x512xf32> to vector<1x384xf32>
    %134 = arith.negf %133 : vector<1x384xf32>
    %135 = math.exp %134 : vector<1x384xf32>
    %cst_48 = arith.constant 1.000000e+00 : f32
    %136 = vector.broadcast %cst_48 : f32 to vector<1x384xf32>
    %137 = arith.addf %136, %135 : vector<1x384xf32>
    %138 = arith.divf %136, %137 : vector<1x384xf32>
    %139 = vector.extract_strided_slice %138 {offsets = [0, 0], sizes = [1, 128], strides = [1, 1]} : vector<1x384xf32> to vector<1x128xf32>
    %140 = vector.extract_strided_slice %138 {offsets = [0, 128], sizes = [1, 128], strides = [1, 1]} : vector<1x384xf32> to vector<1x128xf32>
    %141 = vector.extract_strided_slice %138 {offsets = [0, 256], sizes = [1, 128], strides = [1, 1]} : vector<1x384xf32> to vector<1x128xf32>
    %142 = vector.extract_strided_slice %132 {offsets = [0, 384], sizes = [1, 128], strides = [1, 1]} : vector<1x512xf32> to vector<1x128xf32>
    %143 = math.tanh %142 : vector<1x128xf32>
    %144 = arith.mulf %140, %101 : vector<1x128xf32>
    %145 = arith.mulf %139, %143 : vector<1x128xf32>
    %146 = arith.addf %144, %145 : vector<1x128xf32>
    %147 = math.tanh %146 : vector<1x128xf32>
    %148 = arith.mulf %141, %147 : vector<1x128xf32>
    %c3 = arith.constant 3 : index
    %c0_49 = arith.constant 0 : index
    %149 = vector.load %arg17[%c3, %c0_49] : memref<16x512xf32, #tpu.memory_space<vmem>>, vector<1x512xf32>
    %150 = vector.extract_strided_slice %124 {offsets = [0, 0], sizes = [1, 64], strides = [1, 1]} : vector<1x128xf32> to vector<1x64xf32>
    %c0_50 = arith.constant 0 : index
    %c0_51 = arith.constant 0 : index
    %151 = vector.load %arg2[%c0_50, %c0_51] : memref<64x512xf32, #tpu.memory_space<vmem>>, vector<64x512xf32>
    %cst_52 = arith.constant dense<0.000000e+00> : vector<1x512xf32>
    %152 = tpu.matmul %150, %151, %cst_52 {dimension_numbers = #tpu.dot_dimension_numbers<[1], [0], [0], [1], [0, 0, 1, 1], [], []>} : vector<1x64xf32>, vector<64x512xf32>, vector<1x512xf32> -> vector<1x512xf32>
    %153 = arith.addf %149, %152 : vector<1x512xf32>
    %154 = vector.extract_strided_slice %153 {offsets = [0, 0], sizes = [1, 384], strides = [1, 1]} : vector<1x512xf32> to vector<1x384xf32>
    %155 = arith.negf %154 : vector<1x384xf32>
    %156 = math.exp %155 : vector<1x384xf32>
    %cst_53 = arith.constant 1.000000e+00 : f32
    %157 = vector.broadcast %cst_53 : f32 to vector<1x384xf32>
    %158 = arith.addf %157, %156 : vector<1x384xf32>
    %159 = arith.divf %157, %158 : vector<1x384xf32>
    %160 = vector.extract_strided_slice %159 {offsets = [0, 0], sizes = [1, 128], strides = [1, 1]} : vector<1x384xf32> to vector<1x128xf32>
    %161 = vector.extract_strided_slice %159 {offsets = [0, 128], sizes = [1, 128], strides = [1, 1]} : vector<1x384xf32> to vector<1x128xf32>
    %162 = vector.extract_strided_slice %159 {offsets = [0, 256], sizes = [1, 128], strides = [1, 1]} : vector<1x384xf32> to vector<1x128xf32>
    %163 = vector.extract_strided_slice %153 {offsets = [0, 384], sizes = [1, 128], strides = [1, 1]} : vector<1x512xf32> to vector<1x128xf32>
    %164 = math.tanh %163 : vector<1x128xf32>
    %165 = arith.mulf %161, %122 : vector<1x128xf32>
    %166 = arith.mulf %160, %164 : vector<1x128xf32>
    %167 = arith.addf %165, %166 : vector<1x128xf32>
    %168 = math.tanh %167 : vector<1x128xf32>
    %169 = arith.mulf %162, %168 : vector<1x128xf32>
    %170 = vector.extract_strided_slice %169 {offsets = [0, 0], sizes = [1, 64], strides = [1, 1]} : vector<1x128xf32> to vector<1x64xf32>
    %c0_54 = arith.constant 0 : index
    %c0_55 = arith.constant 0 : index
    %171 = vector.load %arg4[%c0_54, %c0_55] : memref<64x512xf32, #tpu.memory_space<vmem>>, vector<64x512xf32>
    %cst_56 = arith.constant dense<0.000000e+00> : vector<1x512xf32>
    %172 = tpu.matmul %170, %171, %cst_56 {dimension_numbers = #tpu.dot_dimension_numbers<[1], [0], [0], [1], [0, 0, 1, 1], [], []>} : vector<1x64xf32>, vector<64x512xf32>, vector<1x512xf32> -> vector<1x512xf32>
    %173 = arith.addf %172, %9 : vector<1x512xf32>
    %174 = vector.extract_strided_slice %148 {offsets = [0, 0], sizes = [1, 32], strides = [1, 1]} : vector<1x128xf32> to vector<1x32xf32>
    %c0_57 = arith.constant 0 : index
    %c0_58 = arith.constant 0 : index
    %175 = vector.load %arg5[%c0_57, %c0_58] : memref<32x512xf32, #tpu.memory_space<vmem>>, vector<32x512xf32>
    %cst_59 = arith.constant dense<0.000000e+00> : vector<1x512xf32>
    %176 = tpu.matmul %174, %175, %cst_59 {dimension_numbers = #tpu.dot_dimension_numbers<[1], [0], [0], [1], [0, 0, 1, 1], [], []>} : vector<1x32xf32>, vector<32x512xf32>, vector<1x512xf32> -> vector<1x512xf32>
    %177 = arith.addf %173, %176 : vector<1x512xf32>
    %178 = vector.extract_strided_slice %177 {offsets = [0, 0], sizes = [1, 384], strides = [1, 1]} : vector<1x512xf32> to vector<1x384xf32>
    %179 = arith.negf %178 : vector<1x384xf32>
    %180 = math.exp %179 : vector<1x384xf32>
    %cst_60 = arith.constant 1.000000e+00 : f32
    %181 = vector.broadcast %cst_60 : f32 to vector<1x384xf32>
    %182 = arith.addf %181, %180 : vector<1x384xf32>
    %183 = arith.divf %181, %182 : vector<1x384xf32>
    %184 = vector.extract_strided_slice %183 {offsets = [0, 0], sizes = [1, 128], strides = [1, 1]} : vector<1x384xf32> to vector<1x128xf32>
    %185 = vector.extract_strided_slice %183 {offsets = [0, 128], sizes = [1, 128], strides = [1, 1]} : vector<1x384xf32> to vector<1x128xf32>
    %186 = vector.extract_strided_slice %183 {offsets = [0, 256], sizes = [1, 128], strides = [1, 1]} : vector<1x384xf32> to vector<1x128xf32>
    %187 = vector.extract_strided_slice %177 {offsets = [0, 384], sizes = [1, 128], strides = [1, 1]} : vector<1x512xf32> to vector<1x128xf32>
    %188 = math.tanh %187 : vector<1x128xf32>
    %189 = arith.mulf %185, %146 : vector<1x128xf32>
    %190 = arith.mulf %184, %188 : vector<1x128xf32>
    %191 = arith.addf %189, %190 : vector<1x128xf32>
    %192 = math.tanh %191 : vector<1x128xf32>
    %193 = arith.mulf %186, %192 : vector<1x128xf32>
    %c4 = arith.constant 4 : index
    %c0_61 = arith.constant 0 : index
    %194 = vector.load %arg17[%c4, %c0_61] : memref<16x512xf32, #tpu.memory_space<vmem>>, vector<1x512xf32>
    %195 = vector.extract_strided_slice %169 {offsets = [0, 0], sizes = [1, 64], strides = [1, 1]} : vector<1x128xf32> to vector<1x64xf32>
    %c0_62 = arith.constant 0 : index
    %c0_63 = arith.constant 0 : index
    %196 = vector.load %arg2[%c0_62, %c0_63] : memref<64x512xf32, #tpu.memory_space<vmem>>, vector<64x512xf32>
    %cst_64 = arith.constant dense<0.000000e+00> : vector<1x512xf32>
    %197 = tpu.matmul %195, %196, %cst_64 {dimension_numbers = #tpu.dot_dimension_numbers<[1], [0], [0], [1], [0, 0, 1, 1], [], []>} : vector<1x64xf32>, vector<64x512xf32>, vector<1x512xf32> -> vector<1x512xf32>
    %198 = arith.addf %194, %197 : vector<1x512xf32>
    %199 = vector.extract_strided_slice %198 {offsets = [0, 0], sizes = [1, 384], strides = [1, 1]} : vector<1x512xf32> to vector<1x384xf32>
    %200 = arith.negf %199 : vector<1x384xf32>
    %201 = math.exp %200 : vector<1x384xf32>
    %cst_65 = arith.constant 1.000000e+00 : f32
    %202 = vector.broadcast %cst_65 : f32 to vector<1x384xf32>
    %203 = arith.addf %202, %201 : vector<1x384xf32>
    %204 = arith.divf %202, %203 : vector<1x384xf32>
    %205 = vector.extract_strided_slice %204 {offsets = [0, 0], sizes = [1, 128], strides = [1, 1]} : vector<1x384xf32> to vector<1x128xf32>
    %206 = vector.extract_strided_slice %204 {offsets = [0, 128], sizes = [1, 128], strides = [1, 1]} : vector<1x384xf32> to vector<1x128xf32>
    %207 = vector.extract_strided_slice %204 {offsets = [0, 256], sizes = [1, 128], strides = [1, 1]} : vector<1x384xf32> to vector<1x128xf32>
    %208 = vector.extract_strided_slice %198 {offsets = [0, 384], sizes = [1, 128], strides = [1, 1]} : vector<1x512xf32> to vector<1x128xf32>
    %209 = math.tanh %208 : vector<1x128xf32>
    %210 = arith.mulf %206, %167 : vector<1x128xf32>
    %211 = arith.mulf %205, %209 : vector<1x128xf32>
    %212 = arith.addf %210, %211 : vector<1x128xf32>
    %213 = math.tanh %212 : vector<1x128xf32>
    %214 = arith.mulf %207, %213 : vector<1x128xf32>
    %215 = vector.extract_strided_slice %214 {offsets = [0, 0], sizes = [1, 64], strides = [1, 1]} : vector<1x128xf32> to vector<1x64xf32>
    %c0_66 = arith.constant 0 : index
    %c0_67 = arith.constant 0 : index
    %216 = vector.load %arg4[%c0_66, %c0_67] : memref<64x512xf32, #tpu.memory_space<vmem>>, vector<64x512xf32>
    %cst_68 = arith.constant dense<0.000000e+00> : vector<1x512xf32>
    %217 = tpu.matmul %215, %216, %cst_68 {dimension_numbers = #tpu.dot_dimension_numbers<[1], [0], [0], [1], [0, 0, 1, 1], [], []>} : vector<1x64xf32>, vector<64x512xf32>, vector<1x512xf32> -> vector<1x512xf32>
    %218 = arith.addf %217, %9 : vector<1x512xf32>
    %219 = vector.extract_strided_slice %193 {offsets = [0, 0], sizes = [1, 32], strides = [1, 1]} : vector<1x128xf32> to vector<1x32xf32>
    %c0_69 = arith.constant 0 : index
    %c0_70 = arith.constant 0 : index
    %220 = vector.load %arg5[%c0_69, %c0_70] : memref<32x512xf32, #tpu.memory_space<vmem>>, vector<32x512xf32>
    %cst_71 = arith.constant dense<0.000000e+00> : vector<1x512xf32>
    %221 = tpu.matmul %219, %220, %cst_71 {dimension_numbers = #tpu.dot_dimension_numbers<[1], [0], [0], [1], [0, 0, 1, 1], [], []>} : vector<1x32xf32>, vector<32x512xf32>, vector<1x512xf32> -> vector<1x512xf32>
    %222 = arith.addf %218, %221 : vector<1x512xf32>
    %223 = vector.extract_strided_slice %222 {offsets = [0, 0], sizes = [1, 384], strides = [1, 1]} : vector<1x512xf32> to vector<1x384xf32>
    %224 = arith.negf %223 : vector<1x384xf32>
    %225 = math.exp %224 : vector<1x384xf32>
    %cst_72 = arith.constant 1.000000e+00 : f32
    %226 = vector.broadcast %cst_72 : f32 to vector<1x384xf32>
    %227 = arith.addf %226, %225 : vector<1x384xf32>
    %228 = arith.divf %226, %227 : vector<1x384xf32>
    %229 = vector.extract_strided_slice %228 {offsets = [0, 0], sizes = [1, 128], strides = [1, 1]} : vector<1x384xf32> to vector<1x128xf32>
    %230 = vector.extract_strided_slice %228 {offsets = [0, 128], sizes = [1, 128], strides = [1, 1]} : vector<1x384xf32> to vector<1x128xf32>
    %231 = vector.extract_strided_slice %228 {offsets = [0, 256], sizes = [1, 128], strides = [1, 1]} : vector<1x384xf32> to vector<1x128xf32>
    %232 = vector.extract_strided_slice %222 {offsets = [0, 384], sizes = [1, 128], strides = [1, 1]} : vector<1x512xf32> to vector<1x128xf32>
    %233 = math.tanh %232 : vector<1x128xf32>
    %234 = arith.mulf %230, %191 : vector<1x128xf32>
    %235 = arith.mulf %229, %233 : vector<1x128xf32>
    %236 = arith.addf %234, %235 : vector<1x128xf32>
    %237 = math.tanh %236 : vector<1x128xf32>
    %238 = arith.mulf %231, %237 : vector<1x128xf32>
    %c5 = arith.constant 5 : index
    %c0_73 = arith.constant 0 : index
    %239 = vector.load %arg17[%c5, %c0_73] : memref<16x512xf32, #tpu.memory_space<vmem>>, vector<1x512xf32>
    %240 = vector.extract_strided_slice %214 {offsets = [0, 0], sizes = [1, 64], strides = [1, 1]} : vector<1x128xf32> to vector<1x64xf32>
    %c0_74 = arith.constant 0 : index
    %c0_75 = arith.constant 0 : index
    %241 = vector.load %arg2[%c0_74, %c0_75] : memref<64x512xf32, #tpu.memory_space<vmem>>, vector<64x512xf32>
    %cst_76 = arith.constant dense<0.000000e+00> : vector<1x512xf32>
    %242 = tpu.matmul %240, %241, %cst_76 {dimension_numbers = #tpu.dot_dimension_numbers<[1], [0], [0], [1], [0, 0, 1, 1], [], []>} : vector<1x64xf32>, vector<64x512xf32>, vector<1x512xf32> -> vector<1x512xf32>
    %243 = arith.addf %239, %242 : vector<1x512xf32>
    %244 = vector.extract_strided_slice %243 {offsets = [0, 0], sizes = [1, 384], strides = [1, 1]} : vector<1x512xf32> to vector<1x384xf32>
    %245 = arith.negf %244 : vector<1x384xf32>
    %246 = math.exp %245 : vector<1x384xf32>
    %cst_77 = arith.constant 1.000000e+00 : f32
    %247 = vector.broadcast %cst_77 : f32 to vector<1x384xf32>
    %248 = arith.addf %247, %246 : vector<1x384xf32>
    %249 = arith.divf %247, %248 : vector<1x384xf32>
    %250 = vector.extract_strided_slice %249 {offsets = [0, 0], sizes = [1, 128], strides = [1, 1]} : vector<1x384xf32> to vector<1x128xf32>
    %251 = vector.extract_strided_slice %249 {offsets = [0, 128], sizes = [1, 128], strides = [1, 1]} : vector<1x384xf32> to vector<1x128xf32>
    %252 = vector.extract_strided_slice %249 {offsets = [0, 256], sizes = [1, 128], strides = [1, 1]} : vector<1x384xf32> to vector<1x128xf32>
    %253 = vector.extract_strided_slice %243 {offsets = [0, 384], sizes = [1, 128], strides = [1, 1]} : vector<1x512xf32> to vector<1x128xf32>
    %254 = math.tanh %253 : vector<1x128xf32>
    %255 = arith.mulf %251, %212 : vector<1x128xf32>
    %256 = arith.mulf %250, %254 : vector<1x128xf32>
    %257 = arith.addf %255, %256 : vector<1x128xf32>
    %258 = math.tanh %257 : vector<1x128xf32>
    %259 = arith.mulf %252, %258 : vector<1x128xf32>
    %260 = vector.extract_strided_slice %259 {offsets = [0, 0], sizes = [1, 64], strides = [1, 1]} : vector<1x128xf32> to vector<1x64xf32>
    %c0_78 = arith.constant 0 : index
    %c0_79 = arith.constant 0 : index
    %261 = vector.load %arg4[%c0_78, %c0_79] : memref<64x512xf32, #tpu.memory_space<vmem>>, vector<64x512xf32>
    %cst_80 = arith.constant dense<0.000000e+00> : vector<1x512xf32>
    %262 = tpu.matmul %260, %261, %cst_80 {dimension_numbers = #tpu.dot_dimension_numbers<[1], [0], [0], [1], [0, 0, 1, 1], [], []>} : vector<1x64xf32>, vector<64x512xf32>, vector<1x512xf32> -> vector<1x512xf32>
    %263 = arith.addf %262, %9 : vector<1x512xf32>
    %264 = vector.extract_strided_slice %238 {offsets = [0, 0], sizes = [1, 32], strides = [1, 1]} : vector<1x128xf32> to vector<1x32xf32>
    %c0_81 = arith.constant 0 : index
    %c0_82 = arith.constant 0 : index
    %265 = vector.load %arg5[%c0_81, %c0_82] : memref<32x512xf32, #tpu.memory_space<vmem>>, vector<32x512xf32>
    %cst_83 = arith.constant dense<0.000000e+00> : vector<1x512xf32>
    %266 = tpu.matmul %264, %265, %cst_83 {dimension_numbers = #tpu.dot_dimension_numbers<[1], [0], [0], [1], [0, 0, 1, 1], [], []>} : vector<1x32xf32>, vector<32x512xf32>, vector<1x512xf32> -> vector<1x512xf32>
    %267 = arith.addf %263, %266 : vector<1x512xf32>
    %268 = vector.extract_strided_slice %267 {offsets = [0, 0], sizes = [1, 384], strides = [1, 1]} : vector<1x512xf32> to vector<1x384xf32>
    %269 = arith.negf %268 : vector<1x384xf32>
    %270 = math.exp %269 : vector<1x384xf32>
    %cst_84 = arith.constant 1.000000e+00 : f32
    %271 = vector.broadcast %cst_84 : f32 to vector<1x384xf32>
    %272 = arith.addf %271, %270 : vector<1x384xf32>
    %273 = arith.divf %271, %272 : vector<1x384xf32>
    %274 = vector.extract_strided_slice %273 {offsets = [0, 0], sizes = [1, 128], strides = [1, 1]} : vector<1x384xf32> to vector<1x128xf32>
    %275 = vector.extract_strided_slice %273 {offsets = [0, 128], sizes = [1, 128], strides = [1, 1]} : vector<1x384xf32> to vector<1x128xf32>
    %276 = vector.extract_strided_slice %273 {offsets = [0, 256], sizes = [1, 128], strides = [1, 1]} : vector<1x384xf32> to vector<1x128xf32>
    %277 = vector.extract_strided_slice %267 {offsets = [0, 384], sizes = [1, 128], strides = [1, 1]} : vector<1x512xf32> to vector<1x128xf32>
    %278 = math.tanh %277 : vector<1x128xf32>
    %279 = arith.mulf %275, %236 : vector<1x128xf32>
    %280 = arith.mulf %274, %278 : vector<1x128xf32>
    %281 = arith.addf %279, %280 : vector<1x128xf32>
    %282 = math.tanh %281 : vector<1x128xf32>
    %283 = arith.mulf %276, %282 : vector<1x128xf32>
    %c6 = arith.constant 6 : index
    %c0_85 = arith.constant 0 : index
    %284 = vector.load %arg17[%c6, %c0_85] : memref<16x512xf32, #tpu.memory_space<vmem>>, vector<1x512xf32>
    %285 = vector.extract_strided_slice %259 {offsets = [0, 0], sizes = [1, 64], strides = [1, 1]} : vector<1x128xf32> to vector<1x64xf32>
    %c0_86 = arith.constant 0 : index
    %c0_87 = arith.constant 0 : index
    %286 = vector.load %arg2[%c0_86, %c0_87] : memref<64x512xf32, #tpu.memory_space<vmem>>, vector<64x512xf32>
    %cst_88 = arith.constant dense<0.000000e+00> : vector<1x512xf32>
    %287 = tpu.matmul %285, %286, %cst_88 {dimension_numbers = #tpu.dot_dimension_numbers<[1], [0], [0], [1], [0, 0, 1, 1], [], []>} : vector<1x64xf32>, vector<64x512xf32>, vector<1x512xf32> -> vector<1x512xf32>
    %288 = arith.addf %284, %287 : vector<1x512xf32>
    %289 = vector.extract_strided_slice %288 {offsets = [0, 0], sizes = [1, 384], strides = [1, 1]} : vector<1x512xf32> to vector<1x384xf32>
    %290 = arith.negf %289 : vector<1x384xf32>
    %291 = math.exp %290 : vector<1x384xf32>
    %cst_89 = arith.constant 1.000000e+00 : f32
    %292 = vector.broadcast %cst_89 : f32 to vector<1x384xf32>
    %293 = arith.addf %292, %291 : vector<1x384xf32>
    %294 = arith.divf %292, %293 : vector<1x384xf32>
    %295 = vector.extract_strided_slice %294 {offsets = [0, 0], sizes = [1, 128], strides = [1, 1]} : vector<1x384xf32> to vector<1x128xf32>
    %296 = vector.extract_strided_slice %294 {offsets = [0, 128], sizes = [1, 128], strides = [1, 1]} : vector<1x384xf32> to vector<1x128xf32>
    %297 = vector.extract_strided_slice %294 {offsets = [0, 256], sizes = [1, 128], strides = [1, 1]} : vector<1x384xf32> to vector<1x128xf32>
    %298 = vector.extract_strided_slice %288 {offsets = [0, 384], sizes = [1, 128], strides = [1, 1]} : vector<1x512xf32> to vector<1x128xf32>
    %299 = math.tanh %298 : vector<1x128xf32>
    %300 = arith.mulf %296, %257 : vector<1x128xf32>
    %301 = arith.mulf %295, %299 : vector<1x128xf32>
    %302 = arith.addf %300, %301 : vector<1x128xf32>
    %303 = math.tanh %302 : vector<1x128xf32>
    %304 = arith.mulf %297, %303 : vector<1x128xf32>
    %305 = vector.extract_strided_slice %304 {offsets = [0, 0], sizes = [1, 64], strides = [1, 1]} : vector<1x128xf32> to vector<1x64xf32>
    %c0_90 = arith.constant 0 : index
    %c0_91 = arith.constant 0 : index
    %306 = vector.load %arg4[%c0_90, %c0_91] : memref<64x512xf32, #tpu.memory_space<vmem>>, vector<64x512xf32>
    %cst_92 = arith.constant dense<0.000000e+00> : vector<1x512xf32>
    %307 = tpu.matmul %305, %306, %cst_92 {dimension_numbers = #tpu.dot_dimension_numbers<[1], [0], [0], [1], [0, 0, 1, 1], [], []>} : vector<1x64xf32>, vector<64x512xf32>, vector<1x512xf32> -> vector<1x512xf32>
    %308 = arith.addf %307, %9 : vector<1x512xf32>
    %309 = vector.extract_strided_slice %283 {offsets = [0, 0], sizes = [1, 32], strides = [1, 1]} : vector<1x128xf32> to vector<1x32xf32>
    %c0_93 = arith.constant 0 : index
    %c0_94 = arith.constant 0 : index
    %310 = vector.load %arg5[%c0_93, %c0_94] : memref<32x512xf32, #tpu.memory_space<vmem>>, vector<32x512xf32>
    %cst_95 = arith.constant dense<0.000000e+00> : vector<1x512xf32>
    %311 = tpu.matmul %309, %310, %cst_95 {dimension_numbers = #tpu.dot_dimension_numbers<[1], [0], [0], [1], [0, 0, 1, 1], [], []>} : vector<1x32xf32>, vector<32x512xf32>, vector<1x512xf32> -> vector<1x512xf32>
    %312 = arith.addf %308, %311 : vector<1x512xf32>
    %313 = vector.extract_strided_slice %312 {offsets = [0, 0], sizes = [1, 384], strides = [1, 1]} : vector<1x512xf32> to vector<1x384xf32>
    %314 = arith.negf %313 : vector<1x384xf32>
    %315 = math.exp %314 : vector<1x384xf32>
    %cst_96 = arith.constant 1.000000e+00 : f32
    %316 = vector.broadcast %cst_96 : f32 to vector<1x384xf32>
    %317 = arith.addf %316, %315 : vector<1x384xf32>
    %318 = arith.divf %316, %317 : vector<1x384xf32>
    %319 = vector.extract_strided_slice %318 {offsets = [0, 0], sizes = [1, 128], strides = [1, 1]} : vector<1x384xf32> to vector<1x128xf32>
    %320 = vector.extract_strided_slice %318 {offsets = [0, 128], sizes = [1, 128], strides = [1, 1]} : vector<1x384xf32> to vector<1x128xf32>
    %321 = vector.extract_strided_slice %318 {offsets = [0, 256], sizes = [1, 128], strides = [1, 1]} : vector<1x384xf32> to vector<1x128xf32>
    %322 = vector.extract_strided_slice %312 {offsets = [0, 384], sizes = [1, 128], strides = [1, 1]} : vector<1x512xf32> to vector<1x128xf32>
    %323 = math.tanh %322 : vector<1x128xf32>
    %324 = arith.mulf %320, %281 : vector<1x128xf32>
    %325 = arith.mulf %319, %323 : vector<1x128xf32>
    %326 = arith.addf %324, %325 : vector<1x128xf32>
    %327 = math.tanh %326 : vector<1x128xf32>
    %328 = arith.mulf %321, %327 : vector<1x128xf32>
    %c7 = arith.constant 7 : index
    %c0_97 = arith.constant 0 : index
    %329 = vector.load %arg17[%c7, %c0_97] : memref<16x512xf32, #tpu.memory_space<vmem>>, vector<1x512xf32>
    %330 = vector.extract_strided_slice %304 {offsets = [0, 0], sizes = [1, 64], strides = [1, 1]} : vector<1x128xf32> to vector<1x64xf32>
    %c0_98 = arith.constant 0 : index
    %c0_99 = arith.constant 0 : index
    %331 = vector.load %arg2[%c0_98, %c0_99] : memref<64x512xf32, #tpu.memory_space<vmem>>, vector<64x512xf32>
    %cst_100 = arith.constant dense<0.000000e+00> : vector<1x512xf32>
    %332 = tpu.matmul %330, %331, %cst_100 {dimension_numbers = #tpu.dot_dimension_numbers<[1], [0], [0], [1], [0, 0, 1, 1], [], []>} : vector<1x64xf32>, vector<64x512xf32>, vector<1x512xf32> -> vector<1x512xf32>
    %333 = arith.addf %329, %332 : vector<1x512xf32>
    %334 = vector.extract_strided_slice %333 {offsets = [0, 0], sizes = [1, 384], strides = [1, 1]} : vector<1x512xf32> to vector<1x384xf32>
    %335 = arith.negf %334 : vector<1x384xf32>
    %336 = math.exp %335 : vector<1x384xf32>
    %cst_101 = arith.constant 1.000000e+00 : f32
    %337 = vector.broadcast %cst_101 : f32 to vector<1x384xf32>
    %338 = arith.addf %337, %336 : vector<1x384xf32>
    %339 = arith.divf %337, %338 : vector<1x384xf32>
    %340 = vector.extract_strided_slice %339 {offsets = [0, 0], sizes = [1, 128], strides = [1, 1]} : vector<1x384xf32> to vector<1x128xf32>
    %341 = vector.extract_strided_slice %339 {offsets = [0, 128], sizes = [1, 128], strides = [1, 1]} : vector<1x384xf32> to vector<1x128xf32>
    %342 = vector.extract_strided_slice %339 {offsets = [0, 256], sizes = [1, 128], strides = [1, 1]} : vector<1x384xf32> to vector<1x128xf32>
    %343 = vector.extract_strided_slice %333 {offsets = [0, 384], sizes = [1, 128], strides = [1, 1]} : vector<1x512xf32> to vector<1x128xf32>
    %344 = math.tanh %343 : vector<1x128xf32>
    %345 = arith.mulf %341, %302 : vector<1x128xf32>
    %346 = arith.mulf %340, %344 : vector<1x128xf32>
    %347 = arith.addf %345, %346 : vector<1x128xf32>
    %348 = math.tanh %347 : vector<1x128xf32>
    %349 = arith.mulf %342, %348 : vector<1x128xf32>
    %350 = vector.extract_strided_slice %349 {offsets = [0, 0], sizes = [1, 64], strides = [1, 1]} : vector<1x128xf32> to vector<1x64xf32>
    %c0_102 = arith.constant 0 : index
    %c0_103 = arith.constant 0 : index
    %351 = vector.load %arg4[%c0_102, %c0_103] : memref<64x512xf32, #tpu.memory_space<vmem>>, vector<64x512xf32>
    %cst_104 = arith.constant dense<0.000000e+00> : vector<1x512xf32>
    %352 = tpu.matmul %350, %351, %cst_104 {dimension_numbers = #tpu.dot_dimension_numbers<[1], [0], [0], [1], [0, 0, 1, 1], [], []>} : vector<1x64xf32>, vector<64x512xf32>, vector<1x512xf32> -> vector<1x512xf32>
    %353 = arith.addf %352, %9 : vector<1x512xf32>
    %354 = vector.extract_strided_slice %328 {offsets = [0, 0], sizes = [1, 32], strides = [1, 1]} : vector<1x128xf32> to vector<1x32xf32>
    %c0_105 = arith.constant 0 : index
    %c0_106 = arith.constant 0 : index
    %355 = vector.load %arg5[%c0_105, %c0_106] : memref<32x512xf32, #tpu.memory_space<vmem>>, vector<32x512xf32>
    %cst_107 = arith.constant dense<0.000000e+00> : vector<1x512xf32>
    %356 = tpu.matmul %354, %355, %cst_107 {dimension_numbers = #tpu.dot_dimension_numbers<[1], [0], [0], [1], [0, 0, 1, 1], [], []>} : vector<1x32xf32>, vector<32x512xf32>, vector<1x512xf32> -> vector<1x512xf32>
    %357 = arith.addf %353, %356 : vector<1x512xf32>
    %358 = vector.extract_strided_slice %357 {offsets = [0, 0], sizes = [1, 384], strides = [1, 1]} : vector<1x512xf32> to vector<1x384xf32>
    %359 = arith.negf %358 : vector<1x384xf32>
    %360 = math.exp %359 : vector<1x384xf32>
    %cst_108 = arith.constant 1.000000e+00 : f32
    %361 = vector.broadcast %cst_108 : f32 to vector<1x384xf32>
    %362 = arith.addf %361, %360 : vector<1x384xf32>
    %363 = arith.divf %361, %362 : vector<1x384xf32>
    %364 = vector.extract_strided_slice %363 {offsets = [0, 0], sizes = [1, 128], strides = [1, 1]} : vector<1x384xf32> to vector<1x128xf32>
    %365 = vector.extract_strided_slice %363 {offsets = [0, 128], sizes = [1, 128], strides = [1, 1]} : vector<1x384xf32> to vector<1x128xf32>
    %366 = vector.extract_strided_slice %363 {offsets = [0, 256], sizes = [1, 128], strides = [1, 1]} : vector<1x384xf32> to vector<1x128xf32>
    %367 = vector.extract_strided_slice %357 {offsets = [0, 384], sizes = [1, 128], strides = [1, 1]} : vector<1x512xf32> to vector<1x128xf32>
    %368 = math.tanh %367 : vector<1x128xf32>
    %369 = arith.mulf %365, %326 : vector<1x128xf32>
    %370 = arith.mulf %364, %368 : vector<1x128xf32>
    %371 = arith.addf %369, %370 : vector<1x128xf32>
    %372 = math.tanh %371 : vector<1x128xf32>
    %373 = arith.mulf %366, %372 : vector<1x128xf32>
    %c8 = arith.constant 8 : index
    %c0_109 = arith.constant 0 : index
    %374 = vector.load %arg17[%c8, %c0_109] : memref<16x512xf32, #tpu.memory_space<vmem>>, vector<1x512xf32>
    %375 = vector.extract_strided_slice %349 {offsets = [0, 0], sizes = [1, 64], strides = [1, 1]} : vector<1x128xf32> to vector<1x64xf32>
    %c0_110 = arith.constant 0 : index
    %c0_111 = arith.constant 0 : index
    %376 = vector.load %arg2[%c0_110, %c0_111] : memref<64x512xf32, #tpu.memory_space<vmem>>, vector<64x512xf32>
    %cst_112 = arith.constant dense<0.000000e+00> : vector<1x512xf32>
    %377 = tpu.matmul %375, %376, %cst_112 {dimension_numbers = #tpu.dot_dimension_numbers<[1], [0], [0], [1], [0, 0, 1, 1], [], []>} : vector<1x64xf32>, vector<64x512xf32>, vector<1x512xf32> -> vector<1x512xf32>
    %378 = arith.addf %374, %377 : vector<1x512xf32>
    %379 = vector.extract_strided_slice %378 {offsets = [0, 0], sizes = [1, 384], strides = [1, 1]} : vector<1x512xf32> to vector<1x384xf32>
    %380 = arith.negf %379 : vector<1x384xf32>
    %381 = math.exp %380 : vector<1x384xf32>
    %cst_113 = arith.constant 1.000000e+00 : f32
    %382 = vector.broadcast %cst_113 : f32 to vector<1x384xf32>
    %383 = arith.addf %382, %381 : vector<1x384xf32>
    %384 = arith.divf %382, %383 : vector<1x384xf32>
    %385 = vector.extract_strided_slice %384 {offsets = [0, 0], sizes = [1, 128], strides = [1, 1]} : vector<1x384xf32> to vector<1x128xf32>
    %386 = vector.extract_strided_slice %384 {offsets = [0, 128], sizes = [1, 128], strides = [1, 1]} : vector<1x384xf32> to vector<1x128xf32>
    %387 = vector.extract_strided_slice %384 {offsets = [0, 256], sizes = [1, 128], strides = [1, 1]} : vector<1x384xf32> to vector<1x128xf32>
    %388 = vector.extract_strided_slice %378 {offsets = [0, 384], sizes = [1, 128], strides = [1, 1]} : vector<1x512xf32> to vector<1x128xf32>
    %389 = math.tanh %388 : vector<1x128xf32>
    %390 = arith.mulf %386, %347 : vector<1x128xf32>
    %391 = arith.mulf %385, %389 : vector<1x128xf32>
    %392 = arith.addf %390, %391 : vector<1x128xf32>
    %393 = math.tanh %392 : vector<1x128xf32>
    %394 = arith.mulf %387, %393 : vector<1x128xf32>
    %395 = vector.extract_strided_slice %394 {offsets = [0, 0], sizes = [1, 64], strides = [1, 1]} : vector<1x128xf32> to vector<1x64xf32>
    %c0_114 = arith.constant 0 : index
    %c0_115 = arith.constant 0 : index
    %396 = vector.load %arg4[%c0_114, %c0_115] : memref<64x512xf32, #tpu.memory_space<vmem>>, vector<64x512xf32>
    %cst_116 = arith.constant dense<0.000000e+00> : vector<1x512xf32>
    %397 = tpu.matmul %395, %396, %cst_116 {dimension_numbers = #tpu.dot_dimension_numbers<[1], [0], [0], [1], [0, 0, 1, 1], [], []>} : vector<1x64xf32>, vector<64x512xf32>, vector<1x512xf32> -> vector<1x512xf32>
    %398 = arith.addf %397, %9 : vector<1x512xf32>
    %399 = vector.extract_strided_slice %373 {offsets = [0, 0], sizes = [1, 32], strides = [1, 1]} : vector<1x128xf32> to vector<1x32xf32>
    %c0_117 = arith.constant 0 : index
    %c0_118 = arith.constant 0 : index
    %400 = vector.load %arg5[%c0_117, %c0_118] : memref<32x512xf32, #tpu.memory_space<vmem>>, vector<32x512xf32>
    %cst_119 = arith.constant dense<0.000000e+00> : vector<1x512xf32>
    %401 = tpu.matmul %399, %400, %cst_119 {dimension_numbers = #tpu.dot_dimension_numbers<[1], [0], [0], [1], [0, 0, 1, 1], [], []>} : vector<1x32xf32>, vector<32x512xf32>, vector<1x512xf32> -> vector<1x512xf32>
    %402 = arith.addf %398, %401 : vector<1x512xf32>
    %403 = vector.extract_strided_slice %402 {offsets = [0, 0], sizes = [1, 384], strides = [1, 1]} : vector<1x512xf32> to vector<1x384xf32>
    %404 = arith.negf %403 : vector<1x384xf32>
    %405 = math.exp %404 : vector<1x384xf32>
    %cst_120 = arith.constant 1.000000e+00 : f32
    %406 = vector.broadcast %cst_120 : f32 to vector<1x384xf32>
    %407 = arith.addf %406, %405 : vector<1x384xf32>
    %408 = arith.divf %406, %407 : vector<1x384xf32>
    %409 = vector.extract_strided_slice %408 {offsets = [0, 0], sizes = [1, 128], strides = [1, 1]} : vector<1x384xf32> to vector<1x128xf32>
    %410 = vector.extract_strided_slice %408 {offsets = [0, 128], sizes = [1, 128], strides = [1, 1]} : vector<1x384xf32> to vector<1x128xf32>
    %411 = vector.extract_strided_slice %408 {offsets = [0, 256], sizes = [1, 128], strides = [1, 1]} : vector<1x384xf32> to vector<1x128xf32>
    %412 = vector.extract_strided_slice %402 {offsets = [0, 384], sizes = [1, 128], strides = [1, 1]} : vector<1x512xf32> to vector<1x128xf32>
    %413 = math.tanh %412 : vector<1x128xf32>
    %414 = arith.mulf %410, %371 : vector<1x128xf32>
    %415 = arith.mulf %409, %413 : vector<1x128xf32>
    %416 = arith.addf %414, %415 : vector<1x128xf32>
    %417 = math.tanh %416 : vector<1x128xf32>
    %418 = arith.mulf %411, %417 : vector<1x128xf32>
    %c9 = arith.constant 9 : index
    %c0_121 = arith.constant 0 : index
    %419 = vector.load %arg17[%c9, %c0_121] : memref<16x512xf32, #tpu.memory_space<vmem>>, vector<1x512xf32>
    %420 = vector.extract_strided_slice %394 {offsets = [0, 0], sizes = [1, 64], strides = [1, 1]} : vector<1x128xf32> to vector<1x64xf32>
    %c0_122 = arith.constant 0 : index
    %c0_123 = arith.constant 0 : index
    %421 = vector.load %arg2[%c0_122, %c0_123] : memref<64x512xf32, #tpu.memory_space<vmem>>, vector<64x512xf32>
    %cst_124 = arith.constant dense<0.000000e+00> : vector<1x512xf32>
    %422 = tpu.matmul %420, %421, %cst_124 {dimension_numbers = #tpu.dot_dimension_numbers<[1], [0], [0], [1], [0, 0, 1, 1], [], []>} : vector<1x64xf32>, vector<64x512xf32>, vector<1x512xf32> -> vector<1x512xf32>
    %423 = arith.addf %419, %422 : vector<1x512xf32>
    %424 = vector.extract_strided_slice %423 {offsets = [0, 0], sizes = [1, 384], strides = [1, 1]} : vector<1x512xf32> to vector<1x384xf32>
    %425 = arith.negf %424 : vector<1x384xf32>
    %426 = math.exp %425 : vector<1x384xf32>
    %cst_125 = arith.constant 1.000000e+00 : f32
    %427 = vector.broadcast %cst_125 : f32 to vector<1x384xf32>
    %428 = arith.addf %427, %426 : vector<1x384xf32>
    %429 = arith.divf %427, %428 : vector<1x384xf32>
    %430 = vector.extract_strided_slice %429 {offsets = [0, 0], sizes = [1, 128], strides = [1, 1]} : vector<1x384xf32> to vector<1x128xf32>
    %431 = vector.extract_strided_slice %429 {offsets = [0, 128], sizes = [1, 128], strides = [1, 1]} : vector<1x384xf32> to vector<1x128xf32>
    %432 = vector.extract_strided_slice %429 {offsets = [0, 256], sizes = [1, 128], strides = [1, 1]} : vector<1x384xf32> to vector<1x128xf32>
    %433 = vector.extract_strided_slice %423 {offsets = [0, 384], sizes = [1, 128], strides = [1, 1]} : vector<1x512xf32> to vector<1x128xf32>
    %434 = math.tanh %433 : vector<1x128xf32>
    %435 = arith.mulf %431, %392 : vector<1x128xf32>
    %436 = arith.mulf %430, %434 : vector<1x128xf32>
    %437 = arith.addf %435, %436 : vector<1x128xf32>
    %438 = math.tanh %437 : vector<1x128xf32>
    %439 = arith.mulf %432, %438 : vector<1x128xf32>
    %440 = vector.extract_strided_slice %439 {offsets = [0, 0], sizes = [1, 64], strides = [1, 1]} : vector<1x128xf32> to vector<1x64xf32>
    %c0_126 = arith.constant 0 : index
    %c0_127 = arith.constant 0 : index
    %441 = vector.load %arg4[%c0_126, %c0_127] : memref<64x512xf32, #tpu.memory_space<vmem>>, vector<64x512xf32>
    %cst_128 = arith.constant dense<0.000000e+00> : vector<1x512xf32>
    %442 = tpu.matmul %440, %441, %cst_128 {dimension_numbers = #tpu.dot_dimension_numbers<[1], [0], [0], [1], [0, 0, 1, 1], [], []>} : vector<1x64xf32>, vector<64x512xf32>, vector<1x512xf32> -> vector<1x512xf32>
    %443 = arith.addf %442, %9 : vector<1x512xf32>
    %444 = vector.extract_strided_slice %418 {offsets = [0, 0], sizes = [1, 32], strides = [1, 1]} : vector<1x128xf32> to vector<1x32xf32>
    %c0_129 = arith.constant 0 : index
    %c0_130 = arith.constant 0 : index
    %445 = vector.load %arg5[%c0_129, %c0_130] : memref<32x512xf32, #tpu.memory_space<vmem>>, vector<32x512xf32>
    %cst_131 = arith.constant dense<0.000000e+00> : vector<1x512xf32>
    %446 = tpu.matmul %444, %445, %cst_131 {dimension_numbers = #tpu.dot_dimension_numbers<[1], [0], [0], [1], [0, 0, 1, 1], [], []>} : vector<1x32xf32>, vector<32x512xf32>, vector<1x512xf32> -> vector<1x512xf32>
    %447 = arith.addf %443, %446 : vector<1x512xf32>
    %448 = vector.extract_strided_slice %447 {offsets = [0, 0], sizes = [1, 384], strides = [1, 1]} : vector<1x512xf32> to vector<1x384xf32>
    %449 = arith.negf %448 : vector<1x384xf32>
    %450 = math.exp %449 : vector<1x384xf32>
    %cst_132 = arith.constant 1.000000e+00 : f32
    %451 = vector.broadcast %cst_132 : f32 to vector<1x384xf32>
    %452 = arith.addf %451, %450 : vector<1x384xf32>
    %453 = arith.divf %451, %452 : vector<1x384xf32>
    %454 = vector.extract_strided_slice %453 {offsets = [0, 0], sizes = [1, 128], strides = [1, 1]} : vector<1x384xf32> to vector<1x128xf32>
    %455 = vector.extract_strided_slice %453 {offsets = [0, 128], sizes = [1, 128], strides = [1, 1]} : vector<1x384xf32> to vector<1x128xf32>
    %456 = vector.extract_strided_slice %453 {offsets = [0, 256], sizes = [1, 128], strides = [1, 1]} : vector<1x384xf32> to vector<1x128xf32>
    %457 = vector.extract_strided_slice %447 {offsets = [0, 384], sizes = [1, 128], strides = [1, 1]} : vector<1x512xf32> to vector<1x128xf32>
    %458 = math.tanh %457 : vector<1x128xf32>
    %459 = arith.mulf %455, %416 : vector<1x128xf32>
    %460 = arith.mulf %454, %458 : vector<1x128xf32>
    %461 = arith.addf %459, %460 : vector<1x128xf32>
    %462 = math.tanh %461 : vector<1x128xf32>
    %463 = arith.mulf %456, %462 : vector<1x128xf32>
    %c10 = arith.constant 10 : index
    %c0_133 = arith.constant 0 : index
    %464 = vector.load %arg17[%c10, %c0_133] : memref<16x512xf32, #tpu.memory_space<vmem>>, vector<1x512xf32>
    %465 = vector.extract_strided_slice %439 {offsets = [0, 0], sizes = [1, 64], strides = [1, 1]} : vector<1x128xf32> to vector<1x64xf32>
    %c0_134 = arith.constant 0 : index
    %c0_135 = arith.constant 0 : index
    %466 = vector.load %arg2[%c0_134, %c0_135] : memref<64x512xf32, #tpu.memory_space<vmem>>, vector<64x512xf32>
    %cst_136 = arith.constant dense<0.000000e+00> : vector<1x512xf32>
    %467 = tpu.matmul %465, %466, %cst_136 {dimension_numbers = #tpu.dot_dimension_numbers<[1], [0], [0], [1], [0, 0, 1, 1], [], []>} : vector<1x64xf32>, vector<64x512xf32>, vector<1x512xf32> -> vector<1x512xf32>
    %468 = arith.addf %464, %467 : vector<1x512xf32>
    %469 = vector.extract_strided_slice %468 {offsets = [0, 0], sizes = [1, 384], strides = [1, 1]} : vector<1x512xf32> to vector<1x384xf32>
    %470 = arith.negf %469 : vector<1x384xf32>
    %471 = math.exp %470 : vector<1x384xf32>
    %cst_137 = arith.constant 1.000000e+00 : f32
    %472 = vector.broadcast %cst_137 : f32 to vector<1x384xf32>
    %473 = arith.addf %472, %471 : vector<1x384xf32>
    %474 = arith.divf %472, %473 : vector<1x384xf32>
    %475 = vector.extract_strided_slice %474 {offsets = [0, 0], sizes = [1, 128], strides = [1, 1]} : vector<1x384xf32> to vector<1x128xf32>
    %476 = vector.extract_strided_slice %474 {offsets = [0, 128], sizes = [1, 128], strides = [1, 1]} : vector<1x384xf32> to vector<1x128xf32>
    %477 = vector.extract_strided_slice %474 {offsets = [0, 256], sizes = [1, 128], strides = [1, 1]} : vector<1x384xf32> to vector<1x128xf32>
    %478 = vector.extract_strided_slice %468 {offsets = [0, 384], sizes = [1, 128], strides = [1, 1]} : vector<1x512xf32> to vector<1x128xf32>
    %479 = math.tanh %478 : vector<1x128xf32>
    %480 = arith.mulf %476, %437 : vector<1x128xf32>
    %481 = arith.mulf %475, %479 : vector<1x128xf32>
    %482 = arith.addf %480, %481 : vector<1x128xf32>
    %483 = math.tanh %482 : vector<1x128xf32>
    %484 = arith.mulf %477, %483 : vector<1x128xf32>
    %485 = vector.extract_strided_slice %484 {offsets = [0, 0], sizes = [1, 64], strides = [1, 1]} : vector<1x128xf32> to vector<1x64xf32>
    %c0_138 = arith.constant 0 : index
    %c0_139 = arith.constant 0 : index
    %486 = vector.load %arg4[%c0_138, %c0_139] : memref<64x512xf32, #tpu.memory_space<vmem>>, vector<64x512xf32>
    %cst_140 = arith.constant dense<0.000000e+00> : vector<1x512xf32>
    %487 = tpu.matmul %485, %486, %cst_140 {dimension_numbers = #tpu.dot_dimension_numbers<[1], [0], [0], [1], [0, 0, 1, 1], [], []>} : vector<1x64xf32>, vector<64x512xf32>, vector<1x512xf32> -> vector<1x512xf32>
    %488 = arith.addf %487, %9 : vector<1x512xf32>
    %489 = vector.extract_strided_slice %463 {offsets = [0, 0], sizes = [1, 32], strides = [1, 1]} : vector<1x128xf32> to vector<1x32xf32>
    %c0_141 = arith.constant 0 : index
    %c0_142 = arith.constant 0 : index
    %490 = vector.load %arg5[%c0_141, %c0_142] : memref<32x512xf32, #tpu.memory_space<vmem>>, vector<32x512xf32>
    %cst_143 = arith.constant dense<0.000000e+00> : vector<1x512xf32>
    %491 = tpu.matmul %489, %490, %cst_143 {dimension_numbers = #tpu.dot_dimension_numbers<[1], [0], [0], [1], [0, 0, 1, 1], [], []>} : vector<1x32xf32>, vector<32x512xf32>, vector<1x512xf32> -> vector<1x512xf32>
    %492 = arith.addf %488, %491 : vector<1x512xf32>
    %493 = vector.extract_strided_slice %492 {offsets = [0, 0], sizes = [1, 384], strides = [1, 1]} : vector<1x512xf32> to vector<1x384xf32>
    %494 = arith.negf %493 : vector<1x384xf32>
    %495 = math.exp %494 : vector<1x384xf32>
    %cst_144 = arith.constant 1.000000e+00 : f32
    %496 = vector.broadcast %cst_144 : f32 to vector<1x384xf32>
    %497 = arith.addf %496, %495 : vector<1x384xf32>
    %498 = arith.divf %496, %497 : vector<1x384xf32>
    %499 = vector.extract_strided_slice %498 {offsets = [0, 0], sizes = [1, 128], strides = [1, 1]} : vector<1x384xf32> to vector<1x128xf32>
    %500 = vector.extract_strided_slice %498 {offsets = [0, 128], sizes = [1, 128], strides = [1, 1]} : vector<1x384xf32> to vector<1x128xf32>
    %501 = vector.extract_strided_slice %498 {offsets = [0, 256], sizes = [1, 128], strides = [1, 1]} : vector<1x384xf32> to vector<1x128xf32>
    %502 = vector.extract_strided_slice %492 {offsets = [0, 384], sizes = [1, 128], strides = [1, 1]} : vector<1x512xf32> to vector<1x128xf32>
    %503 = math.tanh %502 : vector<1x128xf32>
    %504 = arith.mulf %500, %461 : vector<1x128xf32>
    %505 = arith.mulf %499, %503 : vector<1x128xf32>
    %506 = arith.addf %504, %505 : vector<1x128xf32>
    %507 = math.tanh %506 : vector<1x128xf32>
    %508 = arith.mulf %501, %507 : vector<1x128xf32>
    %c11 = arith.constant 11 : index
    %c0_145 = arith.constant 0 : index
    %509 = vector.load %arg17[%c11, %c0_145] : memref<16x512xf32, #tpu.memory_space<vmem>>, vector<1x512xf32>
    %510 = vector.extract_strided_slice %484 {offsets = [0, 0], sizes = [1, 64], strides = [1, 1]} : vector<1x128xf32> to vector<1x64xf32>
    %c0_146 = arith.constant 0 : index
    %c0_147 = arith.constant 0 : index
    %511 = vector.load %arg2[%c0_146, %c0_147] : memref<64x512xf32, #tpu.memory_space<vmem>>, vector<64x512xf32>
    %cst_148 = arith.constant dense<0.000000e+00> : vector<1x512xf32>
    %512 = tpu.matmul %510, %511, %cst_148 {dimension_numbers = #tpu.dot_dimension_numbers<[1], [0], [0], [1], [0, 0, 1, 1], [], []>} : vector<1x64xf32>, vector<64x512xf32>, vector<1x512xf32> -> vector<1x512xf32>
    %513 = arith.addf %509, %512 : vector<1x512xf32>
    %514 = vector.extract_strided_slice %513 {offsets = [0, 0], sizes = [1, 384], strides = [1, 1]} : vector<1x512xf32> to vector<1x384xf32>
    %515 = arith.negf %514 : vector<1x384xf32>
    %516 = math.exp %515 : vector<1x384xf32>
    %cst_149 = arith.constant 1.000000e+00 : f32
    %517 = vector.broadcast %cst_149 : f32 to vector<1x384xf32>
    %518 = arith.addf %517, %516 : vector<1x384xf32>
    %519 = arith.divf %517, %518 : vector<1x384xf32>
    %520 = vector.extract_strided_slice %519 {offsets = [0, 0], sizes = [1, 128], strides = [1, 1]} : vector<1x384xf32> to vector<1x128xf32>
    %521 = vector.extract_strided_slice %519 {offsets = [0, 128], sizes = [1, 128], strides = [1, 1]} : vector<1x384xf32> to vector<1x128xf32>
    %522 = vector.extract_strided_slice %519 {offsets = [0, 256], sizes = [1, 128], strides = [1, 1]} : vector<1x384xf32> to vector<1x128xf32>
    %523 = vector.extract_strided_slice %513 {offsets = [0, 384], sizes = [1, 128], strides = [1, 1]} : vector<1x512xf32> to vector<1x128xf32>
    %524 = math.tanh %523 : vector<1x128xf32>
    %525 = arith.mulf %521, %482 : vector<1x128xf32>
    %526 = arith.mulf %520, %524 : vector<1x128xf32>
    %527 = arith.addf %525, %526 : vector<1x128xf32>
    %528 = math.tanh %527 : vector<1x128xf32>
    %529 = arith.mulf %522, %528 : vector<1x128xf32>
    %530 = vector.extract_strided_slice %529 {offsets = [0, 0], sizes = [1, 64], strides = [1, 1]} : vector<1x128xf32> to vector<1x64xf32>
    %c0_150 = arith.constant 0 : index
    %c0_151 = arith.constant 0 : index
    %531 = vector.load %arg4[%c0_150, %c0_151] : memref<64x512xf32, #tpu.memory_space<vmem>>, vector<64x512xf32>
    %cst_152 = arith.constant dense<0.000000e+00> : vector<1x512xf32>
    %532 = tpu.matmul %530, %531, %cst_152 {dimension_numbers = #tpu.dot_dimension_numbers<[1], [0], [0], [1], [0, 0, 1, 1], [], []>} : vector<1x64xf32>, vector<64x512xf32>, vector<1x512xf32> -> vector<1x512xf32>
    %533 = arith.addf %532, %9 : vector<1x512xf32>
    %534 = vector.extract_strided_slice %508 {offsets = [0, 0], sizes = [1, 32], strides = [1, 1]} : vector<1x128xf32> to vector<1x32xf32>
    %c0_153 = arith.constant 0 : index
    %c0_154 = arith.constant 0 : index
    %535 = vector.load %arg5[%c0_153, %c0_154] : memref<32x512xf32, #tpu.memory_space<vmem>>, vector<32x512xf32>
    %cst_155 = arith.constant dense<0.000000e+00> : vector<1x512xf32>
    %536 = tpu.matmul %534, %535, %cst_155 {dimension_numbers = #tpu.dot_dimension_numbers<[1], [0], [0], [1], [0, 0, 1, 1], [], []>} : vector<1x32xf32>, vector<32x512xf32>, vector<1x512xf32> -> vector<1x512xf32>
    %537 = arith.addf %533, %536 : vector<1x512xf32>
    %538 = vector.extract_strided_slice %537 {offsets = [0, 0], sizes = [1, 384], strides = [1, 1]} : vector<1x512xf32> to vector<1x384xf32>
    %539 = arith.negf %538 : vector<1x384xf32>
    %540 = math.exp %539 : vector<1x384xf32>
    %cst_156 = arith.constant 1.000000e+00 : f32
    %541 = vector.broadcast %cst_156 : f32 to vector<1x384xf32>
    %542 = arith.addf %541, %540 : vector<1x384xf32>
    %543 = arith.divf %541, %542 : vector<1x384xf32>
    %544 = vector.extract_strided_slice %543 {offsets = [0, 0], sizes = [1, 128], strides = [1, 1]} : vector<1x384xf32> to vector<1x128xf32>
    %545 = vector.extract_strided_slice %543 {offsets = [0, 128], sizes = [1, 128], strides = [1, 1]} : vector<1x384xf32> to vector<1x128xf32>
    %546 = vector.extract_strided_slice %543 {offsets = [0, 256], sizes = [1, 128], strides = [1, 1]} : vector<1x384xf32> to vector<1x128xf32>
    %547 = vector.extract_strided_slice %537 {offsets = [0, 384], sizes = [1, 128], strides = [1, 1]} : vector<1x512xf32> to vector<1x128xf32>
    %548 = math.tanh %547 : vector<1x128xf32>
    %549 = arith.mulf %545, %506 : vector<1x128xf32>
    %550 = arith.mulf %544, %548 : vector<1x128xf32>
    %551 = arith.addf %549, %550 : vector<1x128xf32>
    %552 = math.tanh %551 : vector<1x128xf32>
    %553 = arith.mulf %546, %552 : vector<1x128xf32>
    %c12 = arith.constant 12 : index
    %c0_157 = arith.constant 0 : index
    %554 = vector.load %arg17[%c12, %c0_157] : memref<16x512xf32, #tpu.memory_space<vmem>>, vector<1x512xf32>
    %555 = vector.extract_strided_slice %529 {offsets = [0, 0], sizes = [1, 64], strides = [1, 1]} : vector<1x128xf32> to vector<1x64xf32>
    %c0_158 = arith.constant 0 : index
    %c0_159 = arith.constant 0 : index
    %556 = vector.load %arg2[%c0_158, %c0_159] : memref<64x512xf32, #tpu.memory_space<vmem>>, vector<64x512xf32>
    %cst_160 = arith.constant dense<0.000000e+00> : vector<1x512xf32>
    %557 = tpu.matmul %555, %556, %cst_160 {dimension_numbers = #tpu.dot_dimension_numbers<[1], [0], [0], [1], [0, 0, 1, 1], [], []>} : vector<1x64xf32>, vector<64x512xf32>, vector<1x512xf32> -> vector<1x512xf32>
    %558 = arith.addf %554, %557 : vector<1x512xf32>
    %559 = vector.extract_strided_slice %558 {offsets = [0, 0], sizes = [1, 384], strides = [1, 1]} : vector<1x512xf32> to vector<1x384xf32>
    %560 = arith.negf %559 : vector<1x384xf32>
    %561 = math.exp %560 : vector<1x384xf32>
    %cst_161 = arith.constant 1.000000e+00 : f32
    %562 = vector.broadcast %cst_161 : f32 to vector<1x384xf32>
    %563 = arith.addf %562, %561 : vector<1x384xf32>
    %564 = arith.divf %562, %563 : vector<1x384xf32>
    %565 = vector.extract_strided_slice %564 {offsets = [0, 0], sizes = [1, 128], strides = [1, 1]} : vector<1x384xf32> to vector<1x128xf32>
    %566 = vector.extract_strided_slice %564 {offsets = [0, 128], sizes = [1, 128], strides = [1, 1]} : vector<1x384xf32> to vector<1x128xf32>
    %567 = vector.extract_strided_slice %564 {offsets = [0, 256], sizes = [1, 128], strides = [1, 1]} : vector<1x384xf32> to vector<1x128xf32>
    %568 = vector.extract_strided_slice %558 {offsets = [0, 384], sizes = [1, 128], strides = [1, 1]} : vector<1x512xf32> to vector<1x128xf32>
    %569 = math.tanh %568 : vector<1x128xf32>
    %570 = arith.mulf %566, %527 : vector<1x128xf32>
    %571 = arith.mulf %565, %569 : vector<1x128xf32>
    %572 = arith.addf %570, %571 : vector<1x128xf32>
    %573 = math.tanh %572 : vector<1x128xf32>
    %574 = arith.mulf %567, %573 : vector<1x128xf32>
    %575 = vector.extract_strided_slice %574 {offsets = [0, 0], sizes = [1, 64], strides = [1, 1]} : vector<1x128xf32> to vector<1x64xf32>
    %c0_162 = arith.constant 0 : index
    %c0_163 = arith.constant 0 : index
    %576 = vector.load %arg4[%c0_162, %c0_163] : memref<64x512xf32, #tpu.memory_space<vmem>>, vector<64x512xf32>
    %cst_164 = arith.constant dense<0.000000e+00> : vector<1x512xf32>
    %577 = tpu.matmul %575, %576, %cst_164 {dimension_numbers = #tpu.dot_dimension_numbers<[1], [0], [0], [1], [0, 0, 1, 1], [], []>} : vector<1x64xf32>, vector<64x512xf32>, vector<1x512xf32> -> vector<1x512xf32>
    %578 = arith.addf %577, %9 : vector<1x512xf32>
    %579 = vector.extract_strided_slice %553 {offsets = [0, 0], sizes = [1, 32], strides = [1, 1]} : vector<1x128xf32> to vector<1x32xf32>
    %c0_165 = arith.constant 0 : index
    %c0_166 = arith.constant 0 : index
    %580 = vector.load %arg5[%c0_165, %c0_166] : memref<32x512xf32, #tpu.memory_space<vmem>>, vector<32x512xf32>
    %cst_167 = arith.constant dense<0.000000e+00> : vector<1x512xf32>
    %581 = tpu.matmul %579, %580, %cst_167 {dimension_numbers = #tpu.dot_dimension_numbers<[1], [0], [0], [1], [0, 0, 1, 1], [], []>} : vector<1x32xf32>, vector<32x512xf32>, vector<1x512xf32> -> vector<1x512xf32>
    %582 = arith.addf %578, %581 : vector<1x512xf32>
    %583 = vector.extract_strided_slice %582 {offsets = [0, 0], sizes = [1, 384], strides = [1, 1]} : vector<1x512xf32> to vector<1x384xf32>
    %584 = arith.negf %583 : vector<1x384xf32>
    %585 = math.exp %584 : vector<1x384xf32>
    %cst_168 = arith.constant 1.000000e+00 : f32
    %586 = vector.broadcast %cst_168 : f32 to vector<1x384xf32>
    %587 = arith.addf %586, %585 : vector<1x384xf32>
    %588 = arith.divf %586, %587 : vector<1x384xf32>
    %589 = vector.extract_strided_slice %588 {offsets = [0, 0], sizes = [1, 128], strides = [1, 1]} : vector<1x384xf32> to vector<1x128xf32>
    %590 = vector.extract_strided_slice %588 {offsets = [0, 128], sizes = [1, 128], strides = [1, 1]} : vector<1x384xf32> to vector<1x128xf32>
    %591 = vector.extract_strided_slice %588 {offsets = [0, 256], sizes = [1, 128], strides = [1, 1]} : vector<1x384xf32> to vector<1x128xf32>
    %592 = vector.extract_strided_slice %582 {offsets = [0, 384], sizes = [1, 128], strides = [1, 1]} : vector<1x512xf32> to vector<1x128xf32>
    %593 = math.tanh %592 : vector<1x128xf32>
    %594 = arith.mulf %590, %551 : vector<1x128xf32>
    %595 = arith.mulf %589, %593 : vector<1x128xf32>
    %596 = arith.addf %594, %595 : vector<1x128xf32>
    %597 = math.tanh %596 : vector<1x128xf32>
    %598 = arith.mulf %591, %597 : vector<1x128xf32>
    %c13 = arith.constant 13 : index
    %c0_169 = arith.constant 0 : index
    %599 = vector.load %arg17[%c13, %c0_169] : memref<16x512xf32, #tpu.memory_space<vmem>>, vector<1x512xf32>
    %600 = vector.extract_strided_slice %574 {offsets = [0, 0], sizes = [1, 64], strides = [1, 1]} : vector<1x128xf32> to vector<1x64xf32>
    %c0_170 = arith.constant 0 : index
    %c0_171 = arith.constant 0 : index
    %601 = vector.load %arg2[%c0_170, %c0_171] : memref<64x512xf32, #tpu.memory_space<vmem>>, vector<64x512xf32>
    %cst_172 = arith.constant dense<0.000000e+00> : vector<1x512xf32>
    %602 = tpu.matmul %600, %601, %cst_172 {dimension_numbers = #tpu.dot_dimension_numbers<[1], [0], [0], [1], [0, 0, 1, 1], [], []>} : vector<1x64xf32>, vector<64x512xf32>, vector<1x512xf32> -> vector<1x512xf32>
    %603 = arith.addf %599, %602 : vector<1x512xf32>
    %604 = vector.extract_strided_slice %603 {offsets = [0, 0], sizes = [1, 384], strides = [1, 1]} : vector<1x512xf32> to vector<1x384xf32>
    %605 = arith.negf %604 : vector<1x384xf32>
    %606 = math.exp %605 : vector<1x384xf32>
    %cst_173 = arith.constant 1.000000e+00 : f32
    %607 = vector.broadcast %cst_173 : f32 to vector<1x384xf32>
    %608 = arith.addf %607, %606 : vector<1x384xf32>
    %609 = arith.divf %607, %608 : vector<1x384xf32>
    %610 = vector.extract_strided_slice %609 {offsets = [0, 0], sizes = [1, 128], strides = [1, 1]} : vector<1x384xf32> to vector<1x128xf32>
    %611 = vector.extract_strided_slice %609 {offsets = [0, 128], sizes = [1, 128], strides = [1, 1]} : vector<1x384xf32> to vector<1x128xf32>
    %612 = vector.extract_strided_slice %609 {offsets = [0, 256], sizes = [1, 128], strides = [1, 1]} : vector<1x384xf32> to vector<1x128xf32>
    %613 = vector.extract_strided_slice %603 {offsets = [0, 384], sizes = [1, 128], strides = [1, 1]} : vector<1x512xf32> to vector<1x128xf32>
    %614 = math.tanh %613 : vector<1x128xf32>
    %615 = arith.mulf %611, %572 : vector<1x128xf32>
    %616 = arith.mulf %610, %614 : vector<1x128xf32>
    %617 = arith.addf %615, %616 : vector<1x128xf32>
    %618 = math.tanh %617 : vector<1x128xf32>
    %619 = arith.mulf %612, %618 : vector<1x128xf32>
    %620 = vector.extract_strided_slice %619 {offsets = [0, 0], sizes = [1, 64], strides = [1, 1]} : vector<1x128xf32> to vector<1x64xf32>
    %c0_174 = arith.constant 0 : index
    %c0_175 = arith.constant 0 : index
    %621 = vector.load %arg4[%c0_174, %c0_175] : memref<64x512xf32, #tpu.memory_space<vmem>>, vector<64x512xf32>
    %cst_176 = arith.constant dense<0.000000e+00> : vector<1x512xf32>
    %622 = tpu.matmul %620, %621, %cst_176 {dimension_numbers = #tpu.dot_dimension_numbers<[1], [0], [0], [1], [0, 0, 1, 1], [], []>} : vector<1x64xf32>, vector<64x512xf32>, vector<1x512xf32> -> vector<1x512xf32>
    %623 = arith.addf %622, %9 : vector<1x512xf32>
    %624 = vector.extract_strided_slice %598 {offsets = [0, 0], sizes = [1, 32], strides = [1, 1]} : vector<1x128xf32> to vector<1x32xf32>
    %c0_177 = arith.constant 0 : index
    %c0_178 = arith.constant 0 : index
    %625 = vector.load %arg5[%c0_177, %c0_178] : memref<32x512xf32, #tpu.memory_space<vmem>>, vector<32x512xf32>
    %cst_179 = arith.constant dense<0.000000e+00> : vector<1x512xf32>
    %626 = tpu.matmul %624, %625, %cst_179 {dimension_numbers = #tpu.dot_dimension_numbers<[1], [0], [0], [1], [0, 0, 1, 1], [], []>} : vector<1x32xf32>, vector<32x512xf32>, vector<1x512xf32> -> vector<1x512xf32>
    %627 = arith.addf %623, %626 : vector<1x512xf32>
    %628 = vector.extract_strided_slice %627 {offsets = [0, 0], sizes = [1, 384], strides = [1, 1]} : vector<1x512xf32> to vector<1x384xf32>
    %629 = arith.negf %628 : vector<1x384xf32>
    %630 = math.exp %629 : vector<1x384xf32>
    %cst_180 = arith.constant 1.000000e+00 : f32
    %631 = vector.broadcast %cst_180 : f32 to vector<1x384xf32>
    %632 = arith.addf %631, %630 : vector<1x384xf32>
    %633 = arith.divf %631, %632 : vector<1x384xf32>
    %634 = vector.extract_strided_slice %633 {offsets = [0, 0], sizes = [1, 128], strides = [1, 1]} : vector<1x384xf32> to vector<1x128xf32>
    %635 = vector.extract_strided_slice %633 {offsets = [0, 128], sizes = [1, 128], strides = [1, 1]} : vector<1x384xf32> to vector<1x128xf32>
    %636 = vector.extract_strided_slice %633 {offsets = [0, 256], sizes = [1, 128], strides = [1, 1]} : vector<1x384xf32> to vector<1x128xf32>
    %637 = vector.extract_strided_slice %627 {offsets = [0, 384], sizes = [1, 128], strides = [1, 1]} : vector<1x512xf32> to vector<1x128xf32>
    %638 = math.tanh %637 : vector<1x128xf32>
    %639 = arith.mulf %635, %596 : vector<1x128xf32>
    %640 = arith.mulf %634, %638 : vector<1x128xf32>
    %641 = arith.addf %639, %640 : vector<1x128xf32>
    %642 = math.tanh %641 : vector<1x128xf32>
    %643 = arith.mulf %636, %642 : vector<1x128xf32>
    %c14 = arith.constant 14 : index
    %c0_181 = arith.constant 0 : index
    %644 = vector.load %arg17[%c14, %c0_181] : memref<16x512xf32, #tpu.memory_space<vmem>>, vector<1x512xf32>
    %645 = vector.extract_strided_slice %619 {offsets = [0, 0], sizes = [1, 64], strides = [1, 1]} : vector<1x128xf32> to vector<1x64xf32>
    %c0_182 = arith.constant 0 : index
    %c0_183 = arith.constant 0 : index
    %646 = vector.load %arg2[%c0_182, %c0_183] : memref<64x512xf32, #tpu.memory_space<vmem>>, vector<64x512xf32>
    %cst_184 = arith.constant dense<0.000000e+00> : vector<1x512xf32>
    %647 = tpu.matmul %645, %646, %cst_184 {dimension_numbers = #tpu.dot_dimension_numbers<[1], [0], [0], [1], [0, 0, 1, 1], [], []>} : vector<1x64xf32>, vector<64x512xf32>, vector<1x512xf32> -> vector<1x512xf32>
    %648 = arith.addf %644, %647 : vector<1x512xf32>
    %649 = vector.extract_strided_slice %648 {offsets = [0, 0], sizes = [1, 384], strides = [1, 1]} : vector<1x512xf32> to vector<1x384xf32>
    %650 = arith.negf %649 : vector<1x384xf32>
    %651 = math.exp %650 : vector<1x384xf32>
    %cst_185 = arith.constant 1.000000e+00 : f32
    %652 = vector.broadcast %cst_185 : f32 to vector<1x384xf32>
    %653 = arith.addf %652, %651 : vector<1x384xf32>
    %654 = arith.divf %652, %653 : vector<1x384xf32>
    %655 = vector.extract_strided_slice %654 {offsets = [0, 0], sizes = [1, 128], strides = [1, 1]} : vector<1x384xf32> to vector<1x128xf32>
    %656 = vector.extract_strided_slice %654 {offsets = [0, 128], sizes = [1, 128], strides = [1, 1]} : vector<1x384xf32> to vector<1x128xf32>
    %657 = vector.extract_strided_slice %654 {offsets = [0, 256], sizes = [1, 128], strides = [1, 1]} : vector<1x384xf32> to vector<1x128xf32>
    %658 = vector.extract_strided_slice %648 {offsets = [0, 384], sizes = [1, 128], strides = [1, 1]} : vector<1x512xf32> to vector<1x128xf32>
    %659 = math.tanh %658 : vector<1x128xf32>
    %660 = arith.mulf %656, %617 : vector<1x128xf32>
    %661 = arith.mulf %655, %659 : vector<1x128xf32>
    %662 = arith.addf %660, %661 : vector<1x128xf32>
    %663 = math.tanh %662 : vector<1x128xf32>
    %664 = arith.mulf %657, %663 : vector<1x128xf32>
    %665 = vector.extract_strided_slice %664 {offsets = [0, 0], sizes = [1, 64], strides = [1, 1]} : vector<1x128xf32> to vector<1x64xf32>
    %c0_186 = arith.constant 0 : index
    %c0_187 = arith.constant 0 : index
    %666 = vector.load %arg4[%c0_186, %c0_187] : memref<64x512xf32, #tpu.memory_space<vmem>>, vector<64x512xf32>
    %cst_188 = arith.constant dense<0.000000e+00> : vector<1x512xf32>
    %667 = tpu.matmul %665, %666, %cst_188 {dimension_numbers = #tpu.dot_dimension_numbers<[1], [0], [0], [1], [0, 0, 1, 1], [], []>} : vector<1x64xf32>, vector<64x512xf32>, vector<1x512xf32> -> vector<1x512xf32>
    %668 = arith.addf %667, %9 : vector<1x512xf32>
    %669 = vector.extract_strided_slice %643 {offsets = [0, 0], sizes = [1, 32], strides = [1, 1]} : vector<1x128xf32> to vector<1x32xf32>
    %c0_189 = arith.constant 0 : index
    %c0_190 = arith.constant 0 : index
    %670 = vector.load %arg5[%c0_189, %c0_190] : memref<32x512xf32, #tpu.memory_space<vmem>>, vector<32x512xf32>
    %cst_191 = arith.constant dense<0.000000e+00> : vector<1x512xf32>
    %671 = tpu.matmul %669, %670, %cst_191 {dimension_numbers = #tpu.dot_dimension_numbers<[1], [0], [0], [1], [0, 0, 1, 1], [], []>} : vector<1x32xf32>, vector<32x512xf32>, vector<1x512xf32> -> vector<1x512xf32>
    %672 = arith.addf %668, %671 : vector<1x512xf32>
    %673 = vector.extract_strided_slice %672 {offsets = [0, 0], sizes = [1, 384], strides = [1, 1]} : vector<1x512xf32> to vector<1x384xf32>
    %674 = arith.negf %673 : vector<1x384xf32>
    %675 = math.exp %674 : vector<1x384xf32>
    %cst_192 = arith.constant 1.000000e+00 : f32
    %676 = vector.broadcast %cst_192 : f32 to vector<1x384xf32>
    %677 = arith.addf %676, %675 : vector<1x384xf32>
    %678 = arith.divf %676, %677 : vector<1x384xf32>
    %679 = vector.extract_strided_slice %678 {offsets = [0, 0], sizes = [1, 128], strides = [1, 1]} : vector<1x384xf32> to vector<1x128xf32>
    %680 = vector.extract_strided_slice %678 {offsets = [0, 128], sizes = [1, 128], strides = [1, 1]} : vector<1x384xf32> to vector<1x128xf32>
    %681 = vector.extract_strided_slice %678 {offsets = [0, 256], sizes = [1, 128], strides = [1, 1]} : vector<1x384xf32> to vector<1x128xf32>
    %682 = vector.extract_strided_slice %672 {offsets = [0, 384], sizes = [1, 128], strides = [1, 1]} : vector<1x512xf32> to vector<1x128xf32>
    %683 = math.tanh %682 : vector<1x128xf32>
    %684 = arith.mulf %680, %641 : vector<1x128xf32>
    %685 = arith.mulf %679, %683 : vector<1x128xf32>
    %686 = arith.addf %684, %685 : vector<1x128xf32>
    %687 = math.tanh %686 : vector<1x128xf32>
    %688 = arith.mulf %681, %687 : vector<1x128xf32>
    %c15 = arith.constant 15 : index
    %c0_193 = arith.constant 0 : index
    %689 = vector.load %arg17[%c15, %c0_193] : memref<16x512xf32, #tpu.memory_space<vmem>>, vector<1x512xf32>
    %690 = vector.extract_strided_slice %664 {offsets = [0, 0], sizes = [1, 64], strides = [1, 1]} : vector<1x128xf32> to vector<1x64xf32>
    %c0_194 = arith.constant 0 : index
    %c0_195 = arith.constant 0 : index
    %691 = vector.load %arg2[%c0_194, %c0_195] : memref<64x512xf32, #tpu.memory_space<vmem>>, vector<64x512xf32>
    %cst_196 = arith.constant dense<0.000000e+00> : vector<1x512xf32>
    %692 = tpu.matmul %690, %691, %cst_196 {dimension_numbers = #tpu.dot_dimension_numbers<[1], [0], [0], [1], [0, 0, 1, 1], [], []>} : vector<1x64xf32>, vector<64x512xf32>, vector<1x512xf32> -> vector<1x512xf32>
    %693 = arith.addf %689, %692 : vector<1x512xf32>
    %694 = vector.extract_strided_slice %693 {offsets = [0, 0], sizes = [1, 384], strides = [1, 1]} : vector<1x512xf32> to vector<1x384xf32>
    %695 = arith.negf %694 : vector<1x384xf32>
    %696 = math.exp %695 : vector<1x384xf32>
    %cst_197 = arith.constant 1.000000e+00 : f32
    %697 = vector.broadcast %cst_197 : f32 to vector<1x384xf32>
    %698 = arith.addf %697, %696 : vector<1x384xf32>
    %699 = arith.divf %697, %698 : vector<1x384xf32>
    %700 = vector.extract_strided_slice %699 {offsets = [0, 0], sizes = [1, 128], strides = [1, 1]} : vector<1x384xf32> to vector<1x128xf32>
    %701 = vector.extract_strided_slice %699 {offsets = [0, 128], sizes = [1, 128], strides = [1, 1]} : vector<1x384xf32> to vector<1x128xf32>
    %702 = vector.extract_strided_slice %699 {offsets = [0, 256], sizes = [1, 128], strides = [1, 1]} : vector<1x384xf32> to vector<1x128xf32>
    %703 = vector.extract_strided_slice %693 {offsets = [0, 384], sizes = [1, 128], strides = [1, 1]} : vector<1x512xf32> to vector<1x128xf32>
    %704 = math.tanh %703 : vector<1x128xf32>
    %705 = arith.mulf %701, %662 : vector<1x128xf32>
    %706 = arith.mulf %700, %704 : vector<1x128xf32>
    %707 = arith.addf %705, %706 : vector<1x128xf32>
    %708 = math.tanh %707 : vector<1x128xf32>
    %709 = arith.mulf %702, %708 : vector<1x128xf32>
    %710 = vector.extract_strided_slice %709 {offsets = [0, 0], sizes = [1, 64], strides = [1, 1]} : vector<1x128xf32> to vector<1x64xf32>
    %c0_198 = arith.constant 0 : index
    %c0_199 = arith.constant 0 : index
    %711 = vector.load %arg4[%c0_198, %c0_199] : memref<64x512xf32, #tpu.memory_space<vmem>>, vector<64x512xf32>
    %cst_200 = arith.constant dense<0.000000e+00> : vector<1x512xf32>
    %712 = tpu.matmul %710, %711, %cst_200 {dimension_numbers = #tpu.dot_dimension_numbers<[1], [0], [0], [1], [0, 0, 1, 1], [], []>} : vector<1x64xf32>, vector<64x512xf32>, vector<1x512xf32> -> vector<1x512xf32>
    %713 = arith.addf %712, %9 : vector<1x512xf32>
    %714 = vector.extract_strided_slice %688 {offsets = [0, 0], sizes = [1, 32], strides = [1, 1]} : vector<1x128xf32> to vector<1x32xf32>
    %c0_201 = arith.constant 0 : index
    %c0_202 = arith.constant 0 : index
    %715 = vector.load %arg5[%c0_201, %c0_202] : memref<32x512xf32, #tpu.memory_space<vmem>>, vector<32x512xf32>
    %cst_203 = arith.constant dense<0.000000e+00> : vector<1x512xf32>
    %716 = tpu.matmul %714, %715, %cst_203 {dimension_numbers = #tpu.dot_dimension_numbers<[1], [0], [0], [1], [0, 0, 1, 1], [], []>} : vector<1x32xf32>, vector<32x512xf32>, vector<1x512xf32> -> vector<1x512xf32>
    %717 = arith.addf %713, %716 : vector<1x512xf32>
    %718 = vector.extract_strided_slice %717 {offsets = [0, 0], sizes = [1, 384], strides = [1, 1]} : vector<1x512xf32> to vector<1x384xf32>
    %719 = arith.negf %718 : vector<1x384xf32>
    %720 = math.exp %719 : vector<1x384xf32>
    %cst_204 = arith.constant 1.000000e+00 : f32
    %721 = vector.broadcast %cst_204 : f32 to vector<1x384xf32>
    %722 = arith.addf %721, %720 : vector<1x384xf32>
    %723 = arith.divf %721, %722 : vector<1x384xf32>
    %724 = vector.extract_strided_slice %723 {offsets = [0, 0], sizes = [1, 128], strides = [1, 1]} : vector<1x384xf32> to vector<1x128xf32>
    %725 = vector.extract_strided_slice %723 {offsets = [0, 128], sizes = [1, 128], strides = [1, 1]} : vector<1x384xf32> to vector<1x128xf32>
    %726 = vector.extract_strided_slice %723 {offsets = [0, 256], sizes = [1, 128], strides = [1, 1]} : vector<1x384xf32> to vector<1x128xf32>
    %727 = vector.extract_strided_slice %717 {offsets = [0, 384], sizes = [1, 128], strides = [1, 1]} : vector<1x512xf32> to vector<1x128xf32>
    %728 = math.tanh %727 : vector<1x128xf32>
    %729 = arith.mulf %725, %686 : vector<1x128xf32>
    %730 = arith.mulf %724, %728 : vector<1x128xf32>
    %731 = arith.addf %729, %730 : vector<1x128xf32>
    %732 = math.tanh %731 : vector<1x128xf32>
    %733 = arith.mulf %726, %732 : vector<1x128xf32>
    %734 = vector.extract_strided_slice %733 {offsets = [0, 0], sizes = [1, 32], strides = [1, 1]} : vector<1x128xf32> to vector<1x32xf32>
    %c0_205 = arith.constant 0 : index
    %c0_206 = arith.constant 0 : index
    %735 = vector.load %arg16[%c0_205, %c0_206] : memref<1x32xf32, #tpu.memory_space<vmem>>, vector<1x32xf32>
    tpu.vector_store %arg16[%c0_205, %c0_206], %734 {strides = array<i32>} : memref<1x32xf32, #tpu.memory_space<vmem>>, vector<1x32xf32>,
    %736 = vector.extract_strided_slice %733 {offsets = [0, 0], sizes = [1, 32], strides = [1, 1]} : vector<1x128xf32> to vector<1x32xf32>
    %c0_207 = arith.constant 0 : index
    %c0_208 = arith.constant 0 : index
    %737 = vector.load %arg7[%c0_207, %c0_208] : memref<32x512xf32, #tpu.memory_space<vmem>>, vector<32x512xf32>
    %cst_209 = arith.constant dense<0.000000e+00> : vector<1x512xf32>
    %738 = tpu.matmul %736, %737, %cst_209 {dimension_numbers = #tpu.dot_dimension_numbers<[1], [0], [0], [1], [0, 0, 1, 1], [], []>} : vector<1x32xf32>, vector<32x512xf32>, vector<1x512xf32> -> vector<1x512xf32>
    %c0_210 = arith.constant 0 : index
    %c0_211 = arith.constant 0 : index
    %739 = vector.load %arg9[%c0_210, %c0_211] : memref<1x512xf32, #tpu.memory_space<vmem>>, vector<1x512xf32>
    %740 = arith.addf %738, %739 : vector<1x512xf32>
    %c0_212 = arith.constant 0 : index
    %c0_213 = arith.constant 0 : index
    %741 = vector.load %arg12[%c0_212, %c0_213] : memref<1x512xf32, #tpu.memory_space<vmem>>, vector<1x512xf32>
    %cst_214 = arith.constant 0.000000e+00 : f32
    %742 = vector.broadcast %cst_214 : f32 to vector<1x128xf32>
    %cst_215 = arith.constant 0.000000e+00 : f32
    %743 = vector.broadcast %cst_215 : f32 to vector<1x128xf32>
    %cst_216 = arith.constant 0.000000e+00 : f32
    %744 = vector.broadcast %cst_216 : f32 to vector<1x128xf32>
    %cst_217 = arith.constant 0.000000e+00 : f32
    %745 = vector.broadcast %cst_217 : f32 to vector<1x128xf32>
    %746 = vector.extract_strided_slice %742 {offsets = [0, 0], sizes = [1, 32], strides = [1, 1]} : vector<1x128xf32> to vector<1x32xf32>
    %c0_218 = arith.constant 0 : index
    %c0_219 = arith.constant 0 : index
    %747 = vector.load %arg8[%c0_218, %c0_219] : memref<32x512xf32, #tpu.memory_space<vmem>>, vector<32x512xf32>
    %cst_220 = arith.constant dense<0.000000e+00> : vector<1x512xf32>
    %748 = tpu.matmul %746, %747, %cst_220 {dimension_numbers = #tpu.dot_dimension_numbers<[1], [0], [0], [1], [0, 0, 1, 1], [], []>} : vector<1x32xf32>, vector<32x512xf32>, vector<1x512xf32> -> vector<1x512xf32>
    %749 = arith.addf %740, %748 : vector<1x512xf32>
    %750 = vector.extract_strided_slice %749 {offsets = [0, 0], sizes = [1, 384], strides = [1, 1]} : vector<1x512xf32> to vector<1x384xf32>
    %751 = arith.negf %750 : vector<1x384xf32>
    %752 = math.exp %751 : vector<1x384xf32>
    %cst_221 = arith.constant 1.000000e+00 : f32
    %753 = vector.broadcast %cst_221 : f32 to vector<1x384xf32>
    %754 = arith.addf %753, %752 : vector<1x384xf32>
    %755 = arith.divf %753, %754 : vector<1x384xf32>
    %756 = vector.extract_strided_slice %755 {offsets = [0, 0], sizes = [1, 128], strides = [1, 1]} : vector<1x384xf32> to vector<1x128xf32>
    %757 = vector.extract_strided_slice %755 {offsets = [0, 128], sizes = [1, 128], strides = [1, 1]} : vector<1x384xf32> to vector<1x128xf32>
    %758 = vector.extract_strided_slice %755 {offsets = [0, 256], sizes = [1, 128], strides = [1, 1]} : vector<1x384xf32> to vector<1x128xf32>
    %759 = vector.extract_strided_slice %749 {offsets = [0, 384], sizes = [1, 128], strides = [1, 1]} : vector<1x512xf32> to vector<1x128xf32>
    %760 = math.tanh %759 : vector<1x128xf32>
    %761 = arith.mulf %757, %743 : vector<1x128xf32>
    %762 = arith.mulf %756, %760 : vector<1x128xf32>
    %763 = arith.addf %761, %762 : vector<1x128xf32>
    %764 = math.tanh %763 : vector<1x128xf32>
    %765 = arith.mulf %758, %764 : vector<1x128xf32>
    %766 = vector.extract_strided_slice %765 {offsets = [0, 0], sizes = [1, 32], strides = [1, 1]} : vector<1x128xf32> to vector<1x32xf32>
    %c0_222 = arith.constant 0 : index
    %c0_223 = arith.constant 0 : index
    %767 = vector.load %arg10[%c0_222, %c0_223] : memref<32x512xf32, #tpu.memory_space<vmem>>, vector<32x512xf32>
    %cst_224 = arith.constant dense<0.000000e+00> : vector<1x512xf32>
    %768 = tpu.matmul %766, %767, %cst_224 {dimension_numbers = #tpu.dot_dimension_numbers<[1], [0], [0], [1], [0, 0, 1, 1], [], []>} : vector<1x32xf32>, vector<32x512xf32>, vector<1x512xf32> -> vector<1x512xf32>
    %769 = arith.addf %768, %741 : vector<1x512xf32>
    %770 = vector.extract_strided_slice %744 {offsets = [0, 0], sizes = [1, 64], strides = [1, 1]} : vector<1x128xf32> to vector<1x64xf32>
    %c0_225 = arith.constant 0 : index
    %c0_226 = arith.constant 0 : index
    %771 = vector.load %arg11[%c0_225, %c0_226] : memref<64x512xf32, #tpu.memory_space<vmem>>, vector<64x512xf32>
    %cst_227 = arith.constant dense<0.000000e+00> : vector<1x512xf32>
    %772 = tpu.matmul %770, %771, %cst_227 {dimension_numbers = #tpu.dot_dimension_numbers<[1], [0], [0], [1], [0, 0, 1, 1], [], []>} : vector<1x64xf32>, vector<64x512xf32>, vector<1x512xf32> -> vector<1x512xf32>
    %773 = arith.addf %769, %772 : vector<1x512xf32>
    %774 = vector.extract_strided_slice %773 {offsets = [0, 0], sizes = [1, 384], strides = [1, 1]} : vector<1x512xf32> to vector<1x384xf32>
    %775 = arith.negf %774 : vector<1x384xf32>
    %776 = math.exp %775 : vector<1x384xf32>
    %cst_228 = arith.constant 1.000000e+00 : f32
    %777 = vector.broadcast %cst_228 : f32 to vector<1x384xf32>
    %778 = arith.addf %777, %776 : vector<1x384xf32>
    %779 = arith.divf %777, %778 : vector<1x384xf32>
    %780 = vector.extract_strided_slice %779 {offsets = [0, 0], sizes = [1, 128], strides = [1, 1]} : vector<1x384xf32> to vector<1x128xf32>
    %781 = vector.extract_strided_slice %779 {offsets = [0, 128], sizes = [1, 128], strides = [1, 1]} : vector<1x384xf32> to vector<1x128xf32>
    %782 = vector.extract_strided_slice %779 {offsets = [0, 256], sizes = [1, 128], strides = [1, 1]} : vector<1x384xf32> to vector<1x128xf32>
    %783 = vector.extract_strided_slice %773 {offsets = [0, 384], sizes = [1, 128], strides = [1, 1]} : vector<1x512xf32> to vector<1x128xf32>
    %784 = math.tanh %783 : vector<1x128xf32>
    %785 = arith.mulf %781, %745 : vector<1x128xf32>
    %786 = arith.mulf %780, %784 : vector<1x128xf32>
    %787 = arith.addf %785, %786 : vector<1x128xf32>
    %788 = math.tanh %787 : vector<1x128xf32>
    %789 = arith.mulf %782, %788 : vector<1x128xf32>
    %c0_229 = arith.constant 0 : index
    %c0_230 = arith.constant 0 : index
    %790 = vector.load %arg18[%c0_229, %c0_230] : memref<16x128xf32, #tpu.memory_space<vmem>>, vector<1x128xf32>
    tpu.vector_store %arg18[%c0_229, %c0_230], %789 {strides = array<i32>} : memref<16x128xf32, #tpu.memory_space<vmem>>, vector<1x128xf32>,
    %791 = vector.extract_strided_slice %765 {offsets = [0, 0], sizes = [1, 32], strides = [1, 1]} : vector<1x128xf32> to vector<1x32xf32>
    %c0_231 = arith.constant 0 : index
    %c0_232 = arith.constant 0 : index
    %792 = vector.load %arg8[%c0_231, %c0_232] : memref<32x512xf32, #tpu.memory_space<vmem>>, vector<32x512xf32>
    %cst_233 = arith.constant dense<0.000000e+00> : vector<1x512xf32>
    %793 = tpu.matmul %791, %792, %cst_233 {dimension_numbers = #tpu.dot_dimension_numbers<[1], [0], [0], [1], [0, 0, 1, 1], [], []>} : vector<1x32xf32>, vector<32x512xf32>, vector<1x512xf32> -> vector<1x512xf32>
    %794 = arith.addf %740, %793 : vector<1x512xf32>
    %795 = vector.extract_strided_slice %794 {offsets = [0, 0], sizes = [1, 384], strides = [1, 1]} : vector<1x512xf32> to vector<1x384xf32>
    %796 = arith.negf %795 : vector<1x384xf32>
    %797 = math.exp %796 : vector<1x384xf32>
    %cst_234 = arith.constant 1.000000e+00 : f32
    %798 = vector.broadcast %cst_234 : f32 to vector<1x384xf32>
    %799 = arith.addf %798, %797 : vector<1x384xf32>
    %800 = arith.divf %798, %799 : vector<1x384xf32>
    %801 = vector.extract_strided_slice %800 {offsets = [0, 0], sizes = [1, 128], strides = [1, 1]} : vector<1x384xf32> to vector<1x128xf32>
    %802 = vector.extract_strided_slice %800 {offsets = [0, 128], sizes = [1, 128], strides = [1, 1]} : vector<1x384xf32> to vector<1x128xf32>
    %803 = vector.extract_strided_slice %800 {offsets = [0, 256], sizes = [1, 128], strides = [1, 1]} : vector<1x384xf32> to vector<1x128xf32>
    %804 = vector.extract_strided_slice %794 {offsets = [0, 384], sizes = [1, 128], strides = [1, 1]} : vector<1x512xf32> to vector<1x128xf32>
    %805 = math.tanh %804 : vector<1x128xf32>
    %806 = arith.mulf %802, %763 : vector<1x128xf32>
    %807 = arith.mulf %801, %805 : vector<1x128xf32>
    %808 = arith.addf %806, %807 : vector<1x128xf32>
    %809 = math.tanh %808 : vector<1x128xf32>
    %810 = arith.mulf %803, %809 : vector<1x128xf32>
    %811 = vector.extract_strided_slice %810 {offsets = [0, 0], sizes = [1, 32], strides = [1, 1]} : vector<1x128xf32> to vector<1x32xf32>
    %c0_235 = arith.constant 0 : index
    %c0_236 = arith.constant 0 : index
    %812 = vector.load %arg10[%c0_235, %c0_236] : memref<32x512xf32, #tpu.memory_space<vmem>>, vector<32x512xf32>
    %cst_237 = arith.constant dense<0.000000e+00> : vector<1x512xf32>
    %813 = tpu.matmul %811, %812, %cst_237 {dimension_numbers = #tpu.dot_dimension_numbers<[1], [0], [0], [1], [0, 0, 1, 1], [], []>} : vector<1x32xf32>, vector<32x512xf32>, vector<1x512xf32> -> vector<1x512xf32>
    %814 = arith.addf %813, %741 : vector<1x512xf32>
    %815 = vector.extract_strided_slice %789 {offsets = [0, 0], sizes = [1, 64], strides = [1, 1]} : vector<1x128xf32> to vector<1x64xf32>
    %c0_238 = arith.constant 0 : index
    %c0_239 = arith.constant 0 : index
    %816 = vector.load %arg11[%c0_238, %c0_239] : memref<64x512xf32, #tpu.memory_space<vmem>>, vector<64x512xf32>
    %cst_240 = arith.constant dense<0.000000e+00> : vector<1x512xf32>
    %817 = tpu.matmul %815, %816, %cst_240 {dimension_numbers = #tpu.dot_dimension_numbers<[1], [0], [0], [1], [0, 0, 1, 1], [], []>} : vector<1x64xf32>, vector<64x512xf32>, vector<1x512xf32> -> vector<1x512xf32>
    %818 = arith.addf %814, %817 : vector<1x512xf32>
    %819 = vector.extract_strided_slice %818 {offsets = [0, 0], sizes = [1, 384], strides = [1, 1]} : vector<1x512xf32> to vector<1x384xf32>
    %820 = arith.negf %819 : vector<1x384xf32>
    %821 = math.exp %820 : vector<1x384xf32>
    %cst_241 = arith.constant 1.000000e+00 : f32
    %822 = vector.broadcast %cst_241 : f32 to vector<1x384xf32>
    %823 = arith.addf %822, %821 : vector<1x384xf32>
    %824 = arith.divf %822, %823 : vector<1x384xf32>
    %825 = vector.extract_strided_slice %824 {offsets = [0, 0], sizes = [1, 128], strides = [1, 1]} : vector<1x384xf32> to vector<1x128xf32>
    %826 = vector.extract_strided_slice %824 {offsets = [0, 128], sizes = [1, 128], strides = [1, 1]} : vector<1x384xf32> to vector<1x128xf32>
    %827 = vector.extract_strided_slice %824 {offsets = [0, 256], sizes = [1, 128], strides = [1, 1]} : vector<1x384xf32> to vector<1x128xf32>
    %828 = vector.extract_strided_slice %818 {offsets = [0, 384], sizes = [1, 128], strides = [1, 1]} : vector<1x512xf32> to vector<1x128xf32>
    %829 = math.tanh %828 : vector<1x128xf32>
    %830 = arith.mulf %826, %787 : vector<1x128xf32>
    %831 = arith.mulf %825, %829 : vector<1x128xf32>
    %832 = arith.addf %830, %831 : vector<1x128xf32>
    %833 = math.tanh %832 : vector<1x128xf32>
    %834 = arith.mulf %827, %833 : vector<1x128xf32>
    %c1_242 = arith.constant 1 : index
    %c0_243 = arith.constant 0 : index
    %835 = vector.load %arg18[%c1_242, %c0_243] : memref<16x128xf32, #tpu.memory_space<vmem>>, vector<1x128xf32>
    tpu.vector_store %arg18[%c1_242, %c0_243], %834 {strides = array<i32>} : memref<16x128xf32, #tpu.memory_space<vmem>>, vector<1x128xf32>,
    %836 = vector.extract_strided_slice %810 {offsets = [0, 0], sizes = [1, 32], strides = [1, 1]} : vector<1x128xf32> to vector<1x32xf32>
    %c0_244 = arith.constant 0 : index
    %c0_245 = arith.constant 0 : index
    %837 = vector.load %arg8[%c0_244, %c0_245] : memref<32x512xf32, #tpu.memory_space<vmem>>, vector<32x512xf32>
    %cst_246 = arith.constant dense<0.000000e+00> : vector<1x512xf32>
    %838 = tpu.matmul %836, %837, %cst_246 {dimension_numbers = #tpu.dot_dimension_numbers<[1], [0], [0], [1], [0, 0, 1, 1], [], []>} : vector<1x32xf32>, vector<32x512xf32>, vector<1x512xf32> -> vector<1x512xf32>
    %839 = arith.addf %740, %838 : vector<1x512xf32>
    %840 = vector.extract_strided_slice %839 {offsets = [0, 0], sizes = [1, 384], strides = [1, 1]} : vector<1x512xf32> to vector<1x384xf32>
    %841 = arith.negf %840 : vector<1x384xf32>
    %842 = math.exp %841 : vector<1x384xf32>
    %cst_247 = arith.constant 1.000000e+00 : f32
    %843 = vector.broadcast %cst_247 : f32 to vector<1x384xf32>
    %844 = arith.addf %843, %842 : vector<1x384xf32>
    %845 = arith.divf %843, %844 : vector<1x384xf32>
    %846 = vector.extract_strided_slice %845 {offsets = [0, 0], sizes = [1, 128], strides = [1, 1]} : vector<1x384xf32> to vector<1x128xf32>
    %847 = vector.extract_strided_slice %845 {offsets = [0, 128], sizes = [1, 128], strides = [1, 1]} : vector<1x384xf32> to vector<1x128xf32>
    %848 = vector.extract_strided_slice %845 {offsets = [0, 256], sizes = [1, 128], strides = [1, 1]} : vector<1x384xf32> to vector<1x128xf32>
    %849 = vector.extract_strided_slice %839 {offsets = [0, 384], sizes = [1, 128], strides = [1, 1]} : vector<1x512xf32> to vector<1x128xf32>
    %850 = math.tanh %849 : vector<1x128xf32>
    %851 = arith.mulf %847, %808 : vector<1x128xf32>
    %852 = arith.mulf %846, %850 : vector<1x128xf32>
    %853 = arith.addf %851, %852 : vector<1x128xf32>
    %854 = math.tanh %853 : vector<1x128xf32>
    %855 = arith.mulf %848, %854 : vector<1x128xf32>
    %856 = vector.extract_strided_slice %855 {offsets = [0, 0], sizes = [1, 32], strides = [1, 1]} : vector<1x128xf32> to vector<1x32xf32>
    %c0_248 = arith.constant 0 : index
    %c0_249 = arith.constant 0 : index
    %857 = vector.load %arg10[%c0_248, %c0_249] : memref<32x512xf32, #tpu.memory_space<vmem>>, vector<32x512xf32>
    %cst_250 = arith.constant dense<0.000000e+00> : vector<1x512xf32>
    %858 = tpu.matmul %856, %857, %cst_250 {dimension_numbers = #tpu.dot_dimension_numbers<[1], [0], [0], [1], [0, 0, 1, 1], [], []>} : vector<1x32xf32>, vector<32x512xf32>, vector<1x512xf32> -> vector<1x512xf32>
    %859 = arith.addf %858, %741 : vector<1x512xf32>
    %860 = vector.extract_strided_slice %834 {offsets = [0, 0], sizes = [1, 64], strides = [1, 1]} : vector<1x128xf32> to vector<1x64xf32>
    %c0_251 = arith.constant 0 : index
    %c0_252 = arith.constant 0 : index
    %861 = vector.load %arg11[%c0_251, %c0_252] : memref<64x512xf32, #tpu.memory_space<vmem>>, vector<64x512xf32>
    %cst_253 = arith.constant dense<0.000000e+00> : vector<1x512xf32>
    %862 = tpu.matmul %860, %861, %cst_253 {dimension_numbers = #tpu.dot_dimension_numbers<[1], [0], [0], [1], [0, 0, 1, 1], [], []>} : vector<1x64xf32>, vector<64x512xf32>, vector<1x512xf32> -> vector<1x512xf32>
    %863 = arith.addf %859, %862 : vector<1x512xf32>
    %864 = vector.extract_strided_slice %863 {offsets = [0, 0], sizes = [1, 384], strides = [1, 1]} : vector<1x512xf32> to vector<1x384xf32>
    %865 = arith.negf %864 : vector<1x384xf32>
    %866 = math.exp %865 : vector<1x384xf32>
    %cst_254 = arith.constant 1.000000e+00 : f32
    %867 = vector.broadcast %cst_254 : f32 to vector<1x384xf32>
    %868 = arith.addf %867, %866 : vector<1x384xf32>
    %869 = arith.divf %867, %868 : vector<1x384xf32>
    %870 = vector.extract_strided_slice %869 {offsets = [0, 0], sizes = [1, 128], strides = [1, 1]} : vector<1x384xf32> to vector<1x128xf32>
    %871 = vector.extract_strided_slice %869 {offsets = [0, 128], sizes = [1, 128], strides = [1, 1]} : vector<1x384xf32> to vector<1x128xf32>
    %872 = vector.extract_strided_slice %869 {offsets = [0, 256], sizes = [1, 128], strides = [1, 1]} : vector<1x384xf32> to vector<1x128xf32>
    %873 = vector.extract_strided_slice %863 {offsets = [0, 384], sizes = [1, 128], strides = [1, 1]} : vector<1x512xf32> to vector<1x128xf32>
    %874 = math.tanh %873 : vector<1x128xf32>
    %875 = arith.mulf %871, %832 : vector<1x128xf32>
    %876 = arith.mulf %870, %874 : vector<1x128xf32>
    %877 = arith.addf %875, %876 : vector<1x128xf32>
    %878 = math.tanh %877 : vector<1x128xf32>
    %879 = arith.mulf %872, %878 : vector<1x128xf32>
    %c2_255 = arith.constant 2 : index
    %c0_256 = arith.constant 0 : index
    %880 = vector.load %arg18[%c2_255, %c0_256] : memref<16x128xf32, #tpu.memory_space<vmem>>, vector<1x128xf32>
    tpu.vector_store %arg18[%c2_255, %c0_256], %879 {strides = array<i32>} : memref<16x128xf32, #tpu.memory_space<vmem>>, vector<1x128xf32>,
    %881 = vector.extract_strided_slice %855 {offsets = [0, 0], sizes = [1, 32], strides = [1, 1]} : vector<1x128xf32> to vector<1x32xf32>
    %c0_257 = arith.constant 0 : index
    %c0_258 = arith.constant 0 : index
    %882 = vector.load %arg8[%c0_257, %c0_258] : memref<32x512xf32, #tpu.memory_space<vmem>>, vector<32x512xf32>
    %cst_259 = arith.constant dense<0.000000e+00> : vector<1x512xf32>
    %883 = tpu.matmul %881, %882, %cst_259 {dimension_numbers = #tpu.dot_dimension_numbers<[1], [0], [0], [1], [0, 0, 1, 1], [], []>} : vector<1x32xf32>, vector<32x512xf32>, vector<1x512xf32> -> vector<1x512xf32>
    %884 = arith.addf %740, %883 : vector<1x512xf32>
    %885 = vector.extract_strided_slice %884 {offsets = [0, 0], sizes = [1, 384], strides = [1, 1]} : vector<1x512xf32> to vector<1x384xf32>
    %886 = arith.negf %885 : vector<1x384xf32>
    %887 = math.exp %886 : vector<1x384xf32>
    %cst_260 = arith.constant 1.000000e+00 : f32
    %888 = vector.broadcast %cst_260 : f32 to vector<1x384xf32>
    %889 = arith.addf %888, %887 : vector<1x384xf32>
    %890 = arith.divf %888, %889 : vector<1x384xf32>
    %891 = vector.extract_strided_slice %890 {offsets = [0, 0], sizes = [1, 128], strides = [1, 1]} : vector<1x384xf32> to vector<1x128xf32>
    %892 = vector.extract_strided_slice %890 {offsets = [0, 128], sizes = [1, 128], strides = [1, 1]} : vector<1x384xf32> to vector<1x128xf32>
    %893 = vector.extract_strided_slice %890 {offsets = [0, 256], sizes = [1, 128], strides = [1, 1]} : vector<1x384xf32> to vector<1x128xf32>
    %894 = vector.extract_strided_slice %884 {offsets = [0, 384], sizes = [1, 128], strides = [1, 1]} : vector<1x512xf32> to vector<1x128xf32>
    %895 = math.tanh %894 : vector<1x128xf32>
    %896 = arith.mulf %892, %853 : vector<1x128xf32>
    %897 = arith.mulf %891, %895 : vector<1x128xf32>
    %898 = arith.addf %896, %897 : vector<1x128xf32>
    %899 = math.tanh %898 : vector<1x128xf32>
    %900 = arith.mulf %893, %899 : vector<1x128xf32>
    %901 = vector.extract_strided_slice %900 {offsets = [0, 0], sizes = [1, 32], strides = [1, 1]} : vector<1x128xf32> to vector<1x32xf32>
    %c0_261 = arith.constant 0 : index
    %c0_262 = arith.constant 0 : index
    %902 = vector.load %arg10[%c0_261, %c0_262] : memref<32x512xf32, #tpu.memory_space<vmem>>, vector<32x512xf32>
    %cst_263 = arith.constant dense<0.000000e+00> : vector<1x512xf32>
    %903 = tpu.matmul %901, %902, %cst_263 {dimension_numbers = #tpu.dot_dimension_numbers<[1], [0], [0], [1], [0, 0, 1, 1], [], []>} : vector<1x32xf32>, vector<32x512xf32>, vector<1x512xf32> -> vector<1x512xf32>
    %904 = arith.addf %903, %741 : vector<1x512xf32>
    %905 = vector.extract_strided_slice %879 {offsets = [0, 0], sizes = [1, 64], strides = [1, 1]} : vector<1x128xf32> to vector<1x64xf32>
    %c0_264 = arith.constant 0 : index
    %c0_265 = arith.constant 0 : index
    %906 = vector.load %arg11[%c0_264, %c0_265] : memref<64x512xf32, #tpu.memory_space<vmem>>, vector<64x512xf32>
    %cst_266 = arith.constant dense<0.000000e+00> : vector<1x512xf32>
    %907 = tpu.matmul %905, %906, %cst_266 {dimension_numbers = #tpu.dot_dimension_numbers<[1], [0], [0], [1], [0, 0, 1, 1], [], []>} : vector<1x64xf32>, vector<64x512xf32>, vector<1x512xf32> -> vector<1x512xf32>
    %908 = arith.addf %904, %907 : vector<1x512xf32>
    %909 = vector.extract_strided_slice %908 {offsets = [0, 0], sizes = [1, 384], strides = [1, 1]} : vector<1x512xf32> to vector<1x384xf32>
    %910 = arith.negf %909 : vector<1x384xf32>
    %911 = math.exp %910 : vector<1x384xf32>
    %cst_267 = arith.constant 1.000000e+00 : f32
    %912 = vector.broadcast %cst_267 : f32 to vector<1x384xf32>
    %913 = arith.addf %912, %911 : vector<1x384xf32>
    %914 = arith.divf %912, %913 : vector<1x384xf32>
    %915 = vector.extract_strided_slice %914 {offsets = [0, 0], sizes = [1, 128], strides = [1, 1]} : vector<1x384xf32> to vector<1x128xf32>
    %916 = vector.extract_strided_slice %914 {offsets = [0, 128], sizes = [1, 128], strides = [1, 1]} : vector<1x384xf32> to vector<1x128xf32>
    %917 = vector.extract_strided_slice %914 {offsets = [0, 256], sizes = [1, 128], strides = [1, 1]} : vector<1x384xf32> to vector<1x128xf32>
    %918 = vector.extract_strided_slice %908 {offsets = [0, 384], sizes = [1, 128], strides = [1, 1]} : vector<1x512xf32> to vector<1x128xf32>
    %919 = math.tanh %918 : vector<1x128xf32>
    %920 = arith.mulf %916, %877 : vector<1x128xf32>
    %921 = arith.mulf %915, %919 : vector<1x128xf32>
    %922 = arith.addf %920, %921 : vector<1x128xf32>
    %923 = math.tanh %922 : vector<1x128xf32>
    %924 = arith.mulf %917, %923 : vector<1x128xf32>
    %c3_268 = arith.constant 3 : index
    %c0_269 = arith.constant 0 : index
    %925 = vector.load %arg18[%c3_268, %c0_269] : memref<16x128xf32, #tpu.memory_space<vmem>>, vector<1x128xf32>
    tpu.vector_store %arg18[%c3_268, %c0_269], %924 {strides = array<i32>} : memref<16x128xf32, #tpu.memory_space<vmem>>, vector<1x128xf32>,
    %926 = vector.extract_strided_slice %900 {offsets = [0, 0], sizes = [1, 32], strides = [1, 1]} : vector<1x128xf32> to vector<1x32xf32>
    %c0_270 = arith.constant 0 : index
    %c0_271 = arith.constant 0 : index
    %927 = vector.load %arg8[%c0_270, %c0_271] : memref<32x512xf32, #tpu.memory_space<vmem>>, vector<32x512xf32>
    %cst_272 = arith.constant dense<0.000000e+00> : vector<1x512xf32>
    %928 = tpu.matmul %926, %927, %cst_272 {dimension_numbers = #tpu.dot_dimension_numbers<[1], [0], [0], [1], [0, 0, 1, 1], [], []>} : vector<1x32xf32>, vector<32x512xf32>, vector<1x512xf32> -> vector<1x512xf32>
    %929 = arith.addf %740, %928 : vector<1x512xf32>
    %930 = vector.extract_strided_slice %929 {offsets = [0, 0], sizes = [1, 384], strides = [1, 1]} : vector<1x512xf32> to vector<1x384xf32>
    %931 = arith.negf %930 : vector<1x384xf32>
    %932 = math.exp %931 : vector<1x384xf32>
    %cst_273 = arith.constant 1.000000e+00 : f32
    %933 = vector.broadcast %cst_273 : f32 to vector<1x384xf32>
    %934 = arith.addf %933, %932 : vector<1x384xf32>
    %935 = arith.divf %933, %934 : vector<1x384xf32>
    %936 = vector.extract_strided_slice %935 {offsets = [0, 0], sizes = [1, 128], strides = [1, 1]} : vector<1x384xf32> to vector<1x128xf32>
    %937 = vector.extract_strided_slice %935 {offsets = [0, 128], sizes = [1, 128], strides = [1, 1]} : vector<1x384xf32> to vector<1x128xf32>
    %938 = vector.extract_strided_slice %935 {offsets = [0, 256], sizes = [1, 128], strides = [1, 1]} : vector<1x384xf32> to vector<1x128xf32>
    %939 = vector.extract_strided_slice %929 {offsets = [0, 384], sizes = [1, 128], strides = [1, 1]} : vector<1x512xf32> to vector<1x128xf32>
    %940 = math.tanh %939 : vector<1x128xf32>
    %941 = arith.mulf %937, %898 : vector<1x128xf32>
    %942 = arith.mulf %936, %940 : vector<1x128xf32>
    %943 = arith.addf %941, %942 : vector<1x128xf32>
    %944 = math.tanh %943 : vector<1x128xf32>
    %945 = arith.mulf %938, %944 : vector<1x128xf32>
    %946 = vector.extract_strided_slice %945 {offsets = [0, 0], sizes = [1, 32], strides = [1, 1]} : vector<1x128xf32> to vector<1x32xf32>
    %c0_274 = arith.constant 0 : index
    %c0_275 = arith.constant 0 : index
    %947 = vector.load %arg10[%c0_274, %c0_275] : memref<32x512xf32, #tpu.memory_space<vmem>>, vector<32x512xf32>
    %cst_276 = arith.constant dense<0.000000e+00> : vector<1x512xf32>
    %948 = tpu.matmul %946, %947, %cst_276 {dimension_numbers = #tpu.dot_dimension_numbers<[1], [0], [0], [1], [0, 0, 1, 1], [], []>} : vector<1x32xf32>, vector<32x512xf32>, vector<1x512xf32> -> vector<1x512xf32>
    %949 = arith.addf %948, %741 : vector<1x512xf32>
    %950 = vector.extract_strided_slice %924 {offsets = [0, 0], sizes = [1, 64], strides = [1, 1]} : vector<1x128xf32> to vector<1x64xf32>
    %c0_277 = arith.constant 0 : index
    %c0_278 = arith.constant 0 : index
    %951 = vector.load %arg11[%c0_277, %c0_278] : memref<64x512xf32, #tpu.memory_space<vmem>>, vector<64x512xf32>
    %cst_279 = arith.constant dense<0.000000e+00> : vector<1x512xf32>
    %952 = tpu.matmul %950, %951, %cst_279 {dimension_numbers = #tpu.dot_dimension_numbers<[1], [0], [0], [1], [0, 0, 1, 1], [], []>} : vector<1x64xf32>, vector<64x512xf32>, vector<1x512xf32> -> vector<1x512xf32>
    %953 = arith.addf %949, %952 : vector<1x512xf32>
    %954 = vector.extract_strided_slice %953 {offsets = [0, 0], sizes = [1, 384], strides = [1, 1]} : vector<1x512xf32> to vector<1x384xf32>
    %955 = arith.negf %954 : vector<1x384xf32>
    %956 = math.exp %955 : vector<1x384xf32>
    %cst_280 = arith.constant 1.000000e+00 : f32
    %957 = vector.broadcast %cst_280 : f32 to vector<1x384xf32>
    %958 = arith.addf %957, %956 : vector<1x384xf32>
    %959 = arith.divf %957, %958 : vector<1x384xf32>
    %960 = vector.extract_strided_slice %959 {offsets = [0, 0], sizes = [1, 128], strides = [1, 1]} : vector<1x384xf32> to vector<1x128xf32>
    %961 = vector.extract_strided_slice %959 {offsets = [0, 128], sizes = [1, 128], strides = [1, 1]} : vector<1x384xf32> to vector<1x128xf32>
    %962 = vector.extract_strided_slice %959 {offsets = [0, 256], sizes = [1, 128], strides = [1, 1]} : vector<1x384xf32> to vector<1x128xf32>
    %963 = vector.extract_strided_slice %953 {offsets = [0, 384], sizes = [1, 128], strides = [1, 1]} : vector<1x512xf32> to vector<1x128xf32>
    %964 = math.tanh %963 : vector<1x128xf32>
    %965 = arith.mulf %961, %922 : vector<1x128xf32>
    %966 = arith.mulf %960, %964 : vector<1x128xf32>
    %967 = arith.addf %965, %966 : vector<1x128xf32>
    %968 = math.tanh %967 : vector<1x128xf32>
    %969 = arith.mulf %962, %968 : vector<1x128xf32>
    %c4_281 = arith.constant 4 : index
    %c0_282 = arith.constant 0 : index
    %970 = vector.load %arg18[%c4_281, %c0_282] : memref<16x128xf32, #tpu.memory_space<vmem>>, vector<1x128xf32>
    tpu.vector_store %arg18[%c4_281, %c0_282], %969 {strides = array<i32>} : memref<16x128xf32, #tpu.memory_space<vmem>>, vector<1x128xf32>,
    %971 = vector.extract_strided_slice %945 {offsets = [0, 0], sizes = [1, 32], strides = [1, 1]} : vector<1x128xf32> to vector<1x32xf32>
    %c0_283 = arith.constant 0 : index
    %c0_284 = arith.constant 0 : index
    %972 = vector.load %arg8[%c0_283, %c0_284] : memref<32x512xf32, #tpu.memory_space<vmem>>, vector<32x512xf32>
    %cst_285 = arith.constant dense<0.000000e+00> : vector<1x512xf32>
    %973 = tpu.matmul %971, %972, %cst_285 {dimension_numbers = #tpu.dot_dimension_numbers<[1], [0], [0], [1], [0, 0, 1, 1], [], []>} : vector<1x32xf32>, vector<32x512xf32>, vector<1x512xf32> -> vector<1x512xf32>
    %974 = arith.addf %740, %973 : vector<1x512xf32>
    %975 = vector.extract_strided_slice %974 {offsets = [0, 0], sizes = [1, 384], strides = [1, 1]} : vector<1x512xf32> to vector<1x384xf32>
    %976 = arith.negf %975 : vector<1x384xf32>
    %977 = math.exp %976 : vector<1x384xf32>
    %cst_286 = arith.constant 1.000000e+00 : f32
    %978 = vector.broadcast %cst_286 : f32 to vector<1x384xf32>
    %979 = arith.addf %978, %977 : vector<1x384xf32>
    %980 = arith.divf %978, %979 : vector<1x384xf32>
    %981 = vector.extract_strided_slice %980 {offsets = [0, 0], sizes = [1, 128], strides = [1, 1]} : vector<1x384xf32> to vector<1x128xf32>
    %982 = vector.extract_strided_slice %980 {offsets = [0, 128], sizes = [1, 128], strides = [1, 1]} : vector<1x384xf32> to vector<1x128xf32>
    %983 = vector.extract_strided_slice %980 {offsets = [0, 256], sizes = [1, 128], strides = [1, 1]} : vector<1x384xf32> to vector<1x128xf32>
    %984 = vector.extract_strided_slice %974 {offsets = [0, 384], sizes = [1, 128], strides = [1, 1]} : vector<1x512xf32> to vector<1x128xf32>
    %985 = math.tanh %984 : vector<1x128xf32>
    %986 = arith.mulf %982, %943 : vector<1x128xf32>
    %987 = arith.mulf %981, %985 : vector<1x128xf32>
    %988 = arith.addf %986, %987 : vector<1x128xf32>
    %989 = math.tanh %988 : vector<1x128xf32>
    %990 = arith.mulf %983, %989 : vector<1x128xf32>
    %991 = vector.extract_strided_slice %990 {offsets = [0, 0], sizes = [1, 32], strides = [1, 1]} : vector<1x128xf32> to vector<1x32xf32>
    %c0_287 = arith.constant 0 : index
    %c0_288 = arith.constant 0 : index
    %992 = vector.load %arg10[%c0_287, %c0_288] : memref<32x512xf32, #tpu.memory_space<vmem>>, vector<32x512xf32>
    %cst_289 = arith.constant dense<0.000000e+00> : vector<1x512xf32>
    %993 = tpu.matmul %991, %992, %cst_289 {dimension_numbers = #tpu.dot_dimension_numbers<[1], [0], [0], [1], [0, 0, 1, 1], [], []>} : vector<1x32xf32>, vector<32x512xf32>, vector<1x512xf32> -> vector<1x512xf32>
    %994 = arith.addf %993, %741 : vector<1x512xf32>
    %995 = vector.extract_strided_slice %969 {offsets = [0, 0], sizes = [1, 64], strides = [1, 1]} : vector<1x128xf32> to vector<1x64xf32>
    %c0_290 = arith.constant 0 : index
    %c0_291 = arith.constant 0 : index
    %996 = vector.load %arg11[%c0_290, %c0_291] : memref<64x512xf32, #tpu.memory_space<vmem>>, vector<64x512xf32>
    %cst_292 = arith.constant dense<0.000000e+00> : vector<1x512xf32>
    %997 = tpu.matmul %995, %996, %cst_292 {dimension_numbers = #tpu.dot_dimension_numbers<[1], [0], [0], [1], [0, 0, 1, 1], [], []>} : vector<1x64xf32>, vector<64x512xf32>, vector<1x512xf32> -> vector<1x512xf32>
    %998 = arith.addf %994, %997 : vector<1x512xf32>
    %999 = vector.extract_strided_slice %998 {offsets = [0, 0], sizes = [1, 384], strides = [1, 1]} : vector<1x512xf32> to vector<1x384xf32>
    %1000 = arith.negf %999 : vector<1x384xf32>
    %1001 = math.exp %1000 : vector<1x384xf32>
    %cst_293 = arith.constant 1.000000e+00 : f32
    %1002 = vector.broadcast %cst_293 : f32 to vector<1x384xf32>
    %1003 = arith.addf %1002, %1001 : vector<1x384xf32>
    %1004 = arith.divf %1002, %1003 : vector<1x384xf32>
    %1005 = vector.extract_strided_slice %1004 {offsets = [0, 0], sizes = [1, 128], strides = [1, 1]} : vector<1x384xf32> to vector<1x128xf32>
    %1006 = vector.extract_strided_slice %1004 {offsets = [0, 128], sizes = [1, 128], strides = [1, 1]} : vector<1x384xf32> to vector<1x128xf32>
    %1007 = vector.extract_strided_slice %1004 {offsets = [0, 256], sizes = [1, 128], strides = [1, 1]} : vector<1x384xf32> to vector<1x128xf32>
    %1008 = vector.extract_strided_slice %998 {offsets = [0, 384], sizes = [1, 128], strides = [1, 1]} : vector<1x512xf32> to vector<1x128xf32>
    %1009 = math.tanh %1008 : vector<1x128xf32>
    %1010 = arith.mulf %1006, %967 : vector<1x128xf32>
    %1011 = arith.mulf %1005, %1009 : vector<1x128xf32>
    %1012 = arith.addf %1010, %1011 : vector<1x128xf32>
    %1013 = math.tanh %1012 : vector<1x128xf32>
    %1014 = arith.mulf %1007, %1013 : vector<1x128xf32>
    %c5_294 = arith.constant 5 : index
    %c0_295 = arith.constant 0 : index
    %1015 = vector.load %arg18[%c5_294, %c0_295] : memref<16x128xf32, #tpu.memory_space<vmem>>, vector<1x128xf32>
    tpu.vector_store %arg18[%c5_294, %c0_295], %1014 {strides = array<i32>} : memref<16x128xf32, #tpu.memory_space<vmem>>, vector<1x128xf32>,
    %1016 = vector.extract_strided_slice %990 {offsets = [0, 0], sizes = [1, 32], strides = [1, 1]} : vector<1x128xf32> to vector<1x32xf32>
    %c0_296 = arith.constant 0 : index
    %c0_297 = arith.constant 0 : index
    %1017 = vector.load %arg8[%c0_296, %c0_297] : memref<32x512xf32, #tpu.memory_space<vmem>>, vector<32x512xf32>
    %cst_298 = arith.constant dense<0.000000e+00> : vector<1x512xf32>
    %1018 = tpu.matmul %1016, %1017, %cst_298 {dimension_numbers = #tpu.dot_dimension_numbers<[1], [0], [0], [1], [0, 0, 1, 1], [], []>} : vector<1x32xf32>, vector<32x512xf32>, vector<1x512xf32> -> vector<1x512xf32>
    %1019 = arith.addf %740, %1018 : vector<1x512xf32>
    %1020 = vector.extract_strided_slice %1019 {offsets = [0, 0], sizes = [1, 384], strides = [1, 1]} : vector<1x512xf32> to vector<1x384xf32>
    %1021 = arith.negf %1020 : vector<1x384xf32>
    %1022 = math.exp %1021 : vector<1x384xf32>
    %cst_299 = arith.constant 1.000000e+00 : f32
    %1023 = vector.broadcast %cst_299 : f32 to vector<1x384xf32>
    %1024 = arith.addf %1023, %1022 : vector<1x384xf32>
    %1025 = arith.divf %1023, %1024 : vector<1x384xf32>
    %1026 = vector.extract_strided_slice %1025 {offsets = [0, 0], sizes = [1, 128], strides = [1, 1]} : vector<1x384xf32> to vector<1x128xf32>
    %1027 = vector.extract_strided_slice %1025 {offsets = [0, 128], sizes = [1, 128], strides = [1, 1]} : vector<1x384xf32> to vector<1x128xf32>
    %1028 = vector.extract_strided_slice %1025 {offsets = [0, 256], sizes = [1, 128], strides = [1, 1]} : vector<1x384xf32> to vector<1x128xf32>
    %1029 = vector.extract_strided_slice %1019 {offsets = [0, 384], sizes = [1, 128], strides = [1, 1]} : vector<1x512xf32> to vector<1x128xf32>
    %1030 = math.tanh %1029 : vector<1x128xf32>
    %1031 = arith.mulf %1027, %988 : vector<1x128xf32>
    %1032 = arith.mulf %1026, %1030 : vector<1x128xf32>
    %1033 = arith.addf %1031, %1032 : vector<1x128xf32>
    %1034 = math.tanh %1033 : vector<1x128xf32>
    %1035 = arith.mulf %1028, %1034 : vector<1x128xf32>
    %1036 = vector.extract_strided_slice %1035 {offsets = [0, 0], sizes = [1, 32], strides = [1, 1]} : vector<1x128xf32> to vector<1x32xf32>
    %c0_300 = arith.constant 0 : index
    %c0_301 = arith.constant 0 : index
    %1037 = vector.load %arg10[%c0_300, %c0_301] : memref<32x512xf32, #tpu.memory_space<vmem>>, vector<32x512xf32>
    %cst_302 = arith.constant dense<0.000000e+00> : vector<1x512xf32>
    %1038 = tpu.matmul %1036, %1037, %cst_302 {dimension_numbers = #tpu.dot_dimension_numbers<[1], [0], [0], [1], [0, 0, 1, 1], [], []>} : vector<1x32xf32>, vector<32x512xf32>, vector<1x512xf32> -> vector<1x512xf32>
    %1039 = arith.addf %1038, %741 : vector<1x512xf32>
    %1040 = vector.extract_strided_slice %1014 {offsets = [0, 0], sizes = [1, 64], strides = [1, 1]} : vector<1x128xf32> to vector<1x64xf32>
    %c0_303 = arith.constant 0 : index
    %c0_304 = arith.constant 0 : index
    %1041 = vector.load %arg11[%c0_303, %c0_304] : memref<64x512xf32, #tpu.memory_space<vmem>>, vector<64x512xf32>
    %cst_305 = arith.constant dense<0.000000e+00> : vector<1x512xf32>
    %1042 = tpu.matmul %1040, %1041, %cst_305 {dimension_numbers = #tpu.dot_dimension_numbers<[1], [0], [0], [1], [0, 0, 1, 1], [], []>} : vector<1x64xf32>, vector<64x512xf32>, vector<1x512xf32> -> vector<1x512xf32>
    %1043 = arith.addf %1039, %1042 : vector<1x512xf32>
    %1044 = vector.extract_strided_slice %1043 {offsets = [0, 0], sizes = [1, 384], strides = [1, 1]} : vector<1x512xf32> to vector<1x384xf32>
    %1045 = arith.negf %1044 : vector<1x384xf32>
    %1046 = math.exp %1045 : vector<1x384xf32>
    %cst_306 = arith.constant 1.000000e+00 : f32
    %1047 = vector.broadcast %cst_306 : f32 to vector<1x384xf32>
    %1048 = arith.addf %1047, %1046 : vector<1x384xf32>
    %1049 = arith.divf %1047, %1048 : vector<1x384xf32>
    %1050 = vector.extract_strided_slice %1049 {offsets = [0, 0], sizes = [1, 128], strides = [1, 1]} : vector<1x384xf32> to vector<1x128xf32>
    %1051 = vector.extract_strided_slice %1049 {offsets = [0, 128], sizes = [1, 128], strides = [1, 1]} : vector<1x384xf32> to vector<1x128xf32>
    %1052 = vector.extract_strided_slice %1049 {offsets = [0, 256], sizes = [1, 128], strides = [1, 1]} : vector<1x384xf32> to vector<1x128xf32>
    %1053 = vector.extract_strided_slice %1043 {offsets = [0, 384], sizes = [1, 128], strides = [1, 1]} : vector<1x512xf32> to vector<1x128xf32>
    %1054 = math.tanh %1053 : vector<1x128xf32>
    %1055 = arith.mulf %1051, %1012 : vector<1x128xf32>
    %1056 = arith.mulf %1050, %1054 : vector<1x128xf32>
    %1057 = arith.addf %1055, %1056 : vector<1x128xf32>
    %1058 = math.tanh %1057 : vector<1x128xf32>
    %1059 = arith.mulf %1052, %1058 : vector<1x128xf32>
    %c6_307 = arith.constant 6 : index
    %c0_308 = arith.constant 0 : index
    %1060 = vector.load %arg18[%c6_307, %c0_308] : memref<16x128xf32, #tpu.memory_space<vmem>>, vector<1x128xf32>
    tpu.vector_store %arg18[%c6_307, %c0_308], %1059 {strides = array<i32>} : memref<16x128xf32, #tpu.memory_space<vmem>>, vector<1x128xf32>,
    %1061 = vector.extract_strided_slice %1035 {offsets = [0, 0], sizes = [1, 32], strides = [1, 1]} : vector<1x128xf32> to vector<1x32xf32>
    %c0_309 = arith.constant 0 : index
    %c0_310 = arith.constant 0 : index
    %1062 = vector.load %arg8[%c0_309, %c0_310] : memref<32x512xf32, #tpu.memory_space<vmem>>, vector<32x512xf32>
    %cst_311 = arith.constant dense<0.000000e+00> : vector<1x512xf32>
    %1063 = tpu.matmul %1061, %1062, %cst_311 {dimension_numbers = #tpu.dot_dimension_numbers<[1], [0], [0], [1], [0, 0, 1, 1], [], []>} : vector<1x32xf32>, vector<32x512xf32>, vector<1x512xf32> -> vector<1x512xf32>
    %1064 = arith.addf %740, %1063 : vector<1x512xf32>
    %1065 = vector.extract_strided_slice %1064 {offsets = [0, 0], sizes = [1, 384], strides = [1, 1]} : vector<1x512xf32> to vector<1x384xf32>
    %1066 = arith.negf %1065 : vector<1x384xf32>
    %1067 = math.exp %1066 : vector<1x384xf32>
    %cst_312 = arith.constant 1.000000e+00 : f32
    %1068 = vector.broadcast %cst_312 : f32 to vector<1x384xf32>
    %1069 = arith.addf %1068, %1067 : vector<1x384xf32>
    %1070 = arith.divf %1068, %1069 : vector<1x384xf32>
    %1071 = vector.extract_strided_slice %1070 {offsets = [0, 0], sizes = [1, 128], strides = [1, 1]} : vector<1x384xf32> to vector<1x128xf32>
    %1072 = vector.extract_strided_slice %1070 {offsets = [0, 128], sizes = [1, 128], strides = [1, 1]} : vector<1x384xf32> to vector<1x128xf32>
    %1073 = vector.extract_strided_slice %1070 {offsets = [0, 256], sizes = [1, 128], strides = [1, 1]} : vector<1x384xf32> to vector<1x128xf32>
    %1074 = vector.extract_strided_slice %1064 {offsets = [0, 384], sizes = [1, 128], strides = [1, 1]} : vector<1x512xf32> to vector<1x128xf32>
    %1075 = math.tanh %1074 : vector<1x128xf32>
    %1076 = arith.mulf %1072, %1033 : vector<1x128xf32>
    %1077 = arith.mulf %1071, %1075 : vector<1x128xf32>
    %1078 = arith.addf %1076, %1077 : vector<1x128xf32>
    %1079 = math.tanh %1078 : vector<1x128xf32>
    %1080 = arith.mulf %1073, %1079 : vector<1x128xf32>
    %1081 = vector.extract_strided_slice %1080 {offsets = [0, 0], sizes = [1, 32], strides = [1, 1]} : vector<1x128xf32> to vector<1x32xf32>
    %c0_313 = arith.constant 0 : index
    %c0_314 = arith.constant 0 : index
    %1082 = vector.load %arg10[%c0_313, %c0_314] : memref<32x512xf32, #tpu.memory_space<vmem>>, vector<32x512xf32>
    %cst_315 = arith.constant dense<0.000000e+00> : vector<1x512xf32>
    %1083 = tpu.matmul %1081, %1082, %cst_315 {dimension_numbers = #tpu.dot_dimension_numbers<[1], [0], [0], [1], [0, 0, 1, 1], [], []>} : vector<1x32xf32>, vector<32x512xf32>, vector<1x512xf32> -> vector<1x512xf32>
    %1084 = arith.addf %1083, %741 : vector<1x512xf32>
    %1085 = vector.extract_strided_slice %1059 {offsets = [0, 0], sizes = [1, 64], strides = [1, 1]} : vector<1x128xf32> to vector<1x64xf32>
    %c0_316 = arith.constant 0 : index
    %c0_317 = arith.constant 0 : index
    %1086 = vector.load %arg11[%c0_316, %c0_317] : memref<64x512xf32, #tpu.memory_space<vmem>>, vector<64x512xf32>
    %cst_318 = arith.constant dense<0.000000e+00> : vector<1x512xf32>
    %1087 = tpu.matmul %1085, %1086, %cst_318 {dimension_numbers = #tpu.dot_dimension_numbers<[1], [0], [0], [1], [0, 0, 1, 1], [], []>} : vector<1x64xf32>, vector<64x512xf32>, vector<1x512xf32> -> vector<1x512xf32>
    %1088 = arith.addf %1084, %1087 : vector<1x512xf32>
    %1089 = vector.extract_strided_slice %1088 {offsets = [0, 0], sizes = [1, 384], strides = [1, 1]} : vector<1x512xf32> to vector<1x384xf32>
    %1090 = arith.negf %1089 : vector<1x384xf32>
    %1091 = math.exp %1090 : vector<1x384xf32>
    %cst_319 = arith.constant 1.000000e+00 : f32
    %1092 = vector.broadcast %cst_319 : f32 to vector<1x384xf32>
    %1093 = arith.addf %1092, %1091 : vector<1x384xf32>
    %1094 = arith.divf %1092, %1093 : vector<1x384xf32>
    %1095 = vector.extract_strided_slice %1094 {offsets = [0, 0], sizes = [1, 128], strides = [1, 1]} : vector<1x384xf32> to vector<1x128xf32>
    %1096 = vector.extract_strided_slice %1094 {offsets = [0, 128], sizes = [1, 128], strides = [1, 1]} : vector<1x384xf32> to vector<1x128xf32>
    %1097 = vector.extract_strided_slice %1094 {offsets = [0, 256], sizes = [1, 128], strides = [1, 1]} : vector<1x384xf32> to vector<1x128xf32>
    %1098 = vector.extract_strided_slice %1088 {offsets = [0, 384], sizes = [1, 128], strides = [1, 1]} : vector<1x512xf32> to vector<1x128xf32>
    %1099 = math.tanh %1098 : vector<1x128xf32>
    %1100 = arith.mulf %1096, %1057 : vector<1x128xf32>
    %1101 = arith.mulf %1095, %1099 : vector<1x128xf32>
    %1102 = arith.addf %1100, %1101 : vector<1x128xf32>
    %1103 = math.tanh %1102 : vector<1x128xf32>
    %1104 = arith.mulf %1097, %1103 : vector<1x128xf32>
    %c7_320 = arith.constant 7 : index
    %c0_321 = arith.constant 0 : index
    %1105 = vector.load %arg18[%c7_320, %c0_321] : memref<16x128xf32, #tpu.memory_space<vmem>>, vector<1x128xf32>
    tpu.vector_store %arg18[%c7_320, %c0_321], %1104 {strides = array<i32>} : memref<16x128xf32, #tpu.memory_space<vmem>>, vector<1x128xf32>,
    %1106 = vector.extract_strided_slice %1080 {offsets = [0, 0], sizes = [1, 32], strides = [1, 1]} : vector<1x128xf32> to vector<1x32xf32>
    %c0_322 = arith.constant 0 : index
    %c0_323 = arith.constant 0 : index
    %1107 = vector.load %arg8[%c0_322, %c0_323] : memref<32x512xf32, #tpu.memory_space<vmem>>, vector<32x512xf32>
    %cst_324 = arith.constant dense<0.000000e+00> : vector<1x512xf32>
    %1108 = tpu.matmul %1106, %1107, %cst_324 {dimension_numbers = #tpu.dot_dimension_numbers<[1], [0], [0], [1], [0, 0, 1, 1], [], []>} : vector<1x32xf32>, vector<32x512xf32>, vector<1x512xf32> -> vector<1x512xf32>
    %1109 = arith.addf %740, %1108 : vector<1x512xf32>
    %1110 = vector.extract_strided_slice %1109 {offsets = [0, 0], sizes = [1, 384], strides = [1, 1]} : vector<1x512xf32> to vector<1x384xf32>
    %1111 = arith.negf %1110 : vector<1x384xf32>
    %1112 = math.exp %1111 : vector<1x384xf32>
    %cst_325 = arith.constant 1.000000e+00 : f32
    %1113 = vector.broadcast %cst_325 : f32 to vector<1x384xf32>
    %1114 = arith.addf %1113, %1112 : vector<1x384xf32>
    %1115 = arith.divf %1113, %1114 : vector<1x384xf32>
    %1116 = vector.extract_strided_slice %1115 {offsets = [0, 0], sizes = [1, 128], strides = [1, 1]} : vector<1x384xf32> to vector<1x128xf32>
    %1117 = vector.extract_strided_slice %1115 {offsets = [0, 128], sizes = [1, 128], strides = [1, 1]} : vector<1x384xf32> to vector<1x128xf32>
    %1118 = vector.extract_strided_slice %1115 {offsets = [0, 256], sizes = [1, 128], strides = [1, 1]} : vector<1x384xf32> to vector<1x128xf32>
    %1119 = vector.extract_strided_slice %1109 {offsets = [0, 384], sizes = [1, 128], strides = [1, 1]} : vector<1x512xf32> to vector<1x128xf32>
    %1120 = math.tanh %1119 : vector<1x128xf32>
    %1121 = arith.mulf %1117, %1078 : vector<1x128xf32>
    %1122 = arith.mulf %1116, %1120 : vector<1x128xf32>
    %1123 = arith.addf %1121, %1122 : vector<1x128xf32>
    %1124 = math.tanh %1123 : vector<1x128xf32>
    %1125 = arith.mulf %1118, %1124 : vector<1x128xf32>
    %1126 = vector.extract_strided_slice %1125 {offsets = [0, 0], sizes = [1, 32], strides = [1, 1]} : vector<1x128xf32> to vector<1x32xf32>
    %c0_326 = arith.constant 0 : index
    %c0_327 = arith.constant 0 : index
    %1127 = vector.load %arg10[%c0_326, %c0_327] : memref<32x512xf32, #tpu.memory_space<vmem>>, vector<32x512xf32>
    %cst_328 = arith.constant dense<0.000000e+00> : vector<1x512xf32>
    %1128 = tpu.matmul %1126, %1127, %cst_328 {dimension_numbers = #tpu.dot_dimension_numbers<[1], [0], [0], [1], [0, 0, 1, 1], [], []>} : vector<1x32xf32>, vector<32x512xf32>, vector<1x512xf32> -> vector<1x512xf32>
    %1129 = arith.addf %1128, %741 : vector<1x512xf32>
    %1130 = vector.extract_strided_slice %1104 {offsets = [0, 0], sizes = [1, 64], strides = [1, 1]} : vector<1x128xf32> to vector<1x64xf32>
    %c0_329 = arith.constant 0 : index
    %c0_330 = arith.constant 0 : index
    %1131 = vector.load %arg11[%c0_329, %c0_330] : memref<64x512xf32, #tpu.memory_space<vmem>>, vector<64x512xf32>
    %cst_331 = arith.constant dense<0.000000e+00> : vector<1x512xf32>
    %1132 = tpu.matmul %1130, %1131, %cst_331 {dimension_numbers = #tpu.dot_dimension_numbers<[1], [0], [0], [1], [0, 0, 1, 1], [], []>} : vector<1x64xf32>, vector<64x512xf32>, vector<1x512xf32> -> vector<1x512xf32>
    %1133 = arith.addf %1129, %1132 : vector<1x512xf32>
    %1134 = vector.extract_strided_slice %1133 {offsets = [0, 0], sizes = [1, 384], strides = [1, 1]} : vector<1x512xf32> to vector<1x384xf32>
    %1135 = arith.negf %1134 : vector<1x384xf32>
    %1136 = math.exp %1135 : vector<1x384xf32>
    %cst_332 = arith.constant 1.000000e+00 : f32
    %1137 = vector.broadcast %cst_332 : f32 to vector<1x384xf32>
    %1138 = arith.addf %1137, %1136 : vector<1x384xf32>
    %1139 = arith.divf %1137, %1138 : vector<1x384xf32>
    %1140 = vector.extract_strided_slice %1139 {offsets = [0, 0], sizes = [1, 128], strides = [1, 1]} : vector<1x384xf32> to vector<1x128xf32>
    %1141 = vector.extract_strided_slice %1139 {offsets = [0, 128], sizes = [1, 128], strides = [1, 1]} : vector<1x384xf32> to vector<1x128xf32>
    %1142 = vector.extract_strided_slice %1139 {offsets = [0, 256], sizes = [1, 128], strides = [1, 1]} : vector<1x384xf32> to vector<1x128xf32>
    %1143 = vector.extract_strided_slice %1133 {offsets = [0, 384], sizes = [1, 128], strides = [1, 1]} : vector<1x512xf32> to vector<1x128xf32>
    %1144 = math.tanh %1143 : vector<1x128xf32>
    %1145 = arith.mulf %1141, %1102 : vector<1x128xf32>
    %1146 = arith.mulf %1140, %1144 : vector<1x128xf32>
    %1147 = arith.addf %1145, %1146 : vector<1x128xf32>
    %1148 = math.tanh %1147 : vector<1x128xf32>
    %1149 = arith.mulf %1142, %1148 : vector<1x128xf32>
    %c8_333 = arith.constant 8 : index
    %c0_334 = arith.constant 0 : index
    %1150 = vector.load %arg18[%c8_333, %c0_334] : memref<16x128xf32, #tpu.memory_space<vmem>>, vector<1x128xf32>
    tpu.vector_store %arg18[%c8_333, %c0_334], %1149 {strides = array<i32>} : memref<16x128xf32, #tpu.memory_space<vmem>>, vector<1x128xf32>,
    %1151 = vector.extract_strided_slice %1125 {offsets = [0, 0], sizes = [1, 32], strides = [1, 1]} : vector<1x128xf32> to vector<1x32xf32>
    %c0_335 = arith.constant 0 : index
    %c0_336 = arith.constant 0 : index
    %1152 = vector.load %arg8[%c0_335, %c0_336] : memref<32x512xf32, #tpu.memory_space<vmem>>, vector<32x512xf32>
    %cst_337 = arith.constant dense<0.000000e+00> : vector<1x512xf32>
    %1153 = tpu.matmul %1151, %1152, %cst_337 {dimension_numbers = #tpu.dot_dimension_numbers<[1], [0], [0], [1], [0, 0, 1, 1], [], []>} : vector<1x32xf32>, vector<32x512xf32>, vector<1x512xf32> -> vector<1x512xf32>
    %1154 = arith.addf %740, %1153 : vector<1x512xf32>
    %1155 = vector.extract_strided_slice %1154 {offsets = [0, 0], sizes = [1, 384], strides = [1, 1]} : vector<1x512xf32> to vector<1x384xf32>
    %1156 = arith.negf %1155 : vector<1x384xf32>
    %1157 = math.exp %1156 : vector<1x384xf32>
    %cst_338 = arith.constant 1.000000e+00 : f32
    %1158 = vector.broadcast %cst_338 : f32 to vector<1x384xf32>
    %1159 = arith.addf %1158, %1157 : vector<1x384xf32>
    %1160 = arith.divf %1158, %1159 : vector<1x384xf32>
    %1161 = vector.extract_strided_slice %1160 {offsets = [0, 0], sizes = [1, 128], strides = [1, 1]} : vector<1x384xf32> to vector<1x128xf32>
    %1162 = vector.extract_strided_slice %1160 {offsets = [0, 128], sizes = [1, 128], strides = [1, 1]} : vector<1x384xf32> to vector<1x128xf32>
    %1163 = vector.extract_strided_slice %1160 {offsets = [0, 256], sizes = [1, 128], strides = [1, 1]} : vector<1x384xf32> to vector<1x128xf32>
    %1164 = vector.extract_strided_slice %1154 {offsets = [0, 384], sizes = [1, 128], strides = [1, 1]} : vector<1x512xf32> to vector<1x128xf32>
    %1165 = math.tanh %1164 : vector<1x128xf32>
    %1166 = arith.mulf %1162, %1123 : vector<1x128xf32>
    %1167 = arith.mulf %1161, %1165 : vector<1x128xf32>
    %1168 = arith.addf %1166, %1167 : vector<1x128xf32>
    %1169 = math.tanh %1168 : vector<1x128xf32>
    %1170 = arith.mulf %1163, %1169 : vector<1x128xf32>
    %1171 = vector.extract_strided_slice %1170 {offsets = [0, 0], sizes = [1, 32], strides = [1, 1]} : vector<1x128xf32> to vector<1x32xf32>
    %c0_339 = arith.constant 0 : index
    %c0_340 = arith.constant 0 : index
    %1172 = vector.load %arg10[%c0_339, %c0_340] : memref<32x512xf32, #tpu.memory_space<vmem>>, vector<32x512xf32>
    %cst_341 = arith.constant dense<0.000000e+00> : vector<1x512xf32>
    %1173 = tpu.matmul %1171, %1172, %cst_341 {dimension_numbers = #tpu.dot_dimension_numbers<[1], [0], [0], [1], [0, 0, 1, 1], [], []>} : vector<1x32xf32>, vector<32x512xf32>, vector<1x512xf32> -> vector<1x512xf32>
    %1174 = arith.addf %1173, %741 : vector<1x512xf32>
    %1175 = vector.extract_strided_slice %1149 {offsets = [0, 0], sizes = [1, 64], strides = [1, 1]} : vector<1x128xf32> to vector<1x64xf32>
    %c0_342 = arith.constant 0 : index
    %c0_343 = arith.constant 0 : index
    %1176 = vector.load %arg11[%c0_342, %c0_343] : memref<64x512xf32, #tpu.memory_space<vmem>>, vector<64x512xf32>
    %cst_344 = arith.constant dense<0.000000e+00> : vector<1x512xf32>
    %1177 = tpu.matmul %1175, %1176, %cst_344 {dimension_numbers = #tpu.dot_dimension_numbers<[1], [0], [0], [1], [0, 0, 1, 1], [], []>} : vector<1x64xf32>, vector<64x512xf32>, vector<1x512xf32> -> vector<1x512xf32>
    %1178 = arith.addf %1174, %1177 : vector<1x512xf32>
    %1179 = vector.extract_strided_slice %1178 {offsets = [0, 0], sizes = [1, 384], strides = [1, 1]} : vector<1x512xf32> to vector<1x384xf32>
    %1180 = arith.negf %1179 : vector<1x384xf32>
    %1181 = math.exp %1180 : vector<1x384xf32>
    %cst_345 = arith.constant 1.000000e+00 : f32
    %1182 = vector.broadcast %cst_345 : f32 to vector<1x384xf32>
    %1183 = arith.addf %1182, %1181 : vector<1x384xf32>
    %1184 = arith.divf %1182, %1183 : vector<1x384xf32>
    %1185 = vector.extract_strided_slice %1184 {offsets = [0, 0], sizes = [1, 128], strides = [1, 1]} : vector<1x384xf32> to vector<1x128xf32>
    %1186 = vector.extract_strided_slice %1184 {offsets = [0, 128], sizes = [1, 128], strides = [1, 1]} : vector<1x384xf32> to vector<1x128xf32>
    %1187 = vector.extract_strided_slice %1184 {offsets = [0, 256], sizes = [1, 128], strides = [1, 1]} : vector<1x384xf32> to vector<1x128xf32>
    %1188 = vector.extract_strided_slice %1178 {offsets = [0, 384], sizes = [1, 128], strides = [1, 1]} : vector<1x512xf32> to vector<1x128xf32>
    %1189 = math.tanh %1188 : vector<1x128xf32>
    %1190 = arith.mulf %1186, %1147 : vector<1x128xf32>
    %1191 = arith.mulf %1185, %1189 : vector<1x128xf32>
    %1192 = arith.addf %1190, %1191 : vector<1x128xf32>
    %1193 = math.tanh %1192 : vector<1x128xf32>
    %1194 = arith.mulf %1187, %1193 : vector<1x128xf32>
    %c9_346 = arith.constant 9 : index
    %c0_347 = arith.constant 0 : index
    %1195 = vector.load %arg18[%c9_346, %c0_347] : memref<16x128xf32, #tpu.memory_space<vmem>>, vector<1x128xf32>
    tpu.vector_store %arg18[%c9_346, %c0_347], %1194 {strides = array<i32>} : memref<16x128xf32, #tpu.memory_space<vmem>>, vector<1x128xf32>,
    %1196 = vector.extract_strided_slice %1170 {offsets = [0, 0], sizes = [1, 32], strides = [1, 1]} : vector<1x128xf32> to vector<1x32xf32>
    %c0_348 = arith.constant 0 : index
    %c0_349 = arith.constant 0 : index
    %1197 = vector.load %arg8[%c0_348, %c0_349] : memref<32x512xf32, #tpu.memory_space<vmem>>, vector<32x512xf32>
    %cst_350 = arith.constant dense<0.000000e+00> : vector<1x512xf32>
    %1198 = tpu.matmul %1196, %1197, %cst_350 {dimension_numbers = #tpu.dot_dimension_numbers<[1], [0], [0], [1], [0, 0, 1, 1], [], []>} : vector<1x32xf32>, vector<32x512xf32>, vector<1x512xf32> -> vector<1x512xf32>
    %1199 = arith.addf %740, %1198 : vector<1x512xf32>
    %1200 = vector.extract_strided_slice %1199 {offsets = [0, 0], sizes = [1, 384], strides = [1, 1]} : vector<1x512xf32> to vector<1x384xf32>
    %1201 = arith.negf %1200 : vector<1x384xf32>
    %1202 = math.exp %1201 : vector<1x384xf32>
    %cst_351 = arith.constant 1.000000e+00 : f32
    %1203 = vector.broadcast %cst_351 : f32 to vector<1x384xf32>
    %1204 = arith.addf %1203, %1202 : vector<1x384xf32>
    %1205 = arith.divf %1203, %1204 : vector<1x384xf32>
    %1206 = vector.extract_strided_slice %1205 {offsets = [0, 0], sizes = [1, 128], strides = [1, 1]} : vector<1x384xf32> to vector<1x128xf32>
    %1207 = vector.extract_strided_slice %1205 {offsets = [0, 128], sizes = [1, 128], strides = [1, 1]} : vector<1x384xf32> to vector<1x128xf32>
    %1208 = vector.extract_strided_slice %1205 {offsets = [0, 256], sizes = [1, 128], strides = [1, 1]} : vector<1x384xf32> to vector<1x128xf32>
    %1209 = vector.extract_strided_slice %1199 {offsets = [0, 384], sizes = [1, 128], strides = [1, 1]} : vector<1x512xf32> to vector<1x128xf32>
    %1210 = math.tanh %1209 : vector<1x128xf32>
    %1211 = arith.mulf %1207, %1168 : vector<1x128xf32>
    %1212 = arith.mulf %1206, %1210 : vector<1x128xf32>
    %1213 = arith.addf %1211, %1212 : vector<1x128xf32>
    %1214 = math.tanh %1213 : vector<1x128xf32>
    %1215 = arith.mulf %1208, %1214 : vector<1x128xf32>
    %1216 = vector.extract_strided_slice %1215 {offsets = [0, 0], sizes = [1, 32], strides = [1, 1]} : vector<1x128xf32> to vector<1x32xf32>
    %c0_352 = arith.constant 0 : index
    %c0_353 = arith.constant 0 : index
    %1217 = vector.load %arg10[%c0_352, %c0_353] : memref<32x512xf32, #tpu.memory_space<vmem>>, vector<32x512xf32>
    %cst_354 = arith.constant dense<0.000000e+00> : vector<1x512xf32>
    %1218 = tpu.matmul %1216, %1217, %cst_354 {dimension_numbers = #tpu.dot_dimension_numbers<[1], [0], [0], [1], [0, 0, 1, 1], [], []>} : vector<1x32xf32>, vector<32x512xf32>, vector<1x512xf32> -> vector<1x512xf32>
    %1219 = arith.addf %1218, %741 : vector<1x512xf32>
    %1220 = vector.extract_strided_slice %1194 {offsets = [0, 0], sizes = [1, 64], strides = [1, 1]} : vector<1x128xf32> to vector<1x64xf32>
    %c0_355 = arith.constant 0 : index
    %c0_356 = arith.constant 0 : index
    %1221 = vector.load %arg11[%c0_355, %c0_356] : memref<64x512xf32, #tpu.memory_space<vmem>>, vector<64x512xf32>
    %cst_357 = arith.constant dense<0.000000e+00> : vector<1x512xf32>
    %1222 = tpu.matmul %1220, %1221, %cst_357 {dimension_numbers = #tpu.dot_dimension_numbers<[1], [0], [0], [1], [0, 0, 1, 1], [], []>} : vector<1x64xf32>, vector<64x512xf32>, vector<1x512xf32> -> vector<1x512xf32>
    %1223 = arith.addf %1219, %1222 : vector<1x512xf32>
    %1224 = vector.extract_strided_slice %1223 {offsets = [0, 0], sizes = [1, 384], strides = [1, 1]} : vector<1x512xf32> to vector<1x384xf32>
    %1225 = arith.negf %1224 : vector<1x384xf32>
    %1226 = math.exp %1225 : vector<1x384xf32>
    %cst_358 = arith.constant 1.000000e+00 : f32
    %1227 = vector.broadcast %cst_358 : f32 to vector<1x384xf32>
    %1228 = arith.addf %1227, %1226 : vector<1x384xf32>
    %1229 = arith.divf %1227, %1228 : vector<1x384xf32>
    %1230 = vector.extract_strided_slice %1229 {offsets = [0, 0], sizes = [1, 128], strides = [1, 1]} : vector<1x384xf32> to vector<1x128xf32>
    %1231 = vector.extract_strided_slice %1229 {offsets = [0, 128], sizes = [1, 128], strides = [1, 1]} : vector<1x384xf32> to vector<1x128xf32>
    %1232 = vector.extract_strided_slice %1229 {offsets = [0, 256], sizes = [1, 128], strides = [1, 1]} : vector<1x384xf32> to vector<1x128xf32>
    %1233 = vector.extract_strided_slice %1223 {offsets = [0, 384], sizes = [1, 128], strides = [1, 1]} : vector<1x512xf32> to vector<1x128xf32>
    %1234 = math.tanh %1233 : vector<1x128xf32>
    %1235 = arith.mulf %1231, %1192 : vector<1x128xf32>
    %1236 = arith.mulf %1230, %1234 : vector<1x128xf32>
    %1237 = arith.addf %1235, %1236 : vector<1x128xf32>
    %1238 = math.tanh %1237 : vector<1x128xf32>
    %1239 = arith.mulf %1232, %1238 : vector<1x128xf32>
    %c10_359 = arith.constant 10 : index
    %c0_360 = arith.constant 0 : index
    %1240 = vector.load %arg18[%c10_359, %c0_360] : memref<16x128xf32, #tpu.memory_space<vmem>>, vector<1x128xf32>
    tpu.vector_store %arg18[%c10_359, %c0_360], %1239 {strides = array<i32>} : memref<16x128xf32, #tpu.memory_space<vmem>>, vector<1x128xf32>,
    %1241 = vector.extract_strided_slice %1215 {offsets = [0, 0], sizes = [1, 32], strides = [1, 1]} : vector<1x128xf32> to vector<1x32xf32>
    %c0_361 = arith.constant 0 : index
    %c0_362 = arith.constant 0 : index
    %1242 = vector.load %arg8[%c0_361, %c0_362] : memref<32x512xf32, #tpu.memory_space<vmem>>, vector<32x512xf32>
    %cst_363 = arith.constant dense<0.000000e+00> : vector<1x512xf32>
    %1243 = tpu.matmul %1241, %1242, %cst_363 {dimension_numbers = #tpu.dot_dimension_numbers<[1], [0], [0], [1], [0, 0, 1, 1], [], []>} : vector<1x32xf32>, vector<32x512xf32>, vector<1x512xf32> -> vector<1x512xf32>
    %1244 = arith.addf %740, %1243 : vector<1x512xf32>
    %1245 = vector.extract_strided_slice %1244 {offsets = [0, 0], sizes = [1, 384], strides = [1, 1]} : vector<1x512xf32> to vector<1x384xf32>
    %1246 = arith.negf %1245 : vector<1x384xf32>
    %1247 = math.exp %1246 : vector<1x384xf32>
    %cst_364 = arith.constant 1.000000e+00 : f32
    %1248 = vector.broadcast %cst_364 : f32 to vector<1x384xf32>
    %1249 = arith.addf %1248, %1247 : vector<1x384xf32>
    %1250 = arith.divf %1248, %1249 : vector<1x384xf32>
    %1251 = vector.extract_strided_slice %1250 {offsets = [0, 0], sizes = [1, 128], strides = [1, 1]} : vector<1x384xf32> to vector<1x128xf32>
    %1252 = vector.extract_strided_slice %1250 {offsets = [0, 128], sizes = [1, 128], strides = [1, 1]} : vector<1x384xf32> to vector<1x128xf32>
    %1253 = vector.extract_strided_slice %1250 {offsets = [0, 256], sizes = [1, 128], strides = [1, 1]} : vector<1x384xf32> to vector<1x128xf32>
    %1254 = vector.extract_strided_slice %1244 {offsets = [0, 384], sizes = [1, 128], strides = [1, 1]} : vector<1x512xf32> to vector<1x128xf32>
    %1255 = math.tanh %1254 : vector<1x128xf32>
    %1256 = arith.mulf %1252, %1213 : vector<1x128xf32>
    %1257 = arith.mulf %1251, %1255 : vector<1x128xf32>
    %1258 = arith.addf %1256, %1257 : vector<1x128xf32>
    %1259 = math.tanh %1258 : vector<1x128xf32>
    %1260 = arith.mulf %1253, %1259 : vector<1x128xf32>
    %1261 = vector.extract_strided_slice %1260 {offsets = [0, 0], sizes = [1, 32], strides = [1, 1]} : vector<1x128xf32> to vector<1x32xf32>
    %c0_365 = arith.constant 0 : index
    %c0_366 = arith.constant 0 : index
    %1262 = vector.load %arg10[%c0_365, %c0_366] : memref<32x512xf32, #tpu.memory_space<vmem>>, vector<32x512xf32>
    %cst_367 = arith.constant dense<0.000000e+00> : vector<1x512xf32>
    %1263 = tpu.matmul %1261, %1262, %cst_367 {dimension_numbers = #tpu.dot_dimension_numbers<[1], [0], [0], [1], [0, 0, 1, 1], [], []>} : vector<1x32xf32>, vector<32x512xf32>, vector<1x512xf32> -> vector<1x512xf32>
    %1264 = arith.addf %1263, %741 : vector<1x512xf32>
    %1265 = vector.extract_strided_slice %1239 {offsets = [0, 0], sizes = [1, 64], strides = [1, 1]} : vector<1x128xf32> to vector<1x64xf32>
    %c0_368 = arith.constant 0 : index
    %c0_369 = arith.constant 0 : index
    %1266 = vector.load %arg11[%c0_368, %c0_369] : memref<64x512xf32, #tpu.memory_space<vmem>>, vector<64x512xf32>
    %cst_370 = arith.constant dense<0.000000e+00> : vector<1x512xf32>
    %1267 = tpu.matmul %1265, %1266, %cst_370 {dimension_numbers = #tpu.dot_dimension_numbers<[1], [0], [0], [1], [0, 0, 1, 1], [], []>} : vector<1x64xf32>, vector<64x512xf32>, vector<1x512xf32> -> vector<1x512xf32>
    %1268 = arith.addf %1264, %1267 : vector<1x512xf32>
    %1269 = vector.extract_strided_slice %1268 {offsets = [0, 0], sizes = [1, 384], strides = [1, 1]} : vector<1x512xf32> to vector<1x384xf32>
    %1270 = arith.negf %1269 : vector<1x384xf32>
    %1271 = math.exp %1270 : vector<1x384xf32>
    %cst_371 = arith.constant 1.000000e+00 : f32
    %1272 = vector.broadcast %cst_371 : f32 to vector<1x384xf32>
    %1273 = arith.addf %1272, %1271 : vector<1x384xf32>
    %1274 = arith.divf %1272, %1273 : vector<1x384xf32>
    %1275 = vector.extract_strided_slice %1274 {offsets = [0, 0], sizes = [1, 128], strides = [1, 1]} : vector<1x384xf32> to vector<1x128xf32>
    %1276 = vector.extract_strided_slice %1274 {offsets = [0, 128], sizes = [1, 128], strides = [1, 1]} : vector<1x384xf32> to vector<1x128xf32>
    %1277 = vector.extract_strided_slice %1274 {offsets = [0, 256], sizes = [1, 128], strides = [1, 1]} : vector<1x384xf32> to vector<1x128xf32>
    %1278 = vector.extract_strided_slice %1268 {offsets = [0, 384], sizes = [1, 128], strides = [1, 1]} : vector<1x512xf32> to vector<1x128xf32>
    %1279 = math.tanh %1278 : vector<1x128xf32>
    %1280 = arith.mulf %1276, %1237 : vector<1x128xf32>
    %1281 = arith.mulf %1275, %1279 : vector<1x128xf32>
    %1282 = arith.addf %1280, %1281 : vector<1x128xf32>
    %1283 = math.tanh %1282 : vector<1x128xf32>
    %1284 = arith.mulf %1277, %1283 : vector<1x128xf32>
    %c11_372 = arith.constant 11 : index
    %c0_373 = arith.constant 0 : index
    %1285 = vector.load %arg18[%c11_372, %c0_373] : memref<16x128xf32, #tpu.memory_space<vmem>>, vector<1x128xf32>
    tpu.vector_store %arg18[%c11_372, %c0_373], %1284 {strides = array<i32>} : memref<16x128xf32, #tpu.memory_space<vmem>>, vector<1x128xf32>,
    %1286 = vector.extract_strided_slice %1260 {offsets = [0, 0], sizes = [1, 32], strides = [1, 1]} : vector<1x128xf32> to vector<1x32xf32>
    %c0_374 = arith.constant 0 : index
    %c0_375 = arith.constant 0 : index
    %1287 = vector.load %arg8[%c0_374, %c0_375] : memref<32x512xf32, #tpu.memory_space<vmem>>, vector<32x512xf32>
    %cst_376 = arith.constant dense<0.000000e+00> : vector<1x512xf32>
    %1288 = tpu.matmul %1286, %1287, %cst_376 {dimension_numbers = #tpu.dot_dimension_numbers<[1], [0], [0], [1], [0, 0, 1, 1], [], []>} : vector<1x32xf32>, vector<32x512xf32>, vector<1x512xf32> -> vector<1x512xf32>
    %1289 = arith.addf %740, %1288 : vector<1x512xf32>
    %1290 = vector.extract_strided_slice %1289 {offsets = [0, 0], sizes = [1, 384], strides = [1, 1]} : vector<1x512xf32> to vector<1x384xf32>
    %1291 = arith.negf %1290 : vector<1x384xf32>
    %1292 = math.exp %1291 : vector<1x384xf32>
    %cst_377 = arith.constant 1.000000e+00 : f32
    %1293 = vector.broadcast %cst_377 : f32 to vector<1x384xf32>
    %1294 = arith.addf %1293, %1292 : vector<1x384xf32>
    %1295 = arith.divf %1293, %1294 : vector<1x384xf32>
    %1296 = vector.extract_strided_slice %1295 {offsets = [0, 0], sizes = [1, 128], strides = [1, 1]} : vector<1x384xf32> to vector<1x128xf32>
    %1297 = vector.extract_strided_slice %1295 {offsets = [0, 128], sizes = [1, 128], strides = [1, 1]} : vector<1x384xf32> to vector<1x128xf32>
    %1298 = vector.extract_strided_slice %1295 {offsets = [0, 256], sizes = [1, 128], strides = [1, 1]} : vector<1x384xf32> to vector<1x128xf32>
    %1299 = vector.extract_strided_slice %1289 {offsets = [0, 384], sizes = [1, 128], strides = [1, 1]} : vector<1x512xf32> to vector<1x128xf32>
    %1300 = math.tanh %1299 : vector<1x128xf32>
    %1301 = arith.mulf %1297, %1258 : vector<1x128xf32>
    %1302 = arith.mulf %1296, %1300 : vector<1x128xf32>
    %1303 = arith.addf %1301, %1302 : vector<1x128xf32>
    %1304 = math.tanh %1303 : vector<1x128xf32>
    %1305 = arith.mulf %1298, %1304 : vector<1x128xf32>
    %1306 = vector.extract_strided_slice %1305 {offsets = [0, 0], sizes = [1, 32], strides = [1, 1]} : vector<1x128xf32> to vector<1x32xf32>
    %c0_378 = arith.constant 0 : index
    %c0_379 = arith.constant 0 : index
    %1307 = vector.load %arg10[%c0_378, %c0_379] : memref<32x512xf32, #tpu.memory_space<vmem>>, vector<32x512xf32>
    %cst_380 = arith.constant dense<0.000000e+00> : vector<1x512xf32>
    %1308 = tpu.matmul %1306, %1307, %cst_380 {dimension_numbers = #tpu.dot_dimension_numbers<[1], [0], [0], [1], [0, 0, 1, 1], [], []>} : vector<1x32xf32>, vector<32x512xf32>, vector<1x512xf32> -> vector<1x512xf32>
    %1309 = arith.addf %1308, %741 : vector<1x512xf32>
    %1310 = vector.extract_strided_slice %1284 {offsets = [0, 0], sizes = [1, 64], strides = [1, 1]} : vector<1x128xf32> to vector<1x64xf32>
    %c0_381 = arith.constant 0 : index
    %c0_382 = arith.constant 0 : index
    %1311 = vector.load %arg11[%c0_381, %c0_382] : memref<64x512xf32, #tpu.memory_space<vmem>>, vector<64x512xf32>
    %cst_383 = arith.constant dense<0.000000e+00> : vector<1x512xf32>
    %1312 = tpu.matmul %1310, %1311, %cst_383 {dimension_numbers = #tpu.dot_dimension_numbers<[1], [0], [0], [1], [0, 0, 1, 1], [], []>} : vector<1x64xf32>, vector<64x512xf32>, vector<1x512xf32> -> vector<1x512xf32>
    %1313 = arith.addf %1309, %1312 : vector<1x512xf32>
    %1314 = vector.extract_strided_slice %1313 {offsets = [0, 0], sizes = [1, 384], strides = [1, 1]} : vector<1x512xf32> to vector<1x384xf32>
    %1315 = arith.negf %1314 : vector<1x384xf32>
    %1316 = math.exp %1315 : vector<1x384xf32>
    %cst_384 = arith.constant 1.000000e+00 : f32
    %1317 = vector.broadcast %cst_384 : f32 to vector<1x384xf32>
    %1318 = arith.addf %1317, %1316 : vector<1x384xf32>
    %1319 = arith.divf %1317, %1318 : vector<1x384xf32>
    %1320 = vector.extract_strided_slice %1319 {offsets = [0, 0], sizes = [1, 128], strides = [1, 1]} : vector<1x384xf32> to vector<1x128xf32>
    %1321 = vector.extract_strided_slice %1319 {offsets = [0, 128], sizes = [1, 128], strides = [1, 1]} : vector<1x384xf32> to vector<1x128xf32>
    %1322 = vector.extract_strided_slice %1319 {offsets = [0, 256], sizes = [1, 128], strides = [1, 1]} : vector<1x384xf32> to vector<1x128xf32>
    %1323 = vector.extract_strided_slice %1313 {offsets = [0, 384], sizes = [1, 128], strides = [1, 1]} : vector<1x512xf32> to vector<1x128xf32>
    %1324 = math.tanh %1323 : vector<1x128xf32>
    %1325 = arith.mulf %1321, %1282 : vector<1x128xf32>
    %1326 = arith.mulf %1320, %1324 : vector<1x128xf32>
    %1327 = arith.addf %1325, %1326 : vector<1x128xf32>
    %1328 = math.tanh %1327 : vector<1x128xf32>
    %1329 = arith.mulf %1322, %1328 : vector<1x128xf32>
    %c12_385 = arith.constant 12 : index
    %c0_386 = arith.constant 0 : index
    %1330 = vector.load %arg18[%c12_385, %c0_386] : memref<16x128xf32, #tpu.memory_space<vmem>>, vector<1x128xf32>
    tpu.vector_store %arg18[%c12_385, %c0_386], %1329 {strides = array<i32>} : memref<16x128xf32, #tpu.memory_space<vmem>>, vector<1x128xf32>,
    %1331 = vector.extract_strided_slice %1305 {offsets = [0, 0], sizes = [1, 32], strides = [1, 1]} : vector<1x128xf32> to vector<1x32xf32>
    %c0_387 = arith.constant 0 : index
    %c0_388 = arith.constant 0 : index
    %1332 = vector.load %arg8[%c0_387, %c0_388] : memref<32x512xf32, #tpu.memory_space<vmem>>, vector<32x512xf32>
    %cst_389 = arith.constant dense<0.000000e+00> : vector<1x512xf32>
    %1333 = tpu.matmul %1331, %1332, %cst_389 {dimension_numbers = #tpu.dot_dimension_numbers<[1], [0], [0], [1], [0, 0, 1, 1], [], []>} : vector<1x32xf32>, vector<32x512xf32>, vector<1x512xf32> -> vector<1x512xf32>
    %1334 = arith.addf %740, %1333 : vector<1x512xf32>
    %1335 = vector.extract_strided_slice %1334 {offsets = [0, 0], sizes = [1, 384], strides = [1, 1]} : vector<1x512xf32> to vector<1x384xf32>
    %1336 = arith.negf %1335 : vector<1x384xf32>
    %1337 = math.exp %1336 : vector<1x384xf32>
    %cst_390 = arith.constant 1.000000e+00 : f32
    %1338 = vector.broadcast %cst_390 : f32 to vector<1x384xf32>
    %1339 = arith.addf %1338, %1337 : vector<1x384xf32>
    %1340 = arith.divf %1338, %1339 : vector<1x384xf32>
    %1341 = vector.extract_strided_slice %1340 {offsets = [0, 0], sizes = [1, 128], strides = [1, 1]} : vector<1x384xf32> to vector<1x128xf32>
    %1342 = vector.extract_strided_slice %1340 {offsets = [0, 128], sizes = [1, 128], strides = [1, 1]} : vector<1x384xf32> to vector<1x128xf32>
    %1343 = vector.extract_strided_slice %1340 {offsets = [0, 256], sizes = [1, 128], strides = [1, 1]} : vector<1x384xf32> to vector<1x128xf32>
    %1344 = vector.extract_strided_slice %1334 {offsets = [0, 384], sizes = [1, 128], strides = [1, 1]} : vector<1x512xf32> to vector<1x128xf32>
    %1345 = math.tanh %1344 : vector<1x128xf32>
    %1346 = arith.mulf %1342, %1303 : vector<1x128xf32>
    %1347 = arith.mulf %1341, %1345 : vector<1x128xf32>
    %1348 = arith.addf %1346, %1347 : vector<1x128xf32>
    %1349 = math.tanh %1348 : vector<1x128xf32>
    %1350 = arith.mulf %1343, %1349 : vector<1x128xf32>
    %1351 = vector.extract_strided_slice %1350 {offsets = [0, 0], sizes = [1, 32], strides = [1, 1]} : vector<1x128xf32> to vector<1x32xf32>
    %c0_391 = arith.constant 0 : index
    %c0_392 = arith.constant 0 : index
    %1352 = vector.load %arg10[%c0_391, %c0_392] : memref<32x512xf32, #tpu.memory_space<vmem>>, vector<32x512xf32>
    %cst_393 = arith.constant dense<0.000000e+00> : vector<1x512xf32>
    %1353 = tpu.matmul %1351, %1352, %cst_393 {dimension_numbers = #tpu.dot_dimension_numbers<[1], [0], [0], [1], [0, 0, 1, 1], [], []>} : vector<1x32xf32>, vector<32x512xf32>, vector<1x512xf32> -> vector<1x512xf32>
    %1354 = arith.addf %1353, %741 : vector<1x512xf32>
    %1355 = vector.extract_strided_slice %1329 {offsets = [0, 0], sizes = [1, 64], strides = [1, 1]} : vector<1x128xf32> to vector<1x64xf32>
    %c0_394 = arith.constant 0 : index
    %c0_395 = arith.constant 0 : index
    %1356 = vector.load %arg11[%c0_394, %c0_395] : memref<64x512xf32, #tpu.memory_space<vmem>>, vector<64x512xf32>
    %cst_396 = arith.constant dense<0.000000e+00> : vector<1x512xf32>
    %1357 = tpu.matmul %1355, %1356, %cst_396 {dimension_numbers = #tpu.dot_dimension_numbers<[1], [0], [0], [1], [0, 0, 1, 1], [], []>} : vector<1x64xf32>, vector<64x512xf32>, vector<1x512xf32> -> vector<1x512xf32>
    %1358 = arith.addf %1354, %1357 : vector<1x512xf32>
    %1359 = vector.extract_strided_slice %1358 {offsets = [0, 0], sizes = [1, 384], strides = [1, 1]} : vector<1x512xf32> to vector<1x384xf32>
    %1360 = arith.negf %1359 : vector<1x384xf32>
    %1361 = math.exp %1360 : vector<1x384xf32>
    %cst_397 = arith.constant 1.000000e+00 : f32
    %1362 = vector.broadcast %cst_397 : f32 to vector<1x384xf32>
    %1363 = arith.addf %1362, %1361 : vector<1x384xf32>
    %1364 = arith.divf %1362, %1363 : vector<1x384xf32>
    %1365 = vector.extract_strided_slice %1364 {offsets = [0, 0], sizes = [1, 128], strides = [1, 1]} : vector<1x384xf32> to vector<1x128xf32>
    %1366 = vector.extract_strided_slice %1364 {offsets = [0, 128], sizes = [1, 128], strides = [1, 1]} : vector<1x384xf32> to vector<1x128xf32>
    %1367 = vector.extract_strided_slice %1364 {offsets = [0, 256], sizes = [1, 128], strides = [1, 1]} : vector<1x384xf32> to vector<1x128xf32>
    %1368 = vector.extract_strided_slice %1358 {offsets = [0, 384], sizes = [1, 128], strides = [1, 1]} : vector<1x512xf32> to vector<1x128xf32>
    %1369 = math.tanh %1368 : vector<1x128xf32>
    %1370 = arith.mulf %1366, %1327 : vector<1x128xf32>
    %1371 = arith.mulf %1365, %1369 : vector<1x128xf32>
    %1372 = arith.addf %1370, %1371 : vector<1x128xf32>
    %1373 = math.tanh %1372 : vector<1x128xf32>
    %1374 = arith.mulf %1367, %1373 : vector<1x128xf32>
    %c13_398 = arith.constant 13 : index
    %c0_399 = arith.constant 0 : index
    %1375 = vector.load %arg18[%c13_398, %c0_399] : memref<16x128xf32, #tpu.memory_space<vmem>>, vector<1x128xf32>
    tpu.vector_store %arg18[%c13_398, %c0_399], %1374 {strides = array<i32>} : memref<16x128xf32, #tpu.memory_space<vmem>>, vector<1x128xf32>,
    %1376 = vector.extract_strided_slice %1350 {offsets = [0, 0], sizes = [1, 32], strides = [1, 1]} : vector<1x128xf32> to vector<1x32xf32>
    %c0_400 = arith.constant 0 : index
    %c0_401 = arith.constant 0 : index
    %1377 = vector.load %arg8[%c0_400, %c0_401] : memref<32x512xf32, #tpu.memory_space<vmem>>, vector<32x512xf32>
    %cst_402 = arith.constant dense<0.000000e+00> : vector<1x512xf32>
    %1378 = tpu.matmul %1376, %1377, %cst_402 {dimension_numbers = #tpu.dot_dimension_numbers<[1], [0], [0], [1], [0, 0, 1, 1], [], []>} : vector<1x32xf32>, vector<32x512xf32>, vector<1x512xf32> -> vector<1x512xf32>
    %1379 = arith.addf %740, %1378 : vector<1x512xf32>
    %1380 = vector.extract_strided_slice %1379 {offsets = [0, 0], sizes = [1, 384], strides = [1, 1]} : vector<1x512xf32> to vector<1x384xf32>
    %1381 = arith.negf %1380 : vector<1x384xf32>
    %1382 = math.exp %1381 : vector<1x384xf32>
    %cst_403 = arith.constant 1.000000e+00 : f32
    %1383 = vector.broadcast %cst_403 : f32 to vector<1x384xf32>
    %1384 = arith.addf %1383, %1382 : vector<1x384xf32>
    %1385 = arith.divf %1383, %1384 : vector<1x384xf32>
    %1386 = vector.extract_strided_slice %1385 {offsets = [0, 0], sizes = [1, 128], strides = [1, 1]} : vector<1x384xf32> to vector<1x128xf32>
    %1387 = vector.extract_strided_slice %1385 {offsets = [0, 128], sizes = [1, 128], strides = [1, 1]} : vector<1x384xf32> to vector<1x128xf32>
    %1388 = vector.extract_strided_slice %1385 {offsets = [0, 256], sizes = [1, 128], strides = [1, 1]} : vector<1x384xf32> to vector<1x128xf32>
    %1389 = vector.extract_strided_slice %1379 {offsets = [0, 384], sizes = [1, 128], strides = [1, 1]} : vector<1x512xf32> to vector<1x128xf32>
    %1390 = math.tanh %1389 : vector<1x128xf32>
    %1391 = arith.mulf %1387, %1348 : vector<1x128xf32>
    %1392 = arith.mulf %1386, %1390 : vector<1x128xf32>
    %1393 = arith.addf %1391, %1392 : vector<1x128xf32>
    %1394 = math.tanh %1393 : vector<1x128xf32>
    %1395 = arith.mulf %1388, %1394 : vector<1x128xf32>
    %1396 = vector.extract_strided_slice %1395 {offsets = [0, 0], sizes = [1, 32], strides = [1, 1]} : vector<1x128xf32> to vector<1x32xf32>
    %c0_404 = arith.constant 0 : index
    %c0_405 = arith.constant 0 : index
    %1397 = vector.load %arg10[%c0_404, %c0_405] : memref<32x512xf32, #tpu.memory_space<vmem>>, vector<32x512xf32>
    %cst_406 = arith.constant dense<0.000000e+00> : vector<1x512xf32>
    %1398 = tpu.matmul %1396, %1397, %cst_406 {dimension_numbers = #tpu.dot_dimension_numbers<[1], [0], [0], [1], [0, 0, 1, 1], [], []>} : vector<1x32xf32>, vector<32x512xf32>, vector<1x512xf32> -> vector<1x512xf32>
    %1399 = arith.addf %1398, %741 : vector<1x512xf32>
    %1400 = vector.extract_strided_slice %1374 {offsets = [0, 0], sizes = [1, 64], strides = [1, 1]} : vector<1x128xf32> to vector<1x64xf32>
    %c0_407 = arith.constant 0 : index
    %c0_408 = arith.constant 0 : index
    %1401 = vector.load %arg11[%c0_407, %c0_408] : memref<64x512xf32, #tpu.memory_space<vmem>>, vector<64x512xf32>
    %cst_409 = arith.constant dense<0.000000e+00> : vector<1x512xf32>
    %1402 = tpu.matmul %1400, %1401, %cst_409 {dimension_numbers = #tpu.dot_dimension_numbers<[1], [0], [0], [1], [0, 0, 1, 1], [], []>} : vector<1x64xf32>, vector<64x512xf32>, vector<1x512xf32> -> vector<1x512xf32>
    %1403 = arith.addf %1399, %1402 : vector<1x512xf32>
    %1404 = vector.extract_strided_slice %1403 {offsets = [0, 0], sizes = [1, 384], strides = [1, 1]} : vector<1x512xf32> to vector<1x384xf32>
    %1405 = arith.negf %1404 : vector<1x384xf32>
    %1406 = math.exp %1405 : vector<1x384xf32>
    %cst_410 = arith.constant 1.000000e+00 : f32
    %1407 = vector.broadcast %cst_410 : f32 to vector<1x384xf32>
    %1408 = arith.addf %1407, %1406 : vector<1x384xf32>
    %1409 = arith.divf %1407, %1408 : vector<1x384xf32>
    %1410 = vector.extract_strided_slice %1409 {offsets = [0, 0], sizes = [1, 128], strides = [1, 1]} : vector<1x384xf32> to vector<1x128xf32>
    %1411 = vector.extract_strided_slice %1409 {offsets = [0, 128], sizes = [1, 128], strides = [1, 1]} : vector<1x384xf32> to vector<1x128xf32>
    %1412 = vector.extract_strided_slice %1409 {offsets = [0, 256], sizes = [1, 128], strides = [1, 1]} : vector<1x384xf32> to vector<1x128xf32>
    %1413 = vector.extract_strided_slice %1403 {offsets = [0, 384], sizes = [1, 128], strides = [1, 1]} : vector<1x512xf32> to vector<1x128xf32>
    %1414 = math.tanh %1413 : vector<1x128xf32>
    %1415 = arith.mulf %1411, %1372 : vector<1x128xf32>
    %1416 = arith.mulf %1410, %1414 : vector<1x128xf32>
    %1417 = arith.addf %1415, %1416 : vector<1x128xf32>
    %1418 = math.tanh %1417 : vector<1x128xf32>
    %1419 = arith.mulf %1412, %1418 : vector<1x128xf32>
    %c14_411 = arith.constant 14 : index
    %c0_412 = arith.constant 0 : index
    %1420 = vector.load %arg18[%c14_411, %c0_412] : memref<16x128xf32, #tpu.memory_space<vmem>>, vector<1x128xf32>
    tpu.vector_store %arg18[%c14_411, %c0_412], %1419 {strides = array<i32>} : memref<16x128xf32, #tpu.memory_space<vmem>>, vector<1x128xf32>,
    %1421 = vector.extract_strided_slice %1395 {offsets = [0, 0], sizes = [1, 32], strides = [1, 1]} : vector<1x128xf32> to vector<1x32xf32>
    %c0_413 = arith.constant 0 : index
    %c0_414 = arith.constant 0 : index
    %1422 = vector.load %arg8[%c0_413, %c0_414] : memref<32x512xf32, #tpu.memory_space<vmem>>, vector<32x512xf32>
    %cst_415 = arith.constant dense<0.000000e+00> : vector<1x512xf32>
    %1423 = tpu.matmul %1421, %1422, %cst_415 {dimension_numbers = #tpu.dot_dimension_numbers<[1], [0], [0], [1], [0, 0, 1, 1], [], []>} : vector<1x32xf32>, vector<32x512xf32>, vector<1x512xf32> -> vector<1x512xf32>
    %1424 = arith.addf %740, %1423 : vector<1x512xf32>
    %1425 = vector.extract_strided_slice %1424 {offsets = [0, 0], sizes = [1, 384], strides = [1, 1]} : vector<1x512xf32> to vector<1x384xf32>
    %1426 = arith.negf %1425 : vector<1x384xf32>
    %1427 = math.exp %1426 : vector<1x384xf32>
    %cst_416 = arith.constant 1.000000e+00 : f32
    %1428 = vector.broadcast %cst_416 : f32 to vector<1x384xf32>
    %1429 = arith.addf %1428, %1427 : vector<1x384xf32>
    %1430 = arith.divf %1428, %1429 : vector<1x384xf32>
    %1431 = vector.extract_strided_slice %1430 {offsets = [0, 0], sizes = [1, 128], strides = [1, 1]} : vector<1x384xf32> to vector<1x128xf32>
    %1432 = vector.extract_strided_slice %1430 {offsets = [0, 128], sizes = [1, 128], strides = [1, 1]} : vector<1x384xf32> to vector<1x128xf32>
    %1433 = vector.extract_strided_slice %1430 {offsets = [0, 256], sizes = [1, 128], strides = [1, 1]} : vector<1x384xf32> to vector<1x128xf32>
    %1434 = vector.extract_strided_slice %1424 {offsets = [0, 384], sizes = [1, 128], strides = [1, 1]} : vector<1x512xf32> to vector<1x128xf32>
    %1435 = math.tanh %1434 : vector<1x128xf32>
    %1436 = arith.mulf %1432, %1393 : vector<1x128xf32>
    %1437 = arith.mulf %1431, %1435 : vector<1x128xf32>
    %1438 = arith.addf %1436, %1437 : vector<1x128xf32>
    %1439 = math.tanh %1438 : vector<1x128xf32>
    %1440 = arith.mulf %1433, %1439 : vector<1x128xf32>
    %1441 = vector.extract_strided_slice %1440 {offsets = [0, 0], sizes = [1, 32], strides = [1, 1]} : vector<1x128xf32> to vector<1x32xf32>
    %c0_417 = arith.constant 0 : index
    %c0_418 = arith.constant 0 : index
    %1442 = vector.load %arg10[%c0_417, %c0_418] : memref<32x512xf32, #tpu.memory_space<vmem>>, vector<32x512xf32>
    %cst_419 = arith.constant dense<0.000000e+00> : vector<1x512xf32>
    %1443 = tpu.matmul %1441, %1442, %cst_419 {dimension_numbers = #tpu.dot_dimension_numbers<[1], [0], [0], [1], [0, 0, 1, 1], [], []>} : vector<1x32xf32>, vector<32x512xf32>, vector<1x512xf32> -> vector<1x512xf32>
    %1444 = arith.addf %1443, %741 : vector<1x512xf32>
    %1445 = vector.extract_strided_slice %1419 {offsets = [0, 0], sizes = [1, 64], strides = [1, 1]} : vector<1x128xf32> to vector<1x64xf32>
    %c0_420 = arith.constant 0 : index
    %c0_421 = arith.constant 0 : index
    %1446 = vector.load %arg11[%c0_420, %c0_421] : memref<64x512xf32, #tpu.memory_space<vmem>>, vector<64x512xf32>
    %cst_422 = arith.constant dense<0.000000e+00> : vector<1x512xf32>
    %1447 = tpu.matmul %1445, %1446, %cst_422 {dimension_numbers = #tpu.dot_dimension_numbers<[1], [0], [0], [1], [0, 0, 1, 1], [], []>} : vector<1x64xf32>, vector<64x512xf32>, vector<1x512xf32> -> vector<1x512xf32>
    %1448 = arith.addf %1444, %1447 : vector<1x512xf32>
    %1449 = vector.extract_strided_slice %1448 {offsets = [0, 0], sizes = [1, 384], strides = [1, 1]} : vector<1x512xf32> to vector<1x384xf32>
    %1450 = arith.negf %1449 : vector<1x384xf32>
    %1451 = math.exp %1450 : vector<1x384xf32>
    %cst_423 = arith.constant 1.000000e+00 : f32
    %1452 = vector.broadcast %cst_423 : f32 to vector<1x384xf32>
    %1453 = arith.addf %1452, %1451 : vector<1x384xf32>
    %1454 = arith.divf %1452, %1453 : vector<1x384xf32>
    %1455 = vector.extract_strided_slice %1454 {offsets = [0, 0], sizes = [1, 128], strides = [1, 1]} : vector<1x384xf32> to vector<1x128xf32>
    %1456 = vector.extract_strided_slice %1454 {offsets = [0, 128], sizes = [1, 128], strides = [1, 1]} : vector<1x384xf32> to vector<1x128xf32>
    %1457 = vector.extract_strided_slice %1454 {offsets = [0, 256], sizes = [1, 128], strides = [1, 1]} : vector<1x384xf32> to vector<1x128xf32>
    %1458 = vector.extract_strided_slice %1448 {offsets = [0, 384], sizes = [1, 128], strides = [1, 1]} : vector<1x512xf32> to vector<1x128xf32>
    %1459 = math.tanh %1458 : vector<1x128xf32>
    %1460 = arith.mulf %1456, %1417 : vector<1x128xf32>
    %1461 = arith.mulf %1455, %1459 : vector<1x128xf32>
    %1462 = arith.addf %1460, %1461 : vector<1x128xf32>
    %1463 = math.tanh %1462 : vector<1x128xf32>
    %1464 = arith.mulf %1457, %1463 : vector<1x128xf32>
    %c15_424 = arith.constant 15 : index
    %c0_425 = arith.constant 0 : index
    %1465 = vector.load %arg18[%c15_424, %c0_425] : memref<16x128xf32, #tpu.memory_space<vmem>>, vector<1x128xf32>
    tpu.vector_store %arg18[%c15_424, %c0_425], %1464 {strides = array<i32>} : memref<16x128xf32, #tpu.memory_space<vmem>>, vector<1x128xf32>,
    %c0_426 = arith.constant 0 : index
    %c0_427 = arith.constant 0 : index
    %1466 = vector.load %arg18[%c0_426, %c0_427] : memref<16x128xf32, #tpu.memory_space<vmem>>, vector<16x128xf32>
    %c0_428 = arith.constant 0 : index
    %c0_429 = arith.constant 0 : index
    %1467 = vector.load %arg13[%c0_428, %c0_429] : memref<1x128xf32, #tpu.memory_space<vmem>>, vector<1x128xf32>
    %1468 = vector.broadcast %1467 : vector<1x128xf32> to vector<16x128xf32>
    %1469 = arith.mulf %1466, %1468 : vector<16x128xf32>
    %cst_430 = arith.constant dense<0.000000e+00> : vector<16xf32>
    %1470 = vector.multi_reduction <add>, %1469, %cst_430 [1] : vector<16x128xf32> to vector<16xf32>
    %1471 = vector.shape_cast %1470 : vector<16xf32> to vector<16x1xf32>
    %c0_431 = arith.constant 0 : index
    %c0_432 = arith.constant 0 : index
    %1472 = vector.load %arg14[%c0_431, %c0_432] : memref<1x1xf32, #tpu.memory_space<vmem>>, vector<1x1xf32>
    %1473 = vector.broadcast %1472 : vector<1x1xf32> to vector<16x1xf32>
    %1474 = arith.addf %1471, %1473 : vector<16x1xf32>
    %c0_433 = arith.constant 0 : index
    %c0_434 = arith.constant 0 : index
    %1475 = vector.load %arg15[%c0_433, %c0_434] : memref<16x1xf32, #tpu.memory_space<vmem>>, vector<16x1xf32>
    tpu.vector_store %arg15[%c0_433, %c0_434], %1474 {strides = array<i32>} : memref<16x1xf32, #tpu.memory_space<vmem>>, vector<16x1xf32>,
    return
  }
}

</mosaic_0001>

<bundles_post_ra>
// kernel: tpu_custom_call.1
= control target key start
LH: loop header
LB: loop body
LE: loop exit
PB: predicated region body
PF: predicated region fallthrough
CT: control target
= control target key end

     0   :  { %s24428_s0 = inlined_call_operand.vmem [shape: f32[16,1], index: 0, kind: input, shape index: {}]   ;;  %s24429_s1 = inlined_call_operand.vmem [shape: f32[1,512], index: 1, kind: input, shape index: {}]   ;;  %s24430_s2 = inlined_call_operand.hbm [shape: f32[64,512], index: 2, kind: input, shape index: {}]   ;;  %s24431_s3 = inlined_call_operand.vmem [shape: f32[1,512], index: 3, kind: input, shape index: {}]   ;;  %s24432_s4 = inlined_call_operand.hbm [shape: f32[64,512], index: 4, kind: input, shape index: {}]   ;;  %s24433_s5 = inlined_call_operand.hbm [shape: f32[32,512], index: 5, kind: input, shape index: {}]   ;;  %s24434_s6 = inlined_call_operand.vmem [shape: f32[1,512], index: 6, kind: input, shape index: {}]   ;;  %s24435_s7 = inlined_call_operand.hbm [shape: f32[32,512], index: 7, kind: input, shape index: {}]   ;;  %s24436_s8 = inlined_call_operand.hbm [shape: f32[32,512], index: 8, kind: input, shape index: {}]   ;;  %s24437_s9 = inlined_call_operand.vmem [shape: f32[1,512], index: 9, kind: input, shape index: {}]   ;;  %s24438_s10 = inlined_call_operand.hbm [shape: f32[32,512], index: 10, kind: input, shape index: {}]   ;;  %s24439_s11 = inlined_call_operand.hbm [shape: f32[64,512], index: 11, kind: input, shape index: {}]   ;;  %s24440_s12 = inlined_call_operand.vmem [shape: f32[1,512], index: 12, kind: input, shape index: {}]   ;;  %s24441_s13 = inlined_call_operand.vmem [shape: f32[1,128], index: 13, kind: input, shape index: {}]   ;;  %s24442_s14 = inlined_call_operand.<no memory space> [shape: f32[1,1], index: 14, kind: input, shape index: {}]   ;;  %s24443_s15 = inlined_call_operand.vmem [shape: f32[16,1], index: 15, kind: output, shape index: {0}]   ;;  %s24444_s16 = inlined_call_operand.hbm [shape: f32[1,32], index: 16, kind: output, shape index: {1}]  }
   0x1   :  { %24466 = sst [smem:[#allocation32_spill]] %s24428_s0  ;;  %v22_v0 = vstv %s24442_s14 }
   0x2   :  { %23 = vst [vmem:[#allocation4] sm:$0x1] %v22_v0 }
   0x3   :  { %24 = vsyncpa [#allocation6], 0 }
   0x4   :  { %25 = vsyncpa [#allocation9], 0 }
   0x5   :  { %26 = vsyncpa [#allocation12], 0 }
   0x6   :  { %27 = vsyncpa [#allocation15], 0 }
   0x7   :  { %28 = vsyncpa [#allocation7], 0  ;;  %s21650_s23 = smov [#allocation8]   ;;  %s21651_s25 = smov [#allocation11]  }
   0x8   :  { %s52_s24 = sshll.u32 %s21650_s23, 4  ;;  %s78_s26 = sshll.u32 %s21651_s25, 4  ;;  %s53_s24 = int_to_ptr.vmem [resolvable:$true] %s52_s24  ;;  %s21751_s26 = int_to_ptr.vmem [resolvable:$true] %s78_s26 }
   0x9   :  { %s21464_s29 = scalar_lea.hbm %s24432_s4, 4096 }
   0xa   :  { %p21465_p0 = scmp.ne.s32.totalorder %s24432_s4, %s21464_s29  ;;  %p21468_p1 = scmp.lt.u32.totalorder %s21464_s29, %s24432_s4 }
   0xc   :  { %p21470_p2 = pnand %p21468_p1, %p21465_p0 }
   0xe   :  { %21473 = shalt.err (!%p21470_p2)
}
   0xf   :  { %s21474_s18 = scalar_lea.vmem %s53_s24, 4096  ;;  %p21479_p4 = scmp.lt.s32.totalorder %s53_s24, %s53_s24 }
  0x10   :  { %p21475_p3 = scmp.ne.s32.totalorder %s53_s24, %s21474_s18  ;;  %p21480_p5 = scmp.lt.s32.totalorder %s21474_s18, %s21474_s18 }
  0x12   :  { %p21481_p6 = por %p21480_p5, %p21479_p4 }
  0x14   :  { %p21482_p7 = pnand %p21481_p6, %p21475_p3 }
  0x16   :  { %21485 = shalt.err (!%p21482_p7)
}
  0x17   :  { %s21652_s19 = smov 512   ;;  %s21653_s20 = smov 32  }
  0x18   :  { %58 = dma.hbm_to_vmem [thread:$0]  %s24432_s4, 4096, %s53_s24, [#allocation9], %s21652_s19, %s21652_s19, %s21653_s20  }
  0x19   :  { %s21486_s27 = scalar_lea.hbm %s24435_s7, 2048 }
  0x1a   :  { %p21487_p8 = scmp.ne.s32.totalorder %s24435_s7, %s21486_s27  ;;  %p21490_p9 = scmp.lt.u32.totalorder %s21486_s27, %s24435_s7 }
  0x1c   :  { %p21492_p10 = pnand %p21490_p9, %p21487_p8 }
  0x1e   :  { %21495 = shalt.err (!%p21492_p10)
}
  0x1f   :  { %s21496_s14 = scalar_lea.vmem %s21751_s26, 2048  ;;  %p21501_p12 = scmp.lt.s32.totalorder %s21751_s26, %s21751_s26 }
  0x20   :  { %p21497_p11 = scmp.ne.s32.totalorder %s21751_s26, %s21496_s14  ;;  %p21502_p13 = scmp.lt.s32.totalorder %s21496_s14, %s21496_s14 }
  0x22   :  { %p21503_p0 = por %p21502_p13, %p21501_p12 }
  0x24   :  { %p21504_p1 = pnand %p21503_p0, %p21497_p11 }
  0x26   :  { %21507 = shalt.err (!%p21504_p1)
}
  0x27   :  { %84 = dma.hbm_to_vmem [thread:$0]  %s24435_s7, 2048, %s21751_s26, [#allocation12], %s21652_s19, %s21652_s19, %s21653_s20  }
  0x28   :  { %s21654_s17 = smov [#allocation14]   ;;  %s21655_s21 = smov [#allocation5]  }
  0x29   :  { %s104_s18 = sshll.u32 %s21654_s17, 4  ;;  %s38_s22 = sshll.u32 %s21655_s21, 4  ;;  %s105_s18 = int_to_ptr.vmem [resolvable:$true] %s104_s18  ;;  %s21788_s22 = int_to_ptr.vmem [resolvable:$true] %s38_s22 }
  0x2a   :  { %s21508_s27 = scalar_lea.hbm %s24438_s10, 2048 }
  0x2b   :  { %p21509_p2 = scmp.ne.s32.totalorder %s24438_s10, %s21508_s27  ;;  %p21512_p3 = scmp.lt.u32.totalorder %s21508_s27, %s24438_s10 }
  0x2d   :  { %p21514_p4 = pnand %p21512_p3, %p21509_p2 }
  0x2f   :  { %21517 = shalt.err (!%p21514_p4)
}
  0x30   :  { %s21518_s7 = scalar_lea.vmem %s105_s18, 2048  ;;  %p21523_p6 = scmp.lt.s32.totalorder %s105_s18, %s105_s18 }
  0x31   :  { %p21519_p5 = scmp.ne.s32.totalorder %s105_s18, %s21518_s7  ;;  %p21524_p7 = scmp.lt.s32.totalorder %s21518_s7, %s21518_s7 }
  0x33   :  { %p21525_p8 = por %p21524_p7, %p21523_p6 }
  0x35   :  { %p21526_p9 = pnand %p21525_p8, %p21519_p5 }
  0x37   :  { %21529 = shalt.err (!%p21526_p9)
}
  0x38   :  { %110 = dma.hbm_to_vmem [thread:$0]  %s24438_s10, 2048, %s105_s18, [#allocation15], %s21652_s19, %s21652_s19, %s21653_s20  }
  0x39   :  { %s21530_s17 = scalar_lea.hbm %s24430_s2, 4096 }
  0x3a   :  { %p21531_p10 = scmp.ne.s32.totalorder %s24430_s2, %s21530_s17  ;;  %p21534_p11 = scmp.lt.u32.totalorder %s21530_s17, %s24430_s2 }
  0x3c   :  { %p21536_p12 = pnand %p21534_p11, %p21531_p10 }
  0x3e   :  { %21539 = shalt.err (!%p21536_p12)
}
  0x3f   :  { %s21540_s28 = scalar_lea.vmem %s21788_s22, 4096  ;;  %p21545_p0 = scmp.lt.s32.totalorder %s21788_s22, %s21788_s22 }
  0x40   :  { %p21541_p13 = scmp.ne.s32.totalorder %s21788_s22, %s21540_s28  ;;  %p21546_p1 = scmp.lt.s32.totalorder %s21540_s28, %s21540_s28 }
  0x42   :  { %p21547_p2 = por %p21546_p1, %p21545_p0 }
  0x44   :  { %p21548_p3 = pnand %p21547_p2, %p21541_p13 }
  0x46   :  { %21551 = shalt.err (!%p21548_p3)
}
  0x47   :  { %44 = dma.hbm_to_vmem [thread:$0]  %s24430_s2, 4096, %s21788_s22, [#allocation6], %s21652_s19, %s21652_s19, %s21653_s20  }
  0x48   :  { %s21656_s29 = smov [#allocation10]   ;;  %s21657_s0 = smov [#allocation13]  }
  0x49   :  { %s64_s30 = sshll.u32 %s21656_s29, 4  ;;  %s90_s7 = sshll.u32 %s21657_s0, 4  ;;  %s65_s30 = int_to_ptr.vmem [resolvable:$true] %s64_s30  ;;  %s21825_s7 = int_to_ptr.vmem [resolvable:$true] %s90_s7 }
  0x4a   :  { %s21552_s4 = scalar_lea.hbm %s24433_s5, 2048 }
  0x4b   :  { %p21553_p4 = scmp.ne.s32.totalorder %s24433_s5, %s21552_s4  ;;  %p21556_p5 = scmp.lt.u32.totalorder %s21552_s4, %s24433_s5 }
  0x4d   :  { %p21558_p6 = pnand %p21556_p5, %p21553_p4 }
  0x4f   :  { %21561 = shalt.err (!%p21558_p6)
}
  0x50   :  { %s21562_s2 = scalar_lea.vmem %s65_s30, 2048  ;;  %p21567_p8 = scmp.lt.s32.totalorder %s65_s30, %s65_s30 }
  0x51   :  { %p21563_p7 = scmp.ne.s32.totalorder %s65_s30, %s21562_s2  ;;  %p21568_p9 = scmp.lt.s32.totalorder %s21562_s2, %s21562_s2 }
  0x53   :  { %p21569_p10 = por %p21568_p9, %p21567_p8 }
  0x55   :  { %p21570_p11 = pnand %p21569_p10, %p21563_p7 }
  0x57   :  { %21573 = shalt.err (!%p21570_p11)
}
  0x58   :  { %70 = dma.hbm_to_vmem [thread:$0]  %s24433_s5, 2048, %s65_s30, [#allocation9], %s21652_s19, %s21652_s19, %s21653_s20  }
  0x59   :  { %s21574_s10 = scalar_lea.hbm %s24436_s8, 2048 }
  0x5a   :  { %p21575_p12 = scmp.ne.s32.totalorder %s24436_s8, %s21574_s10  ;;  %p21578_p13 = scmp.lt.u32.totalorder %s21574_s10, %s24436_s8 }
  0x5c   :  { %p21580_p0 = pnand %p21578_p13, %p21575_p12 }
  0x5e   :  { %21583 = shalt.err (!%p21580_p0)
}
  0x5f   :  { %s21584_s14 = scalar_lea.vmem %s21825_s7, 2048  ;;  %p21589_p2 = scmp.lt.s32.totalorder %s21825_s7, %s21825_s7 }
  0x60   :  { %p21585_p1 = scmp.ne.s32.totalorder %s21825_s7, %s21584_s14  ;;  %p21590_p3 = scmp.lt.s32.totalorder %s21584_s14, %s21584_s14 }
  0x62   :  { %p21591_p4 = por %p21590_p3, %p21589_p2 }
  0x64   :  { %p21592_p5 = pnand %p21591_p4, %p21585_p1 }
  0x66   :  { %21595 = shalt.err (!%p21592_p5)
}
  0x67   :  { %96 = dma.hbm_to_vmem [thread:$0]  %s24436_s8, 2048, %s21825_s7, [#allocation12], %s21652_s19, %s21652_s19, %s21653_s20  }
  0x68   :  { %s21658_s4 = smov [#allocation16]   ;;  %s21596_s23 = scalar_lea.hbm %s24439_s11, 4096 }
  0x69   :  { %s116_s24 = sshll.u32 %s21658_s4, 4  ;;  %p21597_p6 = scmp.ne.s32.totalorder %s24439_s11, %s21596_s23  ;;  %s117_s24 = int_to_ptr.vmem [resolvable:$true] %s116_s24 }
  0x6a   :  { %p21600_p7 = scmp.lt.u32.totalorder %s21596_s23, %s24439_s11 }
  0x6c   :  { %p21602_p8 = pnand %p21600_p7, %p21597_p6 }
  0x6e   :  { %21605 = shalt.err (!%p21602_p8)
}
  0x6f   :  { %s21606_s28 = scalar_lea.vmem %s117_s24, 4096  ;;  %p21611_p10 = scmp.lt.s32.totalorder %s117_s24, %s117_s24 }
  0x70   :  { %p21607_p9 = scmp.ne.s32.totalorder %s117_s24, %s21606_s28  ;;  %p21612_p11 = scmp.lt.s32.totalorder %s21606_s28, %s21606_s28 }
  0x72   :  { %p21613_p12 = por %p21612_p11, %p21611_p10 }
  0x74   :  { %p21614_p13 = pnand %p21613_p12, %p21607_p9 }
  0x76   :  { %21617 = shalt.err (!%p21614_p13)
}
  0x77   :  { %122 = dma.hbm_to_vmem [thread:$0]  %s24439_s11, 4096, %s117_s24, [#allocation15], %s21652_s19, %s21652_s19, %s21653_s20  }
  0x78   :  { %21640 = dma.done.wait [#allocation6], 4096  }
  0x79   :  { %21641 = vsyncadd [#allocation6], 4294963200 }
  0x7a   :  { %21642 = dma.done.wait [#allocation9], 6144  }
  0x7b   :  { %21643 = vsyncadd [#allocation9], 4294961152 }
  0x7c   :  { %21644 = dma.done.wait [#allocation12], 4096  }
  0x7d   :  { %21645 = vsyncadd [#allocation12], 4294963200 }
  0x7e   :  { %21646 = dma.done.wait [#allocation15], 6144  }
  0x7f   :  { %21647 = vsyncadd [#allocation15], 4294961152  ;;  %v24446_v1 = vmov 0.0   ;;  %v21660_v2 = vmov 0   ;;  %v233_v3 = vld [vmem:[#allocation5 + $0x8] sm:$0xff]  ;;  %v235_v5 = vld [vmem:[#allocation5 + $0x18] sm:$0xff]  ;;  %v164_v53 = vlaneseq }
  0x80   :  { %332 = vmatprep.mubr.f32.mxu0 %v24446_v1  ;;  %403 = vmatprep.mubr.f32.mxu1 %v24446_v1  ;;  %v237_v4 = vld [vmem:[#allocation5 + $0x28] sm:$0xff]  ;;  %v239_v7 = vld [vmem:[#allocation5 + $0x38] sm:$0xff]  ;;  %v232_v8 = vld [vmem:[#allocation5] sm:$0xff]  ;;  %s24467_s20 = sld [smem:[#allocation32_spill]]  ;;  %vm264_vm0 = vcmask 523264   ;;  %vm674_vm1 = vcmask 261120  }
  0x81   :  { %20565 = vset.pattern.permute.xlu0 %v21660_v2  ;;  %v21879_v6 = vpack.c.bf16 %v237_v4, %v233_v3  ;;  %v236_v9 = vld [vmem:[#allocation5 + $0x20] sm:$0xff]  ;;  %v21881_v10 = vpack.c.bf16 %v239_v7, %v235_v5  ;;  %v234_v12 = vld [vmem:[#allocation5 + $0x10] sm:$0xff]  ;;  %v241_v14 = vld [vmem:[#allocation5 + $0x48] sm:$0xff]  ;;  %v21937_v54 = vshrl.u32 %v164_v53, 7  ;;  %vm8527_vm2 = vcmask 253952   ;;  %s21662_s2 = smov [#allocation17]  }
  0x82   :  { %v21883_v11 = vpack.c.bf16 %v236_v9, %v232_v8  ;;  %v238_v13 = vld [vmem:[#allocation5 + $0x30] sm:$0xff]  ;;  %v245_v16 = vld [vmem:[#allocation5 + $0x68] sm:$0xff]  ;;  %v243_v17 = vld [vmem:[#allocation5 + $0x58] sm:$0xff]  ;;  %vm17603_vm3 = vcmask 7168   ;;  %s17614_s22 = sshll.u32 %s21662_s2, 4  ;;  %s17615_s22 = int_to_ptr.vmem [resolvable:$true] %s17614_s22 }
  0x83   :  { %17977 = vmatprep.subr.bf16.mxu0 %v21879_v6  ;;  %v21886_v15 = vpack.c.bf16 %v238_v13, %v234_v12  ;;  %v247_v18 = vld [vmem:[#allocation5 + $0x78] sm:$0xff]  ;;  %17993 = vmatprep.subr.bf16.mxu1 %v21881_v10  ;;  %v21890_v19 = vpack.c.bf16 %v245_v16, %v241_v14  ;;  %v240_v21 = vld [vmem:[#allocation5 + $0x40] sm:$0xff]  ;;  %v242_v23 = vld [vmem:[#allocation5 + $0x50] sm:$0xff]  ;;  %v21940_v55 = vsub.s32 0, %v21937_v54  ;;  %v21943_v56 = vsub.s32 1, %v21937_v54  ;;  %s21618_s25 = scalar_lea.vmem %s17615_s22, 16  ;;  %p21623_p1 = scmp.lt.s32.totalorder %s17615_s22, %s17615_s22 }
  0x84   :  { %17979 = vmatpush1.bf16.msra.mxu0 %v21883_v11  ;;  %v21892_v20 = vpack.c.bf16 %v247_v18, %v243_v17  ;;  %v244_v22 = vld [vmem:[#allocation5 + $0x60] sm:$0xff]  ;;  %v246_v25 = vld [vmem:[#allocation5 + $0x70] sm:$0xff]  ;;  %v249_v26 = vld [vmem:[#allocation5 + $0x88] sm:$0xff]  ;;  %v21946_v57 = vsub.s32 2, %v21937_v54  ;;  %v21949_v58 = vsub.s32 3, %v21937_v54  ;;  %p21619_p0 = scmp.ne.s32.totalorder %s17615_s22, %s21618_s25  ;;  %s21622_s27 = scalar_lea.vmem %s17615_s22, 32 }
  0x85   :  { %17995 = vmatpush1.bf16.msra.mxu1 %v21886_v15  ;;  %v21895_v24 = vpack.c.bf16 %v244_v22, %v240_v21  ;;  %v253_v27 = vld [vmem:[#allocation5 + $0xa8] sm:$0xff]  ;;  %17981 = vmatprep.subr.bf16.mxu0 %v21890_v19  ;;  %v21899_v28 = vpack.c.bf16 %v246_v25, %v242_v23  ;;  %v251_v30 = vld [vmem:[#allocation5 + $0x98] sm:$0xff]  ;;  %v248_v32 = vld [vmem:[#allocation5 + $0x80] sm:$0xff]  ;;  %24468 = vst [vmem:[#allocation23_spill] sm:$0xff] %v21940_v55  ;;  %p21624_p2 = scmp.lt.s32.totalorder %s21622_s27, %s21618_s25 }
  0x86   :  { %17997 = vmatprep.subr.bf16.mxu1 %v21892_v20  ;;  %v21901_v29 = vpack.c.bf16 %v253_v27, %v249_v26  ;;  %v255_v31 = vld [vmem:[#allocation5 + $0xb8] sm:$0xff]  ;;  %v252_v34 = vld [vmem:[#allocation5 + $0xa0] sm:$0xff]  ;;  %v250_v35 = vld [vmem:[#allocation5 + $0x90] sm:$0xff]  ;;  %24469 = vst [vmem:[#allocation24_spill] sm:$0xff] %v21943_v56 }
  0x87   :  { %v21903_v33 = vpack.c.bf16 %v255_v31, %v251_v30  ;;  %v254_v36 = vld [vmem:[#allocation5 + $0xb0] sm:$0xff]  ;;  %v21906_v37 = vpack.c.bf16 %v252_v34, %v248_v32  ;;  %v257_v38 = vld [vmem:[#allocation5 + $0xc8] sm:$0xff]  ;;  %v259_v40 = vld [vmem:[#allocation5 + $0xd8] sm:$0xff]  ;;  %24470 = vst [vmem:[#allocation25_spill] sm:$0xff] %v21946_v57  ;;  %p21625_p3 = por %p21624_p2, %p21623_p1 }
  0x88   :  { %17983 = vmatpush1.bf16.msra.mxu0 %v21895_v24  ;;  %v261_v39 = vld [vmem:[#allocation5 + $0xe8] sm:$0xff]  ;;  %v21910_v41 = vpack.c.bf16 %v254_v36, %v250_v35  ;;  %v263_v43 = vld [vmem:[#allocation5 + $0xf8] sm:$0xff]  ;;  %v256_v44 = vld [vmem:[#allocation5 + $0xc0] sm:$0xff]  ;;  %24471 = vst [vmem:[#allocation26_spill] sm:$0xff] %v21949_v58 }
  0x89   :  { %17999 = vmatpush1.bf16.msra.mxu1 %v21899_v28  ;;  %17985 = vmatprep.subr.bf16.mxu0 %v21901_v29  ;;  %v21912_v42 = vpack.c.bf16 %v261_v39, %v257_v38  ;;  %v260_v45 = vld [vmem:[#allocation5 + $0xe0] sm:$0xff]  ;;  %v21915_v46 = vpack.c.bf16 %v263_v43, %v259_v40  ;;  %v258_v47 = vld [vmem:[#allocation5 + $0xd0] sm:$0xff]  ;;  %v461_v21 = vld [vmem:[#allocation8 + $0x8] sm:$0xff]  ;;  %p21626_p4 = pnand %p21625_p3, %p21619_p0 }
  0x8a   :  { %18001 = vmatprep.subr.bf16.mxu1 %v21903_v33  ;;  %v262_v48 = vld [vmem:[#allocation5 + $0xf0] sm:$0xff]  ;;  %v21921_v50 = vpack.c.bf16 %v260_v45, %v256_v44  ;;  %v465_v22 = vld [vmem:[#allocation8 + $0x28] sm:$0xff]  ;;  %v463_v23 = vld [vmem:[#allocation8 + $0x18] sm:$0xff] }
  0x8b   :  { %v150_v49 = vld [vmem:[%s24467_s20] sm:$0xff]  ;;  %v151_v51 = vld [vmem:[%s24467_s20 + $0x8] sm:$0xff]  ;;  %v21928_v52 = vpack.c.bf16 %v262_v48, %v258_v47  ;;  %v21965_v26 = vpack.c.bf16 %v465_v22, %v461_v21  ;;  %v460_v30 = vld [vmem:[#allocation8] sm:$0xff] }
  0x8c   :  { %155 = vperm.xlu0 %20565, %v150_v49   ;;  %17987 = vmatpush1.bf16.msra.mxu0 %v21906_v37  ;;  %v152_v59 = vld [vmem:[%s24429_s1] sm:$0xf]  ;;  %v467_v27 = vld [vmem:[#allocation8 + $0x38] sm:$0xff]  ;;  %v464_v31 = vld [vmem:[#allocation8 + $0x20] sm:$0xff] }
  0x8d   :  { %18003 = vmatpush1.bf16.msra.mxu1 %v21910_v41  ;;  %17989 = vmatprep.subr.bf16.mxu0 %v21912_v42  ;;  %v192_v60 = vld [vmem:[%s24431_s3] sm:$0xf]  ;;  %v167_v61 = vrot.slane %v152_v59, %v21940_v55  ;;  %v171_v62 = vrot.slane %v152_v59, %v21943_v56  ;;  %v175_v63 = vrot.slane %v152_v59, %v21946_v57 }
  0x8e   :  { %18005 = vmatprep.subr.bf16.mxu1 %v21915_v46  ;;  %v179_v0 = vrot.slane %v152_v59, %v21949_v58  ;;  %v197_v2 = vrot.slane %v192_v60, %v21940_v55  ;;  %v201_v3 = vrot.slane %v192_v60, %v21943_v56  ;;  %v205_v4 = vrot.slane %v192_v60, %v21946_v57  ;;  %v462_v38 = vld [vmem:[#allocation8 + $0x10] sm:$0xff]  ;;  %v473_v53 = vld [vmem:[#allocation8 + $0x68] sm:$0xff]  ;;  %v471_v59 = vld [vmem:[#allocation8 + $0x58] sm:$0xff] }
  0x8f   :  { %v209_v5 = vrot.slane %v192_v60, %v21949_v58  ;;  %v466_v39 = vld [vmem:[#allocation8 + $0x30] sm:$0xff]  ;;  %v21968_v40 = vpack.c.bf16 %v467_v27, %v463_v23  ;;  %v21970_v43 = vpack.c.bf16 %v464_v31, %v460_v30  ;;  %v485_v23 = vld [vmem:[#allocation8 + $0xc8] sm:$0xff]  ;;  %v487_v30 = vld [vmem:[#allocation8 + $0xd8] sm:$0xff] }
  0x90   :  { %160 = vperm.xlu0 %20565, %v151_v51   ;;  %17991 = vmatpush1.bf16.msra.mxu0 %v21921_v50  ;;  %v21972_v44 = vpack.c.bf16 %v466_v39, %v462_v38  ;;  %v469_v51 = vld [vmem:[#allocation8 + $0x48] sm:$0xff]  ;;  %v482_v22 = vld [vmem:[#allocation8 + $0xb0] sm:$0xff]  ;;  %v491_v31 = vld [vmem:[#allocation8 + $0xf8] sm:$0xff] }
  0x91   :  { %18007 = vmatpush1.bf16.msra.mxu1 %v21928_v52  ;;  %18009 = vmatprep.subr.bf16.mxu0 %v21965_v26  ;;  %v21976_v60 = vpack.c.bf16 %v473_v53, %v469_v51  ;;  %v489_v27 = vld [vmem:[#allocation8 + $0xe8] sm:$0xff]  ;;  %v486_v38 = vld [vmem:[#allocation8 + $0xd0] sm:$0xff]  ;;  %v665_v51 = vld [vmem:[#allocation10 + $0x38] sm:$0xff] }
  0x92   :  { %18025 = vmatprep.subr.bf16.mxu1 %v21968_v40  ;;  %v490_v39 = vld [vmem:[#allocation8 + $0xf0] sm:$0xff] }
  0x93   :  { %333 = vmatmul.mubr.f32.vlgmr.msra.gmra.mrb[0].mxu0 %v24446_v1  ;;  %v22008_v53 = vpack.c.bf16 %v490_v39, %v486_v38 }
  0x94   :  { %404 = vmatmul.mubr.f32.vlgmr.msra.gmra.mrb[0].mxu1 %v24446_v1  ;;  %580 = vmatprep.mubr.f32.mxu0 %v24446_v1 }
  0x95   :  { %651 = vmatprep.mubr.f32.mxu1 %v24446_v1  ;;  %18011 = vmatpush1.bf16.msra.mxu0 %v21970_v43 }
  0x96   :  { %18027 = vmatpush1.bf16.msra.mxu1 %v21972_v44  ;;  %18013 = vmatprep.subr.bf16.mxu0 %v21976_v60 }
 0x10b   :  { %v156_v7 = vpop.permute.xlu0 %155 }
 0x10c   :  { %v184_v8 = vmul.f32 %v167_v61, %v156_v7  ;;  %v185_v9 = vmul.f32 %v171_v62, %v156_v7  ;;  %v186_v12 = vmul.f32 %v175_v63, %v156_v7  ;;  %v187_v13 = vmul.f32 %v179_v0, %v156_v7 }
 0x10e   :  { %v214_v14 = vadd.f32 %v197_v2, %v184_v8  ;;  %v215_v16 = vadd.f32 %v201_v3, %v185_v9  ;;  %v216_v17 = vadd.f32 %v205_v4, %v186_v12  ;;  %v217_v18 = vadd.f32 %v209_v5, %v187_v13  ;;  %v481_v8 = vld [vmem:[#allocation8 + $0xa8] sm:$0xff]  ;;  %v479_v9 = vld [vmem:[#allocation8 + $0x98] sm:$0xff] }
 0x10f   :  { %v161_v25 = vpop.permute.xlu0 %160  ;;  %v483_v12 = vld [vmem:[#allocation8 + $0xb8] sm:$0xff] }
 0x110   :  { %222 = vst [vmem:[#allocation2] sm:$0xff] %v214_v14  ;;  %223 = vst [vmem:[#allocation2 + $0x8] sm:$0xff] %v215_v16  ;;  %v188_v32 = vmul.f32 %v167_v61, %v161_v25  ;;  %v189_v34 = vmul.f32 %v171_v62, %v161_v25  ;;  %v190_v35 = vmul.f32 %v175_v63, %v161_v25  ;;  %v475_v61 = vld [vmem:[#allocation8 + $0x78] sm:$0xff]  ;;  %v468_v62 = vld [vmem:[#allocation8 + $0x40] sm:$0xff] }
 0x111   :  { %224 = vst [vmem:[#allocation2 + $0x10] sm:$0xff] %v216_v17  ;;  %225 = vst [vmem:[#allocation2 + $0x18] sm:$0xff] %v217_v18  ;;  %v191_v36 = vmul.f32 %v179_v0, %v161_v25  ;;  %v472_v63 = vld [vmem:[#allocation8 + $0x60] sm:$0xff]  ;;  %v21979_v0 = vpack.c.bf16 %v475_v61, %v471_v59  ;;  %v21989_v14 = vpack.c.bf16 %v483_v12, %v479_v9  ;;  %v478_v18 = vld [vmem:[#allocation8 + $0x90] sm:$0xff] }
 0x112   :  { %v218_v45 = vadd.f32 %v197_v2, %v188_v32  ;;  %v219_v47 = vadd.f32 %v201_v3, %v189_v34  ;;  %v220_v48 = vadd.f32 %v205_v4, %v190_v35  ;;  %v21981_v2 = vpack.c.bf16 %v472_v63, %v468_v62  ;;  %v470_v3 = vld [vmem:[#allocation8 + $0x50] sm:$0xff]  ;;  %v476_v16 = vld [vmem:[#allocation8 + $0x80] sm:$0xff] }
 0x113   :  { %v221_v49 = vadd.f32 %v209_v5, %v191_v36  ;;  %v474_v4 = vld [vmem:[#allocation8 + $0x70] sm:$0xff]  ;;  %v477_v5 = vld [vmem:[#allocation8 + $0x88] sm:$0xff]  ;;  %18029 = vmatprep.subr.bf16.mxu1 %v21979_v0  ;;  %v480_v17 = vld [vmem:[#allocation8 + $0xa0] sm:$0xff]  ;;  %v21996_v25 = vpack.c.bf16 %v482_v22, %v478_v18  ;;  %v21999_v32 = vpack.c.bf16 %v489_v27, %v485_v23  ;;  %v22001_v34 = vpack.c.bf16 %v491_v31, %v487_v30 }
 0x114   :  { %226 = vst [vmem:[#allocation2 + $0x20] sm:$0xff] %v218_v45  ;;  %227 = vst [vmem:[#allocation2 + $0x28] sm:$0xff] %v219_v47  ;;  %v21984_v7 = vpack.c.bf16 %v474_v4, %v470_v3  ;;  %v21987_v13 = vpack.c.bf16 %v481_v8, %v477_v5  ;;  %18015 = vmatpush1.bf16.msra.mxu0 %v21981_v2  ;;  %v21992_v21 = vpack.c.bf16 %v480_v17, %v476_v16  ;;  %v484_v35 = vld [vmem:[#allocation8 + $0xc0] sm:$0xff]  ;;  %v659_v45 = vld [vmem:[#allocation10 + $0x8] sm:$0xff]  ;;  %v21661_v62 = vmov 1966171168  }
 0x115   :  { %228 = vst [vmem:[#allocation2 + $0x30] sm:$0xff] %v220_v48  ;;  %229 = vst [vmem:[#allocation2 + $0x38] sm:$0xff] %v221_v49  ;;  %v488_v36 = vld [vmem:[#allocation8 + $0xe0] sm:$0xff]  ;;  %v663_v47 = vld [vmem:[#allocation10 + $0x28] sm:$0xff]  ;;  %v417_v63 = vunpack.c.l.s4 %v21661_v62 }
 0x116   :  { %18031 = vmatpush1.bf16.msra.mxu1 %v21984_v7  ;;  %18017 = vmatprep.subr.bf16.mxu0 %v21987_v13  ;;  %v22004_v48 = vpack.c.bf16 %v488_v36, %v484_v35  ;;  %v661_v49 = vld [vmem:[#allocation10 + $0x18] sm:$0xff]  ;;  %v22010_v59 = vpack.c.bf16 %v663_v47, %v659_v45 }
 0x117   :  { %18033 = vmatprep.subr.bf16.mxu1 %v21989_v14  ;;  %v22013_v61 = vpack.c.bf16 %v665_v51, %v661_v49  ;;  %v418_v3 = vunpack.c.0.s8 %v417_v63  ;;  %v658_v63 = vld [vmem:[#allocation10] sm:$0xff] }
 0x118   :  { %18019 = vmatpush1.bf16.msra.mxu0 %v21992_v21  ;;  %24472 = vst [vmem:[#allocation27_spill] sm:$0xff] %v22010_v59  ;;  %v231_v27 = vld [vmem:[#allocation2] ss:$8 sm:$0xf] }
 0x119   :  { %18021 = vmatprep.subr.bf16.mxu0 %v21999_v32  ;;  %24473 = vst [vmem:[#allocation28_spill] sm:$0xff] %v22013_v61  ;;  %v22020_v4 = vsub.s32 %v418_v3, %v21937_v54  ;;  %v662_v3 = vld [vmem:[#allocation10 + $0x20] sm:$0xff] }
 0x11a   :  { %18035 = vmatpush1.bf16.msra.mxu1 %v21996_v25 }
 0x11b   :  { %18037 = vmatprep.subr.bf16.mxu1 %v22001_v34 }
 0x11c   :  { %18023 = vmatpush1.bf16.msra.mxu0 %v22004_v48 }
 0x11d   :  { %18041 = vmatprep.subr.bf16.mxu0 %v22010_v59 }
 0x11e   :  { %18039 = vmatpush1.bf16.msra.mxu1 %v22008_v53 }
 0x11f   :  { %18049 = vmatprep.subr.bf16.mxu1 %v22013_v61 }
 0x166   :  { %v334_v5 = vpop.f32.mrb[0].mxu0 }
 0x167   :  { %v405_v8 = vpop.f32.mrb[0].mxu1  ;;  %v336_v9 = vpop.f32.mrb[1].mxu0 }
 0x168   :  { %v414_v12 = vcombine.low %v334_v5, %v336_v9  ;;  %v407_v16 = vpop.f32.mrb[1].mxu1  ;;  %v660_v5 = vld [vmem:[#allocation10 + $0x10] sm:$0xff]  ;;  %v667_v9 = vld [vmem:[#allocation10 + $0x48] sm:$0xff] }
 0x169   :  { %v415_v17 = vcombine.low %v405_v8, %v407_v16  ;;  %v664_v8 = vld [vmem:[#allocation10 + $0x30] sm:$0xff]  ;;  %v669_v16 = vld [vmem:[#allocation10 + $0x58] sm:$0xff] }
 0x16a   :  { %v422_v18 = vrot.slane %v414_v12, %v22020_v4  ;;  %v671_v12 = vld [vmem:[#allocation10 + $0x68] sm:$0xff] }
 0x16b   :  { %v429_v22 = vrot.slane %v415_v17, %v22020_v4  ;;  %v673_v17 = vld [vmem:[#allocation10 + $0x78] sm:$0xff] }
 0x16d   :  { %v430_v23 = vcombine.low %v422_v18, %v429_v22 }
 0x16f   :  { %v437_v30 = vrot.slane %v430_v23, %v22020_v4  ;;  %v22028_v23 = vpack.c.bf16 %v662_v3, %v658_v63 }
 0x171   :  { %v439_v31 = vadd.f32 %v437_v30, %v231_v27  ;;  %v22030_v27 = vpack.c.bf16 %v664_v8, %v660_v5  ;;  %v666_v30 = vld [vmem:[#allocation10 + $0x40] sm:$0xff] }
 0x173   :  { %v17628_v35 = vmul.f32 -1.442695, %v439_v31  ;;  %v447_v38 = vrot.slane %v439_v31, 3 }
 0x175   :  { %20566 = vpow2.f32 %v17628_v35  ;;  %v22032_v35 = vpack.c.bf16 %v671_v12, %v667_v9 }
 0x17f   :  { %v20567_v36 = vpop.eup %20566 }
 0x180   :  { %v443_v54 = vadd.f32 1.0, %v20567_v36  ;;  %v22034_v36 = vpack.c.bf16 %v673_v17, %v669_v16 }
 0x182   :  { %20568 = vrcp.f32 %v443_v54  ;;  %v670_v54 = vld [vmem:[#allocation10 + $0x60] sm:$0xff] }
 0x183   :  { %20570 = vtanh.f32 %v447_v38  ;;  %v668_v38 = vld [vmem:[#allocation10 + $0x50] sm:$0xff] }
 0x18c   :  { %v20569_v39 = vpop.eup %20568 }
 0x18d   :  { %v451_v45 = vrot.slane %v20569_v39, 1  ;;  %v20571_v47 = vpop.eup %20570  ;;  %v457_v18 = vrot.slane %v20569_v39, 2 }
 0x18e   :  { %v454_v51 = vmul.f32 %v20571_v47, %v20569_v39  ;;  %v22040_v39 = vpack.c.bf16 %v670_v54, %v666_v30 }
 0x18f   :  { %v453_v49 = vmul.f32 0.0, %v451_v45  ;;  %v672_v45 = vld [vmem:[#allocation10 + $0x70] sm:$0xff] }
 0x190   :  { %v22042_v47 = vpack.c.bf16 %v672_v45, %v668_v38 }
 0x191   :  { %v22025_v62 = vadd.f32 %v454_v51, %v453_v49  ;;  %v230_v49 = vld [vmem:[%s24434_s6] sm:$0xf] }
 0x192   :  { %v22096_v51 = vrot.slane %v230_v49, %v21940_v55  ;;  %v22099_v63 = vrot.slane %v230_v49, %v21943_v56 }
 0x193   :  { %20572 = vtanh.f32 %v22025_v62 }
 0x194   :  { %24474 = vst [vmem:[#allocation29_spill] sm:$0xff] %v22096_v51  ;;  %24475 = vst [vmem:[#allocation30_spill] sm:$0xff] %v22099_v63 }
 0x19d   :  { %v20573_v22 = vpop.eup %20572 }
 0x19e   :  { %v459_v31 = vmul.f32 %v20573_v22, %v457_v18  ;;  %v22104_v22 = vrot.slane %v230_v49, %v21949_v58  ;;  %v848_v58 = vld [vmem:[#allocation2 + $0x1] ss:$8 sm:$0xf] }
 0x1a0   :  { %17629 = vmatmul.mubr.msk.f32.vlgmr.msra.gmra.mrb[2].mxu0 %vm264_vm0, %v459_v31  ;;  %17630 = vmatmul.mubr.msk.f32.vlgmr.msra.gmra.mrb[2].mxu1 %vm264_vm0, %v459_v31  ;;  %24476 = vst [vmem:[#allocation31_spill] sm:$0xff] %v22104_v22 }
 0x1a1   :  { %18043 = vmatpush1.bf16.msra.mxu0 %v22028_v23  ;;  %18051 = vmatpush1.bf16.msra.mxu1 %v22030_v27 }
 0x1a2   :  { %18045 = vmatprep.subr.bf16.mxu0 %v22032_v35  ;;  %18053 = vmatprep.subr.bf16.mxu1 %v22034_v36 }
 0x1a3   :  { %741 = vmatprep.mubr.f32.mxu0 %v24446_v1  ;;  %812 = vmatprep.mubr.f32.mxu1 %v24446_v1 }
 0x1a5   :  { %18047 = vmatpush1.bf16.msra.mxu0 %v22040_v39  ;;  %18055 = vmatpush1.bf16.msra.mxu1 %v22042_v47 }
 0x1a6   :  { %18057 = vmatprep.subr.bf16.mxu0 %v21879_v6  ;;  %18073 = vmatprep.subr.bf16.mxu1 %v21881_v10 }
 0x1a8   :  { %742 = vmatmul.mubr.f32.vlgmr.msra.gmra.mrb[2].mxu0 %v24446_v1  ;;  %813 = vmatmul.mubr.f32.vlgmr.msra.gmra.mrb[2].mxu1 %v24446_v1 }
 0x1a9   :  { %18059 = vmatpush1.bf16.msra.mxu0 %v21883_v11  ;;  %18075 = vmatpush1.bf16.msra.mxu1 %v21886_v15 }
 0x1aa   :  { %18061 = vmatprep.subr.bf16.mxu0 %v21890_v19  ;;  %18077 = vmatprep.subr.bf16.mxu1 %v21892_v20 }
 0x1ab   :  { %913 = vmatprep.mubr.f32.mxu0 %v24446_v1  ;;  %984 = vmatprep.mubr.f32.mxu1 %v24446_v1 }
 0x1ad   :  { %18063 = vmatpush1.bf16.msra.mxu0 %v21895_v24  ;;  %18079 = vmatpush1.bf16.msra.mxu1 %v21899_v28 }
 0x1ae   :  { %18065 = vmatprep.subr.bf16.mxu0 %v21901_v29  ;;  %18081 = vmatprep.subr.bf16.mxu1 %v21903_v33 }
 0x1b1   :  { %18067 = vmatpush1.bf16.msra.mxu0 %v21906_v37  ;;  %18083 = vmatpush1.bf16.msra.mxu1 %v21910_v41 }
 0x1b2   :  { %18069 = vmatprep.subr.bf16.mxu0 %v21912_v42  ;;  %18085 = vmatprep.subr.bf16.mxu1 %v21915_v46 }
 0x1b5   :  { %18071 = vmatpush1.bf16.msra.mxu0 %v21921_v50  ;;  %18087 = vmatpush1.bf16.msra.mxu1 %v21928_v52 }
 0x1b6   :  { %18089 = vmatprep.subr.bf16.mxu0 %v21965_v26  ;;  %18105 = vmatprep.subr.bf16.mxu1 %v21968_v40 }
 0x1b8   :  { %17634 = vmatmul.mubr.msk.f32.vlgmr.msra.gmra.mrb[4].mxu0 %vm264_vm0, %v459_v31  ;;  %17635 = vmatmul.mubr.msk.f32.vlgmr.msra.gmra.mrb[4].mxu1 %vm264_vm0, %v459_v31 }
 0x1b9   :  { %18091 = vmatpush1.bf16.msra.mxu0 %v21970_v43  ;;  %18107 = vmatpush1.bf16.msra.mxu1 %v21972_v44 }
 0x1ba   :  { %18093 = vmatprep.subr.bf16.mxu0 %v21976_v60  ;;  %18109 = vmatprep.subr.bf16.mxu1 %v21979_v0 }
 0x1bb   :  { %1108 = vmatprep.mubr.f32.mxu0 %v24446_v1  ;;  %1179 = vmatprep.mubr.f32.mxu1 %v24446_v1 }
 0x1bd   :  { %18095 = vmatpush1.bf16.msra.mxu0 %v21981_v2  ;;  %18111 = vmatpush1.bf16.msra.mxu1 %v21984_v7 }
 0x1be   :  { %18097 = vmatprep.subr.bf16.mxu0 %v21987_v13  ;;  %18113 = vmatprep.subr.bf16.mxu1 %v21989_v14 }
 0x1c1   :  { %18099 = vmatpush1.bf16.msra.mxu0 %v21992_v21  ;;  %18115 = vmatpush1.bf16.msra.mxu1 %v21996_v25 }
 0x1c2   :  { %18101 = vmatprep.subr.bf16.mxu0 %v21999_v32  ;;  %18117 = vmatprep.subr.bf16.mxu1 %v22001_v34 }
 0x1c5   :  { %18103 = vmatpush1.bf16.msra.mxu0 %v22004_v48  ;;  %18119 = vmatpush1.bf16.msra.mxu1 %v22008_v53 }
 0x1c6   :  { %18121 = vmatprep.subr.bf16.mxu0 %v22010_v59  ;;  %18129 = vmatprep.subr.bf16.mxu1 %v22013_v61 }
 0x27b   :  { %v743_v3 = vpop.f32.mrb[2].mxu0  ;;  %v814_v5 = vpop.f32.mrb[2].mxu1 }
 0x27c   :  { %v20296_v8 = vadd.f32 %v743_v3, %v22096_v51  ;;  %v745_v9 = vpop.f32.mrb[3].mxu0  ;;  %v816_v12 = vpop.f32.mrb[3].mxu1 }
 0x27d   :  { %v20297_v16 = vadd.f32 %v745_v9, %v22099_v63  ;;  %v20299_v30 = vadd.f32 %v816_v12, %v22104_v22 }
 0x27e   :  { %v17631_v17 = vmul.f32 -1.442695, %v20296_v8 }
 0x27f   :  { %v17632_v18 = vmul.f32 -1.442695, %v20297_v16 }
 0x280   :  { %20574 = vpow2.f32 %v17631_v17 }
 0x281   :  { %20576 = vpow2.f32 %v17632_v18 }
 0x282   :  { %20578 = vtanh.f32 %v20299_v30 }
 0x28a   :  { %v20575_v31 = vpop.eup %20574 }
 0x28b   :  { %v832_v54 = vadd.f32 1.0, %v20575_v31  ;;  %v915_v38 = vpop.f32.mrb[4].mxu0  ;;  %v986_v45 = vpop.f32.mrb[4].mxu1 }
 0x28c   :  { %v20577_v1 = vpop.eup %20576  ;;  %v917_v3 = vpop.f32.mrb[5].mxu0 }
 0x28d   :  { %v988_v56 = vpop.f32.mrb[5].mxu1  ;;  %20580 = vrcp.f32 %v832_v54  ;;  %v833_v55 = vadd.f32 1.0, %v20577_v1  ;;  %v995_v9 = vcombine.low %v915_v38, %v917_v3  ;;  %v20579_v22 = vpop.eup %20578 }
 0x28e   :  { %v996_v8 = vcombine.low %v986_v45, %v988_v56 }
 0x28f   :  { %20582 = vrcp.f32 %v833_v55  ;;  %v1003_v16 = vrot.slane %v995_v9, %v22020_v4  ;;  %v22113_v55 = vrot.slane %v230_v49, %v21946_v57 }
 0x290   :  { %v1010_v17 = vrot.slane %v996_v8, %v22020_v4 }
 0x291   :  { %v20298_v3 = vadd.f32 %v814_v5, %v22113_v55 }
 0x292   :  { %v1011_v18 = vcombine.low %v1003_v16, %v1010_v17 }
 0x294   :  { %v1018_v12 = vrot.slane %v1011_v18, %v22020_v4 }
 0x296   :  { %v1020_v31 = vadd.f32 %v1018_v12, %v848_v58  ;;  %v17633_v58 = vmul.f32 -1.442695, %v20298_v3  ;;  %v24477_v12 = vmov 0.0  }
 0x297   :  { %v20581_v63 = vpop.eup %20580 }
 0x298   :  { %v17636_v51 = vmul.f32 -1.442695, %v1020_v31  ;;  %v843_v30 = vmul.f32 %v20581_v63, %v20579_v22  ;;  %v1028_v45 = vrot.slane %v1020_v31, 3 }
 0x299   :  { %v20583_v61 = vpop.eup %20582 }
 0x29a   :  { %20584 = vpow2.f32 %v17636_v51  ;;  %v842_v54 = vmul.f32 0.0, %v20583_v61 }
 0x29c   :  { %v22110_v1 = vadd.f32 %v843_v30, %v842_v54  ;;  %v24478_v54 = vld [vmem:[#allocation28_spill] sm:$0xff] }
 0x2a4   :  { %v20585_v56 = vpop.eup %20584 }
 0x2a5   :  { %v1024_v38 = vadd.f32 1.0, %v20585_v56 }
 0x2a7   :  { %20586 = vrcp.f32 %v1024_v38 }
 0x2a8   :  { %20588 = vtanh.f32 %v1028_v45  ;;  %v24479_v45 = vld [vmem:[#allocation29_spill] sm:$0xff] }
 0x2a9   :  { %20590 = vpow2.f32 %v17633_v58 }
 0x2b1   :  { %v20587_v9 = vpop.eup %20586 }
 0x2b2   :  { %v1032_v8 = vrot.slane %v20587_v9, 1  ;;  %v20589_v63 = vpop.eup %20588  ;;  %v1038_v5 = vrot.slane %v20587_v9, 2 }
 0x2b3   :  { %v1035_v61 = vmul.f32 %v20589_v63, %v20587_v9  ;;  %v20591_v49 = vpop.eup %20590 }
 0x2b4   :  { %v1034_v51 = vmul.f32 %v1032_v8, %v22025_v62  ;;  %v834_v16 = vadd.f32 1.0, %v20591_v49  ;;  %v24480_v8 = vld [vmem:[#allocation30_spill] sm:$0xff]  ;;  %v24481_v49 = vld [vmem:[#allocation31_spill] sm:$0xff] }
 0x2b6   :  { %v22117_v22 = vadd.f32 %v1035_v61, %v1034_v51 }
 0x2b8   :  { %20592 = vtanh.f32 %v22117_v22 }
 0x2b9   :  { %20594 = vtanh.f32 %v22110_v1 }
 0x2ba   :  { %20596 = vrcp.f32 %v834_v16 }
 0x2c2   :  { %v20593_v17 = vpop.eup %20592 }
 0x2c3   :  { %v1040_v18 = vmul.f32 %v20593_v17, %v1038_v5  ;;  %v20595_v62 = vpop.eup %20594 }
 0x2c4   :  { %v20597_v31 = vpop.eup %20596 }
 0x2c5   :  { %17637 = vmatmul.mubr.msk.f32.vlgmr.msra.gmra.mrb[6].mxu0 %vm264_vm0, %v1040_v18  ;;  %17638 = vmatmul.mubr.msk.f32.vlgmr.msra.gmra.mrb[6].mxu1 %vm264_vm0, %v1040_v18  ;;  %v846_v30 = vmul.f32 %v20597_v31, %v20595_v62 }
 0x2c6   :  { %18123 = vmatpush1.bf16.msra.mxu0 %v22028_v23  ;;  %18131 = vmatpush1.bf16.msra.mxu1 %v22030_v27 }
 0x2c7   :  { %18125 = vmatprep.subr.bf16.mxu0 %v22032_v35  ;;  %18133 = vmatprep.subr.bf16.mxu1 %v22034_v36 }
 0x2c8   :  { %1253 = vmatprep.mubr.f32.mxu0 %v24477_v12  ;;  %1324 = vmatprep.mubr.f32.mxu1 %v24477_v12 }
 0x2ca   :  { %18127 = vmatpush1.bf16.msra.mxu0 %v22040_v39  ;;  %18135 = vmatpush1.bf16.msra.mxu1 %v22042_v47 }
 0x2cb   :  { %18137 = vmatprep.subr.bf16.mxu0 %v21879_v6  ;;  %18153 = vmatprep.subr.bf16.mxu1 %v21881_v10 }
 0x2cd   :  { %17639 = vmatmul.mubr.msk.f32.vlgmr.msra.gmra.mrb[6].mxu0 %vm674_vm1, %v846_v30  ;;  %17640 = vmatmul.mubr.msk.f32.vlgmr.msra.gmra.mrb[6].mxu1 %vm674_vm1, %v846_v30 }
 0x2ce   :  { %18139 = vmatpush1.bf16.msra.mxu0 %v21883_v11  ;;  %18155 = vmatpush1.bf16.msra.mxu1 %v21886_v15 }
 0x2cf   :  { %18141 = vmatprep.subr.bf16.mxu0 %v21890_v19  ;;  %18157 = vmatprep.subr.bf16.mxu1 %v21892_v20 }
 0x2d0   :  { %1425 = vmatprep.mubr.f32.mxu0 %v24477_v12  ;;  %1496 = vmatprep.mubr.f32.mxu1 %v24477_v12 }
 0x2d2   :  { %18143 = vmatpush1.bf16.msra.mxu0 %v21895_v24  ;;  %18159 = vmatpush1.bf16.msra.mxu1 %v21899_v28 }
 0x2d3   :  { %18145 = vmatprep.subr.bf16.mxu0 %v21901_v29  ;;  %18161 = vmatprep.subr.bf16.mxu1 %v21903_v33 }
 0x2d6   :  { %18147 = vmatpush1.bf16.msra.mxu0 %v21906_v37  ;;  %18163 = vmatpush1.bf16.msra.mxu1 %v21910_v41 }
 0x2d7   :  { %18149 = vmatprep.subr.bf16.mxu0 %v21912_v42  ;;  %18165 = vmatprep.subr.bf16.mxu1 %v21915_v46 }
 0x2da   :  { %18151 = vmatpush1.bf16.msra.mxu0 %v21921_v50  ;;  %18167 = vmatpush1.bf16.msra.mxu1 %v21928_v52 }
 0x2db   :  { %18169 = vmatprep.subr.bf16.mxu0 %v21965_v26  ;;  %18185 = vmatprep.subr.bf16.mxu1 %v21968_v40 }
 0x2dd   :  { %17644 = vmatmul.mubr.msk.f32.vlgmr.msra.gmra.mrb[8].mxu0 %vm264_vm0, %v1040_v18  ;;  %17645 = vmatmul.mubr.msk.f32.vlgmr.msra.gmra.mrb[8].mxu1 %vm264_vm0, %v1040_v18 }
 0x2de   :  { %18171 = vmatpush1.bf16.msra.mxu0 %v21970_v43  ;;  %18187 = vmatpush1.bf16.msra.mxu1 %v21972_v44 }
 0x2df   :  { %18173 = vmatprep.subr.bf16.mxu0 %v21976_v60  ;;  %18189 = vmatprep.subr.bf16.mxu1 %v21979_v0 }
 0x2e0   :  { %1620 = vmatprep.mubr.f32.mxu0 %v24477_v12  ;;  %1691 = vmatprep.mubr.f32.mxu1 %v24477_v12 }
 0x2e2   :  { %18175 = vmatpush1.bf16.msra.mxu0 %v21981_v2  ;;  %18191 = vmatpush1.bf16.msra.mxu1 %v21984_v7 }
 0x2e3   :  { %18177 = vmatprep.subr.bf16.mxu0 %v21987_v13  ;;  %18193 = vmatprep.subr.bf16.mxu1 %v21989_v14 }
 0x2e6   :  { %18179 = vmatpush1.bf16.msra.mxu0 %v21992_v21  ;;  %18195 = vmatpush1.bf16.msra.mxu1 %v21996_v25 }
 0x2e7   :  { %18181 = vmatprep.subr.bf16.mxu0 %v21999_v32  ;;  %18197 = vmatprep.subr.bf16.mxu1 %v22001_v34 }
 0x2ea   :  { %18183 = vmatpush1.bf16.msra.mxu0 %v22004_v48  ;;  %18199 = vmatpush1.bf16.msra.mxu1 %v22008_v53 }
 0x2eb   :  { %18201 = vmatprep.subr.bf16.mxu0 %v22010_v59  ;;  %18209 = vmatprep.subr.bf16.mxu1 %v24478_v54 }
 0x3a0   :  { %v1255_v56 = vpop.f32.mrb[6].mxu0  ;;  %v1326_v38 = vpop.f32.mrb[6].mxu1 }
 0x3a1   :  { %v20300_v3 = vadd.f32 %v1255_v56, %v24479_v45  ;;  %v1257_v58 = vpop.f32.mrb[7].mxu0  ;;  %v1328_v9 = vpop.f32.mrb[7].mxu1 }
 0x3a2   :  { %v20301_v63 = vadd.f32 %v1257_v58, %v24480_v8  ;;  %v20303_v16 = vadd.f32 %v1328_v9, %v24481_v49 }
 0x3a3   :  { %v17641_v51 = vmul.f32 -1.442695, %v20300_v3 }
 0x3a4   :  { %v17642_v61 = vmul.f32 -1.442695, %v20301_v63 }
 0x3a5   :  { %20598 = vpow2.f32 %v17641_v51  ;;  %v1360_v51 = vld [vmem:[#allocation2 + $0x2] ss:$8 sm:$0xf] }
 0x3a6   :  { %20600 = vpow2.f32 %v17642_v61 }
 0x3a7   :  { %20602 = vtanh.f32 %v20303_v16 }
 0x3af   :  { %v20599_v5 = vpop.eup %20598 }
 0x3b0   :  { %v1344_v17 = vadd.f32 1.0, %v20599_v5  ;;  %v1427_v18 = vpop.f32.mrb[8].mxu0  ;;  %v1498_v62 = vpop.f32.mrb[8].mxu1 }
 0x3b1   :  { %v20601_v31 = vpop.eup %20600  ;;  %v1429_v30 = vpop.f32.mrb[9].mxu0 }
 0x3b2   :  { %v1500_v57 = vpop.f32.mrb[9].mxu1  ;;  %20604 = vrcp.f32 %v1344_v17  ;;  %v1345_v56 = vadd.f32 1.0, %v20601_v31  ;;  %v1507_v45 = vcombine.low %v1427_v18, %v1429_v30  ;;  %v20603_v5 = vpop.eup %20602 }
 0x3b3   :  { %v1508_v54 = vcombine.low %v1498_v62, %v1500_v57 }
 0x3b4   :  { %20606 = vrcp.f32 %v1345_v56  ;;  %v1515_v3 = vrot.slane %v1507_v45, %v22020_v4 }
 0x3b5   :  { %v1522_v58 = vrot.slane %v1508_v54, %v22020_v4  ;;  %v20302_v54 = vadd.f32 %v1326_v38, %v22113_v55 }
 0x3b7   :  { %v1523_v63 = vcombine.low %v1515_v3, %v1522_v58  ;;  %v17643_v31 = vmul.f32 -1.442695, %v20302_v54 }
 0x3b9   :  { %v1530_v9 = vrot.slane %v1523_v63, %v22020_v4 }
 0x3bb   :  { %v1532_v61 = vadd.f32 %v1530_v9, %v1360_v51 }
 0x3bc   :  { %v20605_v49 = vpop.eup %20604 }
 0x3bd   :  { %v17646_v8 = vmul.f32 -1.442695, %v1532_v61  ;;  %v1355_v16 = vmul.f32 %v20605_v49, %v20603_v5  ;;  %v1540_v45 = vrot.slane %v1532_v61, 3  ;;  %v24482_v5 = vld [vmem:[#allocation27_spill] sm:$0xff] }
 0x3be   :  { %v20607_v59 = vpop.eup %20606 }
 0x3bf   :  { %20608 = vpow2.f32 %v17646_v8  ;;  %v1354_v17 = vmul.f32 %v20607_v59, %v22110_v1 }
 0x3c1   :  { %v22180_v18 = vadd.f32 %v1355_v16, %v1354_v17  ;;  %v24483_v16 = vld [vmem:[#allocation28_spill] sm:$0xff] }
 0x3c9   :  { %v20609_v57 = vpop.eup %20608 }
 0x3ca   :  { %v1536_v62 = vadd.f32 1.0, %v20609_v57 }
 0x3cc   :  { %20610 = vrcp.f32 %v1536_v62  ;;  %v24484_v62 = vld [vmem:[#allocation29_spill] sm:$0xff] }
 0x3cd   :  { %20612 = vtanh.f32 %v1540_v45 }
 0x3ce   :  { %20614 = vpow2.f32 %v17643_v31 }
 0x3d6   :  { %v20611_v30 = vpop.eup %20610 }
 0x3d7   :  { %v1544_v56 = vrot.slane %v20611_v30, 1  ;;  %v20613_v3 = vpop.eup %20612  ;;  %v1550_v38 = vrot.slane %v20611_v30, 2 }
 0x3d8   :  { %v1547_v58 = vmul.f32 %v20613_v3, %v20611_v30  ;;  %v20615_v59 = vpop.eup %20614  ;;  %v24485_v30 = vld [vmem:[#allocation30_spill] sm:$0xff] }
 0x3d9   :  { %v1546_v49 = vmul.f32 %v1544_v56, %v22117_v22  ;;  %v1346_v1 = vadd.f32 1.0, %v20615_v59 }
 0x3db   :  { %v22184_v8 = vadd.f32 %v1547_v58, %v1546_v49  ;;  %v24486_v58 = vld [vmem:[#allocation31_spill] sm:$0xff] }
 0x3dd   :  { %20616 = vtanh.f32 %v22184_v8 }
 0x3de   :  { %20618 = vtanh.f32 %v22180_v18 }
 0x3df   :  { %20620 = vrcp.f32 %v1346_v1 }
 0x3e7   :  { %v20617_v63 = vpop.eup %20616 }
 0x3e8   :  { %v1552_v9 = vmul.f32 %v20617_v63, %v1550_v38  ;;  %v20619_v22 = vpop.eup %20618 }
 0x3e9   :  { %v20621_v51 = vpop.eup %20620 }
 0x3ea   :  { %17647 = vmatmul.mubr.msk.f32.vlgmr.msra.gmra.mrb[10].mxu0 %vm264_vm0, %v1552_v9  ;;  %17648 = vmatmul.mubr.msk.f32.vlgmr.msra.gmra.mrb[10].mxu1 %vm264_vm0, %v1552_v9  ;;  %v1358_v61 = vmul.f32 %v20621_v51, %v20619_v22 }
 0x3eb   :  { %18203 = vmatpush1.bf16.msra.mxu0 %v22028_v23  ;;  %18211 = vmatpush1.bf16.msra.mxu1 %v22030_v27 }
 0x3ec   :  { %18205 = vmatprep.subr.bf16.mxu0 %v22032_v35  ;;  %18213 = vmatprep.subr.bf16.mxu1 %v22034_v36 }
 0x3ed   :  { %1765 = vmatprep.mubr.f32.mxu0 %v24477_v12  ;;  %1836 = vmatprep.mubr.f32.mxu1 %v24477_v12 }
 0x3ef   :  { %18207 = vmatpush1.bf16.msra.mxu0 %v22040_v39  ;;  %18215 = vmatpush1.bf16.msra.mxu1 %v22042_v47 }
 0x3f0   :  { %18217 = vmatprep.subr.bf16.mxu0 %v21879_v6  ;;  %18233 = vmatprep.subr.bf16.mxu1 %v21881_v10 }
 0x3f2   :  { %17649 = vmatmul.mubr.msk.f32.vlgmr.msra.gmra.mrb[10].mxu0 %vm674_vm1, %v1358_v61  ;;  %17650 = vmatmul.mubr.msk.f32.vlgmr.msra.gmra.mrb[10].mxu1 %vm674_vm1, %v1358_v61 }
 0x3f3   :  { %18219 = vmatpush1.bf16.msra.mxu0 %v21883_v11  ;;  %18235 = vmatpush1.bf16.msra.mxu1 %v21886_v15 }
 0x3f4   :  { %18221 = vmatprep.subr.bf16.mxu0 %v21890_v19  ;;  %18237 = vmatprep.subr.bf16.mxu1 %v21892_v20 }
 0x3f5   :  { %1937 = vmatprep.mubr.f32.mxu0 %v24477_v12  ;;  %2008 = vmatprep.mubr.f32.mxu1 %v24477_v12 }
 0x3f7   :  { %18223 = vmatpush1.bf16.msra.mxu0 %v21895_v24  ;;  %18239 = vmatpush1.bf16.msra.mxu1 %v21899_v28 }
 0x3f8   :  { %18225 = vmatprep.subr.bf16.mxu0 %v21901_v29  ;;  %18241 = vmatprep.subr.bf16.mxu1 %v21903_v33 }
 0x3fb   :  { %18227 = vmatpush1.bf16.msra.mxu0 %v21906_v37  ;;  %18243 = vmatpush1.bf16.msra.mxu1 %v21910_v41 }
 0x3fc   :  { %18229 = vmatprep.subr.bf16.mxu0 %v21912_v42  ;;  %18245 = vmatprep.subr.bf16.mxu1 %v21915_v46 }
 0x3ff   :  { %18231 = vmatpush1.bf16.msra.mxu0 %v21921_v50  ;;  %18247 = vmatpush1.bf16.msra.mxu1 %v21928_v52 }
 0x400   :  { %18249 = vmatprep.subr.bf16.mxu0 %v21965_v26  ;;  %18265 = vmatprep.subr.bf16.mxu1 %v21968_v40 }
 0x402   :  { %17654 = vmatmul.mubr.msk.f32.vlgmr.msra.gmra.mrb[12].mxu0 %vm264_vm0, %v1552_v9  ;;  %17655 = vmatmul.mubr.msk.f32.vlgmr.msra.gmra.mrb[12].mxu1 %vm264_vm0, %v1552_v9 }
 0x403   :  { %18251 = vmatpush1.bf16.msra.mxu0 %v21970_v43  ;;  %18267 = vmatpush1.bf16.msra.mxu1 %v21972_v44 }
 0x404   :  { %18253 = vmatprep.subr.bf16.mxu0 %v21976_v60  ;;  %18269 = vmatprep.subr.bf16.mxu1 %v21979_v0 }
 0x405   :  { %2132 = vmatprep.mubr.f32.mxu0 %v24477_v12  ;;  %2203 = vmatprep.mubr.f32.mxu1 %v24477_v12 }
 0x407   :  { %18255 = vmatpush1.bf16.msra.mxu0 %v21981_v2  ;;  %18271 = vmatpush1.bf16.msra.mxu1 %v21984_v7 }
 0x408   :  { %18257 = vmatprep.subr.bf16.mxu0 %v21987_v13  ;;  %18273 = vmatprep.subr.bf16.mxu1 %v21989_v14 }
 0x40b   :  { %18259 = vmatpush1.bf16.msra.mxu0 %v21992_v21  ;;  %18275 = vmatpush1.bf16.msra.mxu1 %v21996_v25 }
 0x40c   :  { %18261 = vmatprep.subr.bf16.mxu0 %v21999_v32  ;;  %18277 = vmatprep.subr.bf16.mxu1 %v22001_v34 }
 0x40f   :  { %18263 = vmatpush1.bf16.msra.mxu0 %v22004_v48  ;;  %18279 = vmatpush1.bf16.msra.mxu1 %v22008_v53 }
 0x410   :  { %18281 = vmatprep.subr.bf16.mxu0 %v24482_v5  ;;  %18289 = vmatprep.subr.bf16.mxu1 %v24483_v16 }
 0x4c5   :  { %v1767_v17 = vpop.f32.mrb[10].mxu0  ;;  %v1838_v57 = vpop.f32.mrb[10].mxu1 }
 0x4c6   :  { %v20304_v45 = vadd.f32 %v1767_v17, %v24484_v62  ;;  %v1769_v54 = vpop.f32.mrb[11].mxu0  ;;  %v1840_v31 = vpop.f32.mrb[11].mxu1 }
 0x4c7   :  { %v20305_v56 = vadd.f32 %v1769_v54, %v24485_v30  ;;  %v20307_v59 = vadd.f32 %v1840_v31, %v24486_v58 }
 0x4c8   :  { %v17651_v3 = vmul.f32 -1.442695, %v20304_v45 }
 0x4c9   :  { %v17652_v49 = vmul.f32 -1.442695, %v20305_v56 }
 0x4ca   :  { %20622 = vpow2.f32 %v17651_v3  ;;  %v1872_v3 = vld [vmem:[#allocation2 + $0x3] ss:$8 sm:$0xf] }
 0x4cb   :  { %20624 = vpow2.f32 %v17652_v49 }
 0x4cc   :  { %20626 = vtanh.f32 %v20307_v59 }
 0x4d4   :  { %v20623_v1 = vpop.eup %20622 }
 0x4d5   :  { %v1856_v38 = vadd.f32 1.0, %v20623_v1  ;;  %v1939_v63 = vpop.f32.mrb[12].mxu0  ;;  %v2010_v9 = vpop.f32.mrb[12].mxu1 }
 0x4d6   :  { %v20625_v22 = vpop.eup %20624  ;;  %v1941_v51 = vpop.f32.mrb[13].mxu0 }
 0x4d7   :  { %v2012_v61 = vpop.f32.mrb[13].mxu1  ;;  %20628 = vrcp.f32 %v1856_v38  ;;  %v1857_v17 = vadd.f32 1.0, %v20625_v22  ;;  %v2019_v62 = vcombine.low %v1939_v63, %v1941_v51  ;;  %v20627_v1 = vpop.eup %20626 }
 0x4d8   :  { %v2020_v16 = vcombine.low %v2010_v9, %v2012_v61 }
 0x4d9   :  { %20630 = vrcp.f32 %v1857_v17  ;;  %v2027_v45 = vrot.slane %v2019_v62, %v22020_v4 }
 0x4da   :  { %v2034_v54 = vrot.slane %v2020_v16, %v22020_v4  ;;  %v20306_v16 = vadd.f32 %v1838_v57, %v22113_v55 }
 0x4dc   :  { %v2035_v56 = vcombine.low %v2027_v45, %v2034_v54  ;;  %v17653_v51 = vmul.f32 -1.442695, %v20306_v16 }
 0x4de   :  { %v2042_v31 = vrot.slane %v2035_v56, %v22020_v4 }
 0x4e0   :  { %v2044_v49 = vadd.f32 %v2042_v31, %v1872_v3 }
 0x4e1   :  { %v20629_v58 = vpop.eup %20628 }
 0x4e2   :  { %v17656_v30 = vmul.f32 -1.442695, %v2044_v49  ;;  %v1867_v59 = vmul.f32 %v20629_v58, %v20627_v1  ;;  %v2052_v62 = vrot.slane %v2044_v49, 3  ;;  %v24487_v1 = vld [vmem:[#allocation27_spill] sm:$0xff] }
 0x4e3   :  { %v20631_v5 = vpop.eup %20630 }
 0x4e4   :  { %20632 = vpow2.f32 %v17656_v30  ;;  %v1866_v38 = vmul.f32 %v20631_v5, %v22180_v18 }
 0x4e6   :  { %v22247_v63 = vadd.f32 %v1867_v59, %v1866_v38  ;;  %v24488_v59 = vld [vmem:[#allocation28_spill] sm:$0xff] }
 0x4ee   :  { %v20633_v9 = vpop.eup %20632 }
 0x4ef   :  { %v2048_v22 = vadd.f32 1.0, %v20633_v9 }
 0x4f1   :  { %20634 = vrcp.f32 %v2048_v22  ;;  %v24489_v22 = vld [vmem:[#allocation29_spill] sm:$0xff] }
 0x4f2   :  { %20636 = vtanh.f32 %v2052_v62 }
 0x4f3   :  { %20638 = vpow2.f32 %v17653_v51 }
 0x4fb   :  { %v20635_v61 = vpop.eup %20634 }
 0x4fc   :  { %v2056_v17 = vrot.slane %v20635_v61, 1  ;;  %v20637_v45 = vpop.eup %20636  ;;  %v2062_v57 = vrot.slane %v20635_v61, 2 }
 0x4fd   :  { %v2059_v54 = vmul.f32 %v20637_v45, %v20635_v61  ;;  %v20639_v18 = vpop.eup %20638  ;;  %v24490_v61 = vld [vmem:[#allocation30_spill] sm:$0xff] }
 0x4fe   :  { %v2058_v58 = vmul.f32 %v2056_v17, %v22184_v8  ;;  %v1858_v5 = vadd.f32 1.0, %v20639_v18 }
 0x500   :  { %v22251_v30 = vadd.f32 %v2059_v54, %v2058_v58  ;;  %v24491_v54 = vld [vmem:[#allocation31_spill] sm:$0xff] }
 0x502   :  { %20640 = vtanh.f32 %v22251_v30 }
 0x503   :  { %20642 = vtanh.f32 %v22247_v63 }
 0x504   :  { %20644 = vrcp.f32 %v1858_v5 }
 0x50c   :  { %v20641_v56 = vpop.eup %20640 }
 0x50d   :  { %v2064_v31 = vmul.f32 %v20641_v56, %v2062_v57  ;;  %v20643_v8 = vpop.eup %20642 }
 0x50e   :  { %v20645_v3 = vpop.eup %20644 }
 0x50f   :  { %17657 = vmatmul.mubr.msk.f32.vlgmr.msra.gmra.mrb[14].mxu0 %vm264_vm0, %v2064_v31  ;;  %17658 = vmatmul.mubr.msk.f32.vlgmr.msra.gmra.mrb[14].mxu1 %vm264_vm0, %v2064_v31  ;;  %v1870_v49 = vmul.f32 %v20645_v3, %v20643_v8 }
 0x510   :  { %18283 = vmatpush1.bf16.msra.mxu0 %v22028_v23  ;;  %18291 = vmatpush1.bf16.msra.mxu1 %v22030_v27 }
 0x511   :  { %18285 = vmatprep.subr.bf16.mxu0 %v22032_v35  ;;  %18293 = vmatprep.subr.bf16.mxu1 %v22034_v36 }
 0x512   :  { %2277 = vmatprep.mubr.f32.mxu0 %v24477_v12  ;;  %2348 = vmatprep.mubr.f32.mxu1 %v24477_v12 }
 0x514   :  { %18287 = vmatpush1.bf16.msra.mxu0 %v22040_v39  ;;  %18295 = vmatpush1.bf16.msra.mxu1 %v22042_v47 }
 0x515   :  { %18297 = vmatprep.subr.bf16.mxu0 %v21879_v6  ;;  %18313 = vmatprep.subr.bf16.mxu1 %v21881_v10 }
 0x517   :  { %17659 = vmatmul.mubr.msk.f32.vlgmr.msra.gmra.mrb[14].mxu0 %vm674_vm1, %v1870_v49  ;;  %17660 = vmatmul.mubr.msk.f32.vlgmr.msra.gmra.mrb[14].mxu1 %vm674_vm1, %v1870_v49 }
 0x518   :  { %18299 = vmatpush1.bf16.msra.mxu0 %v21883_v11  ;;  %18315 = vmatpush1.bf16.msra.mxu1 %v21886_v15 }
 0x519   :  { %18301 = vmatprep.subr.bf16.mxu0 %v21890_v19  ;;  %18317 = vmatprep.subr.bf16.mxu1 %v21892_v20 }
 0x51a   :  { %2449 = vmatprep.mubr.f32.mxu0 %v24477_v12  ;;  %2520 = vmatprep.mubr.f32.mxu1 %v24477_v12 }
 0x51c   :  { %18303 = vmatpush1.bf16.msra.mxu0 %v21895_v24  ;;  %18319 = vmatpush1.bf16.msra.mxu1 %v21899_v28 }
 0x51d   :  { %18305 = vmatprep.subr.bf16.mxu0 %v21901_v29  ;;  %18321 = vmatprep.subr.bf16.mxu1 %v21903_v33 }
 0x520   :  { %18307 = vmatpush1.bf16.msra.mxu0 %v21906_v37  ;;  %18323 = vmatpush1.bf16.msra.mxu1 %v21910_v41 }
 0x521   :  { %18309 = vmatprep.subr.bf16.mxu0 %v21912_v42  ;;  %18325 = vmatprep.subr.bf16.mxu1 %v21915_v46 }
 0x524   :  { %18311 = vmatpush1.bf16.msra.mxu0 %v21921_v50  ;;  %18327 = vmatpush1.bf16.msra.mxu1 %v21928_v52 }
 0x525   :  { %18329 = vmatprep.subr.bf16.mxu0 %v21965_v26  ;;  %18345 = vmatprep.subr.bf16.mxu1 %v21968_v40 }
 0x527   :  { %17664 = vmatmul.mubr.msk.f32.vlgmr.msra.gmra.mrb[16].mxu0 %vm264_vm0, %v2064_v31  ;;  %17665 = vmatmul.mubr.msk.f32.vlgmr.msra.gmra.mrb[16].mxu1 %vm264_vm0, %v2064_v31 }
 0x528   :  { %18331 = vmatpush1.bf16.msra.mxu0 %v21970_v43  ;;  %18347 = vmatpush1.bf16.msra.mxu1 %v21972_v44 }
 0x529   :  { %18333 = vmatprep.subr.bf16.mxu0 %v21976_v60  ;;  %18349 = vmatprep.subr.bf16.mxu1 %v21979_v0 }
 0x52a   :  { %2644 = vmatprep.mubr.f32.mxu0 %v24477_v12  ;;  %2715 = vmatprep.mubr.f32.mxu1 %v24477_v12 }
 0x52c   :  { %18335 = vmatpush1.bf16.msra.mxu0 %v21981_v2  ;;  %18351 = vmatpush1.bf16.msra.mxu1 %v21984_v7 }
 0x52d   :  { %18337 = vmatprep.subr.bf16.mxu0 %v21987_v13  ;;  %18353 = vmatprep.subr.bf16.mxu1 %v21989_v14 }
 0x530   :  { %18339 = vmatpush1.bf16.msra.mxu0 %v21992_v21  ;;  %18355 = vmatpush1.bf16.msra.mxu1 %v21996_v25 }
 0x531   :  { %18341 = vmatprep.subr.bf16.mxu0 %v21999_v32  ;;  %18357 = vmatprep.subr.bf16.mxu1 %v22001_v34 }
 0x534   :  { %18343 = vmatpush1.bf16.msra.mxu0 %v22004_v48  ;;  %18359 = vmatpush1.bf16.msra.mxu1 %v22008_v53 }
 0x535   :  { %18361 = vmatprep.subr.bf16.mxu0 %v24487_v1  ;;  %18369 = vmatprep.subr.bf16.mxu1 %v24488_v59 }
 0x5ea   :  { %v2279_v38 = vpop.f32.mrb[14].mxu0  ;;  %v2350_v9 = vpop.f32.mrb[14].mxu1 }
 0x5eb   :  { %v20308_v62 = vadd.f32 %v2279_v38, %v24489_v22  ;;  %v2281_v16 = vpop.f32.mrb[15].mxu0  ;;  %v2352_v51 = vpop.f32.mrb[15].mxu1 }
 0x5ec   :  { %v20309_v17 = vadd.f32 %v2281_v16, %v24490_v61  ;;  %v20311_v18 = vadd.f32 %v2352_v51, %v24491_v54 }
 0x5ed   :  { %v17661_v45 = vmul.f32 -1.442695, %v20308_v62 }
 0x5ee   :  { %v17662_v58 = vmul.f32 -1.442695, %v20309_v17 }
 0x5ef   :  { %20646 = vpow2.f32 %v17661_v45  ;;  %v2384_v45 = vld [vmem:[#allocation2 + $0x4] ss:$8 sm:$0xf] }
 0x5f0   :  { %20648 = vpow2.f32 %v17662_v58 }
 0x5f1   :  { %20650 = vtanh.f32 %v20311_v18 }
 0x5f9   :  { %v20647_v5 = vpop.eup %20646 }
 0x5fa   :  { %v2368_v57 = vadd.f32 1.0, %v20647_v5  ;;  %v2451_v56 = vpop.f32.mrb[16].mxu0  ;;  %v2522_v31 = vpop.f32.mrb[16].mxu1 }
 0x5fb   :  { %v20649_v8 = vpop.eup %20648  ;;  %v2453_v3 = vpop.f32.mrb[17].mxu0 }
 0x5fc   :  { %v2524_v49 = vpop.f32.mrb[17].mxu1  ;;  %20652 = vrcp.f32 %v2368_v57  ;;  %v2369_v38 = vadd.f32 1.0, %v20649_v8  ;;  %v2531_v22 = vcombine.low %v2451_v56, %v2453_v3  ;;  %v20651_v5 = vpop.eup %20650 }
 0x5fd   :  { %v2532_v59 = vcombine.low %v2522_v31, %v2524_v49 }
 0x5fe   :  { %20654 = vrcp.f32 %v2369_v38  ;;  %v2539_v62 = vrot.slane %v2531_v22, %v22020_v4 }
 0x5ff   :  { %v2546_v16 = vrot.slane %v2532_v59, %v22020_v4  ;;  %v20310_v59 = vadd.f32 %v2350_v9, %v22113_v55 }
 0x601   :  { %v2547_v17 = vcombine.low %v2539_v62, %v2546_v16  ;;  %v17663_v3 = vmul.f32 -1.442695, %v20310_v59 }
 0x603   :  { %v2554_v51 = vrot.slane %v2547_v17, %v22020_v4 }
 0x605   :  { %v2556_v58 = vadd.f32 %v2554_v51, %v2384_v45 }
 0x606   :  { %v20653_v54 = vpop.eup %20652 }
 0x607   :  { %v17666_v61 = vmul.f32 -1.442695, %v2556_v58  ;;  %v2379_v18 = vmul.f32 %v20653_v54, %v20651_v5  ;;  %v2564_v22 = vrot.slane %v2556_v58, 3  ;;  %v24492_v5 = vld [vmem:[#allocation27_spill] sm:$0xff] }
 0x608   :  { %v20655_v1 = vpop.eup %20654 }
 0x609   :  { %20656 = vpow2.f32 %v17666_v61  ;;  %v2378_v57 = vmul.f32 %v20655_v1, %v22247_v63 }
 0x60b   :  { %v22314_v56 = vadd.f32 %v2379_v18, %v2378_v57  ;;  %v24493_v18 = vld [vmem:[#allocation28_spill] sm:$0xff] }
 0x613   :  { %v20657_v31 = vpop.eup %20656 }
 0x614   :  { %v2560_v8 = vadd.f32 1.0, %v20657_v31 }
 0x616   :  { %20658 = vrcp.f32 %v2560_v8  ;;  %v24494_v8 = vld [vmem:[#allocation29_spill] sm:$0xff] }
 0x617   :  { %20660 = vtanh.f32 %v2564_v22 }
 0x618   :  { %20662 = vpow2.f32 %v17663_v3 }
 0x620   :  { %v20659_v49 = vpop.eup %20658 }
 0x621   :  { %v2568_v38 = vrot.slane %v20659_v49, 1  ;;  %v20661_v62 = vpop.eup %20660  ;;  %v2574_v9 = vrot.slane %v20659_v49, 2 }
 0x622   :  { %v2571_v16 = vmul.f32 %v20661_v62, %v20659_v49  ;;  %v20663_v63 = vpop.eup %20662  ;;  %v24495_v49 = vld [vmem:[#allocation30_spill] sm:$0xff] }
 0x623   :  { %v2570_v54 = vmul.f32 %v2568_v38, %v22251_v30  ;;  %v2370_v1 = vadd.f32 1.0, %v20663_v63 }
 0x625   :  { %v22318_v61 = vadd.f32 %v2571_v16, %v2570_v54  ;;  %v24496_v16 = vld [vmem:[#allocation31_spill] sm:$0xff] }
 0x627   :  { %20664 = vtanh.f32 %v22318_v61 }
 0x628   :  { %20666 = vtanh.f32 %v22314_v56 }
 0x629   :  { %20668 = vrcp.f32 %v2370_v1 }
 0x631   :  { %v20665_v17 = vpop.eup %20664 }
 0x632   :  { %v2576_v51 = vmul.f32 %v20665_v17, %v2574_v9  ;;  %v20667_v30 = vpop.eup %20666 }
 0x633   :  { %v20669_v45 = vpop.eup %20668 }
 0x634   :  { %17667 = vmatmul.mubr.msk.f32.vlgmr.msra.gmra.mrb[18].mxu0 %vm264_vm0, %v2576_v51  ;;  %17668 = vmatmul.mubr.msk.f32.vlgmr.msra.gmra.mrb[18].mxu1 %vm264_vm0, %v2576_v51  ;;  %v2382_v58 = vmul.f32 %v20669_v45, %v20667_v30 }
 0x635   :  { %18363 = vmatpush1.bf16.msra.mxu0 %v22028_v23  ;;  %18371 = vmatpush1.bf16.msra.mxu1 %v22030_v27 }
 0x636   :  { %18365 = vmatprep.subr.bf16.mxu0 %v22032_v35  ;;  %18373 = vmatprep.subr.bf16.mxu1 %v22034_v36 }
 0x637   :  { %2789 = vmatprep.mubr.f32.mxu0 %v24477_v12  ;;  %2860 = vmatprep.mubr.f32.mxu1 %v24477_v12 }
 0x639   :  { %18367 = vmatpush1.bf16.msra.mxu0 %v22040_v39  ;;  %18375 = vmatpush1.bf16.msra.mxu1 %v22042_v47 }
 0x63a   :  { %18377 = vmatprep.subr.bf16.mxu0 %v21879_v6  ;;  %18393 = vmatprep.subr.bf16.mxu1 %v21881_v10 }
 0x63c   :  { %17669 = vmatmul.mubr.msk.f32.vlgmr.msra.gmra.mrb[18].mxu0 %vm674_vm1, %v2382_v58  ;;  %17670 = vmatmul.mubr.msk.f32.vlgmr.msra.gmra.mrb[18].mxu1 %vm674_vm1, %v2382_v58 }
 0x63d   :  { %18379 = vmatpush1.bf16.msra.mxu0 %v21883_v11  ;;  %18395 = vmatpush1.bf16.msra.mxu1 %v21886_v15 }
 0x63e   :  { %18381 = vmatprep.subr.bf16.mxu0 %v21890_v19  ;;  %18397 = vmatprep.subr.bf16.mxu1 %v21892_v20 }
 0x63f   :  { %2961 = vmatprep.mubr.f32.mxu0 %v24477_v12  ;;  %3032 = vmatprep.mubr.f32.mxu1 %v24477_v12 }
 0x641   :  { %18383 = vmatpush1.bf16.msra.mxu0 %v21895_v24  ;;  %18399 = vmatpush1.bf16.msra.mxu1 %v21899_v28 }
 0x642   :  { %18385 = vmatprep.subr.bf16.mxu0 %v21901_v29  ;;  %18401 = vmatprep.subr.bf16.mxu1 %v21903_v33 }
 0x645   :  { %18387 = vmatpush1.bf16.msra.mxu0 %v21906_v37  ;;  %18403 = vmatpush1.bf16.msra.mxu1 %v21910_v41 }
 0x646   :  { %18389 = vmatprep.subr.bf16.mxu0 %v21912_v42  ;;  %18405 = vmatprep.subr.bf16.mxu1 %v21915_v46 }
 0x649   :  { %18391 = vmatpush1.bf16.msra.mxu0 %v21921_v50  ;;  %18407 = vmatpush1.bf16.msra.mxu1 %v21928_v52 }
 0x64a   :  { %18409 = vmatprep.subr.bf16.mxu0 %v21965_v26  ;;  %18425 = vmatprep.subr.bf16.mxu1 %v21968_v40 }
 0x64c   :  { %17674 = vmatmul.mubr.msk.f32.vlgmr.msra.gmra.mrb[20].mxu0 %vm264_vm0, %v2576_v51  ;;  %17675 = vmatmul.mubr.msk.f32.vlgmr.msra.gmra.mrb[20].mxu1 %vm264_vm0, %v2576_v51 }
 0x64d   :  { %18411 = vmatpush1.bf16.msra.mxu0 %v21970_v43  ;;  %18427 = vmatpush1.bf16.msra.mxu1 %v21972_v44 }
 0x64e   :  { %18413 = vmatprep.subr.bf16.mxu0 %v21976_v60  ;;  %18429 = vmatprep.subr.bf16.mxu1 %v21979_v0 }
 0x64f   :  { %3156 = vmatprep.mubr.f32.mxu0 %v24477_v12  ;;  %3227 = vmatprep.mubr.f32.mxu1 %v24477_v12 }
 0x651   :  { %18415 = vmatpush1.bf16.msra.mxu0 %v21981_v2  ;;  %18431 = vmatpush1.bf16.msra.mxu1 %v21984_v7 }
 0x652   :  { %18417 = vmatprep.subr.bf16.mxu0 %v21987_v13  ;;  %18433 = vmatprep.subr.bf16.mxu1 %v21989_v14 }
 0x655   :  { %18419 = vmatpush1.bf16.msra.mxu0 %v21992_v21  ;;  %18435 = vmatpush1.bf16.msra.mxu1 %v21996_v25 }
 0x656   :  { %18421 = vmatprep.subr.bf16.mxu0 %v21999_v32  ;;  %18437 = vmatprep.subr.bf16.mxu1 %v22001_v34 }
 0x659   :  { %18423 = vmatpush1.bf16.msra.mxu0 %v22004_v48  ;;  %18439 = vmatpush1.bf16.msra.mxu1 %v22008_v53 }
 0x65a   :  { %18441 = vmatprep.subr.bf16.mxu0 %v24492_v5  ;;  %18449 = vmatprep.subr.bf16.mxu1 %v24493_v18 }
 0x70f   :  { %v2791_v57 = vpop.f32.mrb[18].mxu0  ;;  %v2862_v31 = vpop.f32.mrb[18].mxu1 }
 0x710   :  { %v20312_v22 = vadd.f32 %v2791_v57, %v24494_v8  ;;  %v2793_v59 = vpop.f32.mrb[19].mxu0  ;;  %v2864_v3 = vpop.f32.mrb[19].mxu1 }
 0x711   :  { %v20313_v38 = vadd.f32 %v2793_v59, %v24495_v49  ;;  %v20315_v63 = vadd.f32 %v2864_v3, %v24496_v16 }
 0x712   :  { %v17671_v62 = vmul.f32 -1.442695, %v20312_v22 }
 0x713   :  { %v17672_v54 = vmul.f32 -1.442695, %v20313_v38 }
 0x714   :  { %20670 = vpow2.f32 %v17671_v62  ;;  %v2896_v62 = vld [vmem:[#allocation2 + $0x5] ss:$8 sm:$0xf] }
 0x715   :  { %20672 = vpow2.f32 %v17672_v54 }
 0x716   :  { %20674 = vtanh.f32 %v20315_v63 }
 0x71e   :  { %v20671_v1 = vpop.eup %20670 }
 0x71f   :  { %v2880_v9 = vadd.f32 1.0, %v20671_v1  ;;  %v2963_v17 = vpop.f32.mrb[20].mxu0  ;;  %v3034_v51 = vpop.f32.mrb[20].mxu1 }
 0x720   :  { %v20673_v30 = vpop.eup %20672  ;;  %v2965_v45 = vpop.f32.mrb[21].mxu0 }
 0x721   :  { %v3036_v58 = vpop.f32.mrb[21].mxu1  ;;  %20676 = vrcp.f32 %v2880_v9  ;;  %v2881_v57 = vadd.f32 1.0, %v20673_v30  ;;  %v3043_v8 = vcombine.low %v2963_v17, %v2965_v45  ;;  %v20675_v1 = vpop.eup %20674 }
 0x722   :  { %v3044_v18 = vcombine.low %v3034_v51, %v3036_v58 }
 0x723   :  { %20678 = vrcp.f32 %v2881_v57  ;;  %v3051_v22 = vrot.slane %v3043_v8, %v22020_v4 }
 0x724   :  { %v3058_v59 = vrot.slane %v3044_v18, %v22020_v4  ;;  %v20314_v18 = vadd.f32 %v2862_v31, %v22113_v55 }
 0x726   :  { %v3059_v38 = vcombine.low %v3051_v22, %v3058_v59  ;;  %v17673_v45 = vmul.f32 -1.442695, %v20314_v18 }
 0x728   :  { %v3066_v3 = vrot.slane %v3059_v38, %v22020_v4 }
 0x72a   :  { %v3068_v54 = vadd.f32 %v3066_v3, %v2896_v62 }
 0x72b   :  { %v20677_v16 = vpop.eup %20676 }
 0x72c   :  { %v17676_v49 = vmul.f32 -1.442695, %v3068_v54  ;;  %v2891_v63 = vmul.f32 %v20677_v16, %v20675_v1  ;;  %v3076_v8 = vrot.slane %v3068_v54, 3  ;;  %v24497_v1 = vld [vmem:[#allocation27_spill] sm:$0xff] }
 0x72d   :  { %v20679_v5 = vpop.eup %20678 }
 0x72e   :  { %20680 = vpow2.f32 %v17676_v49  ;;  %v2890_v9 = vmul.f32 %v20679_v5, %v22314_v56 }
 0x730   :  { %v22381_v17 = vadd.f32 %v2891_v63, %v2890_v9  ;;  %v24498_v63 = vld [vmem:[#allocation28_spill] sm:$0xff] }
 0x738   :  { %v20681_v51 = vpop.eup %20680 }
 0x739   :  { %v3072_v30 = vadd.f32 1.0, %v20681_v51 }
 0x73b   :  { %20682 = vrcp.f32 %v3072_v30  ;;  %v24499_v30 = vld [vmem:[#allocation29_spill] sm:$0xff] }
 0x73c   :  { %20684 = vtanh.f32 %v3076_v8 }
 0x73d   :  { %20686 = vpow2.f32 %v17673_v45 }
 0x745   :  { %v20683_v58 = vpop.eup %20682 }
 0x746   :  { %v3080_v57 = vrot.slane %v20683_v58, 1  ;;  %v20685_v22 = vpop.eup %20684  ;;  %v3086_v31 = vrot.slane %v20683_v58, 2 }
 0x747   :  { %v3083_v59 = vmul.f32 %v20685_v22, %v20683_v58  ;;  %v20687_v56 = vpop.eup %20686  ;;  %v24500_v58 = vld [vmem:[#allocation30_spill] sm:$0xff] }
 0x748   :  { %v3082_v16 = vmul.f32 %v3080_v57, %v22318_v61  ;;  %v2882_v5 = vadd.f32 1.0, %v20687_v56 }
 0x74a   :  { %v22385_v49 = vadd.f32 %v3083_v59, %v3082_v16  ;;  %v24501_v59 = vld [vmem:[#allocation31_spill] sm:$0xff] }
 0x74c   :  { %20688 = vtanh.f32 %v22385_v49 }
 0x74d   :  { %20690 = vtanh.f32 %v22381_v17 }
 0x74e   :  { %20692 = vrcp.f32 %v2882_v5 }
 0x756   :  { %v20689_v38 = vpop.eup %20688 }
 0x757   :  { %v3088_v3 = vmul.f32 %v20689_v38, %v3086_v31  ;;  %v20691_v61 = vpop.eup %20690 }
 0x758   :  { %v20693_v62 = vpop.eup %20692 }
 0x759   :  { %17677 = vmatmul.mubr.msk.f32.vlgmr.msra.gmra.mrb[22].mxu0 %vm264_vm0, %v3088_v3  ;;  %17678 = vmatmul.mubr.msk.f32.vlgmr.msra.gmra.mrb[22].mxu1 %vm264_vm0, %v3088_v3  ;;  %v2894_v54 = vmul.f32 %v20693_v62, %v20691_v61 }
 0x75a   :  { %18443 = vmatpush1.bf16.msra.mxu0 %v22028_v23  ;;  %18451 = vmatpush1.bf16.msra.mxu1 %v22030_v27 }
 0x75b   :  { %18445 = vmatprep.subr.bf16.mxu0 %v22032_v35  ;;  %18453 = vmatprep.subr.bf16.mxu1 %v22034_v36 }
 0x75c   :  { %3301 = vmatprep.mubr.f32.mxu0 %v24477_v12  ;;  %3372 = vmatprep.mubr.f32.mxu1 %v24477_v12 }
 0x75e   :  { %18447 = vmatpush1.bf16.msra.mxu0 %v22040_v39  ;;  %18455 = vmatpush1.bf16.msra.mxu1 %v22042_v47 }
 0x75f   :  { %18457 = vmatprep.subr.bf16.mxu0 %v21879_v6  ;;  %18473 = vmatprep.subr.bf16.mxu1 %v21881_v10 }
 0x761   :  { %17679 = vmatmul.mubr.msk.f32.vlgmr.msra.gmra.mrb[22].mxu0 %vm674_vm1, %v2894_v54  ;;  %17680 = vmatmul.mubr.msk.f32.vlgmr.msra.gmra.mrb[22].mxu1 %vm674_vm1, %v2894_v54 }
 0x762   :  { %18459 = vmatpush1.bf16.msra.mxu0 %v21883_v11  ;;  %18475 = vmatpush1.bf16.msra.mxu1 %v21886_v15 }
 0x763   :  { %18461 = vmatprep.subr.bf16.mxu0 %v21890_v19  ;;  %18477 = vmatprep.subr.bf16.mxu1 %v21892_v20 }
 0x764   :  { %3473 = vmatprep.mubr.f32.mxu0 %v24477_v12  ;;  %3544 = vmatprep.mubr.f32.mxu1 %v24477_v12 }
 0x766   :  { %18463 = vmatpush1.bf16.msra.mxu0 %v21895_v24  ;;  %18479 = vmatpush1.bf16.msra.mxu1 %v21899_v28 }
 0x767   :  { %18465 = vmatprep.subr.bf16.mxu0 %v21901_v29  ;;  %18481 = vmatprep.subr.bf16.mxu1 %v21903_v33 }
 0x76a   :  { %18467 = vmatpush1.bf16.msra.mxu0 %v21906_v37  ;;  %18483 = vmatpush1.bf16.msra.mxu1 %v21910_v41 }
 0x76b   :  { %18469 = vmatprep.subr.bf16.mxu0 %v21912_v42  ;;  %18485 = vmatprep.subr.bf16.mxu1 %v21915_v46 }
 0x76e   :  { %18471 = vmatpush1.bf16.msra.mxu0 %v21921_v50  ;;  %18487 = vmatpush1.bf16.msra.mxu1 %v21928_v52 }
 0x76f   :  { %18489 = vmatprep.subr.bf16.mxu0 %v21965_v26  ;;  %18505 = vmatprep.subr.bf16.mxu1 %v21968_v40 }
 0x771   :  { %17684 = vmatmul.mubr.msk.f32.vlgmr.msra.gmra.mrb[24].mxu0 %vm264_vm0, %v3088_v3  ;;  %17685 = vmatmul.mubr.msk.f32.vlgmr.msra.gmra.mrb[24].mxu1 %vm264_vm0, %v3088_v3 }
 0x772   :  { %18491 = vmatpush1.bf16.msra.mxu0 %v21970_v43  ;;  %18507 = vmatpush1.bf16.msra.mxu1 %v21972_v44 }
 0x773   :  { %18493 = vmatprep.subr.bf16.mxu0 %v21976_v60  ;;  %18509 = vmatprep.subr.bf16.mxu1 %v21979_v0 }
 0x774   :  { %3668 = vmatprep.mubr.f32.mxu0 %v24477_v12  ;;  %3739 = vmatprep.mubr.f32.mxu1 %v24477_v12 }
 0x776   :  { %18495 = vmatpush1.bf16.msra.mxu0 %v21981_v2  ;;  %18511 = vmatpush1.bf16.msra.mxu1 %v21984_v7 }
 0x777   :  { %18497 = vmatprep.subr.bf16.mxu0 %v21987_v13  ;;  %18513 = vmatprep.subr.bf16.mxu1 %v21989_v14 }
 0x77a   :  { %18499 = vmatpush1.bf16.msra.mxu0 %v21992_v21  ;;  %18515 = vmatpush1.bf16.msra.mxu1 %v21996_v25 }
 0x77b   :  { %18501 = vmatprep.subr.bf16.mxu0 %v21999_v32  ;;  %18517 = vmatprep.subr.bf16.mxu1 %v22001_v34 }
 0x77e   :  { %18503 = vmatpush1.bf16.msra.mxu0 %v22004_v48  ;;  %18519 = vmatpush1.bf16.msra.mxu1 %v22008_v53 }
 0x77f   :  { %18521 = vmatprep.subr.bf16.mxu0 %v24497_v1  ;;  %18529 = vmatprep.subr.bf16.mxu1 %v24498_v63 }
 0x834   :  { %v3303_v9 = vpop.f32.mrb[22].mxu0  ;;  %v3374_v51 = vpop.f32.mrb[22].mxu1 }
 0x835   :  { %v20316_v8 = vadd.f32 %v3303_v9, %v24499_v30  ;;  %v3305_v18 = vpop.f32.mrb[23].mxu0  ;;  %v3376_v45 = vpop.f32.mrb[23].mxu1 }
 0x836   :  { %v20317_v57 = vadd.f32 %v3305_v18, %v24500_v58  ;;  %v20319_v56 = vadd.f32 %v3376_v45, %v24501_v59 }
 0x837   :  { %v17681_v22 = vmul.f32 -1.442695, %v20316_v8 }
 0x838   :  { %v17682_v16 = vmul.f32 -1.442695, %v20317_v57 }
 0x839   :  { %20694 = vpow2.f32 %v17681_v22  ;;  %v3408_v22 = vld [vmem:[#allocation2 + $0x6] ss:$8 sm:$0xf] }
 0x83a   :  { %20696 = vpow2.f32 %v17682_v16 }
 0x83b   :  { %20698 = vtanh.f32 %v20319_v56 }
 0x843   :  { %v20695_v5 = vpop.eup %20694 }
 0x844   :  { %v3392_v31 = vadd.f32 1.0, %v20695_v5  ;;  %v3475_v38 = vpop.f32.mrb[24].mxu0  ;;  %v3546_v3 = vpop.f32.mrb[24].mxu1 }
 0x845   :  { %v20697_v61 = vpop.eup %20696  ;;  %v3477_v62 = vpop.f32.mrb[25].mxu0 }
 0x846   :  { %v3548_v54 = vpop.f32.mrb[25].mxu1  ;;  %20700 = vrcp.f32 %v3392_v31  ;;  %v3393_v9 = vadd.f32 1.0, %v20697_v61  ;;  %v3555_v30 = vcombine.low %v3475_v38, %v3477_v62  ;;  %v20699_v5 = vpop.eup %20698 }
 0x847   :  { %v3556_v63 = vcombine.low %v3546_v3, %v3548_v54 }
 0x848   :  { %20702 = vrcp.f32 %v3393_v9  ;;  %v3563_v8 = vrot.slane %v3555_v30, %v22020_v4 }
 0x849   :  { %v3570_v18 = vrot.slane %v3556_v63, %v22020_v4  ;;  %v20318_v63 = vadd.f32 %v3374_v51, %v22113_v55 }
 0x84b   :  { %v3571_v57 = vcombine.low %v3563_v8, %v3570_v18  ;;  %v17683_v62 = vmul.f32 -1.442695, %v20318_v63 }
 0x84d   :  { %v3578_v45 = vrot.slane %v3571_v57, %v22020_v4 }
 0x84f   :  { %v3580_v16 = vadd.f32 %v3578_v45, %v3408_v22 }
 0x850   :  { %v20701_v59 = vpop.eup %20700 }
 0x851   :  { %v17686_v58 = vmul.f32 -1.442695, %v3580_v16  ;;  %v3403_v56 = vmul.f32 %v20701_v59, %v20699_v5  ;;  %v3588_v30 = vrot.slane %v3580_v16, 3  ;;  %v24502_v5 = vld [vmem:[#allocation27_spill] sm:$0xff] }
 0x852   :  { %v20703_v1 = vpop.eup %20702 }
 0x853   :  { %20704 = vpow2.f32 %v17686_v58  ;;  %v3402_v31 = vmul.f32 %v20703_v1, %v22381_v17 }
 0x855   :  { %v22448_v38 = vadd.f32 %v3403_v56, %v3402_v31  ;;  %v24503_v56 = vld [vmem:[#allocation28_spill] sm:$0xff] }
 0x85d   :  { %v20705_v3 = vpop.eup %20704 }
 0x85e   :  { %v3584_v61 = vadd.f32 1.0, %v20705_v3 }
 0x860   :  { %20706 = vrcp.f32 %v3584_v61  ;;  %v24504_v61 = vld [vmem:[#allocation29_spill] sm:$0xff] }
 0x861   :  { %20708 = vtanh.f32 %v3588_v30 }
 0x862   :  { %20710 = vpow2.f32 %v17683_v62 }
 0x86a   :  { %v20707_v54 = vpop.eup %20706 }
 0x86b   :  { %v3592_v9 = vrot.slane %v20707_v54, 1  ;;  %v20709_v8 = vpop.eup %20708  ;;  %v3598_v51 = vrot.slane %v20707_v54, 2 }
 0x86c   :  { %v3595_v18 = vmul.f32 %v20709_v8, %v20707_v54  ;;  %v20711_v17 = vpop.eup %20710  ;;  %v24505_v54 = vld [vmem:[#allocation30_spill] sm:$0xff] }
 0x86d   :  { %v3594_v59 = vmul.f32 %v3592_v9, %v22385_v49  ;;  %v3394_v1 = vadd.f32 1.0, %v20711_v17 }
 0x86f   :  { %v22452_v58 = vadd.f32 %v3595_v18, %v3594_v59  ;;  %v24506_v18 = vld [vmem:[#allocation31_spill] sm:$0xff] }
 0x871   :  { %20712 = vtanh.f32 %v22452_v58 }
 0x872   :  { %20714 = vtanh.f32 %v22448_v38 }
 0x873   :  { %20716 = vrcp.f32 %v3394_v1 }
 0x87b   :  { %v20713_v57 = vpop.eup %20712 }
 0x87c   :  { %v3600_v45 = vmul.f32 %v20713_v57, %v3598_v51  ;;  %v20715_v49 = vpop.eup %20714 }
 0x87d   :  { %v20717_v22 = vpop.eup %20716 }
 0x87e   :  { %17687 = vmatmul.mubr.msk.f32.vlgmr.msra.gmra.mrb[26].mxu0 %vm264_vm0, %v3600_v45  ;;  %17688 = vmatmul.mubr.msk.f32.vlgmr.msra.gmra.mrb[26].mxu1 %vm264_vm0, %v3600_v45  ;;  %v3406_v16 = vmul.f32 %v20717_v22, %v20715_v49 }
 0x87f   :  { %18523 = vmatpush1.bf16.msra.mxu0 %v22028_v23  ;;  %18531 = vmatpush1.bf16.msra.mxu1 %v22030_v27 }
 0x880   :  { %18525 = vmatprep.subr.bf16.mxu0 %v22032_v35  ;;  %18533 = vmatprep.subr.bf16.mxu1 %v22034_v36 }
 0x881   :  { %3813 = vmatprep.mubr.f32.mxu0 %v24477_v12  ;;  %3884 = vmatprep.mubr.f32.mxu1 %v24477_v12 }
 0x883   :  { %18527 = vmatpush1.bf16.msra.mxu0 %v22040_v39  ;;  %18535 = vmatpush1.bf16.msra.mxu1 %v22042_v47 }
 0x884   :  { %18537 = vmatprep.subr.bf16.mxu0 %v21879_v6  ;;  %18553 = vmatprep.subr.bf16.mxu1 %v21881_v10 }
 0x886   :  { %17689 = vmatmul.mubr.msk.f32.vlgmr.msra.gmra.mrb[26].mxu0 %vm674_vm1, %v3406_v16  ;;  %17690 = vmatmul.mubr.msk.f32.vlgmr.msra.gmra.mrb[26].mxu1 %vm674_vm1, %v3406_v16 }
 0x887   :  { %18539 = vmatpush1.bf16.msra.mxu0 %v21883_v11  ;;  %18555 = vmatpush1.bf16.msra.mxu1 %v21886_v15 }
 0x888   :  { %18541 = vmatprep.subr.bf16.mxu0 %v21890_v19  ;;  %18557 = vmatprep.subr.bf16.mxu1 %v21892_v20 }
 0x889   :  { %3985 = vmatprep.mubr.f32.mxu0 %v24477_v12  ;;  %4056 = vmatprep.mubr.f32.mxu1 %v24477_v12 }
 0x88b   :  { %18543 = vmatpush1.bf16.msra.mxu0 %v21895_v24  ;;  %18559 = vmatpush1.bf16.msra.mxu1 %v21899_v28 }
 0x88c   :  { %18545 = vmatprep.subr.bf16.mxu0 %v21901_v29  ;;  %18561 = vmatprep.subr.bf16.mxu1 %v21903_v33 }
 0x88f   :  { %18547 = vmatpush1.bf16.msra.mxu0 %v21906_v37  ;;  %18563 = vmatpush1.bf16.msra.mxu1 %v21910_v41 }
 0x890   :  { %18549 = vmatprep.subr.bf16.mxu0 %v21912_v42  ;;  %18565 = vmatprep.subr.bf16.mxu1 %v21915_v46 }
 0x893   :  { %18551 = vmatpush1.bf16.msra.mxu0 %v21921_v50  ;;  %18567 = vmatpush1.bf16.msra.mxu1 %v21928_v52 }
 0x894   :  { %18569 = vmatprep.subr.bf16.mxu0 %v21965_v26  ;;  %18585 = vmatprep.subr.bf16.mxu1 %v21968_v40 }
 0x896   :  { %17694 = vmatmul.mubr.msk.f32.vlgmr.msra.gmra.mrb[28].mxu0 %vm264_vm0, %v3600_v45  ;;  %17695 = vmatmul.mubr.msk.f32.vlgmr.msra.gmra.mrb[28].mxu1 %vm264_vm0, %v3600_v45 }
 0x897   :  { %18571 = vmatpush1.bf16.msra.mxu0 %v21970_v43  ;;  %18587 = vmatpush1.bf16.msra.mxu1 %v21972_v44 }
 0x898   :  { %18573 = vmatprep.subr.bf16.mxu0 %v21976_v60  ;;  %18589 = vmatprep.subr.bf16.mxu1 %v21979_v0 }
 0x899   :  { %4180 = vmatprep.mubr.f32.mxu0 %v24477_v12  ;;  %4251 = vmatprep.mubr.f32.mxu1 %v24477_v12 }
 0x89b   :  { %18575 = vmatpush1.bf16.msra.mxu0 %v21981_v2  ;;  %18591 = vmatpush1.bf16.msra.mxu1 %v21984_v7 }
 0x89c   :  { %18577 = vmatprep.subr.bf16.mxu0 %v21987_v13  ;;  %18593 = vmatprep.subr.bf16.mxu1 %v21989_v14 }
 0x89f   :  { %18579 = vmatpush1.bf16.msra.mxu0 %v21992_v21  ;;  %18595 = vmatpush1.bf16.msra.mxu1 %v21996_v25 }
 0x8a0   :  { %18581 = vmatprep.subr.bf16.mxu0 %v21999_v32  ;;  %18597 = vmatprep.subr.bf16.mxu1 %v22001_v34 }
 0x8a3   :  { %18583 = vmatpush1.bf16.msra.mxu0 %v22004_v48  ;;  %18599 = vmatpush1.bf16.msra.mxu1 %v22008_v53 }
 0x8a4   :  { %18601 = vmatprep.subr.bf16.mxu0 %v24502_v5  ;;  %18609 = vmatprep.subr.bf16.mxu1 %v24503_v56 }
 0x959   :  { %v3815_v31 = vpop.f32.mrb[26].mxu0  ;;  %v3886_v3 = vpop.f32.mrb[26].mxu1 }
 0x95a   :  { %v20320_v30 = vadd.f32 %v3815_v31, %v24504_v61  ;;  %v3817_v63 = vpop.f32.mrb[27].mxu0  ;;  %v3888_v62 = vpop.f32.mrb[27].mxu1 }
 0x95b   :  { %v20321_v9 = vadd.f32 %v3817_v63, %v24505_v54  ;;  %v20323_v17 = vadd.f32 %v3888_v62, %v24506_v18 }
 0x95c   :  { %v17691_v8 = vmul.f32 -1.442695, %v20320_v30 }
 0x95d   :  { %v17692_v59 = vmul.f32 -1.442695, %v20321_v9 }
 0x95e   :  { %20718 = vpow2.f32 %v17691_v8  ;;  %v3920_v8 = vld [vmem:[#allocation2 + $0x7] ss:$8 sm:$0xf] }
 0x95f   :  { %20720 = vpow2.f32 %v17692_v59 }
 0x960   :  { %20722 = vtanh.f32 %v20323_v17 }
 0x968   :  { %v20719_v1 = vpop.eup %20718 }
 0x969   :  { %v3904_v51 = vadd.f32 1.0, %v20719_v1  ;;  %v3987_v57 = vpop.f32.mrb[28].mxu0  ;;  %v4058_v45 = vpop.f32.mrb[28].mxu1 }
 0x96a   :  { %v20721_v49 = vpop.eup %20720  ;;  %v3989_v22 = vpop.f32.mrb[29].mxu0 }
 0x96b   :  { %v4060_v16 = vpop.f32.mrb[29].mxu1  ;;  %20724 = vrcp.f32 %v3904_v51  ;;  %v3905_v31 = vadd.f32 1.0, %v20721_v49  ;;  %v4067_v61 = vcombine.low %v3987_v57, %v3989_v22  ;;  %v20723_v1 = vpop.eup %20722 }
 0x96c   :  { %v4068_v56 = vcombine.low %v4058_v45, %v4060_v16 }
 0x96d   :  { %20726 = vrcp.f32 %v3905_v31  ;;  %v4075_v30 = vrot.slane %v4067_v61, %v22020_v4 }
 0x96e   :  { %v4082_v63 = vrot.slane %v4068_v56, %v22020_v4  ;;  %v20322_v56 = vadd.f32 %v3886_v3, %v22113_v55 }
 0x970   :  { %v4083_v9 = vcombine.low %v4075_v30, %v4082_v63  ;;  %v17693_v22 = vmul.f32 -1.442695, %v20322_v56 }
 0x972   :  { %v4090_v62 = vrot.slane %v4083_v9, %v22020_v4 }
 0x974   :  { %v4092_v59 = vadd.f32 %v4090_v62, %v3920_v8 }
 0x975   :  { %v20725_v18 = vpop.eup %20724 }
 0x976   :  { %v17696_v54 = vmul.f32 -1.442695, %v4092_v59  ;;  %v3915_v17 = vmul.f32 %v20725_v18, %v20723_v1  ;;  %v4100_v61 = vrot.slane %v4092_v59, 3  ;;  %v24507_v1 = vld [vmem:[#allocation27_spill] sm:$0xff] }
 0x977   :  { %v20727_v5 = vpop.eup %20726 }
 0x978   :  { %20728 = vpow2.f32 %v17696_v54  ;;  %v3914_v51 = vmul.f32 %v20727_v5, %v22448_v38 }
 0x97a   :  { %v22515_v57 = vadd.f32 %v3915_v17, %v3914_v51  ;;  %v24508_v17 = vld [vmem:[#allocation28_spill] sm:$0xff] }
 0x982   :  { %v20729_v45 = vpop.eup %20728 }
 0x983   :  { %v4096_v49 = vadd.f32 1.0, %v20729_v45 }
 0x985   :  { %20730 = vrcp.f32 %v4096_v49  ;;  %v24509_v49 = vld [vmem:[#allocation29_spill] sm:$0xff] }
 0x986   :  { %20732 = vtanh.f32 %v4100_v61 }
 0x987   :  { %20734 = vpow2.f32 %v17693_v22 }
 0x98f   :  { %v20731_v16 = vpop.eup %20730 }
 0x990   :  { %v4104_v31 = vrot.slane %v20731_v16, 1  ;;  %v20733_v30 = vpop.eup %20732  ;;  %v4110_v3 = vrot.slane %v20731_v16, 2 }
 0x991   :  { %v4107_v63 = vmul.f32 %v20733_v30, %v20731_v16  ;;  %v20735_v38 = vpop.eup %20734  ;;  %v24510_v16 = vld [vmem:[#allocation30_spill] sm:$0xff] }
 0x992   :  { %v4106_v18 = vmul.f32 %v4104_v31, %v22452_v58  ;;  %v3906_v5 = vadd.f32 1.0, %v20735_v38 }
 0x994   :  { %v22519_v54 = vadd.f32 %v4107_v63, %v4106_v18  ;;  %v24511_v63 = vld [vmem:[#allocation31_spill] sm:$0xff] }
 0x996   :  { %20736 = vtanh.f32 %v22519_v54 }
 0x997   :  { %20738 = vtanh.f32 %v22515_v57 }
 0x998   :  { %20740 = vrcp.f32 %v3906_v5 }
 0x9a0   :  { %v20737_v9 = vpop.eup %20736 }
 0x9a1   :  { %v4112_v62 = vmul.f32 %v20737_v9, %v4110_v3  ;;  %v20739_v58 = vpop.eup %20738 }
 0x9a2   :  { %v20741_v8 = vpop.eup %20740 }
 0x9a3   :  { %17697 = vmatmul.mubr.msk.f32.vlgmr.msra.gmra.mrb[30].mxu0 %vm264_vm0, %v4112_v62  ;;  %17698 = vmatmul.mubr.msk.f32.vlgmr.msra.gmra.mrb[30].mxu1 %vm264_vm0, %v4112_v62  ;;  %v3918_v59 = vmul.f32 %v20741_v8, %v20739_v58 }
 0x9a4   :  { %18603 = vmatpush1.bf16.msra.mxu0 %v22028_v23  ;;  %18611 = vmatpush1.bf16.msra.mxu1 %v22030_v27 }
 0x9a5   :  { %18605 = vmatprep.subr.bf16.mxu0 %v22032_v35  ;;  %18613 = vmatprep.subr.bf16.mxu1 %v22034_v36 }
 0x9a6   :  { %4325 = vmatprep.mubr.f32.mxu0 %v24477_v12  ;;  %4396 = vmatprep.mubr.f32.mxu1 %v24477_v12 }
 0x9a8   :  { %18607 = vmatpush1.bf16.msra.mxu0 %v22040_v39  ;;  %18615 = vmatpush1.bf16.msra.mxu1 %v22042_v47 }
 0x9a9   :  { %18617 = vmatprep.subr.bf16.mxu0 %v21879_v6  ;;  %18633 = vmatprep.subr.bf16.mxu1 %v21881_v10 }
 0x9ab   :  { %17699 = vmatmul.mubr.msk.f32.vlgmr.msra.gmra.mrb[30].mxu0 %vm674_vm1, %v3918_v59  ;;  %17700 = vmatmul.mubr.msk.f32.vlgmr.msra.gmra.mrb[30].mxu1 %vm674_vm1, %v3918_v59 }
 0x9ac   :  { %18619 = vmatpush1.bf16.msra.mxu0 %v21883_v11  ;;  %18635 = vmatpush1.bf16.msra.mxu1 %v21886_v15 }
 0x9ad   :  { %18621 = vmatprep.subr.bf16.mxu0 %v21890_v19  ;;  %18637 = vmatprep.subr.bf16.mxu1 %v21892_v20 }
 0x9ae   :  { %4497 = vmatprep.mubr.f32.mxu0 %v24477_v12  ;;  %4568 = vmatprep.mubr.f32.mxu1 %v24477_v12 }
 0x9b0   :  { %18623 = vmatpush1.bf16.msra.mxu0 %v21895_v24  ;;  %18639 = vmatpush1.bf16.msra.mxu1 %v21899_v28 }
 0x9b1   :  { %18625 = vmatprep.subr.bf16.mxu0 %v21901_v29  ;;  %18641 = vmatprep.subr.bf16.mxu1 %v21903_v33 }
 0x9b4   :  { %18627 = vmatpush1.bf16.msra.mxu0 %v21906_v37  ;;  %18643 = vmatpush1.bf16.msra.mxu1 %v21910_v41 }
 0x9b5   :  { %18629 = vmatprep.subr.bf16.mxu0 %v21912_v42  ;;  %18645 = vmatprep.subr.bf16.mxu1 %v21915_v46 }
 0x9b8   :  { %18631 = vmatpush1.bf16.msra.mxu0 %v21921_v50  ;;  %18647 = vmatpush1.bf16.msra.mxu1 %v21928_v52 }
 0x9b9   :  { %18649 = vmatprep.subr.bf16.mxu0 %v21965_v26  ;;  %18665 = vmatprep.subr.bf16.mxu1 %v21968_v40 }
 0x9bb   :  { %17704 = vmatmul.mubr.msk.f32.vlgmr.msra.gmra.mrb[32].mxu0 %vm264_vm0, %v4112_v62  ;;  %17705 = vmatmul.mubr.msk.f32.vlgmr.msra.gmra.mrb[32].mxu1 %vm264_vm0, %v4112_v62 }
 0x9bc   :  { %18651 = vmatpush1.bf16.msra.mxu0 %v21970_v43  ;;  %18667 = vmatpush1.bf16.msra.mxu1 %v21972_v44 }
 0x9bd   :  { %18653 = vmatprep.subr.bf16.mxu0 %v21976_v60  ;;  %18669 = vmatprep.subr.bf16.mxu1 %v21979_v0 }
 0x9be   :  { %4692 = vmatprep.mubr.f32.mxu0 %v24477_v12  ;;  %4763 = vmatprep.mubr.f32.mxu1 %v24477_v12 }
 0x9c0   :  { %18655 = vmatpush1.bf16.msra.mxu0 %v21981_v2  ;;  %18671 = vmatpush1.bf16.msra.mxu1 %v21984_v7 }
 0x9c1   :  { %18657 = vmatprep.subr.bf16.mxu0 %v21987_v13  ;;  %18673 = vmatprep.subr.bf16.mxu1 %v21989_v14 }
 0x9c4   :  { %18659 = vmatpush1.bf16.msra.mxu0 %v21992_v21  ;;  %18675 = vmatpush1.bf16.msra.mxu1 %v21996_v25 }
 0x9c5   :  { %18661 = vmatprep.subr.bf16.mxu0 %v21999_v32  ;;  %18677 = vmatprep.subr.bf16.mxu1 %v22001_v34 }
 0x9c8   :  { %18663 = vmatpush1.bf16.msra.mxu0 %v22004_v48  ;;  %18679 = vmatpush1.bf16.msra.mxu1 %v22008_v53 }
 0x9c9   :  { %18681 = vmatprep.subr.bf16.mxu0 %v24507_v1  ;;  %18689 = vmatprep.subr.bf16.mxu1 %v24508_v17 }
 0xa7e   :  { %v4327_v51 = vpop.f32.mrb[30].mxu0  ;;  %v4398_v45 = vpop.f32.mrb[30].mxu1 }
 0xa7f   :  { %v20324_v61 = vadd.f32 %v4327_v51, %v24509_v49  ;;  %v4329_v56 = vpop.f32.mrb[31].mxu0  ;;  %v4400_v22 = vpop.f32.mrb[31].mxu1 }
 0xa80   :  { %v20325_v31 = vadd.f32 %v4329_v56, %v24510_v16  ;;  %v20327_v38 = vadd.f32 %v4400_v22, %v24511_v63 }
 0xa81   :  { %v17701_v30 = vmul.f32 -1.442695, %v20324_v61 }
 0xa82   :  { %v17702_v18 = vmul.f32 -1.442695, %v20325_v31 }
 0xa83   :  { %20742 = vpow2.f32 %v17701_v30  ;;  %v4432_v30 = vld [vmem:[#allocation2 + $0x20] ss:$8 sm:$0xf] }
 0xa84   :  { %20744 = vpow2.f32 %v17702_v18 }
 0xa85   :  { %20746 = vtanh.f32 %v20327_v38 }
 0xa8d   :  { %v20743_v5 = vpop.eup %20742 }
 0xa8e   :  { %v4416_v3 = vadd.f32 1.0, %v20743_v5  ;;  %v4499_v9 = vpop.f32.mrb[32].mxu0  ;;  %v4570_v62 = vpop.f32.mrb[32].mxu1 }
 0xa8f   :  { %v20745_v58 = vpop.eup %20744  ;;  %v4501_v8 = vpop.f32.mrb[33].mxu0 }
 0xa90   :  { %v4572_v59 = vpop.f32.mrb[33].mxu1  ;;  %20748 = vrcp.f32 %v4416_v3  ;;  %v4417_v51 = vadd.f32 1.0, %v20745_v58  ;;  %v4579_v49 = vcombine.low %v4499_v9, %v4501_v8  ;;  %v20747_v5 = vpop.eup %20746 }
 0xa91   :  { %v4580_v17 = vcombine.low %v4570_v62, %v4572_v59 }
 0xa92   :  { %20750 = vrcp.f32 %v4417_v51  ;;  %v4587_v61 = vrot.slane %v4579_v49, %v22020_v4 }
 0xa93   :  { %v4594_v56 = vrot.slane %v4580_v17, %v22020_v4  ;;  %v20326_v17 = vadd.f32 %v4398_v45, %v22113_v55 }
 0xa95   :  { %v4595_v31 = vcombine.low %v4587_v61, %v4594_v56  ;;  %v17703_v8 = vmul.f32 -1.442695, %v20326_v17 }
 0xa97   :  { %v4602_v22 = vrot.slane %v4595_v31, %v22020_v4 }
 0xa99   :  { %v4604_v18 = vadd.f32 %v4602_v22, %v4432_v30 }
 0xa9a   :  { %v20749_v63 = vpop.eup %20748 }
 0xa9b   :  { %v17706_v16 = vmul.f32 -1.442695, %v4604_v18  ;;  %v4427_v38 = vmul.f32 %v20749_v63, %v20747_v5  ;;  %v4612_v49 = vrot.slane %v4604_v18, 3  ;;  %v24512_v5 = vld [vmem:[#allocation27_spill] sm:$0xff] }
 0xa9c   :  { %v20751_v1 = vpop.eup %20750 }
 0xa9d   :  { %20752 = vpow2.f32 %v17706_v16  ;;  %v4426_v3 = vmul.f32 %v20751_v1, %v22515_v57 }
 0xa9f   :  { %v22582_v9 = vadd.f32 %v4427_v38, %v4426_v3  ;;  %v24513_v38 = vld [vmem:[#allocation28_spill] sm:$0xff] }
 0xaa7   :  { %v20753_v62 = vpop.eup %20752 }
 0xaa8   :  { %v4608_v58 = vadd.f32 1.0, %v20753_v62 }
 0xaaa   :  { %20754 = vrcp.f32 %v4608_v58  ;;  %v24514_v58 = vld [vmem:[#allocation29_spill] sm:$0xff] }
 0xaab   :  { %20756 = vtanh.f32 %v4612_v49 }
 0xaac   :  { %20758 = vpow2.f32 %v17703_v8 }
 0xab4   :  { %v20755_v59 = vpop.eup %20754 }
 0xab5   :  { %v4616_v51 = vrot.slane %v20755_v59, 1  ;;  %v20757_v61 = vpop.eup %20756  ;;  %v4622_v45 = vrot.slane %v20755_v59, 2 }
 0xab6   :  { %v4619_v56 = vmul.f32 %v20757_v61, %v20755_v59  ;;  %v20759_v57 = vpop.eup %20758  ;;  %v24515_v59 = vld [vmem:[#allocation30_spill] sm:$0xff] }
 0xab7   :  { %v4618_v63 = vmul.f32 %v4616_v51, %v22519_v54  ;;  %v4418_v1 = vadd.f32 1.0, %v20759_v57 }
 0xab9   :  { %v22586_v16 = vadd.f32 %v4619_v56, %v4618_v63  ;;  %v24516_v56 = vld [vmem:[#allocation31_spill] sm:$0xff] }
 0xabb   :  { %20760 = vtanh.f32 %v22586_v16 }
 0xabc   :  { %20762 = vtanh.f32 %v22582_v9 }
 0xabd   :  { %20764 = vrcp.f32 %v4418_v1 }
 0xac5   :  { %v20761_v31 = vpop.eup %20760 }
 0xac6   :  { %v4624_v22 = vmul.f32 %v20761_v31, %v4622_v45  ;;  %v20763_v54 = vpop.eup %20762 }
 0xac7   :  { %v20765_v30 = vpop.eup %20764 }
 0xac8   :  { %17707 = vmatmul.mubr.msk.f32.vlgmr.msra.gmra.mrb[34].mxu0 %vm264_vm0, %v4624_v22  ;;  %17708 = vmatmul.mubr.msk.f32.vlgmr.msra.gmra.mrb[34].mxu1 %vm264_vm0, %v4624_v22  ;;  %v4430_v18 = vmul.f32 %v20765_v30, %v20763_v54 }
 0xac9   :  { %18683 = vmatpush1.bf16.msra.mxu0 %v22028_v23  ;;  %18691 = vmatpush1.bf16.msra.mxu1 %v22030_v27 }
 0xaca   :  { %18685 = vmatprep.subr.bf16.mxu0 %v22032_v35  ;;  %18693 = vmatprep.subr.bf16.mxu1 %v22034_v36 }
 0xacb   :  { %4837 = vmatprep.mubr.f32.mxu0 %v24477_v12  ;;  %4908 = vmatprep.mubr.f32.mxu1 %v24477_v12 }
 0xacd   :  { %18687 = vmatpush1.bf16.msra.mxu0 %v22040_v39  ;;  %18695 = vmatpush1.bf16.msra.mxu1 %v22042_v47 }
 0xace   :  { %18697 = vmatprep.subr.bf16.mxu0 %v21879_v6  ;;  %18713 = vmatprep.subr.bf16.mxu1 %v21881_v10 }
 0xad0   :  { %17709 = vmatmul.mubr.msk.f32.vlgmr.msra.gmra.mrb[34].mxu0 %vm674_vm1, %v4430_v18  ;;  %17710 = vmatmul.mubr.msk.f32.vlgmr.msra.gmra.mrb[34].mxu1 %vm674_vm1, %v4430_v18 }
 0xad1   :  { %18699 = vmatpush1.bf16.msra.mxu0 %v21883_v11  ;;  %18715 = vmatpush1.bf16.msra.mxu1 %v21886_v15 }
 0xad2   :  { %18701 = vmatprep.subr.bf16.mxu0 %v21890_v19  ;;  %18717 = vmatprep.subr.bf16.mxu1 %v21892_v20 }
 0xad3   :  { %5009 = vmatprep.mubr.f32.mxu0 %v24477_v12  ;;  %5080 = vmatprep.mubr.f32.mxu1 %v24477_v12 }
 0xad5   :  { %18703 = vmatpush1.bf16.msra.mxu0 %v21895_v24  ;;  %18719 = vmatpush1.bf16.msra.mxu1 %v21899_v28 }
 0xad6   :  { %18705 = vmatprep.subr.bf16.mxu0 %v21901_v29  ;;  %18721 = vmatprep.subr.bf16.mxu1 %v21903_v33 }
 0xad9   :  { %18707 = vmatpush1.bf16.msra.mxu0 %v21906_v37  ;;  %18723 = vmatpush1.bf16.msra.mxu1 %v21910_v41 }
 0xada   :  { %18709 = vmatprep.subr.bf16.mxu0 %v21912_v42  ;;  %18725 = vmatprep.subr.bf16.mxu1 %v21915_v46 }
 0xadd   :  { %18711 = vmatpush1.bf16.msra.mxu0 %v21921_v50  ;;  %18727 = vmatpush1.bf16.msra.mxu1 %v21928_v52 }
 0xade   :  { %18729 = vmatprep.subr.bf16.mxu0 %v21965_v26  ;;  %18745 = vmatprep.subr.bf16.mxu1 %v21968_v40 }
 0xae0   :  { %17714 = vmatmul.mubr.msk.f32.vlgmr.msra.gmra.mrb[36].mxu0 %vm264_vm0, %v4624_v22  ;;  %17715 = vmatmul.mubr.msk.f32.vlgmr.msra.gmra.mrb[36].mxu1 %vm264_vm0, %v4624_v22 }
 0xae1   :  { %18731 = vmatpush1.bf16.msra.mxu0 %v21970_v43  ;;  %18747 = vmatpush1.bf16.msra.mxu1 %v21972_v44 }
 0xae2   :  { %18733 = vmatprep.subr.bf16.mxu0 %v21976_v60  ;;  %18749 = vmatprep.subr.bf16.mxu1 %v21979_v0 }
 0xae3   :  { %5204 = vmatprep.mubr.f32.mxu0 %v24477_v12  ;;  %5275 = vmatprep.mubr.f32.mxu1 %v24477_v12 }
 0xae5   :  { %18735 = vmatpush1.bf16.msra.mxu0 %v21981_v2  ;;  %18751 = vmatpush1.bf16.msra.mxu1 %v21984_v7 }
 0xae6   :  { %18737 = vmatprep.subr.bf16.mxu0 %v21987_v13  ;;  %18753 = vmatprep.subr.bf16.mxu1 %v21989_v14 }
 0xae9   :  { %18739 = vmatpush1.bf16.msra.mxu0 %v21992_v21  ;;  %18755 = vmatpush1.bf16.msra.mxu1 %v21996_v25 }
 0xaea   :  { %18741 = vmatprep.subr.bf16.mxu0 %v21999_v32  ;;  %18757 = vmatprep.subr.bf16.mxu1 %v22001_v34 }
 0xaed   :  { %18743 = vmatpush1.bf16.msra.mxu0 %v22004_v48  ;;  %18759 = vmatpush1.bf16.msra.mxu1 %v22008_v53 }
 0xaee   :  { %18761 = vmatprep.subr.bf16.mxu0 %v24512_v5  ;;  %18769 = vmatprep.subr.bf16.mxu1 %v24513_v38 }
 0xba3   :  { %v4839_v3 = vpop.f32.mrb[34].mxu0  ;;  %v4910_v62 = vpop.f32.mrb[34].mxu1 }
 0xba4   :  { %v20328_v49 = vadd.f32 %v4839_v3, %v24514_v58  ;;  %v4841_v17 = vpop.f32.mrb[35].mxu0  ;;  %v4912_v8 = vpop.f32.mrb[35].mxu1 }
 0xba5   :  { %v20329_v51 = vadd.f32 %v4841_v17, %v24515_v59  ;;  %v20331_v57 = vadd.f32 %v4912_v8, %v24516_v56 }
 0xba6   :  { %v17711_v61 = vmul.f32 -1.442695, %v20328_v49 }
 0xba7   :  { %v17712_v63 = vmul.f32 -1.442695, %v20329_v51 }
 0xba8   :  { %20766 = vpow2.f32 %v17711_v61  ;;  %v4944_v61 = vld [vmem:[#allocation2 + $0x21] ss:$8 sm:$0xf] }
 0xba9   :  { %20768 = vpow2.f32 %v17712_v63 }
 0xbaa   :  { %20770 = vtanh.f32 %v20331_v57 }
 0xbb2   :  { %v20767_v1 = vpop.eup %20766 }
 0xbb3   :  { %v4928_v45 = vadd.f32 1.0, %v20767_v1  ;;  %v5011_v31 = vpop.f32.mrb[36].mxu0  ;;  %v5082_v22 = vpop.f32.mrb[36].mxu1 }
 0xbb4   :  { %v20769_v54 = vpop.eup %20768  ;;  %v5013_v30 = vpop.f32.mrb[37].mxu0 }
 0xbb5   :  { %v5084_v18 = vpop.f32.mrb[37].mxu1  ;;  %20772 = vrcp.f32 %v4928_v45  ;;  %v4929_v3 = vadd.f32 1.0, %v20769_v54  ;;  %v5091_v58 = vcombine.low %v5011_v31, %v5013_v30  ;;  %v20771_v1 = vpop.eup %20770 }
 0xbb6   :  { %v5092_v38 = vcombine.low %v5082_v22, %v5084_v18 }
 0xbb7   :  { %20774 = vrcp.f32 %v4929_v3  ;;  %v5099_v49 = vrot.slane %v5091_v58, %v22020_v4 }
 0xbb8   :  { %v5106_v17 = vrot.slane %v5092_v38, %v22020_v4  ;;  %v20330_v38 = vadd.f32 %v4910_v62, %v22113_v55 }
 0xbba   :  { %v5107_v51 = vcombine.low %v5099_v49, %v5106_v17  ;;  %v17713_v30 = vmul.f32 -1.442695, %v20330_v38 }
 0xbbc   :  { %v5114_v8 = vrot.slane %v5107_v51, %v22020_v4 }
 0xbbe   :  { %v5116_v63 = vadd.f32 %v5114_v8, %v4944_v61 }
 0xbbf   :  { %v20773_v56 = vpop.eup %20772 }
 0xbc0   :  { %v17716_v59 = vmul.f32 -1.442695, %v5116_v63  ;;  %v4939_v57 = vmul.f32 %v20773_v56, %v20771_v1  ;;  %v5124_v58 = vrot.slane %v5116_v63, 3  ;;  %v24517_v1 = vld [vmem:[#allocation27_spill] sm:$0xff] }
 0xbc1   :  { %v20775_v5 = vpop.eup %20774 }
 0xbc2   :  { %20776 = vpow2.f32 %v17716_v59  ;;  %v4938_v45 = vmul.f32 %v20775_v5, %v22582_v9 }
 0xbc4   :  { %v22649_v31 = vadd.f32 %v4939_v57, %v4938_v45  ;;  %v24518_v57 = vld [vmem:[#allocation28_spill] sm:$0xff] }
 0xbcc   :  { %v20777_v22 = vpop.eup %20776 }
 0xbcd   :  { %v5120_v54 = vadd.f32 1.0, %v20777_v22 }
 0xbcf   :  { %20778 = vrcp.f32 %v5120_v54  ;;  %v24519_v54 = vld [vmem:[#allocation29_spill] sm:$0xff] }
 0xbd0   :  { %20780 = vtanh.f32 %v5124_v58 }
 0xbd1   :  { %20782 = vpow2.f32 %v17713_v30 }
 0xbd9   :  { %v20779_v18 = vpop.eup %20778 }
 0xbda   :  { %v5128_v3 = vrot.slane %v20779_v18, 1  ;;  %v20781_v49 = vpop.eup %20780  ;;  %v5134_v62 = vrot.slane %v20779_v18, 2 }
 0xbdb   :  { %v5131_v17 = vmul.f32 %v20781_v49, %v20779_v18  ;;  %v20783_v9 = vpop.eup %20782  ;;  %v24520_v18 = vld [vmem:[#allocation30_spill] sm:$0xff] }
 0xbdc   :  { %v5130_v56 = vmul.f32 %v5128_v3, %v22586_v16  ;;  %v4930_v5 = vadd.f32 1.0, %v20783_v9 }
 0xbde   :  { %v22653_v59 = vadd.f32 %v5131_v17, %v5130_v56  ;;  %v24521_v17 = vld [vmem:[#allocation31_spill] sm:$0xff] }
 0xbe0   :  { %20784 = vtanh.f32 %v22653_v59 }
 0xbe1   :  { %20786 = vtanh.f32 %v22649_v31 }
 0xbe2   :  { %20788 = vrcp.f32 %v4930_v5 }
 0xbea   :  { %v20785_v51 = vpop.eup %20784 }
 0xbeb   :  { %v5136_v8 = vmul.f32 %v20785_v51, %v5134_v62  ;;  %v20787_v16 = vpop.eup %20786 }
 0xbec   :  { %v20789_v61 = vpop.eup %20788 }
 0xbed   :  { %17717 = vmatmul.mubr.msk.f32.vlgmr.msra.gmra.mrb[38].mxu0 %vm264_vm0, %v5136_v8  ;;  %17718 = vmatmul.mubr.msk.f32.vlgmr.msra.gmra.mrb[38].mxu1 %vm264_vm0, %v5136_v8  ;;  %v4942_v63 = vmul.f32 %v20789_v61, %v20787_v16 }
 0xbee   :  { %18763 = vmatpush1.bf16.msra.mxu0 %v22028_v23  ;;  %18771 = vmatpush1.bf16.msra.mxu1 %v22030_v27 }
 0xbef   :  { %18765 = vmatprep.subr.bf16.mxu0 %v22032_v35  ;;  %18773 = vmatprep.subr.bf16.mxu1 %v22034_v36 }
 0xbf0   :  { %5349 = vmatprep.mubr.f32.mxu0 %v24477_v12  ;;  %5420 = vmatprep.mubr.f32.mxu1 %v24477_v12 }
 0xbf2   :  { %18767 = vmatpush1.bf16.msra.mxu0 %v22040_v39  ;;  %18775 = vmatpush1.bf16.msra.mxu1 %v22042_v47 }
 0xbf3   :  { %18777 = vmatprep.subr.bf16.mxu0 %v21879_v6  ;;  %18793 = vmatprep.subr.bf16.mxu1 %v21881_v10 }
 0xbf5   :  { %17719 = vmatmul.mubr.msk.f32.vlgmr.msra.gmra.mrb[38].mxu0 %vm674_vm1, %v4942_v63  ;;  %17720 = vmatmul.mubr.msk.f32.vlgmr.msra.gmra.mrb[38].mxu1 %vm674_vm1, %v4942_v63 }
 0xbf6   :  { %18779 = vmatpush1.bf16.msra.mxu0 %v21883_v11  ;;  %18795 = vmatpush1.bf16.msra.mxu1 %v21886_v15 }
 0xbf7   :  { %18781 = vmatprep.subr.bf16.mxu0 %v21890_v19  ;;  %18797 = vmatprep.subr.bf16.mxu1 %v21892_v20 }
 0xbf8   :  { %5521 = vmatprep.mubr.f32.mxu0 %v24477_v12  ;;  %5592 = vmatprep.mubr.f32.mxu1 %v24477_v12 }
 0xbfa   :  { %18783 = vmatpush1.bf16.msra.mxu0 %v21895_v24  ;;  %18799 = vmatpush1.bf16.msra.mxu1 %v21899_v28 }
 0xbfb   :  { %18785 = vmatprep.subr.bf16.mxu0 %v21901_v29  ;;  %18801 = vmatprep.subr.bf16.mxu1 %v21903_v33 }
 0xbfe   :  { %18787 = vmatpush1.bf16.msra.mxu0 %v21906_v37  ;;  %18803 = vmatpush1.bf16.msra.mxu1 %v21910_v41 }
 0xbff   :  { %18789 = vmatprep.subr.bf16.mxu0 %v21912_v42  ;;  %18805 = vmatprep.subr.bf16.mxu1 %v21915_v46 }
 0xc02   :  { %18791 = vmatpush1.bf16.msra.mxu0 %v21921_v50  ;;  %18807 = vmatpush1.bf16.msra.mxu1 %v21928_v52 }
 0xc03   :  { %18809 = vmatprep.subr.bf16.mxu0 %v21965_v26  ;;  %18825 = vmatprep.subr.bf16.mxu1 %v21968_v40 }
 0xc05   :  { %17724 = vmatmul.mubr.msk.f32.vlgmr.msra.gmra.mrb[40].mxu0 %vm264_vm0, %v5136_v8  ;;  %17725 = vmatmul.mubr.msk.f32.vlgmr.msra.gmra.mrb[40].mxu1 %vm264_vm0, %v5136_v8 }
 0xc06   :  { %18811 = vmatpush1.bf16.msra.mxu0 %v21970_v43  ;;  %18827 = vmatpush1.bf16.msra.mxu1 %v21972_v44 }
 0xc07   :  { %18813 = vmatprep.subr.bf16.mxu0 %v21976_v60  ;;  %18829 = vmatprep.subr.bf16.mxu1 %v21979_v0 }
 0xc08   :  { %5716 = vmatprep.mubr.f32.mxu0 %v24477_v12  ;;  %5787 = vmatprep.mubr.f32.mxu1 %v24477_v12 }
 0xc0a   :  { %18815 = vmatpush1.bf16.msra.mxu0 %v21981_v2  ;;  %18831 = vmatpush1.bf16.msra.mxu1 %v21984_v7 }
 0xc0b   :  { %18817 = vmatprep.subr.bf16.mxu0 %v21987_v13  ;;  %18833 = vmatprep.subr.bf16.mxu1 %v21989_v14 }
 0xc0e   :  { %18819 = vmatpush1.bf16.msra.mxu0 %v21992_v21  ;;  %18835 = vmatpush1.bf16.msra.mxu1 %v21996_v25 }
 0xc0f   :  { %18821 = vmatprep.subr.bf16.mxu0 %v21999_v32  ;;  %18837 = vmatprep.subr.bf16.mxu1 %v22001_v34 }
 0xc12   :  { %18823 = vmatpush1.bf16.msra.mxu0 %v22004_v48  ;;  %18839 = vmatpush1.bf16.msra.mxu1 %v22008_v53 }
 0xc13   :  { %18841 = vmatprep.subr.bf16.mxu0 %v24517_v1  ;;  %18849 = vmatprep.subr.bf16.mxu1 %v24518_v57 }
 0xcc8   :  { %v5351_v45 = vpop.f32.mrb[38].mxu0  ;;  %v5422_v22 = vpop.f32.mrb[38].mxu1 }
 0xcc9   :  { %v20332_v58 = vadd.f32 %v5351_v45, %v24519_v54  ;;  %v5353_v38 = vpop.f32.mrb[39].mxu0  ;;  %v5424_v30 = vpop.f32.mrb[39].mxu1 }
 0xcca   :  { %v20333_v3 = vadd.f32 %v5353_v38, %v24520_v18  ;;  %v20335_v9 = vadd.f32 %v5424_v30, %v24521_v17 }
 0xccb   :  { %v17721_v49 = vmul.f32 -1.442695, %v20332_v58 }
 0xccc   :  { %v17722_v56 = vmul.f32 -1.442695, %v20333_v3 }
 0xccd   :  { %20790 = vpow2.f32 %v17721_v49  ;;  %v5456_v49 = vld [vmem:[#allocation2 + $0x22] ss:$8 sm:$0xf] }
 0xcce   :  { %20792 = vpow2.f32 %v17722_v56 }
 0xccf   :  { %20794 = vtanh.f32 %v20335_v9 }
 0xcd7   :  { %v20791_v5 = vpop.eup %20790 }
 0xcd8   :  { %v5440_v62 = vadd.f32 1.0, %v20791_v5  ;;  %v5523_v51 = vpop.f32.mrb[40].mxu0  ;;  %v5594_v8 = vpop.f32.mrb[40].mxu1 }
 0xcd9   :  { %v20793_v16 = vpop.eup %20792  ;;  %v5525_v61 = vpop.f32.mrb[41].mxu0 }
 0xcda   :  { %v5596_v63 = vpop.f32.mrb[41].mxu1  ;;  %20796 = vrcp.f32 %v5440_v62  ;;  %v5441_v45 = vadd.f32 1.0, %v20793_v16  ;;  %v5603_v54 = vcombine.low %v5523_v51, %v5525_v61  ;;  %v20795_v5 = vpop.eup %20794 }
 0xcdb   :  { %v5604_v57 = vcombine.low %v5594_v8, %v5596_v63 }
 0xcdc   :  { %20798 = vrcp.f32 %v5441_v45  ;;  %v5611_v58 = vrot.slane %v5603_v54, %v22020_v4 }
 0xcdd   :  { %v5618_v38 = vrot.slane %v5604_v57, %v22020_v4  ;;  %v20334_v57 = vadd.f32 %v5422_v22, %v22113_v55 }
 0xcdf   :  { %v5619_v3 = vcombine.low %v5611_v58, %v5618_v38  ;;  %v17723_v61 = vmul.f32 -1.442695, %v20334_v57 }
 0xce1   :  { %v5626_v30 = vrot.slane %v5619_v3, %v22020_v4 }
 0xce3   :  { %v5628_v56 = vadd.f32 %v5626_v30, %v5456_v49 }
 0xce4   :  { %v20797_v17 = vpop.eup %20796 }
 0xce5   :  { %v17726_v18 = vmul.f32 -1.442695, %v5628_v56  ;;  %v5451_v9 = vmul.f32 %v20797_v17, %v20795_v5  ;;  %v5636_v54 = vrot.slane %v5628_v56, 3  ;;  %v24522_v5 = vld [vmem:[#allocation27_spill] sm:$0xff] }
 0xce6   :  { %v20799_v1 = vpop.eup %20798 }
 0xce7   :  { %20800 = vpow2.f32 %v17726_v18  ;;  %v5450_v62 = vmul.f32 %v20799_v1, %v22649_v31 }
 0xce9   :  { %v22716_v51 = vadd.f32 %v5451_v9, %v5450_v62  ;;  %v24523_v9 = vld [vmem:[#allocation28_spill] sm:$0xff] }
 0xcf1   :  { %v20801_v8 = vpop.eup %20800 }
 0xcf2   :  { %v5632_v16 = vadd.f32 1.0, %v20801_v8 }
 0xcf4   :  { %20802 = vrcp.f32 %v5632_v16  ;;  %v24524_v16 = vld [vmem:[#allocation29_spill] sm:$0xff] }
 0xcf5   :  { %20804 = vtanh.f32 %v5636_v54 }
 0xcf6   :  { %20806 = vpow2.f32 %v17723_v61 }
 0xcfe   :  { %v20803_v63 = vpop.eup %20802 }
 0xcff   :  { %v5640_v45 = vrot.slane %v20803_v63, 1  ;;  %v20805_v58 = vpop.eup %20804  ;;  %v5646_v22 = vrot.slane %v20803_v63, 2 }
 0xd00   :  { %v5643_v38 = vmul.f32 %v20805_v58, %v20803_v63  ;;  %v20807_v31 = vpop.eup %20806  ;;  %v24525_v63 = vld [vmem:[#allocation30_spill] sm:$0xff] }
 0xd01   :  { %v5642_v17 = vmul.f32 %v5640_v45, %v22653_v59  ;;  %v5442_v1 = vadd.f32 1.0, %v20807_v31 }
 0xd03   :  { %v22720_v18 = vadd.f32 %v5643_v38, %v5642_v17  ;;  %v24526_v38 = vld [vmem:[#allocation31_spill] sm:$0xff] }
 0xd05   :  { %20808 = vtanh.f32 %v22720_v18 }
 0xd06   :  { %20810 = vtanh.f32 %v22716_v51 }
 0xd07   :  { %20812 = vrcp.f32 %v5442_v1 }
 0xd0f   :  { %v20809_v3 = vpop.eup %20808 }
 0xd10   :  { %v5648_v30 = vmul.f32 %v20809_v3, %v5646_v22  ;;  %v20811_v59 = vpop.eup %20810 }
 0xd11   :  { %v20813_v49 = vpop.eup %20812 }
 0xd12   :  { %17727 = vmatmul.mubr.msk.f32.vlgmr.msra.gmra.mrb[42].mxu0 %vm264_vm0, %v5648_v30  ;;  %17728 = vmatmul.mubr.msk.f32.vlgmr.msra.gmra.mrb[42].mxu1 %vm264_vm0, %v5648_v30  ;;  %v5454_v56 = vmul.f32 %v20813_v49, %v20811_v59 }
 0xd13   :  { %18843 = vmatpush1.bf16.msra.mxu0 %v22028_v23  ;;  %18851 = vmatpush1.bf16.msra.mxu1 %v22030_v27 }
 0xd14   :  { %18845 = vmatprep.subr.bf16.mxu0 %v22032_v35  ;;  %18853 = vmatprep.subr.bf16.mxu1 %v22034_v36 }
 0xd15   :  { %5861 = vmatprep.mubr.f32.mxu0 %v24477_v12  ;;  %5932 = vmatprep.mubr.f32.mxu1 %v24477_v12 }
 0xd17   :  { %18847 = vmatpush1.bf16.msra.mxu0 %v22040_v39  ;;  %18855 = vmatpush1.bf16.msra.mxu1 %v22042_v47 }
 0xd18   :  { %18857 = vmatprep.subr.bf16.mxu0 %v21879_v6  ;;  %18873 = vmatprep.subr.bf16.mxu1 %v21881_v10 }
 0xd1a   :  { %17729 = vmatmul.mubr.msk.f32.vlgmr.msra.gmra.mrb[42].mxu0 %vm674_vm1, %v5454_v56  ;;  %17730 = vmatmul.mubr.msk.f32.vlgmr.msra.gmra.mrb[42].mxu1 %vm674_vm1, %v5454_v56 }
 0xd1b   :  { %18859 = vmatpush1.bf16.msra.mxu0 %v21883_v11  ;;  %18875 = vmatpush1.bf16.msra.mxu1 %v21886_v15 }
 0xd1c   :  { %18861 = vmatprep.subr.bf16.mxu0 %v21890_v19  ;;  %18877 = vmatprep.subr.bf16.mxu1 %v21892_v20 }
 0xd1d   :  { %6033 = vmatprep.mubr.f32.mxu0 %v24477_v12  ;;  %6104 = vmatprep.mubr.f32.mxu1 %v24477_v12 }
 0xd1f   :  { %18863 = vmatpush1.bf16.msra.mxu0 %v21895_v24  ;;  %18879 = vmatpush1.bf16.msra.mxu1 %v21899_v28 }
 0xd20   :  { %18865 = vmatprep.subr.bf16.mxu0 %v21901_v29  ;;  %18881 = vmatprep.subr.bf16.mxu1 %v21903_v33 }
 0xd23   :  { %18867 = vmatpush1.bf16.msra.mxu0 %v21906_v37  ;;  %18883 = vmatpush1.bf16.msra.mxu1 %v21910_v41 }
 0xd24   :  { %18869 = vmatprep.subr.bf16.mxu0 %v21912_v42  ;;  %18885 = vmatprep.subr.bf16.mxu1 %v21915_v46 }
 0xd27   :  { %18871 = vmatpush1.bf16.msra.mxu0 %v21921_v50  ;;  %18887 = vmatpush1.bf16.msra.mxu1 %v21928_v52 }
 0xd28   :  { %18889 = vmatprep.subr.bf16.mxu0 %v21965_v26  ;;  %18905 = vmatprep.subr.bf16.mxu1 %v21968_v40 }
 0xd2a   :  { %17734 = vmatmul.mubr.msk.f32.vlgmr.msra.gmra.mrb[44].mxu0 %vm264_vm0, %v5648_v30  ;;  %17735 = vmatmul.mubr.msk.f32.vlgmr.msra.gmra.mrb[44].mxu1 %vm264_vm0, %v5648_v30 }
 0xd2b   :  { %18891 = vmatpush1.bf16.msra.mxu0 %v21970_v43  ;;  %18907 = vmatpush1.bf16.msra.mxu1 %v21972_v44 }
 0xd2c   :  { %18893 = vmatprep.subr.bf16.mxu0 %v21976_v60  ;;  %18909 = vmatprep.subr.bf16.mxu1 %v21979_v0 }
 0xd2d   :  { %6228 = vmatprep.mubr.f32.mxu0 %v24477_v12  ;;  %6299 = vmatprep.mubr.f32.mxu1 %v24477_v12 }
 0xd2f   :  { %18895 = vmatpush1.bf16.msra.mxu0 %v21981_v2  ;;  %18911 = vmatpush1.bf16.msra.mxu1 %v21984_v7 }
 0xd30   :  { %18897 = vmatprep.subr.bf16.mxu0 %v21987_v13  ;;  %18913 = vmatprep.subr.bf16.mxu1 %v21989_v14 }
 0xd33   :  { %18899 = vmatpush1.bf16.msra.mxu0 %v21992_v21  ;;  %18915 = vmatpush1.bf16.msra.mxu1 %v21996_v25 }
 0xd34   :  { %18901 = vmatprep.subr.bf16.mxu0 %v21999_v32  ;;  %18917 = vmatprep.subr.bf16.mxu1 %v22001_v34 }
 0xd37   :  { %18903 = vmatpush1.bf16.msra.mxu0 %v22004_v48  ;;  %18919 = vmatpush1.bf16.msra.mxu1 %v22008_v53 }
 0xd38   :  { %18921 = vmatprep.subr.bf16.mxu0 %v24522_v5  ;;  %18929 = vmatprep.subr.bf16.mxu1 %v24523_v9 }
 0xded   :  { %v5863_v62 = vpop.f32.mrb[42].mxu0  ;;  %v5934_v8 = vpop.f32.mrb[42].mxu1 }
 0xdee   :  { %v20336_v54 = vadd.f32 %v5863_v62, %v24524_v16  ;;  %v5865_v57 = vpop.f32.mrb[43].mxu0  ;;  %v5936_v61 = vpop.f32.mrb[43].mxu1 }
 0xdef   :  { %v20337_v45 = vadd.f32 %v5865_v57, %v24525_v63  ;;  %v20339_v31 = vadd.f32 %v5936_v61, %v24526_v38 }
 0xdf0   :  { %v17731_v58 = vmul.f32 -1.442695, %v20336_v54 }
 0xdf1   :  { %v17732_v17 = vmul.f32 -1.442695, %v20337_v45 }
 0xdf2   :  { %20814 = vpow2.f32 %v17731_v58  ;;  %v5968_v58 = vld [vmem:[#allocation2 + $0x23] ss:$8 sm:$0xf] }
 0xdf3   :  { %20816 = vpow2.f32 %v17732_v17 }
 0xdf4   :  { %20818 = vtanh.f32 %v20339_v31 }
 0xdfc   :  { %v20815_v1 = vpop.eup %20814 }
 0xdfd   :  { %v5952_v22 = vadd.f32 1.0, %v20815_v1  ;;  %v6035_v3 = vpop.f32.mrb[44].mxu0  ;;  %v6106_v30 = vpop.f32.mrb[44].mxu1 }
 0xdfe   :  { %v20817_v59 = vpop.eup %20816  ;;  %v6037_v49 = vpop.f32.mrb[45].mxu0 }
 0xdff   :  { %v6108_v56 = vpop.f32.mrb[45].mxu1  ;;  %20820 = vrcp.f32 %v5952_v22  ;;  %v5953_v62 = vadd.f32 1.0, %v20817_v59  ;;  %v6115_v16 = vcombine.low %v6035_v3, %v6037_v49  ;;  %v20819_v1 = vpop.eup %20818 }
 0xe00   :  { %v6116_v9 = vcombine.low %v6106_v30, %v6108_v56 }
 0xe01   :  { %20822 = vrcp.f32 %v5953_v62  ;;  %v6123_v54 = vrot.slane %v6115_v16, %v22020_v4 }
 0xe02   :  { %v6130_v57 = vrot.slane %v6116_v9, %v22020_v4  ;;  %v20338_v9 = vadd.f32 %v5934_v8, %v22113_v55 }
 0xe04   :  { %v6131_v45 = vcombine.low %v6123_v54, %v6130_v57  ;;  %v17733_v49 = vmul.f32 -1.442695, %v20338_v9 }
 0xe06   :  { %v6138_v61 = vrot.slane %v6131_v45, %v22020_v4 }
 0xe08   :  { %v6140_v17 = vadd.f32 %v6138_v61, %v5968_v58 }
 0xe09   :  { %v20821_v38 = vpop.eup %20820 }
 0xe0a   :  { %v17736_v63 = vmul.f32 -1.442695, %v6140_v17  ;;  %v5963_v31 = vmul.f32 %v20821_v38, %v20819_v1  ;;  %v6148_v16 = vrot.slane %v6140_v17, 3  ;;  %v24527_v1 = vld [vmem:[#allocation27_spill] sm:$0xff] }
 0xe0b   :  { %v20823_v5 = vpop.eup %20822 }
 0xe0c   :  { %20824 = vpow2.f32 %v17736_v63  ;;  %v5962_v22 = vmul.f32 %v20823_v5, %v22716_v51 }
 0xe0e   :  { %v22783_v3 = vadd.f32 %v5963_v31, %v5962_v22  ;;  %v24528_v31 = vld [vmem:[#allocation28_spill] sm:$0xff] }
 0xe16   :  { %v20825_v30 = vpop.eup %20824 }
 0xe17   :  { %v6144_v59 = vadd.f32 1.0, %v20825_v30 }
 0xe19   :  { %20826 = vrcp.f32 %v6144_v59  ;;  %v24529_v59 = vld [vmem:[#allocation29_spill] sm:$0xff] }
 0xe1a   :  { %20828 = vtanh.f32 %v6148_v16 }
 0xe1b   :  { %20830 = vpow2.f32 %v17733_v49 }
 0xe23   :  { %v20827_v56 = vpop.eup %20826 }
 0xe24   :  { %v6152_v62 = vrot.slane %v20827_v56, 1  ;;  %v20829_v54 = vpop.eup %20828  ;;  %v6158_v8 = vrot.slane %v20827_v56, 2 }
 0xe25   :  { %v6155_v57 = vmul.f32 %v20829_v54, %v20827_v56  ;;  %v20831_v51 = vpop.eup %20830  ;;  %v24530_v56 = vld [vmem:[#allocation30_spill] sm:$0xff] }
 0xe26   :  { %v6154_v38 = vmul.f32 %v6152_v62, %v22720_v18  ;;  %v5954_v5 = vadd.f32 1.0, %v20831_v51 }
 0xe28   :  { %v22787_v63 = vadd.f32 %v6155_v57, %v6154_v38  ;;  %v24531_v57 = vld [vmem:[#allocation31_spill] sm:$0xff] }
 0xe2a   :  { %20832 = vtanh.f32 %v22787_v63 }
 0xe2b   :  { %20834 = vtanh.f32 %v22783_v3 }
 0xe2c   :  { %20836 = vrcp.f32 %v5954_v5 }
 0xe34   :  { %v20833_v45 = vpop.eup %20832 }
 0xe35   :  { %v6160_v61 = vmul.f32 %v20833_v45, %v6158_v8  ;;  %v20835_v18 = vpop.eup %20834 }
 0xe36   :  { %v20837_v58 = vpop.eup %20836 }
 0xe37   :  { %17737 = vmatmul.mubr.msk.f32.vlgmr.msra.gmra.mrb[46].mxu0 %vm264_vm0, %v6160_v61  ;;  %17738 = vmatmul.mubr.msk.f32.vlgmr.msra.gmra.mrb[46].mxu1 %vm264_vm0, %v6160_v61  ;;  %v5966_v17 = vmul.f32 %v20837_v58, %v20835_v18 }
 0xe38   :  { %18923 = vmatpush1.bf16.msra.mxu0 %v22028_v23  ;;  %18931 = vmatpush1.bf16.msra.mxu1 %v22030_v27 }
 0xe39   :  { %18925 = vmatprep.subr.bf16.mxu0 %v22032_v35  ;;  %18933 = vmatprep.subr.bf16.mxu1 %v22034_v36 }
 0xe3a   :  { %6373 = vmatprep.mubr.f32.mxu0 %v24477_v12  ;;  %6444 = vmatprep.mubr.f32.mxu1 %v24477_v12 }
 0xe3c   :  { %18927 = vmatpush1.bf16.msra.mxu0 %v22040_v39  ;;  %18935 = vmatpush1.bf16.msra.mxu1 %v22042_v47 }
 0xe3d   :  { %18937 = vmatprep.subr.bf16.mxu0 %v21879_v6  ;;  %18953 = vmatprep.subr.bf16.mxu1 %v21881_v10 }
 0xe3f   :  { %17739 = vmatmul.mubr.msk.f32.vlgmr.msra.gmra.mrb[46].mxu0 %vm674_vm1, %v5966_v17  ;;  %17740 = vmatmul.mubr.msk.f32.vlgmr.msra.gmra.mrb[46].mxu1 %vm674_vm1, %v5966_v17 }
 0xe40   :  { %18939 = vmatpush1.bf16.msra.mxu0 %v21883_v11  ;;  %18955 = vmatpush1.bf16.msra.mxu1 %v21886_v15 }
 0xe41   :  { %18941 = vmatprep.subr.bf16.mxu0 %v21890_v19  ;;  %18957 = vmatprep.subr.bf16.mxu1 %v21892_v20 }
 0xe42   :  { %6545 = vmatprep.mubr.f32.mxu0 %v24477_v12  ;;  %6616 = vmatprep.mubr.f32.mxu1 %v24477_v12 }
 0xe44   :  { %18943 = vmatpush1.bf16.msra.mxu0 %v21895_v24  ;;  %18959 = vmatpush1.bf16.msra.mxu1 %v21899_v28 }
 0xe45   :  { %18945 = vmatprep.subr.bf16.mxu0 %v21901_v29  ;;  %18961 = vmatprep.subr.bf16.mxu1 %v21903_v33 }
 0xe48   :  { %18947 = vmatpush1.bf16.msra.mxu0 %v21906_v37  ;;  %18963 = vmatpush1.bf16.msra.mxu1 %v21910_v41 }
 0xe49   :  { %18949 = vmatprep.subr.bf16.mxu0 %v21912_v42  ;;  %18965 = vmatprep.subr.bf16.mxu1 %v21915_v46 }
 0xe4c   :  { %18951 = vmatpush1.bf16.msra.mxu0 %v21921_v50  ;;  %18967 = vmatpush1.bf16.msra.mxu1 %v21928_v52 }
 0xe4d   :  { %18969 = vmatprep.subr.bf16.mxu0 %v21965_v26  ;;  %18985 = vmatprep.subr.bf16.mxu1 %v21968_v40 }
 0xe4f   :  { %17744 = vmatmul.mubr.msk.f32.vlgmr.msra.gmra.mrb[48].mxu0 %vm264_vm0, %v6160_v61  ;;  %17745 = vmatmul.mubr.msk.f32.vlgmr.msra.gmra.mrb[48].mxu1 %vm264_vm0, %v6160_v61 }
 0xe50   :  { %18971 = vmatpush1.bf16.msra.mxu0 %v21970_v43  ;;  %18987 = vmatpush1.bf16.msra.mxu1 %v21972_v44 }
 0xe51   :  { %18973 = vmatprep.subr.bf16.mxu0 %v21976_v60  ;;  %18989 = vmatprep.subr.bf16.mxu1 %v21979_v0 }
 0xe52   :  { %6740 = vmatprep.mubr.f32.mxu0 %v24477_v12  ;;  %6811 = vmatprep.mubr.f32.mxu1 %v24477_v12 }
 0xe54   :  { %18975 = vmatpush1.bf16.msra.mxu0 %v21981_v2  ;;  %18991 = vmatpush1.bf16.msra.mxu1 %v21984_v7 }
 0xe55   :  { %18977 = vmatprep.subr.bf16.mxu0 %v21987_v13  ;;  %18993 = vmatprep.subr.bf16.mxu1 %v21989_v14 }
 0xe58   :  { %18979 = vmatpush1.bf16.msra.mxu0 %v21992_v21  ;;  %18995 = vmatpush1.bf16.msra.mxu1 %v21996_v25 }
 0xe59   :  { %18981 = vmatprep.subr.bf16.mxu0 %v21999_v32  ;;  %18997 = vmatprep.subr.bf16.mxu1 %v22001_v34 }
 0xe5c   :  { %18983 = vmatpush1.bf16.msra.mxu0 %v22004_v48  ;;  %18999 = vmatpush1.bf16.msra.mxu1 %v22008_v53 }
 0xe5d   :  { %19001 = vmatprep.subr.bf16.mxu0 %v24527_v1  ;;  %19009 = vmatprep.subr.bf16.mxu1 %v24528_v31 }
 0xf12   :  { %v6375_v22 = vpop.f32.mrb[46].mxu0  ;;  %v6446_v30 = vpop.f32.mrb[46].mxu1 }
 0xf13   :  { %v20340_v16 = vadd.f32 %v6375_v22, %v24529_v59  ;;  %v6377_v9 = vpop.f32.mrb[47].mxu0  ;;  %v6448_v49 = vpop.f32.mrb[47].mxu1 }
 0xf14   :  { %v20341_v62 = vadd.f32 %v6377_v9, %v24530_v56  ;;  %v20343_v51 = vadd.f32 %v6448_v49, %v24531_v57 }
 0xf15   :  { %v17741_v54 = vmul.f32 -1.442695, %v20340_v16 }
 0xf16   :  { %v17742_v38 = vmul.f32 -1.442695, %v20341_v62 }
 0xf17   :  { %20838 = vpow2.f32 %v17741_v54  ;;  %v6480_v54 = vld [vmem:[#allocation2 + $0x24] ss:$8 sm:$0xf] }
 0xf18   :  { %20840 = vpow2.f32 %v17742_v38 }
 0xf19   :  { %20842 = vtanh.f32 %v20343_v51 }
 0xf21   :  { %v20839_v5 = vpop.eup %20838 }
 0xf22   :  { %v6464_v8 = vadd.f32 1.0, %v20839_v5  ;;  %v6547_v45 = vpop.f32.mrb[48].mxu0  ;;  %v6618_v61 = vpop.f32.mrb[48].mxu1 }
 0xf23   :  { %v20841_v18 = vpop.eup %20840  ;;  %v6549_v58 = vpop.f32.mrb[49].mxu0 }
 0xf24   :  { %v6620_v17 = vpop.f32.mrb[49].mxu1  ;;  %20844 = vrcp.f32 %v6464_v8  ;;  %v6465_v22 = vadd.f32 1.0, %v20841_v18  ;;  %v6627_v59 = vcombine.low %v6547_v45, %v6549_v58  ;;  %v20843_v5 = vpop.eup %20842 }
 0xf25   :  { %v6628_v31 = vcombine.low %v6618_v61, %v6620_v17 }
 0xf26   :  { %20846 = vrcp.f32 %v6465_v22  ;;  %v6635_v16 = vrot.slane %v6627_v59, %v22020_v4 }
 0xf27   :  { %v6642_v9 = vrot.slane %v6628_v31, %v22020_v4  ;;  %v20342_v31 = vadd.f32 %v6446_v30, %v22113_v55 }
 0xf29   :  { %v6643_v62 = vcombine.low %v6635_v16, %v6642_v9  ;;  %v17743_v58 = vmul.f32 -1.442695, %v20342_v31 }
 0xf2b   :  { %v6650_v49 = vrot.slane %v6643_v62, %v22020_v4 }
 0xf2d   :  { %v6652_v38 = vadd.f32 %v6650_v49, %v6480_v54 }
 0xf2e   :  { %v20845_v57 = vpop.eup %20844 }
 0xf2f   :  { %v17746_v56 = vmul.f32 -1.442695, %v6652_v38  ;;  %v6475_v51 = vmul.f32 %v20845_v57, %v20843_v5  ;;  %v6660_v59 = vrot.slane %v6652_v38, 3  ;;  %v24532_v5 = vld [vmem:[#allocation27_spill] sm:$0xff] }
 0xf30   :  { %v20847_v1 = vpop.eup %20846 }
 0xf31   :  { %20848 = vpow2.f32 %v17746_v56  ;;  %v6474_v8 = vmul.f32 %v20847_v1, %v22783_v3 }
 0xf33   :  { %v22850_v45 = vadd.f32 %v6475_v51, %v6474_v8  ;;  %v24533_v51 = vld [vmem:[#allocation28_spill] sm:$0xff] }
 0xf3b   :  { %v20849_v61 = vpop.eup %20848 }
 0xf3c   :  { %v6656_v18 = vadd.f32 1.0, %v20849_v61 }
 0xf3e   :  { %20850 = vrcp.f32 %v6656_v18  ;;  %v24534_v18 = vld [vmem:[#allocation29_spill] sm:$0xff] }
 0xf3f   :  { %20852 = vtanh.f32 %v6660_v59 }
 0xf40   :  { %20854 = vpow2.f32 %v17743_v58 }
 0xf48   :  { %v20851_v17 = vpop.eup %20850 }
 0xf49   :  { %v6664_v22 = vrot.slane %v20851_v17, 1  ;;  %v20853_v16 = vpop.eup %20852  ;;  %v6670_v30 = vrot.slane %v20851_v17, 2 }
 0xf4a   :  { %v6667_v9 = vmul.f32 %v20853_v16, %v20851_v17  ;;  %v20855_v3 = vpop.eup %20854  ;;  %v24535_v17 = vld [vmem:[#allocation30_spill] sm:$0xff] }
 0xf4b   :  { %v6666_v57 = vmul.f32 %v6664_v22, %v22787_v63  ;;  %v6466_v1 = vadd.f32 1.0, %v20855_v3 }
 0xf4d   :  { %v22854_v56 = vadd.f32 %v6667_v9, %v6666_v57  ;;  %v24536_v9 = vld [vmem:[#allocation31_spill] sm:$0xff] }
 0xf4f   :  { %20856 = vtanh.f32 %v22854_v56 }
 0xf50   :  { %20858 = vtanh.f32 %v22850_v45 }
 0xf51   :  { %20860 = vrcp.f32 %v6466_v1 }
 0xf59   :  { %v20857_v62 = vpop.eup %20856 }
 0xf5a   :  { %v6672_v49 = vmul.f32 %v20857_v62, %v6670_v30  ;;  %v20859_v63 = vpop.eup %20858 }
 0xf5b   :  { %v20861_v54 = vpop.eup %20860 }
 0xf5c   :  { %17747 = vmatmul.mubr.msk.f32.vlgmr.msra.gmra.mrb[50].mxu0 %vm264_vm0, %v6672_v49  ;;  %17748 = vmatmul.mubr.msk.f32.vlgmr.msra.gmra.mrb[50].mxu1 %vm264_vm0, %v6672_v49  ;;  %v6478_v38 = vmul.f32 %v20861_v54, %v20859_v63 }
 0xf5d   :  { %19003 = vmatpush1.bf16.msra.mxu0 %v22028_v23  ;;  %19011 = vmatpush1.bf16.msra.mxu1 %v22030_v27 }
 0xf5e   :  { %19005 = vmatprep.subr.bf16.mxu0 %v22032_v35  ;;  %19013 = vmatprep.subr.bf16.mxu1 %v22034_v36 }
 0xf5f   :  { %6885 = vmatprep.mubr.f32.mxu0 %v24477_v12  ;;  %6956 = vmatprep.mubr.f32.mxu1 %v24477_v12 }
 0xf61   :  { %19007 = vmatpush1.bf16.msra.mxu0 %v22040_v39  ;;  %19015 = vmatpush1.bf16.msra.mxu1 %v22042_v47 }
 0xf62   :  { %19017 = vmatprep.subr.bf16.mxu0 %v21879_v6  ;;  %19033 = vmatprep.subr.bf16.mxu1 %v21881_v10 }
 0xf64   :  { %17749 = vmatmul.mubr.msk.f32.vlgmr.msra.gmra.mrb[50].mxu0 %vm674_vm1, %v6478_v38  ;;  %17750 = vmatmul.mubr.msk.f32.vlgmr.msra.gmra.mrb[50].mxu1 %vm674_vm1, %v6478_v38 }
 0xf65   :  { %19019 = vmatpush1.bf16.msra.mxu0 %v21883_v11  ;;  %19035 = vmatpush1.bf16.msra.mxu1 %v21886_v15 }
 0xf66   :  { %19021 = vmatprep.subr.bf16.mxu0 %v21890_v19  ;;  %19037 = vmatprep.subr.bf16.mxu1 %v21892_v20 }
 0xf67   :  { %7057 = vmatprep.mubr.f32.mxu0 %v24477_v12  ;;  %7128 = vmatprep.mubr.f32.mxu1 %v24477_v12 }
 0xf69   :  { %19023 = vmatpush1.bf16.msra.mxu0 %v21895_v24  ;;  %19039 = vmatpush1.bf16.msra.mxu1 %v21899_v28 }
 0xf6a   :  { %19025 = vmatprep.subr.bf16.mxu0 %v21901_v29  ;;  %19041 = vmatprep.subr.bf16.mxu1 %v21903_v33 }
 0xf6d   :  { %19027 = vmatpush1.bf16.msra.mxu0 %v21906_v37  ;;  %19043 = vmatpush1.bf16.msra.mxu1 %v21910_v41 }
 0xf6e   :  { %19029 = vmatprep.subr.bf16.mxu0 %v21912_v42  ;;  %19045 = vmatprep.subr.bf16.mxu1 %v21915_v46 }
 0xf71   :  { %19031 = vmatpush1.bf16.msra.mxu0 %v21921_v50  ;;  %19047 = vmatpush1.bf16.msra.mxu1 %v21928_v52 }
 0xf72   :  { %19049 = vmatprep.subr.bf16.mxu0 %v21965_v26  ;;  %19065 = vmatprep.subr.bf16.mxu1 %v21968_v40 }
 0xf74   :  { %17754 = vmatmul.mubr.msk.f32.vlgmr.msra.gmra.mrb[52].mxu0 %vm264_vm0, %v6672_v49  ;;  %17755 = vmatmul.mubr.msk.f32.vlgmr.msra.gmra.mrb[52].mxu1 %vm264_vm0, %v6672_v49 }
 0xf75   :  { %19051 = vmatpush1.bf16.msra.mxu0 %v21970_v43  ;;  %19067 = vmatpush1.bf16.msra.mxu1 %v21972_v44 }
 0xf76   :  { %19053 = vmatprep.subr.bf16.mxu0 %v21976_v60  ;;  %19069 = vmatprep.subr.bf16.mxu1 %v21979_v0 }
 0xf77   :  { %7252 = vmatprep.mubr.f32.mxu0 %v24477_v12  ;;  %7323 = vmatprep.mubr.f32.mxu1 %v24477_v12 }
 0xf79   :  { %19055 = vmatpush1.bf16.msra.mxu0 %v21981_v2  ;;  %19071 = vmatpush1.bf16.msra.mxu1 %v21984_v7 }
 0xf7a   :  { %19057 = vmatprep.subr.bf16.mxu0 %v21987_v13  ;;  %19073 = vmatprep.subr.bf16.mxu1 %v21989_v14 }
 0xf7d   :  { %19059 = vmatpush1.bf16.msra.mxu0 %v21992_v21  ;;  %19075 = vmatpush1.bf16.msra.mxu1 %v21996_v25 }
 0xf7e   :  { %19061 = vmatprep.subr.bf16.mxu0 %v21999_v32  ;;  %19077 = vmatprep.subr.bf16.mxu1 %v22001_v34 }
 0xf81   :  { %19063 = vmatpush1.bf16.msra.mxu0 %v22004_v48  ;;  %19079 = vmatpush1.bf16.msra.mxu1 %v22008_v53 }
 0xf82   :  { %19081 = vmatprep.subr.bf16.mxu0 %v24532_v5  ;;  %19089 = vmatprep.subr.bf16.mxu1 %v24533_v51 }
0x1037   :  { %v6887_v8 = vpop.f32.mrb[50].mxu0  ;;  %v6958_v61 = vpop.f32.mrb[50].mxu1 }
0x1038   :  { %v20344_v59 = vadd.f32 %v6887_v8, %v24534_v18  ;;  %v6889_v31 = vpop.f32.mrb[51].mxu0  ;;  %v6960_v58 = vpop.f32.mrb[51].mxu1 }
0x1039   :  { %v20345_v22 = vadd.f32 %v6889_v31, %v24535_v17  ;;  %v20347_v3 = vadd.f32 %v6960_v58, %v24536_v9 }
0x103a   :  { %v17751_v16 = vmul.f32 -1.442695, %v20344_v59 }
0x103b   :  { %v17752_v57 = vmul.f32 -1.442695, %v20345_v22 }
0x103c   :  { %20862 = vpow2.f32 %v17751_v16  ;;  %v6992_v16 = vld [vmem:[#allocation2 + $0x25] ss:$8 sm:$0xf] }
0x103d   :  { %20864 = vpow2.f32 %v17752_v57 }
0x103e   :  { %20866 = vtanh.f32 %v20347_v3 }
0x1046   :  { %v20863_v1 = vpop.eup %20862 }
0x1047   :  { %v6976_v30 = vadd.f32 1.0, %v20863_v1  ;;  %v7059_v62 = vpop.f32.mrb[52].mxu0  ;;  %v7130_v49 = vpop.f32.mrb[52].mxu1 }
0x1048   :  { %v20865_v63 = vpop.eup %20864  ;;  %v7061_v54 = vpop.f32.mrb[53].mxu0 }
0x1049   :  { %v7132_v38 = vpop.f32.mrb[53].mxu1  ;;  %20868 = vrcp.f32 %v6976_v30  ;;  %v6977_v8 = vadd.f32 1.0, %v20865_v63  ;;  %v7139_v18 = vcombine.low %v7059_v62, %v7061_v54  ;;  %v20867_v1 = vpop.eup %20866 }
0x104a   :  { %v7140_v51 = vcombine.low %v7130_v49, %v7132_v38 }
0x104b   :  { %20870 = vrcp.f32 %v6977_v8  ;;  %v7147_v59 = vrot.slane %v7139_v18, %v22020_v4 }
0x104c   :  { %v7154_v31 = vrot.slane %v7140_v51, %v22020_v4  ;;  %v20346_v51 = vadd.f32 %v6958_v61, %v22113_v55 }
0x104e   :  { %v7155_v22 = vcombine.low %v7147_v59, %v7154_v31  ;;  %v17753_v54 = vmul.f32 -1.442695, %v20346_v51 }
0x1050   :  { %v7162_v58 = vrot.slane %v7155_v22, %v22020_v4 }
0x1052   :  { %v7164_v57 = vadd.f32 %v7162_v58, %v6992_v16 }
0x1053   :  { %v20869_v9 = vpop.eup %20868 }
0x1054   :  { %v17756_v17 = vmul.f32 -1.442695, %v7164_v57  ;;  %v6987_v3 = vmul.f32 %v20869_v9, %v20867_v1  ;;  %v7172_v18 = vrot.slane %v7164_v57, 3  ;;  %v24537_v1 = vld [vmem:[#allocation27_spill] sm:$0xff] }
0x1055   :  { %v20871_v5 = vpop.eup %20870 }
0x1056   :  { %20872 = vpow2.f32 %v17756_v17  ;;  %v6986_v30 = vmul.f32 %v20871_v5, %v22850_v45 }
0x1058   :  { %v22917_v62 = vadd.f32 %v6987_v3, %v6986_v30  ;;  %v24538_v3 = vld [vmem:[#allocation28_spill] sm:$0xff] }
0x1060   :  { %v20873_v49 = vpop.eup %20872 }
0x1061   :  { %v7168_v63 = vadd.f32 1.0, %v20873_v49 }
0x1063   :  { %20874 = vrcp.f32 %v7168_v63  ;;  %v24539_v63 = vld [vmem:[#allocation29_spill] sm:$0xff] }
0x1064   :  { %20876 = vtanh.f32 %v7172_v18 }
0x1065   :  { %20878 = vpow2.f32 %v17753_v54 }
0x106d   :  { %v20875_v38 = vpop.eup %20874 }
0x106e   :  { %v7176_v8 = vrot.slane %v20875_v38, 1  ;;  %v20877_v59 = vpop.eup %20876  ;;  %v7182_v61 = vrot.slane %v20875_v38, 2 }
0x106f   :  { %v7179_v31 = vmul.f32 %v20877_v59, %v20875_v38  ;;  %v20879_v45 = vpop.eup %20878  ;;  %v24540_v38 = vld [vmem:[#allocation30_spill] sm:$0xff] }
0x1070   :  { %v7178_v9 = vmul.f32 %v7176_v8, %v22854_v56  ;;  %v6978_v5 = vadd.f32 1.0, %v20879_v45 }
0x1072   :  { %v22921_v17 = vadd.f32 %v7179_v31, %v7178_v9  ;;  %v24541_v31 = vld [vmem:[#allocation31_spill] sm:$0xff] }
0x1074   :  { %20880 = vtanh.f32 %v22921_v17 }
0x1075   :  { %20882 = vtanh.f32 %v22917_v62 }
0x1076   :  { %20884 = vrcp.f32 %v6978_v5 }
0x107e   :  { %v20881_v22 = vpop.eup %20880 }
0x107f   :  { %v7184_v58 = vmul.f32 %v20881_v22, %v7182_v61  ;;  %v20883_v56 = vpop.eup %20882 }
0x1080   :  { %v20885_v16 = vpop.eup %20884 }
0x1081   :  { %17757 = vmatmul.mubr.msk.f32.vlgmr.msra.gmra.mrb[54].mxu0 %vm264_vm0, %v7184_v58  ;;  %17758 = vmatmul.mubr.msk.f32.vlgmr.msra.gmra.mrb[54].mxu1 %vm264_vm0, %v7184_v58  ;;  %v6990_v57 = vmul.f32 %v20885_v16, %v20883_v56 }
0x1082   :  { %19083 = vmatpush1.bf16.msra.mxu0 %v22028_v23  ;;  %19091 = vmatpush1.bf16.msra.mxu1 %v22030_v27 }
0x1083   :  { %19085 = vmatprep.subr.bf16.mxu0 %v22032_v35  ;;  %19093 = vmatprep.subr.bf16.mxu1 %v22034_v36 }
0x1084   :  { %7397 = vmatprep.mubr.f32.mxu0 %v24477_v12  ;;  %7468 = vmatprep.mubr.f32.mxu1 %v24477_v12 }
0x1086   :  { %19087 = vmatpush1.bf16.msra.mxu0 %v22040_v39  ;;  %19095 = vmatpush1.bf16.msra.mxu1 %v22042_v47 }
0x1087   :  { %19097 = vmatprep.subr.bf16.mxu0 %v21879_v6  ;;  %19113 = vmatprep.subr.bf16.mxu1 %v21881_v10 }
0x1089   :  { %17759 = vmatmul.mubr.msk.f32.vlgmr.msra.gmra.mrb[54].mxu0 %vm674_vm1, %v6990_v57  ;;  %17760 = vmatmul.mubr.msk.f32.vlgmr.msra.gmra.mrb[54].mxu1 %vm674_vm1, %v6990_v57 }
0x108a   :  { %19099 = vmatpush1.bf16.msra.mxu0 %v21883_v11  ;;  %19115 = vmatpush1.bf16.msra.mxu1 %v21886_v15 }
0x108b   :  { %19101 = vmatprep.subr.bf16.mxu0 %v21890_v19  ;;  %19117 = vmatprep.subr.bf16.mxu1 %v21892_v20 }
0x108c   :  { %7569 = vmatprep.mubr.f32.mxu0 %v24477_v12  ;;  %7640 = vmatprep.mubr.f32.mxu1 %v24477_v12 }
0x108e   :  { %19103 = vmatpush1.bf16.msra.mxu0 %v21895_v24  ;;  %19119 = vmatpush1.bf16.msra.mxu1 %v21899_v28 }
0x108f   :  { %19105 = vmatprep.subr.bf16.mxu0 %v21901_v29  ;;  %19121 = vmatprep.subr.bf16.mxu1 %v21903_v33 }
0x1092   :  { %19107 = vmatpush1.bf16.msra.mxu0 %v21906_v37  ;;  %19123 = vmatpush1.bf16.msra.mxu1 %v21910_v41 }
0x1093   :  { %19109 = vmatprep.subr.bf16.mxu0 %v21912_v42  ;;  %19125 = vmatprep.subr.bf16.mxu1 %v21915_v46 }
0x1096   :  { %19111 = vmatpush1.bf16.msra.mxu0 %v21921_v50  ;;  %19127 = vmatpush1.bf16.msra.mxu1 %v21928_v52 }
0x1097   :  { %19129 = vmatprep.subr.bf16.mxu0 %v21965_v26  ;;  %19145 = vmatprep.subr.bf16.mxu1 %v21968_v40 }
0x1099   :  { %17764 = vmatmul.mubr.msk.f32.vlgmr.msra.gmra.mrb[56].mxu0 %vm264_vm0, %v7184_v58  ;;  %17765 = vmatmul.mubr.msk.f32.vlgmr.msra.gmra.mrb[56].mxu1 %vm264_vm0, %v7184_v58 }
0x109a   :  { %19131 = vmatpush1.bf16.msra.mxu0 %v21970_v43  ;;  %19147 = vmatpush1.bf16.msra.mxu1 %v21972_v44 }
0x109b   :  { %19133 = vmatprep.subr.bf16.mxu0 %v21976_v60  ;;  %19149 = vmatprep.subr.bf16.mxu1 %v21979_v0 }
0x109c   :  { %7764 = vmatprep.mubr.f32.mxu0 %v24477_v12  ;;  %7835 = vmatprep.mubr.f32.mxu1 %v24477_v12 }
0x109e   :  { %19135 = vmatpush1.bf16.msra.mxu0 %v21981_v2  ;;  %19151 = vmatpush1.bf16.msra.mxu1 %v21984_v7 }
0x109f   :  { %19137 = vmatprep.subr.bf16.mxu0 %v21987_v13  ;;  %19153 = vmatprep.subr.bf16.mxu1 %v21989_v14 }
0x10a2   :  { %19139 = vmatpush1.bf16.msra.mxu0 %v21992_v21  ;;  %19155 = vmatpush1.bf16.msra.mxu1 %v21996_v25 }
0x10a3   :  { %19141 = vmatprep.subr.bf16.mxu0 %v21999_v32  ;;  %19157 = vmatprep.subr.bf16.mxu1 %v22001_v34 }
0x10a6   :  { %19143 = vmatpush1.bf16.msra.mxu0 %v22004_v48  ;;  %19159 = vmatpush1.bf16.msra.mxu1 %v22008_v53 }
0x10a7   :  { %19161 = vmatprep.subr.bf16.mxu0 %v24537_v1  ;;  %19169 = vmatprep.subr.bf16.mxu1 %v24538_v3 }
0x115c   :  { %v7399_v30 = vpop.f32.mrb[54].mxu0  ;;  %v7470_v49 = vpop.f32.mrb[54].mxu1 }
0x115d   :  { %v20348_v18 = vadd.f32 %v7399_v30, %v24539_v63  ;;  %v7401_v51 = vpop.f32.mrb[55].mxu0  ;;  %v7472_v54 = vpop.f32.mrb[55].mxu1 }
0x115e   :  { %v20349_v8 = vadd.f32 %v7401_v51, %v24540_v38  ;;  %v20351_v45 = vadd.f32 %v7472_v54, %v24541_v31 }
0x115f   :  { %v17761_v59 = vmul.f32 -1.442695, %v20348_v18 }
0x1160   :  { %v17762_v9 = vmul.f32 -1.442695, %v20349_v8 }
0x1161   :  { %20886 = vpow2.f32 %v17761_v59  ;;  %v7504_v59 = vld [vmem:[#allocation2 + $0x26] ss:$8 sm:$0xf] }
0x1162   :  { %20888 = vpow2.f32 %v17762_v9 }
0x1163   :  { %20890 = vtanh.f32 %v20351_v45 }
0x116b   :  { %v20887_v5 = vpop.eup %20886 }
0x116c   :  { %v7488_v61 = vadd.f32 1.0, %v20887_v5  ;;  %v7571_v22 = vpop.f32.mrb[56].mxu0  ;;  %v7642_v58 = vpop.f32.mrb[56].mxu1 }
0x116d   :  { %v20889_v56 = vpop.eup %20888  ;;  %v7573_v16 = vpop.f32.mrb[57].mxu0 }
0x116e   :  { %v7644_v57 = vpop.f32.mrb[57].mxu1  ;;  %20892 = vrcp.f32 %v7488_v61  ;;  %v7489_v30 = vadd.f32 1.0, %v20889_v56  ;;  %v7651_v63 = vcombine.low %v7571_v22, %v7573_v16  ;;  %v20891_v5 = vpop.eup %20890 }
0x116f   :  { %v7652_v3 = vcombine.low %v7642_v58, %v7644_v57 }
0x1170   :  { %20894 = vrcp.f32 %v7489_v30  ;;  %v7659_v18 = vrot.slane %v7651_v63, %v22020_v4 }
0x1171   :  { %v7666_v51 = vrot.slane %v7652_v3, %v22020_v4  ;;  %v20350_v3 = vadd.f32 %v7470_v49, %v22113_v55 }
0x1173   :  { %v7667_v8 = vcombine.low %v7659_v18, %v7666_v51  ;;  %v17763_v16 = vmul.f32 -1.442695, %v20350_v3 }
0x1175   :  { %v7674_v54 = vrot.slane %v7667_v8, %v22020_v4 }
0x1177   :  { %v7676_v9 = vadd.f32 %v7674_v54, %v7504_v59 }
0x1178   :  { %v20893_v31 = vpop.eup %20892 }
0x1179   :  { %v17766_v38 = vmul.f32 -1.442695, %v7676_v9  ;;  %v7499_v45 = vmul.f32 %v20893_v31, %v20891_v5  ;;  %v7684_v63 = vrot.slane %v7676_v9, 3 }
0x117a   :  { %v20895_v1 = vpop.eup %20894 }
0x117b   :  { %20896 = vpow2.f32 %v17766_v38  ;;  %v7498_v61 = vmul.f32 %v20895_v1, %v22917_v62 }
0x117d   :  { %v22984_v22 = vadd.f32 %v7499_v45, %v7498_v61 }
0x1185   :  { %v20897_v58 = vpop.eup %20896 }
0x1186   :  { %v7680_v56 = vadd.f32 1.0, %v20897_v58 }
0x1188   :  { %20898 = vrcp.f32 %v7680_v56 }
0x1189   :  { %20900 = vtanh.f32 %v7684_v63 }
0x118a   :  { %20902 = vpow2.f32 %v17763_v16 }
0x1192   :  { %v20899_v57 = vpop.eup %20898 }
0x1193   :  { %v7688_v30 = vrot.slane %v20899_v57, 1  ;;  %v20901_v18 = vpop.eup %20900  ;;  %v7694_v49 = vrot.slane %v20899_v57, 2 }
0x1194   :  { %v7691_v51 = vmul.f32 %v20901_v18, %v20899_v57  ;;  %v20903_v62 = vpop.eup %20902 }
0x1195   :  { %v7690_v31 = vmul.f32 %v7688_v30, %v22921_v17  ;;  %v7490_v1 = vadd.f32 1.0, %v20903_v62 }
0x1197   :  { %v22988_v38 = vadd.f32 %v7691_v51, %v7690_v31 }
0x1199   :  { %20904 = vtanh.f32 %v22988_v38 }
0x119a   :  { %20906 = vtanh.f32 %v22984_v22 }
0x119b   :  { %20908 = vrcp.f32 %v7490_v1 }
0x11a3   :  { %v20905_v8 = vpop.eup %20904 }
0x11a4   :  { %v7696_v54 = vmul.f32 %v20905_v8, %v7694_v49  ;;  %v20907_v17 = vpop.eup %20906 }
0x11a5   :  { %v20909_v59 = vpop.eup %20908 }
0x11a6   :  { %17767 = vmatmul.mubr.msk.f32.vlgmr.msra.gmra.mrb[58].mxu0 %vm264_vm0, %v7696_v54  ;;  %17768 = vmatmul.mubr.msk.f32.vlgmr.msra.gmra.mrb[58].mxu1 %vm264_vm0, %v7696_v54  ;;  %v7502_v9 = vmul.f32 %v20909_v59, %v20907_v17 }
0x11a7   :  { %19163 = vmatpush1.bf16.msra.mxu0 %v22028_v23  ;;  %19171 = vmatpush1.bf16.msra.mxu1 %v22030_v27 }
0x11a8   :  { %19165 = vmatprep.subr.bf16.mxu0 %v22032_v35  ;;  %19173 = vmatprep.subr.bf16.mxu1 %v22034_v36 }
0x11a9   :  { %7909 = vmatprep.mubr.f32.mxu0 %v24477_v12  ;;  %7980 = vmatprep.mubr.f32.mxu1 %v24477_v12 }
0x11ab   :  { %19167 = vmatpush1.bf16.msra.mxu0 %v22040_v39  ;;  %19175 = vmatpush1.bf16.msra.mxu1 %v22042_v47 }
0x11ac   :  { %19177 = vmatprep.subr.bf16.mxu0 %v21879_v6  ;;  %19193 = vmatprep.subr.bf16.mxu1 %v21881_v10  ;;  %v24542_v6 = vld [vmem:[#allocation27_spill] sm:$0xff]  ;;  %v24543_v10 = vld [vmem:[#allocation28_spill] sm:$0xff] }
0x11ae   :  { %17769 = vmatmul.mubr.msk.f32.vlgmr.msra.gmra.mrb[58].mxu0 %vm674_vm1, %v7502_v9  ;;  %17770 = vmatmul.mubr.msk.f32.vlgmr.msra.gmra.mrb[58].mxu1 %vm674_vm1, %v7502_v9 }
0x11af   :  { %19179 = vmatpush1.bf16.msra.mxu0 %v21883_v11  ;;  %19195 = vmatpush1.bf16.msra.mxu1 %v21886_v15 }
0x11b0   :  { %19181 = vmatprep.subr.bf16.mxu0 %v21890_v19  ;;  %19197 = vmatprep.subr.bf16.mxu1 %v21892_v20  ;;  %v24544_v19 = vld [vmem:[#allocation29_spill] sm:$0xff] }
0x11b1   :  { %8081 = vmatprep.mubr.f32.mxu0 %v24477_v12  ;;  %8152 = vmatprep.mubr.f32.mxu1 %v24477_v12 }
0x11b3   :  { %19183 = vmatpush1.bf16.msra.mxu0 %v21895_v24  ;;  %19199 = vmatpush1.bf16.msra.mxu1 %v21899_v28 }
0x11b4   :  { %19185 = vmatprep.subr.bf16.mxu0 %v21901_v29  ;;  %19201 = vmatprep.subr.bf16.mxu1 %v21903_v33  ;;  %v24545_v29 = vld [vmem:[#allocation30_spill] sm:$0xff] }
0x11b7   :  { %19187 = vmatpush1.bf16.msra.mxu0 %v21906_v37  ;;  %19203 = vmatpush1.bf16.msra.mxu1 %v21910_v41 }
0x11b8   :  { %19189 = vmatprep.subr.bf16.mxu0 %v21912_v42  ;;  %19205 = vmatprep.subr.bf16.mxu1 %v21915_v46  ;;  %v24546_v42 = vld [vmem:[#allocation31_spill] sm:$0xff] }
0x11bb   :  { %19191 = vmatpush1.bf16.msra.mxu0 %v21921_v50  ;;  %19207 = vmatpush1.bf16.msra.mxu1 %v21928_v52 }
0x11bc   :  { %19209 = vmatprep.subr.bf16.mxu0 %v21965_v26  ;;  %19225 = vmatprep.subr.bf16.mxu1 %v21968_v40 }
0x11be   :  { %17774 = vmatmul.mubr.msk.f32.vlgmr.msra.gmra.mrb[60].mxu0 %vm264_vm0, %v7696_v54  ;;  %17775 = vmatmul.mubr.msk.f32.vlgmr.msra.gmra.mrb[60].mxu1 %vm264_vm0, %v7696_v54 }
0x11bf   :  { %19211 = vmatpush1.bf16.msra.mxu0 %v21970_v43  ;;  %19227 = vmatpush1.bf16.msra.mxu1 %v21972_v44 }
0x11c0   :  { %19213 = vmatprep.subr.bf16.mxu0 %v21976_v60  ;;  %19229 = vmatprep.subr.bf16.mxu1 %v21979_v0 }
0x11c1   :  { %8276 = vmatprep.mubr.f32.mxu0 %v24477_v12  ;;  %8347 = vmatprep.mubr.f32.mxu1 %v24477_v12 }
0x11c3   :  { %19215 = vmatpush1.bf16.msra.mxu0 %v21981_v2  ;;  %19231 = vmatpush1.bf16.msra.mxu1 %v21984_v7 }
0x11c4   :  { %19217 = vmatprep.subr.bf16.mxu0 %v21987_v13  ;;  %19233 = vmatprep.subr.bf16.mxu1 %v21989_v14 }
0x11c7   :  { %19219 = vmatpush1.bf16.msra.mxu0 %v21992_v21  ;;  %19235 = vmatpush1.bf16.msra.mxu1 %v21996_v25 }
0x11c8   :  { %19221 = vmatprep.subr.bf16.mxu0 %v21999_v32  ;;  %19237 = vmatprep.subr.bf16.mxu1 %v22001_v34  ;;  %v8016_v32 = vld [vmem:[#allocation2 + $0x27] ss:$8 sm:$0xf] }
0x11cb   :  { %19223 = vmatpush1.bf16.msra.mxu0 %v22004_v48  ;;  %19239 = vmatpush1.bf16.msra.mxu1 %v22008_v53 }
0x11cc   :  { %19241 = vmatprep.subr.bf16.mxu0 %v24542_v6  ;;  %19249 = vmatprep.subr.bf16.mxu1 %v24543_v10  ;;  %v8536_v6 = vld [vmem:[#allocation11 + $0x38] sm:$0xff]  ;;  %v8529_v10 = vld [vmem:[#allocation11] sm:$0xff] }
0x1281   :  { %v7911_v11 = vpop.f32.mrb[58].mxu0  ;;  %v7982_v15 = vpop.f32.mrb[58].mxu1 }
0x1282   :  { %v20352_v20 = vadd.f32 %v7911_v11, %v24544_v19  ;;  %v7913_v24 = vpop.f32.mrb[59].mxu0  ;;  %v7984_v28 = vpop.f32.mrb[59].mxu1  ;;  %v20354_v57 = vadd.f32 %v7982_v15, %v22113_v55  ;;  %v8533_v11 = vld [vmem:[#allocation11 + $0x20] sm:$0xff] }
0x1283   :  { %v20353_v33 = vadd.f32 %v7913_v24, %v24545_v29  ;;  %v20355_v46 = vadd.f32 %v7984_v28, %v24546_v42  ;;  %v8538_v24 = vld [vmem:[#allocation11 + $0x48] sm:$0xff] }
0x1284   :  { %v17771_v37 = vmul.f32 -1.442695, %v20352_v20  ;;  %v8531_v20 = vld [vmem:[#allocation11 + $0x10] sm:$0xff] }
0x1285   :  { %v17772_v41 = vmul.f32 -1.442695, %v20353_v33  ;;  %v8542_v33 = vld [vmem:[#allocation11 + $0x68] sm:$0xff] }
0x1286   :  { %20910 = vpow2.f32 %v17771_v37  ;;  %v8540_v37 = vld [vmem:[#allocation11 + $0x58] sm:$0xff] }
0x1287   :  { %20912 = vpow2.f32 %v17772_v41  ;;  %v8544_v41 = vld [vmem:[#allocation11 + $0x78] sm:$0xff] }
0x1288   :  { %20914 = vtanh.f32 %v20355_v46  ;;  %v19260_v46 = vpack.c.bf16 %v8542_v33, %v8538_v24  ;;  %v8900_v24 = vld [vmem:[#allocation14 + $0x8] sm:$0xff]  ;;  %v8902_v33 = vld [vmem:[#allocation14 + $0x18] sm:$0xff] }
0x1290   :  { %v20911_v50 = vpop.eup %20910 }
0x1291   :  { %v8000_v52 = vadd.f32 1.0, %v20911_v50  ;;  %v8083_v26 = vpop.f32.mrb[60].mxu0  ;;  %v8154_v40 = vpop.f32.mrb[60].mxu1  ;;  %v19268_v50 = vpack.c.bf16 %v8544_v41, %v8540_v37  ;;  %v8906_v41 = vld [vmem:[#allocation14 + $0x38] sm:$0xff] }
0x1292   :  { %v20913_v43 = vpop.eup %20912  ;;  %v8085_v44 = vpop.f32.mrb[61].mxu0 }
0x1293   :  { %v8156_v60 = vpop.f32.mrb[61].mxu1  ;;  %20916 = vrcp.f32 %v8000_v52  ;;  %v8001_v0 = vadd.f32 1.0, %v20913_v43  ;;  %v8163_v2 = vcombine.low %v8083_v26, %v8085_v44  ;;  %v20915_v48 = vpop.eup %20914  ;;  %v8537_v52 = vld [vmem:[#allocation11 + $0x40] sm:$0xff]  ;;  %v8543_v44 = vld [vmem:[#allocation11 + $0x70] sm:$0xff] }
0x1294   :  { %v8164_v7 = vcombine.low %v8154_v40, %v8156_v60  ;;  %v8541_v26 = vld [vmem:[#allocation11 + $0x60] sm:$0xff]  ;;  %v8539_v40 = vld [vmem:[#allocation11 + $0x50] sm:$0xff]  ;;  %v8714_v60 = vld [vmem:[#allocation13 + $0x8] sm:$0xff] }
0x1295   :  { %20918 = vrcp.f32 %v8001_v0  ;;  %v8171_v13 = vrot.slane %v8163_v2, %v22020_v4  ;;  %v19262_v43 = vpack.c.bf16 %v8541_v26, %v8537_v52  ;;  %v8718_v0 = vld [vmem:[#allocation13 + $0x28] sm:$0xff]  ;;  %v19270_v2 = vpack.c.bf16 %v8543_v44, %v8539_v40  ;;  %v8901_v40 = vld [vmem:[#allocation14 + $0x10] sm:$0xff] }
0x1296   :  { %v8178_v14 = vrot.slane %v8164_v7, %v22020_v4  ;;  %v23070_v7 = vpack.c.bf16 %v8718_v0, %v8714_v60  ;;  %v23109_v52 = vpack.c.bf16 %v8906_v41, %v8902_v33  ;;  %v8908_v44 = vld [vmem:[#allocation14 + $0x48] sm:$0xff] }
0x1297   :  { %v8912_v0 = vld [vmem:[#allocation14 + $0x68] sm:$0xff] }
0x1298   :  { %v8179_v21 = vcombine.low %v8171_v13, %v8178_v14  ;;  %v8716_v13 = vld [vmem:[#allocation13 + $0x18] sm:$0xff] }
0x1299   :  { %v8720_v14 = vld [vmem:[#allocation13 + $0x38] sm:$0xff] }
0x129a   :  { %v8186_v25 = vrot.slane %v8179_v21, %v22020_v4  ;;  %v17773_v4 = vmul.f32 -1.442695, %v20354_v57  ;;  %v23072_v21 = vpack.c.bf16 %v8720_v14, %v8716_v13  ;;  %v8914_v13 = vld [vmem:[#allocation14 + $0x78] sm:$0xff]  ;;  %v23118_v14 = vpack.c.bf16 %v8912_v0, %v8908_v44 }
0x129c   :  { %v8188_v34 = vadd.f32 %v8186_v25, %v8016_v32 }
0x129d   :  { %v20917_v53 = vpop.eup %20916 }
0x129e   :  { %v17776_v5 = vmul.f32 -1.442695, %v8188_v34  ;;  %v8011_v45 = vmul.f32 %v20917_v53, %v20915_v48  ;;  %v8196_v16 = vrot.slane %v8188_v34, 3 }
0x129f   :  { %v20919_v61 = vpop.eup %20918 }
0x12a0   :  { %20920 = vpow2.f32 %v17776_v5  ;;  %v8010_v58 = vmul.f32 %v20919_v61, %v22984_v22 }
0x12a2   :  { %v23051_v56 = vadd.f32 %v8011_v45, %v8010_v58 }
0x12aa   :  { %v20921_v63 = vpop.eup %20920 }
0x12ab   :  { %v8192_v3 = vadd.f32 1.0, %v20921_v63 }
0x12ad   :  { %20922 = vrcp.f32 %v8192_v3 }
0x12ae   :  { %20924 = vtanh.f32 %v8196_v16 }
0x12af   :  { %20926 = vpow2.f32 %v17773_v4 }
0x12b7   :  { %v20923_v30 = vpop.eup %20922 }
0x12b8   :  { %v8200_v18 = vrot.slane %v20923_v30, 1  ;;  %v20925_v31 = vpop.eup %20924  ;;  %v8206_v8 = vrot.slane %v20923_v30, 2 }
0x12b9   :  { %v8203_v51 = vmul.f32 %v20925_v31, %v20923_v30  ;;  %v20927_v22 = vpop.eup %20926 }
0x12ba   :  { %v8202_v62 = vmul.f32 %v8200_v18, %v22988_v38  ;;  %v8002_v49 = vadd.f32 1.0, %v20927_v22  ;;  %v8717_v22 = vld [vmem:[#allocation13 + $0x20] sm:$0xff] }
0x12bc   :  { %v8204_v1 = vadd.f32 %v8203_v51, %v8202_v62 }
0x12be   :  { %20928 = vtanh.f32 %v8204_v1 }
0x12bf   :  { %20930 = vtanh.f32 %v23051_v56 }
0x12c0   :  { %20932 = vrcp.f32 %v8002_v49  ;;  %v8715_v49 = vld [vmem:[#allocation13 + $0x10] sm:$0xff] }
0x12c8   :  { %v20929_v54 = vpop.eup %20928 }
0x12c9   :  { %v8208_v17 = vmul.f32 %v20929_v54, %v8206_v8  ;;  %v20931_v38 = vpop.eup %20930  ;;  %v8719_v8 = vld [vmem:[#allocation13 + $0x30] sm:$0xff]  ;;  %v8722_v54 = vld [vmem:[#allocation13 + $0x48] sm:$0xff] }
0x12ca   :  { %v20933_v59 = vpop.eup %20932 }
0x12cb   :  { %17777 = vmatmul.mubr.msk.f32.vlgmr.msra.gmra.mrb[62].mxu0 %vm264_vm0, %v8208_v17  ;;  %17778 = vmatmul.mubr.msk.f32.vlgmr.msra.gmra.mrb[62].mxu1 %vm264_vm0, %v8208_v17  ;;  %v8014_v9 = vmul.f32 %v20933_v59, %v20931_v38  ;;  %v8726_v17 = vld [vmem:[#allocation13 + $0x68] sm:$0xff]  ;;  %v8724_v38 = vld [vmem:[#allocation13 + $0x58] sm:$0xff] }
0x12cc   :  { %19243 = vmatpush1.bf16.msra.mxu0 %v22028_v23  ;;  %19251 = vmatpush1.bf16.msra.mxu1 %v22030_v27  ;;  %v8530_v23 = vld [vmem:[#allocation11 + $0x8] sm:$0xff]  ;;  %v8728_v59 = vld [vmem:[#allocation13 + $0x78] sm:$0xff] }
0x12cd   :  { %19245 = vmatprep.subr.bf16.mxu0 %v22032_v35  ;;  %19253 = vmatprep.subr.bf16.mxu1 %v22034_v36  ;;  %v8534_v27 = vld [vmem:[#allocation11 + $0x28] sm:$0xff]  ;;  %v8532_v35 = vld [vmem:[#allocation11 + $0x18] sm:$0xff] }
0x12ce   :  { %8421 = vmatprep.mubr.f32.mxu0 %v24477_v12  ;;  %8492 = vmatprep.mubr.f32.mxu1 %v24477_v12  ;;  %v19256_v36 = vpack.c.bf16 %v8534_v27, %v8530_v23  ;;  %v19264_v15 = vpack.c.bf16 %v8536_v6, %v8532_v35  ;;  %v23083_v35 = vpack.c.bf16 %v8719_v8, %v8715_v49 }
0x12cf   :  { %v23085_v6 = vpack.c.bf16 %v8726_v17, %v8722_v54 }
0x12d0   :  { %19247 = vmatpush1.bf16.msra.mxu0 %v22040_v39  ;;  %19255 = vmatpush1.bf16.msra.mxu1 %v22042_v47  ;;  %v19258_v39 = vpack.c.bf16 %v8533_v11, %v8529_v10  ;;  %v8535_v47 = vld [vmem:[#allocation11 + $0x30] sm:$0xff]  ;;  %v23087_v10 = vpack.c.bf16 %v8728_v59, %v8724_v38  ;;  %v8725_v11 = vld [vmem:[#allocation13 + $0x60] sm:$0xff] }
0x12d1   :  { %19257 = vmatprep.subr.bf16.mxu0 %v19256_v36  ;;  %v19266_v28 = vpack.c.bf16 %v8535_v47, %v8531_v20  ;;  %19265 = vmatprep.subr.bf16.mxu1 %v19264_v15  ;;  %v8721_v36 = vld [vmem:[#allocation13 + $0x40] sm:$0xff]  ;;  %v8723_v15 = vld [vmem:[#allocation13 + $0x50] sm:$0xff] }
0x12d2   :  { %v23093_v20 = vpack.c.bf16 %v8725_v11, %v8721_v36 }
0x12d3   :  { %17779 = vmatmul.mubr.msk.f32.vlgmr.msra.gmra.mrb[62].mxu0 %vm674_vm1, %v8014_v9  ;;  %17780 = vmatmul.mubr.msk.f32.vlgmr.msra.gmra.mrb[62].mxu1 %vm674_vm1, %v8014_v9 }
0x12d4   :  { %8634 = vmatprep.mubr.f32.mxu0 %v24477_v12  ;;  %8705 = vmatprep.mubr.f32.mxu1 %v24477_v12 }
0x12d5   :  { %19259 = vmatpush1.bf16.msra.mxu0 %v19258_v39  ;;  %19267 = vmatpush1.bf16.msra.mxu1 %v19266_v28  ;;  %v8727_v39 = vld [vmem:[#allocation13 + $0x70] sm:$0xff]  ;;  %v8904_v28 = vld [vmem:[#allocation14 + $0x28] sm:$0xff] }
0x12d6   :  { %19261 = vmatprep.subr.bf16.mxu0 %v19260_v46  ;;  %19269 = vmatprep.subr.bf16.mxu1 %v19268_v50  ;;  %v23095_v47 = vpack.c.bf16 %v8727_v39, %v8723_v15  ;;  %v23107_v37 = vpack.c.bf16 %v8904_v28, %v8900_v24  ;;  %v8899_v46 = vld [vmem:[#allocation14] sm:$0xff] }
0x12d7   :  { %v8903_v50 = vld [vmem:[#allocation14 + $0x20] sm:$0xff] }
0x12d8   :  { %v23111_v26 = vpack.c.bf16 %v8903_v50, %v8899_v46 }
0x12d9   :  { %19263 = vmatpush1.bf16.msra.mxu0 %v19262_v43  ;;  %19271 = vmatpush1.bf16.msra.mxu1 %v19270_v2  ;;  %v8905_v43 = vld [vmem:[#allocation14 + $0x30] sm:$0xff]  ;;  %v8910_v2 = vld [vmem:[#allocation14 + $0x58] sm:$0xff] }
0x12da   :  { %19273 = vmatprep.subr.bf16.mxu0 %v23070_v7  ;;  %19281 = vmatprep.subr.bf16.mxu1 %v23072_v21  ;;  %v23114_v60 = vpack.c.bf16 %v8905_v43, %v8901_v40 }
0x13a6   :  { %v8423_v25 = vpop.f32.mrb[62].mxu0  ;;  %v8494_v32 = vpop.f32.mrb[62].mxu1 }
0x13a7   :  { %v20356_v34 = vadd.f32 %v8423_v25, %v24544_v19  ;;  %v8425_v48 = vpop.f32.mrb[63].mxu0  ;;  %v8496_v53 = vpop.f32.mrb[63].mxu1  ;;  %v20358_v58 = vadd.f32 %v8494_v32, %v22113_v55  ;;  %v23120_v25 = vpack.c.bf16 %v8914_v13, %v8910_v2  ;;  %v8907_v32 = vld [vmem:[#allocation14 + $0x40] sm:$0xff] }
0x13a8   :  { %v20357_v5 = vadd.f32 %v8425_v48, %v24545_v29  ;;  %v20359_v63 = vadd.f32 %v8496_v53, %v24546_v42  ;;  %v8713_v42 = vld [vmem:[#allocation13] sm:$0xff]  ;;  %v8909_v48 = vld [vmem:[#allocation14 + $0x50] sm:$0xff] }
0x13a9   :  { %v17781_v45 = vmul.f32 -1.442695, %v20356_v34  ;;  %v17783_v3 = vmul.f32 -1.442695, %v20358_v58  ;;  %v23081_v27 = vpack.c.bf16 %v8717_v22, %v8713_v42  ;;  %v8911_v34 = vld [vmem:[#allocation14 + $0x60] sm:$0xff] }
0x13aa   :  { %v17782_v61 = vmul.f32 -1.442695, %v20357_v5  ;;  %v23123_v53 = vpack.c.bf16 %v8911_v34, %v8907_v32  ;;  %v8913_v5 = vld [vmem:[#allocation14 + $0x70] sm:$0xff] }
0x13ab   :  { %20934 = vpow2.f32 %v17781_v45  ;;  %v9082_v45 = vld [vmem:[#allocation16 + $0x8] sm:$0xff]  ;;  %v23127_v58 = vpack.c.bf16 %v8913_v5, %v8909_v48  ;;  %v9081_v5 = vld [vmem:[#allocation16] sm:$0xff] }
0x13ac   :  { %20936 = vpow2.f32 %v17782_v61  ;;  %v9086_v61 = vld [vmem:[#allocation16 + $0x28] sm:$0xff] }
0x13ad   :  { %20938 = vtanh.f32 %v20359_v63  ;;  %v23129_v63 = vpack.c.bf16 %v9086_v61, %v9082_v45  ;;  %v9085_v45 = vld [vmem:[#allocation16 + $0x20] sm:$0xff]  ;;  %v9083_v61 = vld [vmem:[#allocation16 + $0x10] sm:$0xff] }
0x13ae   :  { %20940 = vpow2.f32 %v17783_v3  ;;  %v9084_v3 = vld [vmem:[#allocation16 + $0x18] sm:$0xff] }
0x13b5   :  { %v20935_v16 = vpop.eup %20934 }
0x13b6   :  { %v8512_v57 = vadd.f32 1.0, %v20935_v16  ;;  %v20937_v4 = vpop.eup %20936  ;;  %v9088_v16 = vld [vmem:[#allocation16 + $0x38] sm:$0xff] }
0x13b7   :  { %v8513_v19 = vadd.f32 1.0, %v20937_v4  ;;  %v20939_v30 = vpop.eup %20938  ;;  %v8545_v4 = vld [vmem:[%s24437_s9] sm:$0xf] }
0x13b8   :  { %20942 = vrcp.f32 %v8512_v57  ;;  %v20941_v18 = vpop.eup %20940  ;;  %v23131_v57 = vpack.c.bf16 %v9088_v16, %v9084_v3  ;;  %v9087_v3 = vld [vmem:[#allocation16 + $0x30] sm:$0xff]  ;;  %v9090_v16 = vld [vmem:[#allocation16 + $0x48] sm:$0xff] }
0x13b9   :  { %20944 = vrcp.f32 %v8513_v19  ;;  %v8514_v62 = vadd.f32 1.0, %v20941_v18  ;;  %v24547_v19 = vld [vmem:[#allocation23_spill] sm:$0xff]  ;;  %v24548_v18 = vld [vmem:[#allocation25_spill] sm:$0xff] }
0x13bb   :  { %20946 = vrcp.f32 %v8514_v62  ;;  %v24550_v62 = vld [vmem:[#allocation26_spill] sm:$0xff] }
0x13c2   :  { %v20943_v29 = vpop.eup %20942 }
0x13c3   :  { %v8523_v31 = vmul.f32 %v20943_v29, %v20939_v30  ;;  %v20945_v51 = vpop.eup %20944  ;;  %v8550_v30 = vrot.slane %v8545_v4, %v24547_v19  ;;  %v8558_v29 = vrot.slane %v8545_v4, %v24548_v18 }
0x13c4   :  { %v8522_v1 = vmul.f32 %v20945_v51, %v23051_v56 }
0x13c5   :  { %v20947_v9 = vpop.eup %20946 }
0x13c6   :  { %v8524_v55 = vadd.f32 %v8523_v31, %v8522_v1  ;;  %v24549_v31 = vld [vmem:[#allocation24_spill] sm:$0xff]  ;;  %v8562_v1 = vrot.slane %v8545_v4, %v24550_v62 }
0x13c7   :  { %v8554_v51 = vrot.slane %v8545_v4, %v24549_v31  ;;  %v9094_v4 = vld [vmem:[#allocation16 + $0x68] sm:$0xff] }
0x13c8   :  { %20948 = vtanh.f32 %v8524_v55 }
0x13d2   :  { %v20949_v23 = vpop.eup %20948 }
0x13d3   :  { %v8526_v56 = vmul.f32 %v20949_v23, %v20947_v9 }
0x13d5   :  { %17784 = vmatmul.mubr.msk.f32.vlgmr.msra.gmra.mrb[64].mxu0 %vm674_vm1, %v8526_v56  ;;  %17785 = vmatmul.mubr.msk.f32.vlgmr.msra.gmra.mrb[64].mxu1 %vm674_vm1, %v8526_v56  ;;  %8528 = vst.msk [vmem:[#allocation17] sm:$0x1] %vm8527_vm2, %v8526_v56 }
0x13d6   :  { %19275 = vmatpush1.bf16.msra.mxu0 %v23081_v27  ;;  %19283 = vmatpush1.bf16.msra.mxu1 %v23083_v35 }
0x13d7   :  { %19277 = vmatprep.subr.bf16.mxu0 %v23085_v6  ;;  %19285 = vmatprep.subr.bf16.mxu1 %v23087_v10 }
0x13d8   :  { %8793 = vmatprep.mubr.f32.mxu0 %v24477_v12  ;;  %8864 = vmatprep.mubr.f32.mxu1 %v24477_v12 }
0x13da   :  { %19279 = vmatpush1.bf16.msra.mxu0 %v23093_v20  ;;  %19287 = vmatpush1.bf16.msra.mxu1 %v23095_v47 }
0x13db   :  { %19289 = vmatprep.subr.bf16.mxu0 %v23107_v37  ;;  %19297 = vmatprep.subr.bf16.mxu1 %v23109_v52 }
0x13dd   :  { %8794 = vmatmul.mubr.f32.vlgmr.msra.gmra.mrb[66].mxu0 %v24477_v12  ;;  %8865 = vmatmul.mubr.f32.vlgmr.msra.gmra.mrb[66].mxu1 %v24477_v12 }
0x13de   :  { %9003 = vmatprep.mubr.f32.mxu0 %v24477_v12  ;;  %9074 = vmatprep.mubr.f32.mxu1 %v24477_v12 }
0x13df   :  { %19291 = vmatpush1.bf16.msra.mxu0 %v23111_v26  ;;  %19299 = vmatpush1.bf16.msra.mxu1 %v23114_v60 }
0x13e0   :  { %19293 = vmatprep.subr.bf16.mxu0 %v23118_v14  ;;  %19301 = vmatprep.subr.bf16.mxu1 %v23120_v25 }
0x13e3   :  { %19295 = vmatpush1.bf16.msra.mxu0 %v23123_v53  ;;  %19303 = vmatpush1.bf16.msra.mxu1 %v23127_v58 }
0x13e4   :  { %19305 = vmatprep.subr.bf16.mxu0 %v23129_v63  ;;  %19321 = vmatprep.subr.bf16.mxu1 %v23131_v57 }
0x14a8   :  { %v8636_v55 = vpop.f32.mrb[64].mxu0  ;;  %v8707_v42 = vpop.f32.mrb[64].mxu1 }
0x14a9   :  { %v23144_v22 = vadd.f32 %v8636_v55, %v8550_v30  ;;  %v23146_v49 = vadd.f32 %v8707_v42, %v8558_v29  ;;  %v8638_v8 = vpop.f32.mrb[65].mxu0  ;;  %v8709_v54 = vpop.f32.mrb[65].mxu1  ;;  %v9092_v30 = vld [vmem:[#allocation16 + $0x58] sm:$0xff]  ;;  %v23159_v55 = vpack.c.bf16 %v9085_v45, %v9081_v5  ;;  %v23161_v42 = vpack.c.bf16 %v9087_v3, %v9083_v61  ;;  %v9105_v45 = vld [vmem:[#allocation16 + $0xc0] sm:$0xff] }
0x14aa   :  { %v23148_v17 = vadd.f32 %v8638_v8, %v8554_v51  ;;  %v23150_v38 = vadd.f32 %v8709_v54, %v8562_v1  ;;  %v9096_v29 = vld [vmem:[#allocation16 + $0x78] sm:$0xff]  ;;  %v9089_v8 = vld [vmem:[#allocation16 + $0x40] sm:$0xff] }
0x14ab   :  { %v9093_v54 = vld [vmem:[#allocation16 + $0x60] sm:$0xff] }
0x14b0   :  { %v8795_v59 = vpop.f32.mrb[66].mxu0  ;;  %v8866_v9 = vpop.f32.mrb[66].mxu1 }
0x14b1   :  { %v8871_v23 = vadd.f32 %v8795_v59, %v23144_v22  ;;  %v8797_v36 = vpop.f32.mrb[67].mxu0  ;;  %v8868_v56 = vpop.f32.mrb[67].mxu1  ;;  %v8873_v24 = vadd.f32 %v8866_v9, %v23146_v49  ;;  %v23165_v9 = vpack.c.bf16 %v9094_v4, %v9090_v16  ;;  %v9109_v16 = vld [vmem:[#allocation16 + $0xe0] sm:$0xff]  ;;  %v9107_v4 = vld [vmem:[#allocation16 + $0xd0] sm:$0xff] }
0x14b2   :  { %v8872_v11 = vadd.f32 %v8797_v36, %v23148_v17  ;;  %v8874_v28 = vadd.f32 %v8868_v56, %v23150_v38  ;;  %v9091_v36 = vld [vmem:[#allocation16 + $0x50] sm:$0xff] }
0x14b3   :  { %v17786_v15 = vmul.f32 -1.442695, %v8871_v23  ;;  %v17788_v33 = vmul.f32 -1.442695, %v8873_v24  ;;  %v23167_v23 = vpack.c.bf16 %v9096_v29, %v9092_v30  ;;  %v9095_v56 = vld [vmem:[#allocation16 + $0x70] sm:$0xff]  ;;  %v9104_v24 = vld [vmem:[#allocation16 + $0xb8] sm:$0xff]  ;;  %v23201_v29 = vpack.c.bf16 %v9109_v16, %v9105_v45 }
0x14b4   :  { %v17787_v39 = vmul.f32 -1.442695, %v8872_v11  ;;  %v9098_v11 = vld [vmem:[#allocation16 + $0x88] sm:$0xff]  ;;  %v9111_v30 = vld [vmem:[#allocation16 + $0xf0] sm:$0xff] }
0x14b5   :  { %20950 = vpow2.f32 %v17786_v15  ;;  %v9102_v15 = vld [vmem:[#allocation16 + $0xa8] sm:$0xff] }
0x14b6   :  { %20952 = vpow2.f32 %v17787_v39  ;;  %v9100_v39 = vld [vmem:[#allocation16 + $0x98] sm:$0xff] }
0x14b7   :  { %20954 = vtanh.f32 %v8874_v28  ;;  %v23175_v28 = vpack.c.bf16 %v9093_v54, %v9089_v8 }
0x14b8   :  { %20956 = vpow2.f32 %v17788_v33  ;;  %v23177_v33 = vpack.c.bf16 %v9095_v56, %v9091_v36 }
0x14bf   :  { %v20951_v41 = vpop.eup %20950 }
0x14c0   :  { %v8884_v46 = vadd.f32 1.0, %v20951_v41  ;;  %v20953_v50 = vpop.eup %20952  ;;  %v9097_v41 = vld [vmem:[#allocation16 + $0x80] sm:$0xff] }
0x14c1   :  { %v8885_v40 = vadd.f32 1.0, %v20953_v50  ;;  %v20955_v43 = vpop.eup %20954  ;;  %v23181_v50 = vpack.c.bf16 %v9102_v15, %v9098_v11 }
0x14c2   :  { %20958 = vrcp.f32 %v8884_v46  ;;  %v20957_v44 = vpop.eup %20956  ;;  %v9101_v46 = vld [vmem:[#allocation16 + $0xa0] sm:$0xff] }
0x14c3   :  { %20960 = vrcp.f32 %v8885_v40  ;;  %v8886_v32 = vadd.f32 1.0, %v20957_v44  ;;  %v23183_v40 = vpack.c.bf16 %v9104_v24, %v9100_v39  ;;  %v9103_v44 = vld [vmem:[#allocation16 + $0xb0] sm:$0xff] }
0x14c5   :  { %20962 = vrcp.f32 %v8886_v32  ;;  %v9112_v32 = vld [vmem:[#allocation16 + $0xf8] sm:$0xff] }
0x14cc   :  { %v20959_v0 = vpop.eup %20958 }
0x14cd   :  { %v8895_v2 = vmul.f32 %v20959_v0, %v20955_v43  ;;  %v20961_v13 = vpop.eup %20960  ;;  %v9099_v43 = vld [vmem:[#allocation16 + $0x90] sm:$0xff]  ;;  %v9106_v0 = vld [vmem:[#allocation16 + $0xc8] sm:$0xff] }
0x14ce   :  { %v8894_v34 = vmul.f32 0.0, %v20961_v13  ;;  %v9108_v13 = vld [vmem:[#allocation16 + $0xd8] sm:$0xff]  ;;  %v23191_v5 = vpack.c.bf16 %v9103_v44, %v9099_v43 }
0x14cf   :  { %v20963_v51 = vpop.eup %20962  ;;  %v23197_v3 = vpack.c.bf16 %v9112_v32, %v9108_v13 }
0x14d0   :  { %v23156_v48 = vadd.f32 %v8895_v2, %v8894_v34  ;;  %v9110_v2 = vld [vmem:[#allocation16 + $0xe8] sm:$0xff]  ;;  %v23189_v34 = vpack.c.bf16 %v9101_v46, %v9097_v41 }
0x14d1   :  { %v23195_v61 = vpack.c.bf16 %v9110_v2, %v9106_v0 }
0x14d2   :  { %20964 = vtanh.f32 %v23156_v48 }
0x14dc   :  { %v20965_v1 = vpop.eup %20964 }
0x14dd   :  { %v23163_v59 = vmul.f32 %v20965_v1, %v20963_v51  ;;  %v23203_v51 = vpack.c.bf16 %v9111_v30, %v9107_v4  ;;  %v8712_v1 = vld [vmem:[%s24440_s12] sm:$0xf] }
0x14de   :  { %v23241_v8 = vrot.slane %v8712_v1, %v24547_v19  ;;  %v23244_v54 = vrot.slane %v8712_v1, %v24549_v31  ;;  %v23249_v46 = vrot.slane %v8712_v1, %v24548_v18  ;;  %v23252_v19 = vrot.slane %v8712_v1, %v24550_v62 }
0x14df   :  { %17789 = vmatmul.mubr.msk.f32.vlgmr.msra.gmra.mrb[68].mxu0 %vm674_vm1, %v23163_v59  ;;  %17790 = vmatmul.mubr.msk.f32.vlgmr.msra.gmra.mrb[68].mxu1 %vm674_vm1, %v23163_v59 }
0x14e0   :  { %19307 = vmatpush1.bf16.msra.mxu0 %v23159_v55  ;;  %19323 = vmatpush1.bf16.msra.mxu1 %v23161_v42 }
0x14e1   :  { %19309 = vmatprep.subr.bf16.mxu0 %v23165_v9  ;;  %19325 = vmatprep.subr.bf16.mxu1 %v23167_v23 }
0x14e2   :  { %9177 = vmatprep.mubr.f32.mxu0 %v24477_v12  ;;  %9248 = vmatprep.mubr.f32.mxu1 %v24477_v12 }
0x14e4   :  { %19311 = vmatpush1.bf16.msra.mxu0 %v23175_v28  ;;  %19327 = vmatpush1.bf16.msra.mxu1 %v23177_v33 }
0x14e5   :  { %19313 = vmatprep.subr.bf16.mxu0 %v23181_v50  ;;  %19329 = vmatprep.subr.bf16.mxu1 %v23183_v40 }
0x14e8   :  { %19315 = vmatpush1.bf16.msra.mxu0 %v23189_v34  ;;  %19331 = vmatpush1.bf16.msra.mxu1 %v23191_v5 }
0x14e9   :  { %19317 = vmatprep.subr.bf16.mxu0 %v23195_v61  ;;  %19333 = vmatprep.subr.bf16.mxu1 %v23197_v3 }
0x14ec   :  { %19319 = vmatpush1.bf16.msra.mxu0 %v23201_v29  ;;  %19335 = vmatpush1.bf16.msra.mxu1 %v23203_v51 }
0x14ed   :  { %19337 = vmatprep.subr.bf16.mxu0 %v23070_v7  ;;  %19345 = vmatprep.subr.bf16.mxu1 %v23072_v21 }
0x14ef   :  { %9178 = vmatmul.mubr.f32.vlgmr.msra.gmra.mrb[68].mxu0 %v24477_v12  ;;  %9249 = vmatmul.mubr.f32.vlgmr.msra.gmra.mrb[68].mxu1 %v24477_v12 }
0x14f0   :  { %19339 = vmatpush1.bf16.msra.mxu0 %v23081_v27  ;;  %19347 = vmatpush1.bf16.msra.mxu1 %v23083_v35 }
0x14f1   :  { %19341 = vmatprep.subr.bf16.mxu0 %v23085_v6  ;;  %19349 = vmatprep.subr.bf16.mxu1 %v23087_v10 }
0x14f2   :  { %9364 = vmatprep.mubr.f32.mxu0 %v24477_v12  ;;  %9435 = vmatprep.mubr.f32.mxu1 %v24477_v12 }
0x14f4   :  { %19343 = vmatpush1.bf16.msra.mxu0 %v23093_v20  ;;  %19351 = vmatpush1.bf16.msra.mxu1 %v23095_v47 }
0x14f5   :  { %19353 = vmatprep.subr.bf16.mxu0 %v23107_v37  ;;  %19361 = vmatprep.subr.bf16.mxu1 %v23109_v52 }
0x14f7   :  { %17794 = vmatmul.mubr.msk.f32.vlgmr.msra.gmra.mrb[70].mxu0 %vm674_vm1, %v23163_v59  ;;  %17795 = vmatmul.mubr.msk.f32.vlgmr.msra.gmra.mrb[70].mxu1 %vm674_vm1, %v23163_v59 }
0x14f8   :  { %19355 = vmatpush1.bf16.msra.mxu0 %v23111_v26  ;;  %19363 = vmatpush1.bf16.msra.mxu1 %v23114_v60 }
0x14f9   :  { %19357 = vmatprep.subr.bf16.mxu0 %v23118_v14  ;;  %19365 = vmatprep.subr.bf16.mxu1 %v23120_v25 }
0x14fa   :  { %9553 = vmatprep.mubr.f32.mxu0 %v24477_v12  ;;  %9624 = vmatprep.mubr.f32.mxu1 %v24477_v12 }
0x14fc   :  { %19359 = vmatpush1.bf16.msra.mxu0 %v23123_v53  ;;  %19367 = vmatpush1.bf16.msra.mxu1 %v23127_v58 }
0x14fd   :  { %19369 = vmatprep.subr.bf16.mxu0 %v23129_v63  ;;  %19385 = vmatprep.subr.bf16.mxu1 %v23131_v57 }
0x15c2   :  { %v9179_v59 = vpop.f32.mrb[68].mxu0  ;;  %v9250_v36 = vpop.f32.mrb[68].mxu1 }
0x15c3   :  { %v20360_v56 = vadd.f32 %v9179_v59, %v23241_v8  ;;  %v9181_v11 = vpop.f32.mrb[69].mxu0  ;;  %v9252_v15 = vpop.f32.mrb[69].mxu1  ;;  %v20362_v44 = vadd.f32 %v9250_v36, %v23249_v46 }
0x15c4   :  { %v20361_v39 = vadd.f32 %v9181_v11, %v23244_v54  ;;  %v20363_v16 = vadd.f32 %v9252_v15, %v23252_v19 }
0x15c5   :  { %v17791_v24 = vmul.f32 -1.442695, %v20360_v56  ;;  %v17793_v4 = vmul.f32 -1.442695, %v20362_v44 }
0x15c6   :  { %v17792_v41 = vmul.f32 -1.442695, %v20361_v39 }
0x15c7   :  { %20966 = vpow2.f32 %v17791_v24 }
0x15c8   :  { %20968 = vpow2.f32 %v17792_v41 }
0x15ca   :  { %v9366_v31 = vpop.f32.mrb[70].mxu0  ;;  %v9437_v43 = vpop.f32.mrb[70].mxu1 }
0x15cb   :  { %v9442_v0 = vadd.f32 %v9366_v31, %v23144_v22  ;;  %v9368_v2 = vpop.f32.mrb[71].mxu0  ;;  %v9439_v13 = vpop.f32.mrb[71].mxu1  ;;  %v9444_v59 = vadd.f32 %v9437_v43, %v23146_v49 }
0x15cc   :  { %v9443_v32 = vadd.f32 %v9368_v2, %v23148_v17  ;;  %v9445_v56 = vadd.f32 %v9439_v13, %v23150_v38 }
0x15cd   :  { %v17796_v45 = vmul.f32 -1.442695, %v9442_v0  ;;  %v17798_v11 = vmul.f32 -1.442695, %v9444_v59 }
0x15ce   :  { %v17797_v18 = vmul.f32 -1.442695, %v9443_v32 }
0x15cf   :  { %20970 = vpow2.f32 %v17796_v45 }
0x15d0   :  { %20972 = vpow2.f32 %v17797_v18 }
0x15d1   :  { %v20967_v30 = vpop.eup %20966  ;;  %20974 = vtanh.f32 %v20363_v16 }
0x15d2   :  { %v9268_v62 = vadd.f32 1.0, %v20967_v30  ;;  %v20969_v1 = vpop.eup %20968  ;;  %20976 = vpow2.f32 %v17793_v4 }
0x15d3   :  { %v9269_v36 = vadd.f32 1.0, %v20969_v1 }
0x15d4   :  { %20978 = vrcp.f32 %v9268_v62 }
0x15d5   :  { %20980 = vrcp.f32 %v9269_v36 }
0x15d6   :  { %20982 = vtanh.f32 %v9445_v56 }
0x15d7   :  { %20984 = vpow2.f32 %v17798_v11 }
0x15d9   :  { %v20971_v39 = vpop.eup %20970 }
0x15da   :  { %v9455_v24 = vadd.f32 1.0, %v20971_v39  ;;  %v20973_v15 = vpop.eup %20972 }
0x15db   :  { %v20975_v41 = vpop.eup %20974  ;;  %v9456_v31 = vadd.f32 1.0, %v20973_v15 }
0x15dc   :  { %20986 = vrcp.f32 %v9455_v24  ;;  %v20977_v44 = vpop.eup %20976 }
0x15dd   :  { %20988 = vrcp.f32 %v9456_v31  ;;  %v9270_v43 = vadd.f32 1.0, %v20977_v44 }
0x15de   :  { %v20979_v0 = vpop.eup %20978 }
0x15df   :  { %v9279_v2 = vmul.f32 %v20979_v0, %v20975_v41  ;;  %v20981_v32 = vpop.eup %20980  ;;  %20990 = vrcp.f32 %v9270_v43 }
0x15e0   :  { %v9278_v45 = vmul.f32 0.0, %v20981_v32  ;;  %v20983_v18 = vpop.eup %20982 }
0x15e1   :  { %v20985_v13 = vpop.eup %20984 }
0x15e2   :  { %v23260_v16 = vadd.f32 %v9279_v2, %v9278_v45  ;;  %v9457_v1 = vadd.f32 1.0, %v20985_v13 }
0x15e4   :  { %20992 = vtanh.f32 %v23260_v16 }
0x15e5   :  { %20994 = vrcp.f32 %v9457_v1 }
0x15e6   :  { %v20987_v4 = vpop.eup %20986 }
0x15e7   :  { %v9466_v30 = vmul.f32 %v20987_v4, %v20983_v18  ;;  %v20989_v62 = vpop.eup %20988 }
0x15e8   :  { %v9465_v59 = vmul.f32 %v20989_v62, %v23156_v48 }
0x15e9   :  { %v20991_v56 = vpop.eup %20990 }
0x15ea   :  { %v23264_v36 = vadd.f32 %v9466_v30, %v9465_v59 }
0x15ec   :  { %20996 = vtanh.f32 %v23264_v36 }
0x15ee   :  { %v20993_v11 = vpop.eup %20992 }
0x15ef   :  { %v9282_v39 = vmul.f32 %v20993_v11, %v20991_v56  ;;  %v20995_v24 = vpop.eup %20994 }
0x15f1   :  { %9283 = vst [vmem:[#allocation3] sm:$0x1] %v9282_v39 }
0x15f6   :  { %v20997_v15 = vpop.eup %20996 }
0x15f7   :  { %v9469_v41 = vmul.f32 %v20997_v15, %v20995_v24 }
0x15f9   :  { %17799 = vmatmul.mubr.msk.f32.vlgmr.msra.gmra.mrb[72].mxu0 %vm674_vm1, %v9469_v41  ;;  %17800 = vmatmul.mubr.msk.f32.vlgmr.msra.gmra.mrb[72].mxu1 %vm674_vm1, %v9469_v41 }
0x15fa   :  { %19371 = vmatpush1.bf16.msra.mxu0 %v23159_v55  ;;  %19387 = vmatpush1.bf16.msra.mxu1 %v23161_v42 }
0x15fb   :  { %19373 = vmatprep.subr.bf16.mxu0 %v23165_v9  ;;  %19389 = vmatprep.subr.bf16.mxu1 %v23167_v23 }
0x15fc   :  { %9730 = vmatprep.mubr.f32.mxu0 %v24477_v12  ;;  %9801 = vmatprep.mubr.f32.mxu1 %v24477_v12 }
0x15fe   :  { %19375 = vmatpush1.bf16.msra.mxu0 %v23175_v28  ;;  %19391 = vmatpush1.bf16.msra.mxu1 %v23177_v33 }
0x15ff   :  { %19377 = vmatprep.subr.bf16.mxu0 %v23181_v50  ;;  %19393 = vmatprep.subr.bf16.mxu1 %v23183_v40 }
0x1602   :  { %19379 = vmatpush1.bf16.msra.mxu0 %v23189_v34  ;;  %19395 = vmatpush1.bf16.msra.mxu1 %v23191_v5 }
0x1603   :  { %19381 = vmatprep.subr.bf16.mxu0 %v23195_v61  ;;  %19397 = vmatprep.subr.bf16.mxu1 %v23197_v3 }
0x1606   :  { %19383 = vmatpush1.bf16.msra.mxu0 %v23201_v29  ;;  %19399 = vmatpush1.bf16.msra.mxu1 %v23203_v51 }
0x1607   :  { %19401 = vmatprep.subr.bf16.mxu0 %v23070_v7  ;;  %19409 = vmatprep.subr.bf16.mxu1 %v23072_v21 }
0x1609   :  { %17801 = vmatmul.mubr.msk.f32.vlgmr.msra.gmra.mrb[72].mxu0 %vm264_vm0, %v9282_v39  ;;  %17802 = vmatmul.mubr.msk.f32.vlgmr.msra.gmra.mrb[72].mxu1 %vm264_vm0, %v9282_v39 }
0x160a   :  { %19403 = vmatpush1.bf16.msra.mxu0 %v23081_v27  ;;  %19411 = vmatpush1.bf16.msra.mxu1 %v23083_v35 }
0x160b   :  { %19405 = vmatprep.subr.bf16.mxu0 %v23085_v6  ;;  %19413 = vmatprep.subr.bf16.mxu1 %v23087_v10 }
0x160c   :  { %9917 = vmatprep.mubr.f32.mxu0 %v24477_v12  ;;  %9988 = vmatprep.mubr.f32.mxu1 %v24477_v12 }
0x160e   :  { %19407 = vmatpush1.bf16.msra.mxu0 %v23093_v20  ;;  %19415 = vmatpush1.bf16.msra.mxu1 %v23095_v47 }
0x160f   :  { %19417 = vmatprep.subr.bf16.mxu0 %v23107_v37  ;;  %19425 = vmatprep.subr.bf16.mxu1 %v23109_v52 }
0x1611   :  { %17806 = vmatmul.mubr.msk.f32.vlgmr.msra.gmra.mrb[74].mxu0 %vm674_vm1, %v9469_v41  ;;  %17807 = vmatmul.mubr.msk.f32.vlgmr.msra.gmra.mrb[74].mxu1 %vm674_vm1, %v9469_v41 }
0x1612   :  { %19419 = vmatpush1.bf16.msra.mxu0 %v23111_v26  ;;  %19427 = vmatpush1.bf16.msra.mxu1 %v23114_v60 }
0x1613   :  { %19421 = vmatprep.subr.bf16.mxu0 %v23118_v14  ;;  %19429 = vmatprep.subr.bf16.mxu1 %v23120_v25 }
0x1614   :  { %10106 = vmatprep.mubr.f32.mxu0 %v24477_v12  ;;  %10177 = vmatprep.mubr.f32.mxu1 %v24477_v12 }
0x1616   :  { %19423 = vmatpush1.bf16.msra.mxu0 %v23123_v53  ;;  %19431 = vmatpush1.bf16.msra.mxu1 %v23127_v58 }
0x1617   :  { %19433 = vmatprep.subr.bf16.mxu0 %v23129_v63  ;;  %19449 = vmatprep.subr.bf16.mxu1 %v23131_v57 }
0x16dc   :  { %v9732_v7 = vpop.f32.mrb[72].mxu0  ;;  %v9803_v21 = vpop.f32.mrb[72].mxu1 }
0x16dd   :  { %v20364_v27 = vadd.f32 %v9732_v7, %v23241_v8  ;;  %v9734_v35 = vpop.f32.mrb[73].mxu0  ;;  %v9805_v6 = vpop.f32.mrb[73].mxu1  ;;  %v20366_v26 = vadd.f32 %v9803_v21, %v23249_v46 }
0x16de   :  { %v20365_v10 = vadd.f32 %v9734_v35, %v23244_v54  ;;  %v20367_v63 = vadd.f32 %v9805_v6, %v23252_v19 }
0x16df   :  { %v17803_v20 = vmul.f32 -1.442695, %v20364_v27  ;;  %v17805_v48 = vmul.f32 -1.442695, %v20366_v26 }
0x16e0   :  { %v17804_v47 = vmul.f32 -1.442695, %v20365_v10 }
0x16e1   :  { %20998 = vpow2.f32 %v17803_v20 }
0x16e2   :  { %21000 = vpow2.f32 %v17804_v47 }
0x16e4   :  { %v9919_v37 = vpop.f32.mrb[74].mxu0  ;;  %v9990_v52 = vpop.f32.mrb[74].mxu1 }
0x16e5   :  { %v9995_v60 = vadd.f32 %v9919_v37, %v23144_v22  ;;  %v9921_v14 = vpop.f32.mrb[75].mxu0  ;;  %v9992_v25 = vpop.f32.mrb[75].mxu1  ;;  %v9997_v2 = vadd.f32 %v9990_v52, %v23146_v49 }
0x16e6   :  { %v9996_v53 = vadd.f32 %v9921_v14, %v23148_v17  ;;  %v9998_v43 = vadd.f32 %v9992_v25, %v23150_v38  ;;  %v10393_v14 = vld [vmem:[#allocation13 + $0x18] sm:$0xff]  ;;  %v10399_v25 = vld [vmem:[#allocation13 + $0x48] sm:$0xff] }
0x16e7   :  { %v17808_v58 = vmul.f32 -1.442695, %v9995_v60  ;;  %v17810_v45 = vmul.f32 -1.442695, %v9997_v2  ;;  %v10581_v2 = vld [vmem:[#allocation14 + $0x28] sm:$0xff] }
0x16e8   :  { %v17809_v57 = vmul.f32 -1.442695, %v9996_v53  ;;  %v10403_v53 = vld [vmem:[#allocation13 + $0x68] sm:$0xff] }
0x16e9   :  { %21002 = vpow2.f32 %v17808_v58  ;;  %v10401_v58 = vld [vmem:[#allocation13 + $0x58] sm:$0xff] }
0x16ea   :  { %21004 = vpow2.f32 %v17809_v57 }
0x16eb   :  { %v20999_v31 = vpop.eup %20998  ;;  %21006 = vtanh.f32 %v20367_v63  ;;  %v10405_v63 = vld [vmem:[#allocation13 + $0x78] sm:$0xff] }
0x16ec   :  { %v9821_v44 = vadd.f32 1.0, %v20999_v31  ;;  %v21001_v0 = vpop.eup %21000  ;;  %21008 = vpow2.f32 %v17805_v48  ;;  %v23357_v57 = vpack.c.bf16 %v10405_v63, %v10401_v58  ;;  %v10402_v48 = vld [vmem:[#allocation13 + $0x60] sm:$0xff]  ;;  %v10400_v31 = vld [vmem:[#allocation13 + $0x50] sm:$0xff] }
0x16ed   :  { %v9822_v32 = vadd.f32 1.0, %v21001_v0  ;;  %v10577_v0 = vld [vmem:[#allocation14 + $0x8] sm:$0xff] }
0x16ee   :  { %21010 = vrcp.f32 %v9821_v44  ;;  %v10404_v44 = vld [vmem:[#allocation13 + $0x70] sm:$0xff] }
0x16ef   :  { %21012 = vrcp.f32 %v9822_v32  ;;  %v10579_v32 = vld [vmem:[#allocation14 + $0x18] sm:$0xff] }
0x16f0   :  { %21014 = vtanh.f32 %v9998_v43  ;;  %v23377_v43 = vpack.c.bf16 %v10581_v2, %v10577_v0 }
0x16f1   :  { %21016 = vpow2.f32 %v17810_v45  ;;  %v10583_v45 = vld [vmem:[#allocation14 + $0x38] sm:$0xff] }
0x16f3   :  { %v21003_v18 = vpop.eup %21002 }
0x16f4   :  { %v10008_v13 = vadd.f32 1.0, %v21003_v18  ;;  %v21005_v4 = vpop.eup %21004  ;;  %v10576_v18 = vld [vmem:[#allocation14] sm:$0xff] }
0x16f5   :  { %v21007_v30 = vpop.eup %21006  ;;  %v10009_v62 = vadd.f32 1.0, %v21005_v4  ;;  %v23379_v4 = vpack.c.bf16 %v10583_v45, %v10579_v32 }
0x16f6   :  { %21018 = vrcp.f32 %v10008_v13  ;;  %v21009_v1 = vpop.eup %21008  ;;  %v10580_v13 = vld [vmem:[#allocation14 + $0x20] sm:$0xff] }
0x16f7   :  { %21020 = vrcp.f32 %v10009_v62  ;;  %v9823_v39 = vadd.f32 1.0, %v21009_v1  ;;  %v10578_v62 = vld [vmem:[#allocation14 + $0x10] sm:$0xff] }
0x16f8   :  { %v21011_v59 = vpop.eup %21010  ;;  %v10582_v1 = vld [vmem:[#allocation14 + $0x30] sm:$0xff] }
0x16f9   :  { %v9832_v56 = vmul.f32 %v21011_v59, %v21007_v30  ;;  %v21013_v11 = vpop.eup %21012  ;;  %21022 = vrcp.f32 %v9823_v39  ;;  %v23381_v30 = vpack.c.bf16 %v10580_v13, %v10576_v18  ;;  %v10585_v59 = vld [vmem:[#allocation14 + $0x48] sm:$0xff]  ;;  %v10587_v39 = vld [vmem:[#allocation14 + $0x58] sm:$0xff] }
0x16fa   :  { %v9831_v24 = vmul.f32 %v21013_v11, %v23260_v16  ;;  %v21015_v41 = vpop.eup %21014  ;;  %v10589_v11 = vld [vmem:[#allocation14 + $0x68] sm:$0xff] }
0x16fb   :  { %v21017_v7 = vpop.eup %21016 }
0x16fc   :  { %v23320_v15 = vadd.f32 %v9832_v56, %v9831_v24  ;;  %v10010_v6 = vadd.f32 1.0, %v21017_v7  ;;  %v23384_v56 = vpack.c.bf16 %v10582_v1, %v10578_v62  ;;  %v10591_v24 = vld [vmem:[#allocation14 + $0x78] sm:$0xff] }
0x16fd   :  { %v23390_v7 = vpack.c.bf16 %v10591_v24, %v10587_v39 }
0x16fe   :  { %21024 = vtanh.f32 %v23320_v15 }
0x16ff   :  { %21026 = vrcp.f32 %v10010_v6 }
0x1700   :  { %v21019_v21 = vpop.eup %21018 }
0x1701   :  { %v10019_v27 = vmul.f32 %v21019_v21, %v21015_v41  ;;  %v21021_v35 = vpop.eup %21020  ;;  %v23388_v41 = vpack.c.bf16 %v10589_v11, %v10585_v59  ;;  %v10584_v21 = vld [vmem:[#allocation14 + $0x40] sm:$0xff] }
0x1702   :  { %v10018_v10 = vmul.f32 %v21021_v35, %v23264_v36  ;;  %v10391_v36 = vld [vmem:[#allocation13 + $0x8] sm:$0xff]  ;;  %v10586_v35 = vld [vmem:[#allocation14 + $0x50] sm:$0xff] }
0x1703   :  { %v21023_v47 = vpop.eup %21022 }
0x1704   :  { %v23324_v20 = vadd.f32 %v10019_v27, %v10018_v10  ;;  %v10588_v27 = vld [vmem:[#allocation14 + $0x60] sm:$0xff]  ;;  %v10590_v10 = vld [vmem:[#allocation14 + $0x70] sm:$0xff] }
0x1705   :  { %v23393_v6 = vpack.c.bf16 %v10588_v27, %v10584_v21 }
0x1706   :  { %21028 = vtanh.f32 %v23324_v20 }
0x1708   :  { %v21025_v16 = vpop.eup %21024 }
0x1709   :  { %v9835_v37 = vmul.f32 %v21025_v16, %v21023_v47  ;;  %v21027_v52 = vpop.eup %21026  ;;  %v10738_v47 = vld [vmem:[#allocation16 + $0x8] sm:$0xff] }
0x170a   :  { %v10742_v16 = vld [vmem:[#allocation16 + $0x28] sm:$0xff] }
0x170b   :  { %9836 = vst [vmem:[#allocation3 + $0x1] sm:$0x1] %v9835_v37 }
0x1710   :  { %v21029_v26 = vpop.eup %21028 }
0x1711   :  { %v10022_v60 = vmul.f32 %v21029_v26, %v21027_v52  ;;  %v23399_v52 = vpack.c.bf16 %v10742_v16, %v10738_v47  ;;  %v10740_v26 = vld [vmem:[#allocation16 + $0x18] sm:$0xff] }
0x1713   :  { %17811 = vmatmul.mubr.msk.f32.vlgmr.msra.gmra.mrb[76].mxu0 %vm674_vm1, %v10022_v60  ;;  %17812 = vmatmul.mubr.msk.f32.vlgmr.msra.gmra.mrb[76].mxu1 %vm674_vm1, %v10022_v60 }
0x1714   :  { %19435 = vmatpush1.bf16.msra.mxu0 %v23159_v55  ;;  %19451 = vmatpush1.bf16.msra.mxu1 %v23161_v42  ;;  %v10395_v55 = vld [vmem:[#allocation13 + $0x28] sm:$0xff]  ;;  %v10397_v42 = vld [vmem:[#allocation13 + $0x38] sm:$0xff] }
0x1715   :  { %19437 = vmatprep.subr.bf16.mxu0 %v23165_v9  ;;  %19453 = vmatprep.subr.bf16.mxu1 %v23167_v23  ;;  %v10390_v9 = vld [vmem:[#allocation13] sm:$0xff] }
0x1716   :  { %10283 = vmatprep.mubr.f32.mxu0 %v24477_v12  ;;  %10354 = vmatprep.mubr.f32.mxu1 %v24477_v12  ;;  %v10394_v23 = vld [vmem:[#allocation13 + $0x20] sm:$0xff] }
0x1718   :  { %19439 = vmatpush1.bf16.msra.mxu0 %v23175_v28  ;;  %19455 = vmatpush1.bf16.msra.mxu1 %v23177_v33  ;;  %v23343_v28 = vpack.c.bf16 %v10395_v55, %v10391_v36  ;;  %v23345_v33 = vpack.c.bf16 %v10397_v42, %v10393_v14 }
0x1719   :  { %19441 = vmatprep.subr.bf16.mxu0 %v23181_v50  ;;  %19457 = vmatprep.subr.bf16.mxu1 %v23183_v40  ;;  %v10392_v50 = vld [vmem:[#allocation13 + $0x10] sm:$0xff] }
0x171a   :  { %v10396_v40 = vld [vmem:[#allocation13 + $0x30] sm:$0xff] }
0x171c   :  { %19443 = vmatpush1.bf16.msra.mxu0 %v23189_v34  ;;  %19459 = vmatpush1.bf16.msra.mxu1 %v23191_v5  ;;  %v23349_v34 = vpack.c.bf16 %v10394_v23, %v10390_v9  ;;  %v23351_v5 = vpack.c.bf16 %v10396_v40, %v10392_v50 }
0x171d   :  { %19445 = vmatprep.subr.bf16.mxu0 %v23195_v61  ;;  %19461 = vmatprep.subr.bf16.mxu1 %v23197_v3  ;;  %v10398_v61 = vld [vmem:[#allocation13 + $0x40] sm:$0xff]  ;;  %v23355_v3 = vpack.c.bf16 %v10403_v53, %v10399_v25 }
0x1720   :  { %19447 = vmatpush1.bf16.msra.mxu0 %v23201_v29  ;;  %19463 = vmatpush1.bf16.msra.mxu1 %v23203_v51  ;;  %v23363_v29 = vpack.c.bf16 %v10402_v48, %v10398_v61  ;;  %v23365_v51 = vpack.c.bf16 %v10404_v44, %v10400_v31 }
0x1721   :  { %19465 = vmatprep.subr.bf16.mxu0 %v23343_v28  ;;  %19473 = vmatprep.subr.bf16.mxu1 %v23345_v33 }
0x1723   :  { %17813 = vmatmul.mubr.msk.f32.vlgmr.msra.gmra.mrb[76].mxu0 %vm264_vm0, %v9835_v37  ;;  %17814 = vmatmul.mubr.msk.f32.vlgmr.msra.gmra.mrb[76].mxu1 %vm264_vm0, %v9835_v37  ;;  %v23397_v37 = vpack.c.bf16 %v10590_v10, %v10586_v35 }
0x1724   :  { %19467 = vmatpush1.bf16.msra.mxu0 %v23349_v34  ;;  %19475 = vmatpush1.bf16.msra.mxu1 %v23351_v5 }
0x1725   :  { %19469 = vmatprep.subr.bf16.mxu0 %v23355_v3  ;;  %19477 = vmatprep.subr.bf16.mxu1 %v23357_v57 }
0x1726   :  { %10470 = vmatprep.mubr.f32.mxu0 %v24477_v12  ;;  %10541 = vmatprep.mubr.f32.mxu1 %v24477_v12 }
0x1728   :  { %19471 = vmatpush1.bf16.msra.mxu0 %v23363_v29  ;;  %19479 = vmatpush1.bf16.msra.mxu1 %v23365_v51 }
0x1729   :  { %19481 = vmatprep.subr.bf16.mxu0 %v23377_v43  ;;  %19489 = vmatprep.subr.bf16.mxu1 %v23379_v4 }
0x172b   :  { %17818 = vmatmul.mubr.msk.f32.vlgmr.msra.gmra.mrb[78].mxu0 %vm674_vm1, %v10022_v60  ;;  %17819 = vmatmul.mubr.msk.f32.vlgmr.msra.gmra.mrb[78].mxu1 %vm674_vm1, %v10022_v60  ;;  %v10744_v60 = vld [vmem:[#allocation16 + $0x38] sm:$0xff] }
0x172c   :  { %10659 = vmatprep.mubr.f32.mxu0 %v24477_v12  ;;  %10730 = vmatprep.mubr.f32.mxu1 %v24477_v12  ;;  %v23401_v36 = vpack.c.bf16 %v10744_v60, %v10740_v26 }
0x172d   :  { %19483 = vmatpush1.bf16.msra.mxu0 %v23381_v30  ;;  %19491 = vmatpush1.bf16.msra.mxu1 %v23384_v56 }
0x172e   :  { %19485 = vmatprep.subr.bf16.mxu0 %v23388_v41  ;;  %19493 = vmatprep.subr.bf16.mxu1 %v23390_v7 }
0x1731   :  { %19487 = vmatpush1.bf16.msra.mxu0 %v23393_v6  ;;  %19495 = vmatpush1.bf16.msra.mxu1 %v23397_v37 }
0x1732   :  { %19497 = vmatprep.subr.bf16.mxu0 %v23399_v52  ;;  %19513 = vmatprep.subr.bf16.mxu1 %v23401_v36 }
0x17f6   :  { %v10285_v55 = vpop.f32.mrb[76].mxu0  ;;  %v10356_v14 = vpop.f32.mrb[76].mxu1 }
0x17f7   :  { %v20368_v42 = vadd.f32 %v10285_v55, %v23241_v8  ;;  %v10287_v9 = vpop.f32.mrb[77].mxu0  ;;  %v10358_v23 = vpop.f32.mrb[77].mxu1  ;;  %v20370_v63 = vadd.f32 %v10356_v14, %v23249_v46 }
0x17f8   :  { %v20369_v50 = vadd.f32 %v10287_v9, %v23244_v54  ;;  %v20371_v2 = vadd.f32 %v10358_v23, %v23252_v19 }
0x17f9   :  { %v17815_v40 = vmul.f32 -1.442695, %v20368_v42  ;;  %v17817_v45 = vmul.f32 -1.442695, %v20370_v63 }
0x17fa   :  { %v17816_v25 = vmul.f32 -1.442695, %v20369_v50 }
0x17fb   :  { %21030 = vpow2.f32 %v17815_v40 }
0x17fc   :  { %21032 = vpow2.f32 %v17816_v25 }
0x17fe   :  { %v10472_v53 = vpop.f32.mrb[78].mxu0  ;;  %v10543_v58 = vpop.f32.mrb[78].mxu1 }
0x17ff   :  { %v10548_v61 = vadd.f32 %v10472_v53, %v23144_v22  ;;  %v10474_v48 = vpop.f32.mrb[79].mxu0  ;;  %v10545_v31 = vpop.f32.mrb[79].mxu1  ;;  %v10550_v1 = vadd.f32 %v10543_v58, %v23146_v49 }
0x1800   :  { %v10549_v44 = vadd.f32 %v10474_v48, %v23148_v17  ;;  %v10551_v11 = vadd.f32 %v10545_v31, %v23150_v38  ;;  %v10737_v31 = vld [vmem:[#allocation16] sm:$0xff] }
0x1801   :  { %v17820_v0 = vmul.f32 -1.442695, %v10548_v61  ;;  %v17822_v39 = vmul.f32 -1.442695, %v10550_v1 }
0x1802   :  { %v17821_v32 = vmul.f32 -1.442695, %v10549_v44  ;;  %v10741_v44 = vld [vmem:[#allocation16 + $0x20] sm:$0xff] }
0x1803   :  { %21034 = vpow2.f32 %v17820_v0  ;;  %v10739_v0 = vld [vmem:[#allocation16 + $0x10] sm:$0xff]  ;;  %v23426_v1 = vpack.c.bf16 %v10741_v44, %v10737_v31  ;;  %v10768_v31 = vld [vmem:[#allocation16 + $0xf8] sm:$0xff] }
0x1804   :  { %21036 = vpow2.f32 %v17821_v32  ;;  %v10746_v32 = vld [vmem:[#allocation16 + $0x48] sm:$0xff] }
0x1805   :  { %v21031_v18 = vpop.eup %21030  ;;  %21038 = vtanh.f32 %v20371_v2  ;;  %v10743_v2 = vld [vmem:[#allocation16 + $0x30] sm:$0xff] }
0x1806   :  { %v10374_v13 = vadd.f32 1.0, %v21031_v18  ;;  %v21033_v62 = vpop.eup %21032  ;;  %21040 = vpow2.f32 %v17817_v45  ;;  %v10750_v45 = vld [vmem:[#allocation16 + $0x68] sm:$0xff]  ;;  %v10748_v18 = vld [vmem:[#allocation16 + $0x58] sm:$0xff] }
0x1807   :  { %v10375_v59 = vadd.f32 1.0, %v21033_v62 }
0x1808   :  { %21042 = vrcp.f32 %v10374_v13  ;;  %v10752_v13 = vld [vmem:[#allocation16 + $0x78] sm:$0xff] }
0x1809   :  { %21044 = vrcp.f32 %v10375_v59  ;;  %v23428_v59 = vpack.c.bf16 %v10743_v2, %v10739_v0  ;;  %v10761_v2 = vld [vmem:[#allocation16 + $0xc0] sm:$0xff] }
0x180a   :  { %21046 = vtanh.f32 %v10551_v11  ;;  %v10745_v11 = vld [vmem:[#allocation16 + $0x40] sm:$0xff] }
0x180b   :  { %21048 = vpow2.f32 %v17822_v39  ;;  %v10749_v39 = vld [vmem:[#allocation16 + $0x60] sm:$0xff] }
0x180d   :  { %v21035_v24 = vpop.eup %21034 }
0x180e   :  { %v10561_v21 = vadd.f32 1.0, %v21035_v24  ;;  %v21037_v27 = vpop.eup %21036 }
0x180f   :  { %v21039_v35 = vpop.eup %21038  ;;  %v10562_v10 = vadd.f32 1.0, %v21037_v27  ;;  %v23434_v27 = vpack.c.bf16 %v10752_v13, %v10748_v18  ;;  %v10765_v18 = vld [vmem:[#allocation16 + $0xe0] sm:$0xff]  ;;  %v10763_v13 = vld [vmem:[#allocation16 + $0xd0] sm:$0xff] }
0x1810   :  { %21050 = vrcp.f32 %v10561_v21  ;;  %v21041_v47 = vpop.eup %21040  ;;  %v23432_v21 = vpack.c.bf16 %v10750_v45, %v10746_v32 }
0x1811   :  { %21052 = vrcp.f32 %v10562_v10  ;;  %v10376_v55 = vadd.f32 1.0, %v21041_v47  ;;  %v10751_v10 = vld [vmem:[#allocation16 + $0x70] sm:$0xff]  ;;  %v10754_v47 = vld [vmem:[#allocation16 + $0x88] sm:$0xff] }
0x1812   :  { %v21043_v16 = vpop.eup %21042 }
0x1813   :  { %v10385_v26 = vmul.f32 %v21043_v16, %v21039_v35  ;;  %v21045_v60 = vpop.eup %21044  ;;  %21054 = vrcp.f32 %v10376_v55  ;;  %v10747_v35 = vld [vmem:[#allocation16 + $0x50] sm:$0xff]  ;;  %v10758_v16 = vld [vmem:[#allocation16 + $0xa8] sm:$0xff]  ;;  %v23442_v55 = vpack.c.bf16 %v10749_v39, %v10745_v11 }
0x1814   :  { %v10384_v14 = vmul.f32 %v21045_v60, %v23320_v15  ;;  %v21047_v9 = vpop.eup %21046  ;;  %v10760_v60 = vld [vmem:[#allocation16 + $0xb8] sm:$0xff] }
0x1815   :  { %v21049_v23 = vpop.eup %21048 }
0x1816   :  { %v23416_v42 = vadd.f32 %v10385_v26, %v10384_v14  ;;  %v10563_v53 = vadd.f32 1.0, %v21049_v23  ;;  %v10756_v26 = vld [vmem:[#allocation16 + $0x98] sm:$0xff]  ;;  %v23444_v14 = vpack.c.bf16 %v10751_v10, %v10747_v35  ;;  %v10757_v23 = vld [vmem:[#allocation16 + $0xa0] sm:$0xff] }
0x1818   :  { %21056 = vtanh.f32 %v23416_v42 }
0x1819   :  { %21058 = vrcp.f32 %v10563_v53  ;;  %v10759_v53 = vld [vmem:[#allocation16 + $0xb0] sm:$0xff] }
0x181a   :  { %v21051_v50 = vpop.eup %21050 }
0x181b   :  { %v10572_v40 = vmul.f32 %v21051_v50, %v21047_v9  ;;  %v21053_v25 = vpop.eup %21052  ;;  %v10753_v9 = vld [vmem:[#allocation16 + $0x80] sm:$0xff]  ;;  %v23448_v50 = vpack.c.bf16 %v10758_v16, %v10754_v47 }
0x181c   :  { %v10571_v58 = vmul.f32 %v21053_v25, %v23324_v20  ;;  %v10755_v25 = vld [vmem:[#allocation16 + $0x90] sm:$0xff]  ;;  %v23456_v44 = vpack.c.bf16 %v10757_v23, %v10753_v9 }
0x181d   :  { %v21055_v61 = vpop.eup %21054  ;;  %v23458_v0 = vpack.c.bf16 %v10759_v53, %v10755_v25 }
0x181e   :  { %v23420_v63 = vadd.f32 %v10572_v40, %v10571_v58  ;;  %v23450_v40 = vpack.c.bf16 %v10760_v60, %v10756_v26  ;;  %v10762_v58 = vld [vmem:[#allocation16 + $0xc8] sm:$0xff] }
0x1820   :  { %21060 = vtanh.f32 %v23420_v63 }
0x1822   :  { %v21057_v15 = vpop.eup %21056 }
0x1823   :  { %v23423_v48 = vmul.f32 %v21057_v15, %v21055_v61  ;;  %v21059_v20 = vpop.eup %21058  ;;  %v10766_v61 = vld [vmem:[#allocation16 + $0xe8] sm:$0xff]  ;;  %v10764_v15 = vld [vmem:[#allocation16 + $0xd8] sm:$0xff] }
0x1824   :  { %v23462_v32 = vpack.c.bf16 %v10766_v61, %v10762_v58  ;;  %v23464_v45 = vpack.c.bf16 %v10768_v31, %v10764_v15 }
0x1825   :  { %10389 = vst [vmem:[#allocation3 + $0x2] sm:$0x1] %v23423_v48 }
0x182a   :  { %v21061_v62 = vpop.eup %21060 }
0x182b   :  { %v23430_v24 = vmul.f32 %v21061_v62, %v21059_v20  ;;  %v10767_v20 = vld [vmem:[#allocation16 + $0xf0] sm:$0xff]  ;;  %v23468_v62 = vpack.c.bf16 %v10765_v18, %v10761_v2 }
0x182c   :  { %v23470_v11 = vpack.c.bf16 %v10767_v20, %v10763_v13 }
0x182d   :  { %17823 = vmatmul.mubr.msk.f32.vlgmr.msra.gmra.mrb[80].mxu0 %vm674_vm1, %v23430_v24  ;;  %17824 = vmatmul.mubr.msk.f32.vlgmr.msra.gmra.mrb[80].mxu1 %vm674_vm1, %v23430_v24 }
0x182e   :  { %19499 = vmatpush1.bf16.msra.mxu0 %v23426_v1  ;;  %19515 = vmatpush1.bf16.msra.mxu1 %v23428_v59 }
0x182f   :  { %19501 = vmatprep.subr.bf16.mxu0 %v23432_v21  ;;  %19517 = vmatprep.subr.bf16.mxu1 %v23434_v27 }
0x1830   :  { %10836 = vmatprep.mubr.f32.mxu0 %v24477_v12  ;;  %10907 = vmatprep.mubr.f32.mxu1 %v24477_v12 }
0x1832   :  { %19503 = vmatpush1.bf16.msra.mxu0 %v23442_v55  ;;  %19519 = vmatpush1.bf16.msra.mxu1 %v23444_v14 }
0x1833   :  { %19505 = vmatprep.subr.bf16.mxu0 %v23448_v50  ;;  %19521 = vmatprep.subr.bf16.mxu1 %v23450_v40 }
0x1836   :  { %19507 = vmatpush1.bf16.msra.mxu0 %v23456_v44  ;;  %19523 = vmatpush1.bf16.msra.mxu1 %v23458_v0 }
0x1837   :  { %19509 = vmatprep.subr.bf16.mxu0 %v23462_v32  ;;  %19525 = vmatprep.subr.bf16.mxu1 %v23464_v45 }
0x183a   :  { %19511 = vmatpush1.bf16.msra.mxu0 %v23468_v62  ;;  %19527 = vmatpush1.bf16.msra.mxu1 %v23470_v11 }
0x183b   :  { %19529 = vmatprep.subr.bf16.mxu0 %v23343_v28  ;;  %19537 = vmatprep.subr.bf16.mxu1 %v23345_v33 }
0x183d   :  { %17825 = vmatmul.mubr.msk.f32.vlgmr.msra.gmra.mrb[80].mxu0 %vm264_vm0, %v23423_v48  ;;  %17826 = vmatmul.mubr.msk.f32.vlgmr.msra.gmra.mrb[80].mxu1 %vm264_vm0, %v23423_v48 }
0x183e   :  { %19531 = vmatpush1.bf16.msra.mxu0 %v23349_v34  ;;  %19539 = vmatpush1.bf16.msra.mxu1 %v23351_v5 }
0x183f   :  { %19533 = vmatprep.subr.bf16.mxu0 %v23355_v3  ;;  %19541 = vmatprep.subr.bf16.mxu1 %v23357_v57 }
0x1840   :  { %11023 = vmatprep.mubr.f32.mxu0 %v24477_v12  ;;  %11094 = vmatprep.mubr.f32.mxu1 %v24477_v12 }
0x1842   :  { %19535 = vmatpush1.bf16.msra.mxu0 %v23363_v29  ;;  %19543 = vmatpush1.bf16.msra.mxu1 %v23365_v51 }
0x1843   :  { %19545 = vmatprep.subr.bf16.mxu0 %v23377_v43  ;;  %19553 = vmatprep.subr.bf16.mxu1 %v23379_v4 }
0x1845   :  { %17830 = vmatmul.mubr.msk.f32.vlgmr.msra.gmra.mrb[82].mxu0 %vm674_vm1, %v23430_v24  ;;  %17831 = vmatmul.mubr.msk.f32.vlgmr.msra.gmra.mrb[82].mxu1 %vm674_vm1, %v23430_v24 }
0x1846   :  { %19547 = vmatpush1.bf16.msra.mxu0 %v23381_v30  ;;  %19555 = vmatpush1.bf16.msra.mxu1 %v23384_v56 }
0x1847   :  { %19549 = vmatprep.subr.bf16.mxu0 %v23388_v41  ;;  %19557 = vmatprep.subr.bf16.mxu1 %v23390_v7 }
0x1848   :  { %11212 = vmatprep.mubr.f32.mxu0 %v24477_v12  ;;  %11283 = vmatprep.mubr.f32.mxu1 %v24477_v12 }
0x184a   :  { %19551 = vmatpush1.bf16.msra.mxu0 %v23393_v6  ;;  %19559 = vmatpush1.bf16.msra.mxu1 %v23397_v37 }
0x184b   :  { %19561 = vmatprep.subr.bf16.mxu0 %v23399_v52  ;;  %19577 = vmatprep.subr.bf16.mxu1 %v23401_v36 }
0x1910   :  { %v10838_v48 = vpop.f32.mrb[80].mxu0  ;;  %v10909_v39 = vpop.f32.mrb[80].mxu1 }
0x1911   :  { %v20372_v24 = vadd.f32 %v10838_v48, %v23241_v8  ;;  %v10840_v35 = vpop.f32.mrb[81].mxu0  ;;  %v10911_v10 = vpop.f32.mrb[81].mxu1  ;;  %v20374_v23 = vadd.f32 %v10909_v39, %v23249_v46 }
0x1912   :  { %v20373_v47 = vadd.f32 %v10840_v35, %v23244_v54  ;;  %v20375_v31 = vadd.f32 %v10911_v10, %v23252_v19 }
0x1913   :  { %v17827_v16 = vmul.f32 -1.442695, %v20372_v24  ;;  %v17829_v18 = vmul.f32 -1.442695, %v20374_v23 }
0x1914   :  { %v17828_v26 = vmul.f32 -1.442695, %v20373_v47 }
0x1915   :  { %21062 = vpow2.f32 %v17827_v16 }
0x1916   :  { %21064 = vpow2.f32 %v17828_v26 }
0x1918   :  { %v11025_v60 = vpop.f32.mrb[82].mxu0  ;;  %v11096_v9 = vpop.f32.mrb[82].mxu1 }
0x1919   :  { %v11101_v25 = vadd.f32 %v11025_v60, %v23144_v22  ;;  %v11027_v53 = vpop.f32.mrb[83].mxu0  ;;  %v11098_v58 = vpop.f32.mrb[83].mxu1  ;;  %v11103_v39 = vadd.f32 %v11096_v9, %v23146_v49 }
0x191a   :  { %v11102_v61 = vadd.f32 %v11027_v53, %v23148_v17  ;;  %v11104_v35 = vadd.f32 %v11098_v58, %v23150_v38 }
0x191b   :  { %v17832_v15 = vmul.f32 -1.442695, %v11101_v25  ;;  %v17834_v47 = vmul.f32 -1.442695, %v11103_v39 }
0x191c   :  { %v17833_v2 = vmul.f32 -1.442695, %v11102_v61 }
0x191d   :  { %21066 = vpow2.f32 %v17832_v15 }
0x191e   :  { %21068 = vpow2.f32 %v17833_v2 }
0x191f   :  { %v21063_v13 = vpop.eup %21062  ;;  %21070 = vtanh.f32 %v20375_v31 }
0x1920   :  { %v10927_v20 = vadd.f32 1.0, %v21063_v13  ;;  %v21065_v48 = vpop.eup %21064  ;;  %21072 = vpow2.f32 %v17829_v18 }
0x1921   :  { %v10928_v24 = vadd.f32 1.0, %v21065_v48 }
0x1922   :  { %21074 = vrcp.f32 %v10927_v20 }
0x1923   :  { %21076 = vrcp.f32 %v10928_v24 }
0x1924   :  { %21078 = vtanh.f32 %v11104_v35 }
0x1925   :  { %21080 = vpow2.f32 %v17834_v47 }
0x1927   :  { %v21067_v16 = vpop.eup %21066 }
0x1928   :  { %v11114_v26 = vadd.f32 1.0, %v21067_v16  ;;  %v21069_v10 = vpop.eup %21068 }
0x1929   :  { %v21071_v60 = vpop.eup %21070  ;;  %v11115_v23 = vadd.f32 1.0, %v21069_v10 }
0x192a   :  { %21082 = vrcp.f32 %v11114_v26  ;;  %v21073_v25 = vpop.eup %21072 }
0x192b   :  { %21084 = vrcp.f32 %v11115_v23  ;;  %v10929_v9 = vadd.f32 1.0, %v21073_v25 }
0x192c   :  { %v21075_v53 = vpop.eup %21074 }
0x192d   :  { %v10938_v61 = vmul.f32 %v21075_v53, %v21071_v60  ;;  %v21077_v15 = vpop.eup %21076  ;;  %21086 = vrcp.f32 %v10929_v9 }
0x192e   :  { %v10937_v31 = vmul.f32 %v21077_v15, %v23416_v42  ;;  %v21079_v58 = vpop.eup %21078 }
0x192f   :  { %v21081_v18 = vpop.eup %21080 }
0x1930   :  { %v23515_v2 = vadd.f32 %v10938_v61, %v10937_v31  ;;  %v11116_v39 = vadd.f32 1.0, %v21081_v18 }
0x1932   :  { %21088 = vtanh.f32 %v23515_v2 }
0x1933   :  { %21090 = vrcp.f32 %v11116_v39 }
0x1934   :  { %v21083_v13 = vpop.eup %21082 }
0x1935   :  { %v11125_v20 = vmul.f32 %v21083_v13, %v21079_v58  ;;  %v21085_v48 = vpop.eup %21084 }
0x1936   :  { %v11124_v24 = vmul.f32 %v21085_v48, %v23420_v63 }
0x1937   :  { %v21087_v47 = vpop.eup %21086 }
0x1938   :  { %v23519_v35 = vadd.f32 %v11125_v20, %v11124_v24 }
0x193a   :  { %21092 = vtanh.f32 %v23519_v35 }
0x193c   :  { %v21089_v42 = vpop.eup %21088 }
0x193d   :  { %v10941_v16 = vmul.f32 %v21089_v42, %v21087_v47  ;;  %v21091_v26 = vpop.eup %21090 }
0x193f   :  { %10942 = vst [vmem:[#allocation3 + $0x3] sm:$0x1] %v10941_v16 }
0x1944   :  { %v21093_v10 = vpop.eup %21092 }
0x1945   :  { %v11128_v60 = vmul.f32 %v21093_v10, %v21091_v26 }
0x1947   :  { %17835 = vmatmul.mubr.msk.f32.vlgmr.msra.gmra.mrb[84].mxu0 %vm674_vm1, %v11128_v60  ;;  %17836 = vmatmul.mubr.msk.f32.vlgmr.msra.gmra.mrb[84].mxu1 %vm674_vm1, %v11128_v60 }
0x1948   :  { %19563 = vmatpush1.bf16.msra.mxu0 %v23426_v1  ;;  %19579 = vmatpush1.bf16.msra.mxu1 %v23428_v59 }
0x1949   :  { %19565 = vmatprep.subr.bf16.mxu0 %v23432_v21  ;;  %19581 = vmatprep.subr.bf16.mxu1 %v23434_v27 }
0x194a   :  { %11389 = vmatprep.mubr.f32.mxu0 %v24477_v12  ;;  %11460 = vmatprep.mubr.f32.mxu1 %v24477_v12 }
0x194c   :  { %19567 = vmatpush1.bf16.msra.mxu0 %v23442_v55  ;;  %19583 = vmatpush1.bf16.msra.mxu1 %v23444_v14 }
0x194d   :  { %19569 = vmatprep.subr.bf16.mxu0 %v23448_v50  ;;  %19585 = vmatprep.subr.bf16.mxu1 %v23450_v40 }
0x1950   :  { %19571 = vmatpush1.bf16.msra.mxu0 %v23456_v44  ;;  %19587 = vmatpush1.bf16.msra.mxu1 %v23458_v0 }
0x1951   :  { %19573 = vmatprep.subr.bf16.mxu0 %v23462_v32  ;;  %19589 = vmatprep.subr.bf16.mxu1 %v23464_v45 }
0x1954   :  { %19575 = vmatpush1.bf16.msra.mxu0 %v23468_v62  ;;  %19591 = vmatpush1.bf16.msra.mxu1 %v23470_v11 }
0x1955   :  { %19593 = vmatprep.subr.bf16.mxu0 %v23343_v28  ;;  %19601 = vmatprep.subr.bf16.mxu1 %v23345_v33 }
0x1957   :  { %17837 = vmatmul.mubr.msk.f32.vlgmr.msra.gmra.mrb[84].mxu0 %vm264_vm0, %v10941_v16  ;;  %17838 = vmatmul.mubr.msk.f32.vlgmr.msra.gmra.mrb[84].mxu1 %vm264_vm0, %v10941_v16 }
0x1958   :  { %19595 = vmatpush1.bf16.msra.mxu0 %v23349_v34  ;;  %19603 = vmatpush1.bf16.msra.mxu1 %v23351_v5 }
0x1959   :  { %19597 = vmatprep.subr.bf16.mxu0 %v23355_v3  ;;  %19605 = vmatprep.subr.bf16.mxu1 %v23357_v57 }
0x195a   :  { %11576 = vmatprep.mubr.f32.mxu0 %v24477_v12  ;;  %11647 = vmatprep.mubr.f32.mxu1 %v24477_v12 }
0x195c   :  { %19599 = vmatpush1.bf16.msra.mxu0 %v23363_v29  ;;  %19607 = vmatpush1.bf16.msra.mxu1 %v23365_v51 }
0x195d   :  { %19609 = vmatprep.subr.bf16.mxu0 %v23377_v43  ;;  %19617 = vmatprep.subr.bf16.mxu1 %v23379_v4 }
0x195f   :  { %17842 = vmatmul.mubr.msk.f32.vlgmr.msra.gmra.mrb[86].mxu0 %vm674_vm1, %v11128_v60  ;;  %17843 = vmatmul.mubr.msk.f32.vlgmr.msra.gmra.mrb[86].mxu1 %vm674_vm1, %v11128_v60 }
0x1960   :  { %19611 = vmatpush1.bf16.msra.mxu0 %v23381_v30  ;;  %19619 = vmatpush1.bf16.msra.mxu1 %v23384_v56 }
0x1961   :  { %19613 = vmatprep.subr.bf16.mxu0 %v23388_v41  ;;  %19621 = vmatprep.subr.bf16.mxu1 %v23390_v7 }
0x1962   :  { %11765 = vmatprep.mubr.f32.mxu0 %v24477_v12  ;;  %11836 = vmatprep.mubr.f32.mxu1 %v24477_v12 }
0x1964   :  { %19615 = vmatpush1.bf16.msra.mxu0 %v23393_v6  ;;  %19623 = vmatpush1.bf16.msra.mxu1 %v23397_v37 }
0x1965   :  { %19625 = vmatprep.subr.bf16.mxu0 %v23399_v52  ;;  %19641 = vmatprep.subr.bf16.mxu1 %v23401_v36 }
0x1a2a   :  { %v11391_v28 = vpop.f32.mrb[84].mxu0  ;;  %v11462_v33 = vpop.f32.mrb[84].mxu1 }
0x1a2b   :  { %v20376_v34 = vadd.f32 %v11391_v28, %v23241_v8  ;;  %v11393_v5 = vpop.f32.mrb[85].mxu0  ;;  %v11464_v3 = vpop.f32.mrb[85].mxu1  ;;  %v20378_v30 = vadd.f32 %v11462_v33, %v23249_v46 }
0x1a2c   :  { %v20377_v57 = vadd.f32 %v11393_v5, %v23244_v54  ;;  %v20379_v52 = vadd.f32 %v11464_v3, %v23252_v19 }
0x1a2d   :  { %v17839_v29 = vmul.f32 -1.442695, %v20376_v34  ;;  %v17841_v63 = vmul.f32 -1.442695, %v20378_v30 }
0x1a2e   :  { %v17840_v51 = vmul.f32 -1.442695, %v20377_v57 }
0x1a2f   :  { %21094 = vpow2.f32 %v17839_v29 }
0x1a30   :  { %21096 = vpow2.f32 %v17840_v51 }
0x1a32   :  { %v11578_v43 = vpop.f32.mrb[86].mxu0  ;;  %v11649_v4 = vpop.f32.mrb[86].mxu1 }
0x1a33   :  { %v11654_v56 = vadd.f32 %v11578_v43, %v23144_v22  ;;  %v11580_v41 = vpop.f32.mrb[87].mxu0  ;;  %v11651_v7 = vpop.f32.mrb[87].mxu1  ;;  %v11656_v61 = vadd.f32 %v11649_v4, %v23146_v49 }
0x1a34   :  { %v11655_v6 = vadd.f32 %v11580_v41, %v23148_v17  ;;  %v11657_v9 = vadd.f32 %v11651_v7, %v23150_v38  ;;  %v12052_v41 = vld [vmem:[#allocation13 + $0x18] sm:$0xff]  ;;  %v12058_v7 = vld [vmem:[#allocation13 + $0x48] sm:$0xff] }
0x1a35   :  { %v17844_v37 = vmul.f32 -1.442695, %v11654_v56  ;;  %v17846_v31 = vmul.f32 -1.442695, %v11656_v61  ;;  %v12240_v61 = vld [vmem:[#allocation14 + $0x28] sm:$0xff] }
0x1a36   :  { %v17845_v36 = vmul.f32 -1.442695, %v11655_v6  ;;  %v12062_v6 = vld [vmem:[#allocation13 + $0x68] sm:$0xff] }
0x1a37   :  { %21098 = vpow2.f32 %v17844_v37  ;;  %v12060_v37 = vld [vmem:[#allocation13 + $0x58] sm:$0xff] }
0x1a38   :  { %21100 = vpow2.f32 %v17845_v36 }
0x1a39   :  { %v21095_v23 = vpop.eup %21094  ;;  %21102 = vtanh.f32 %v20379_v52  ;;  %v12064_v52 = vld [vmem:[#allocation13 + $0x78] sm:$0xff] }
0x1a3a   :  { %v11480_v25 = vadd.f32 1.0, %v21095_v23  ;;  %v21097_v53 = vpop.eup %21096  ;;  %21104 = vpow2.f32 %v17841_v63  ;;  %v23612_v36 = vpack.c.bf16 %v12064_v52, %v12060_v37  ;;  %v12061_v63 = vld [vmem:[#allocation13 + $0x60] sm:$0xff]  ;;  %v12059_v23 = vld [vmem:[#allocation13 + $0x50] sm:$0xff] }
0x1a3b   :  { %v11481_v15 = vadd.f32 1.0, %v21097_v53  ;;  %v12236_v53 = vld [vmem:[#allocation14 + $0x8] sm:$0xff] }
0x1a3c   :  { %21106 = vrcp.f32 %v11480_v25  ;;  %v12063_v25 = vld [vmem:[#allocation13 + $0x70] sm:$0xff] }
0x1a3d   :  { %21108 = vrcp.f32 %v11481_v15  ;;  %v12238_v15 = vld [vmem:[#allocation14 + $0x18] sm:$0xff] }
0x1a3e   :  { %21110 = vtanh.f32 %v11657_v9  ;;  %v23632_v9 = vpack.c.bf16 %v12240_v61, %v12236_v53 }
0x1a3f   :  { %21112 = vpow2.f32 %v17846_v31  ;;  %v12242_v31 = vld [vmem:[#allocation14 + $0x38] sm:$0xff] }
0x1a41   :  { %v21099_v58 = vpop.eup %21098 }
0x1a42   :  { %v11667_v18 = vadd.f32 1.0, %v21099_v58  ;;  %v21101_v13 = vpop.eup %21100  ;;  %v12235_v58 = vld [vmem:[#allocation14] sm:$0xff] }
0x1a43   :  { %v21103_v20 = vpop.eup %21102  ;;  %v11668_v48 = vadd.f32 1.0, %v21101_v13  ;;  %v23634_v13 = vpack.c.bf16 %v12242_v31, %v12238_v15 }
0x1a44   :  { %21114 = vrcp.f32 %v11667_v18  ;;  %v21105_v39 = vpop.eup %21104  ;;  %v12239_v18 = vld [vmem:[#allocation14 + $0x20] sm:$0xff] }
0x1a45   :  { %21116 = vrcp.f32 %v11668_v48  ;;  %v11482_v16 = vadd.f32 1.0, %v21105_v39  ;;  %v12237_v48 = vld [vmem:[#allocation14 + $0x10] sm:$0xff] }
0x1a46   :  { %v21107_v24 = vpop.eup %21106  ;;  %v12241_v39 = vld [vmem:[#allocation14 + $0x30] sm:$0xff] }
0x1a47   :  { %v11491_v47 = vmul.f32 %v21107_v24, %v21103_v20  ;;  %v21109_v42 = vpop.eup %21108  ;;  %21118 = vrcp.f32 %v11482_v16  ;;  %v23636_v20 = vpack.c.bf16 %v12239_v18, %v12235_v58  ;;  %v12244_v24 = vld [vmem:[#allocation14 + $0x48] sm:$0xff]  ;;  %v12246_v16 = vld [vmem:[#allocation14 + $0x58] sm:$0xff] }
0x1a48   :  { %v11490_v26 = vmul.f32 %v21109_v42, %v23515_v2  ;;  %v21111_v60 = vpop.eup %21110  ;;  %v12248_v42 = vld [vmem:[#allocation14 + $0x68] sm:$0xff] }
0x1a49   :  { %v21113_v28 = vpop.eup %21112 }
0x1a4a   :  { %v23575_v10 = vadd.f32 %v11491_v47, %v11490_v26  ;;  %v11669_v3 = vadd.f32 1.0, %v21113_v28  ;;  %v23639_v47 = vpack.c.bf16 %v12241_v39, %v12237_v48  ;;  %v12250_v26 = vld [vmem:[#allocation14 + $0x78] sm:$0xff] }
0x1a4b   :  { %v23645_v28 = vpack.c.bf16 %v12250_v26, %v12246_v16 }
0x1a4c   :  { %21120 = vtanh.f32 %v23575_v10 }
0x1a4d   :  { %21122 = vrcp.f32 %v11669_v3 }
0x1a4e   :  { %v21115_v33 = vpop.eup %21114 }
0x1a4f   :  { %v11678_v34 = vmul.f32 %v21115_v33, %v21111_v60  ;;  %v21117_v5 = vpop.eup %21116  ;;  %v23643_v60 = vpack.c.bf16 %v12248_v42, %v12244_v24  ;;  %v12243_v33 = vld [vmem:[#allocation14 + $0x40] sm:$0xff] }
0x1a50   :  { %v11677_v57 = vmul.f32 %v21117_v5, %v23519_v35  ;;  %v12050_v35 = vld [vmem:[#allocation13 + $0x8] sm:$0xff]  ;;  %v12245_v5 = vld [vmem:[#allocation14 + $0x50] sm:$0xff] }
0x1a51   :  { %v21119_v51 = vpop.eup %21118 }
0x1a52   :  { %v23579_v29 = vadd.f32 %v11678_v34, %v11677_v57  ;;  %v12247_v34 = vld [vmem:[#allocation14 + $0x60] sm:$0xff]  ;;  %v12249_v57 = vld [vmem:[#allocation14 + $0x70] sm:$0xff] }
0x1a53   :  { %v23648_v3 = vpack.c.bf16 %v12247_v34, %v12243_v33 }
0x1a54   :  { %21124 = vtanh.f32 %v23579_v29 }
0x1a56   :  { %v21121_v2 = vpop.eup %21120 }
0x1a57   :  { %v11494_v43 = vmul.f32 %v21121_v2, %v21119_v51  ;;  %v21123_v4 = vpop.eup %21122  ;;  %v12397_v51 = vld [vmem:[#allocation16 + $0x8] sm:$0xff] }
0x1a58   :  { %v12401_v2 = vld [vmem:[#allocation16 + $0x28] sm:$0xff] }
0x1a59   :  { %11495 = vst [vmem:[#allocation3 + $0x4] sm:$0x1] %v11494_v43 }
0x1a5e   :  { %v21125_v30 = vpop.eup %21124 }
0x1a5f   :  { %v11681_v56 = vmul.f32 %v21125_v30, %v21123_v4  ;;  %v23654_v4 = vpack.c.bf16 %v12401_v2, %v12397_v51  ;;  %v12399_v30 = vld [vmem:[#allocation16 + $0x18] sm:$0xff] }
0x1a61   :  { %17847 = vmatmul.mubr.msk.f32.vlgmr.msra.gmra.mrb[88].mxu0 %vm674_vm1, %v11681_v56  ;;  %17848 = vmatmul.mubr.msk.f32.vlgmr.msra.gmra.mrb[88].mxu1 %vm674_vm1, %v11681_v56 }
0x1a62   :  { %19627 = vmatpush1.bf16.msra.mxu0 %v23426_v1  ;;  %19643 = vmatpush1.bf16.msra.mxu1 %v23428_v59  ;;  %v12054_v1 = vld [vmem:[#allocation13 + $0x28] sm:$0xff]  ;;  %v12056_v59 = vld [vmem:[#allocation13 + $0x38] sm:$0xff] }
0x1a63   :  { %19629 = vmatprep.subr.bf16.mxu0 %v23432_v21  ;;  %19645 = vmatprep.subr.bf16.mxu1 %v23434_v27  ;;  %v12049_v21 = vld [vmem:[#allocation13] sm:$0xff] }
0x1a64   :  { %11942 = vmatprep.mubr.f32.mxu0 %v24477_v12  ;;  %12013 = vmatprep.mubr.f32.mxu1 %v24477_v12  ;;  %v12053_v27 = vld [vmem:[#allocation13 + $0x20] sm:$0xff] }
0x1a66   :  { %19631 = vmatpush1.bf16.msra.mxu0 %v23442_v55  ;;  %19647 = vmatpush1.bf16.msra.mxu1 %v23444_v14  ;;  %v23598_v55 = vpack.c.bf16 %v12054_v1, %v12050_v35  ;;  %v23600_v14 = vpack.c.bf16 %v12056_v59, %v12052_v41 }
0x1a67   :  { %19633 = vmatprep.subr.bf16.mxu0 %v23448_v50  ;;  %19649 = vmatprep.subr.bf16.mxu1 %v23450_v40  ;;  %v12051_v50 = vld [vmem:[#allocation13 + $0x10] sm:$0xff] }
0x1a68   :  { %v12055_v40 = vld [vmem:[#allocation13 + $0x30] sm:$0xff] }
0x1a6a   :  { %19635 = vmatpush1.bf16.msra.mxu0 %v23456_v44  ;;  %19651 = vmatpush1.bf16.msra.mxu1 %v23458_v0  ;;  %v23604_v44 = vpack.c.bf16 %v12053_v27, %v12049_v21  ;;  %v23606_v0 = vpack.c.bf16 %v12055_v40, %v12051_v50 }
0x1a6b   :  { %19637 = vmatprep.subr.bf16.mxu0 %v23462_v32  ;;  %19653 = vmatprep.subr.bf16.mxu1 %v23464_v45  ;;  %v12057_v32 = vld [vmem:[#allocation13 + $0x40] sm:$0xff]  ;;  %v23610_v45 = vpack.c.bf16 %v12062_v6, %v12058_v7 }
0x1a6e   :  { %19639 = vmatpush1.bf16.msra.mxu0 %v23468_v62  ;;  %19655 = vmatpush1.bf16.msra.mxu1 %v23470_v11  ;;  %v23618_v62 = vpack.c.bf16 %v12061_v63, %v12057_v32  ;;  %v23620_v11 = vpack.c.bf16 %v12063_v25, %v12059_v23 }
0x1a6f   :  { %19657 = vmatprep.subr.bf16.mxu0 %v23598_v55  ;;  %19665 = vmatprep.subr.bf16.mxu1 %v23600_v14 }
0x1a71   :  { %17849 = vmatmul.mubr.msk.f32.vlgmr.msra.gmra.mrb[88].mxu0 %vm264_vm0, %v11494_v43  ;;  %17850 = vmatmul.mubr.msk.f32.vlgmr.msra.gmra.mrb[88].mxu1 %vm264_vm0, %v11494_v43  ;;  %v23652_v43 = vpack.c.bf16 %v12249_v57, %v12245_v5 }
0x1a72   :  { %19659 = vmatpush1.bf16.msra.mxu0 %v23604_v44  ;;  %19667 = vmatpush1.bf16.msra.mxu1 %v23606_v0 }
0x1a73   :  { %19661 = vmatprep.subr.bf16.mxu0 %v23610_v45  ;;  %19669 = vmatprep.subr.bf16.mxu1 %v23612_v36 }
0x1a74   :  { %12129 = vmatprep.mubr.f32.mxu0 %v24477_v12  ;;  %12200 = vmatprep.mubr.f32.mxu1 %v24477_v12 }
0x1a76   :  { %19663 = vmatpush1.bf16.msra.mxu0 %v23618_v62  ;;  %19671 = vmatpush1.bf16.msra.mxu1 %v23620_v11 }
0x1a77   :  { %19673 = vmatprep.subr.bf16.mxu0 %v23632_v9  ;;  %19681 = vmatprep.subr.bf16.mxu1 %v23634_v13 }
0x1a79   :  { %17854 = vmatmul.mubr.msk.f32.vlgmr.msra.gmra.mrb[90].mxu0 %vm674_vm1, %v11681_v56  ;;  %17855 = vmatmul.mubr.msk.f32.vlgmr.msra.gmra.mrb[90].mxu1 %vm674_vm1, %v11681_v56  ;;  %v12403_v56 = vld [vmem:[#allocation16 + $0x38] sm:$0xff] }
0x1a7a   :  { %12318 = vmatprep.mubr.f32.mxu0 %v24477_v12  ;;  %12389 = vmatprep.mubr.f32.mxu1 %v24477_v12  ;;  %v23656_v35 = vpack.c.bf16 %v12403_v56, %v12399_v30 }
0x1a7b   :  { %19675 = vmatpush1.bf16.msra.mxu0 %v23636_v20  ;;  %19683 = vmatpush1.bf16.msra.mxu1 %v23639_v47 }
0x1a7c   :  { %19677 = vmatprep.subr.bf16.mxu0 %v23643_v60  ;;  %19685 = vmatprep.subr.bf16.mxu1 %v23645_v28 }
0x1a7f   :  { %19679 = vmatpush1.bf16.msra.mxu0 %v23648_v3  ;;  %19687 = vmatpush1.bf16.msra.mxu1 %v23652_v43 }
0x1a80   :  { %19689 = vmatprep.subr.bf16.mxu0 %v23654_v4  ;;  %19705 = vmatprep.subr.bf16.mxu1 %v23656_v35 }
0x1b44   :  { %v11944_v1 = vpop.f32.mrb[88].mxu0  ;;  %v12015_v41 = vpop.f32.mrb[88].mxu1 }
0x1b45   :  { %v20380_v59 = vadd.f32 %v11944_v1, %v23241_v8  ;;  %v11946_v21 = vpop.f32.mrb[89].mxu0  ;;  %v12017_v27 = vpop.f32.mrb[89].mxu1  ;;  %v20382_v52 = vadd.f32 %v12015_v41, %v23249_v46 }
0x1b46   :  { %v20381_v50 = vadd.f32 %v11946_v21, %v23244_v54  ;;  %v20383_v61 = vadd.f32 %v12017_v27, %v23252_v19 }
0x1b47   :  { %v17851_v40 = vmul.f32 -1.442695, %v20380_v59  ;;  %v17853_v31 = vmul.f32 -1.442695, %v20382_v52 }
0x1b48   :  { %v17852_v7 = vmul.f32 -1.442695, %v20381_v50 }
0x1b49   :  { %21126 = vpow2.f32 %v17851_v40 }
0x1b4a   :  { %21128 = vpow2.f32 %v17852_v7 }
0x1b4c   :  { %v12131_v6 = vpop.f32.mrb[90].mxu0  ;;  %v12202_v37 = vpop.f32.mrb[90].mxu1 }
0x1b4d   :  { %v12207_v32 = vadd.f32 %v12131_v6, %v23144_v22  ;;  %v12133_v63 = vpop.f32.mrb[91].mxu0  ;;  %v12204_v23 = vpop.f32.mrb[91].mxu1  ;;  %v12209_v39 = vadd.f32 %v12202_v37, %v23146_v49 }
0x1b4e   :  { %v12208_v25 = vadd.f32 %v12133_v63, %v23148_v17  ;;  %v12210_v42 = vadd.f32 %v12204_v23, %v23150_v38  ;;  %v12396_v23 = vld [vmem:[#allocation16] sm:$0xff] }
0x1b4f   :  { %v17856_v53 = vmul.f32 -1.442695, %v12207_v32  ;;  %v17858_v16 = vmul.f32 -1.442695, %v12209_v39 }
0x1b50   :  { %v17857_v15 = vmul.f32 -1.442695, %v12208_v25  ;;  %v12400_v25 = vld [vmem:[#allocation16 + $0x20] sm:$0xff] }
0x1b51   :  { %21130 = vpow2.f32 %v17856_v53  ;;  %v12398_v53 = vld [vmem:[#allocation16 + $0x10] sm:$0xff]  ;;  %v23681_v39 = vpack.c.bf16 %v12400_v25, %v12396_v23  ;;  %v12427_v23 = vld [vmem:[#allocation16 + $0xf8] sm:$0xff] }
0x1b52   :  { %21132 = vpow2.f32 %v17857_v15  ;;  %v12405_v15 = vld [vmem:[#allocation16 + $0x48] sm:$0xff] }
0x1b53   :  { %v21127_v58 = vpop.eup %21126  ;;  %21134 = vtanh.f32 %v20383_v61  ;;  %v12402_v61 = vld [vmem:[#allocation16 + $0x30] sm:$0xff] }
0x1b54   :  { %v12033_v18 = vadd.f32 1.0, %v21127_v58  ;;  %v21129_v48 = vpop.eup %21128  ;;  %21136 = vpow2.f32 %v17853_v31  ;;  %v12409_v31 = vld [vmem:[#allocation16 + $0x68] sm:$0xff]  ;;  %v12407_v58 = vld [vmem:[#allocation16 + $0x58] sm:$0xff] }
0x1b55   :  { %v12034_v24 = vadd.f32 1.0, %v21129_v48 }
0x1b56   :  { %21138 = vrcp.f32 %v12033_v18  ;;  %v12411_v18 = vld [vmem:[#allocation16 + $0x78] sm:$0xff] }
0x1b57   :  { %21140 = vrcp.f32 %v12034_v24  ;;  %v23683_v24 = vpack.c.bf16 %v12402_v61, %v12398_v53  ;;  %v12420_v61 = vld [vmem:[#allocation16 + $0xc0] sm:$0xff] }
0x1b58   :  { %21142 = vtanh.f32 %v12210_v42  ;;  %v12404_v42 = vld [vmem:[#allocation16 + $0x40] sm:$0xff] }
0x1b59   :  { %21144 = vpow2.f32 %v17858_v16  ;;  %v12408_v16 = vld [vmem:[#allocation16 + $0x60] sm:$0xff] }
0x1b5b   :  { %v21131_v26 = vpop.eup %21130 }
0x1b5c   :  { %v12220_v33 = vadd.f32 1.0, %v21131_v26  ;;  %v21133_v34 = vpop.eup %21132 }
0x1b5d   :  { %v21135_v5 = vpop.eup %21134  ;;  %v12221_v57 = vadd.f32 1.0, %v21133_v34  ;;  %v23689_v34 = vpack.c.bf16 %v12411_v18, %v12407_v58  ;;  %v12424_v58 = vld [vmem:[#allocation16 + $0xe0] sm:$0xff]  ;;  %v12422_v18 = vld [vmem:[#allocation16 + $0xd0] sm:$0xff] }
0x1b5e   :  { %21146 = vrcp.f32 %v12220_v33  ;;  %v21137_v51 = vpop.eup %21136  ;;  %v23687_v33 = vpack.c.bf16 %v12409_v31, %v12405_v15 }
0x1b5f   :  { %21148 = vrcp.f32 %v12221_v57  ;;  %v12035_v1 = vadd.f32 1.0, %v21137_v51  ;;  %v12410_v57 = vld [vmem:[#allocation16 + $0x70] sm:$0xff]  ;;  %v12413_v51 = vld [vmem:[#allocation16 + $0x88] sm:$0xff] }
0x1b60   :  { %v21139_v2 = vpop.eup %21138 }
0x1b61   :  { %v12044_v30 = vmul.f32 %v21139_v2, %v21135_v5  ;;  %v21141_v56 = vpop.eup %21140  ;;  %21150 = vrcp.f32 %v12035_v1  ;;  %v12406_v5 = vld [vmem:[#allocation16 + $0x50] sm:$0xff]  ;;  %v12417_v2 = vld [vmem:[#allocation16 + $0xa8] sm:$0xff]  ;;  %v23697_v1 = vpack.c.bf16 %v12408_v16, %v12404_v42 }
0x1b62   :  { %v12043_v41 = vmul.f32 %v21141_v56, %v23575_v10  ;;  %v21143_v21 = vpop.eup %21142  ;;  %v12419_v56 = vld [vmem:[#allocation16 + $0xb8] sm:$0xff] }
0x1b63   :  { %v21145_v27 = vpop.eup %21144 }
0x1b64   :  { %v23671_v59 = vadd.f32 %v12044_v30, %v12043_v41  ;;  %v12222_v6 = vadd.f32 1.0, %v21145_v27  ;;  %v12415_v30 = vld [vmem:[#allocation16 + $0x98] sm:$0xff]  ;;  %v23699_v41 = vpack.c.bf16 %v12410_v57, %v12406_v5  ;;  %v12416_v27 = vld [vmem:[#allocation16 + $0xa0] sm:$0xff] }
0x1b66   :  { %21152 = vtanh.f32 %v23671_v59 }
0x1b67   :  { %21154 = vrcp.f32 %v12222_v6  ;;  %v12418_v6 = vld [vmem:[#allocation16 + $0xb0] sm:$0xff] }
0x1b68   :  { %v21147_v50 = vpop.eup %21146 }
0x1b69   :  { %v12231_v40 = vmul.f32 %v21147_v50, %v21143_v21  ;;  %v21149_v7 = vpop.eup %21148  ;;  %v12412_v21 = vld [vmem:[#allocation16 + $0x80] sm:$0xff]  ;;  %v23703_v50 = vpack.c.bf16 %v12417_v2, %v12413_v51 }
0x1b6a   :  { %v12230_v37 = vmul.f32 %v21149_v7, %v23579_v29  ;;  %v12414_v7 = vld [vmem:[#allocation16 + $0x90] sm:$0xff]  ;;  %v23711_v25 = vpack.c.bf16 %v12416_v27, %v12412_v21 }
0x1b6b   :  { %v21151_v32 = vpop.eup %21150  ;;  %v23713_v53 = vpack.c.bf16 %v12418_v6, %v12414_v7 }
0x1b6c   :  { %v23675_v52 = vadd.f32 %v12231_v40, %v12230_v37  ;;  %v23705_v40 = vpack.c.bf16 %v12419_v56, %v12415_v30  ;;  %v12421_v37 = vld [vmem:[#allocation16 + $0xc8] sm:$0xff] }
0x1b6e   :  { %21156 = vtanh.f32 %v23675_v52 }
0x1b70   :  { %v21153_v10 = vpop.eup %21152 }
0x1b71   :  { %v23678_v63 = vmul.f32 %v21153_v10, %v21151_v32  ;;  %v21155_v29 = vpop.eup %21154  ;;  %v12425_v32 = vld [vmem:[#allocation16 + $0xe8] sm:$0xff]  ;;  %v12423_v10 = vld [vmem:[#allocation16 + $0xd8] sm:$0xff] }
0x1b72   :  { %v23717_v15 = vpack.c.bf16 %v12425_v32, %v12421_v37  ;;  %v23719_v31 = vpack.c.bf16 %v12427_v23, %v12423_v10 }
0x1b73   :  { %12048 = vst [vmem:[#allocation3 + $0x5] sm:$0x1] %v23678_v63 }
0x1b78   :  { %v21157_v48 = vpop.eup %21156 }
0x1b79   :  { %v23685_v26 = vmul.f32 %v21157_v48, %v21155_v29  ;;  %v12426_v29 = vld [vmem:[#allocation16 + $0xf0] sm:$0xff]  ;;  %v23723_v48 = vpack.c.bf16 %v12424_v58, %v12420_v61 }
0x1b7a   :  { %v23725_v42 = vpack.c.bf16 %v12426_v29, %v12422_v18 }
0x1b7b   :  { %17859 = vmatmul.mubr.msk.f32.vlgmr.msra.gmra.mrb[92].mxu0 %vm674_vm1, %v23685_v26  ;;  %17860 = vmatmul.mubr.msk.f32.vlgmr.msra.gmra.mrb[92].mxu1 %vm674_vm1, %v23685_v26 }
0x1b7c   :  { %19691 = vmatpush1.bf16.msra.mxu0 %v23681_v39  ;;  %19707 = vmatpush1.bf16.msra.mxu1 %v23683_v24 }
0x1b7d   :  { %19693 = vmatprep.subr.bf16.mxu0 %v23687_v33  ;;  %19709 = vmatprep.subr.bf16.mxu1 %v23689_v34 }
0x1b7e   :  { %12495 = vmatprep.mubr.f32.mxu0 %v24477_v12  ;;  %12566 = vmatprep.mubr.f32.mxu1 %v24477_v12 }
0x1b80   :  { %19695 = vmatpush1.bf16.msra.mxu0 %v23697_v1  ;;  %19711 = vmatpush1.bf16.msra.mxu1 %v23699_v41 }
0x1b81   :  { %19697 = vmatprep.subr.bf16.mxu0 %v23703_v50  ;;  %19713 = vmatprep.subr.bf16.mxu1 %v23705_v40 }
0x1b84   :  { %19699 = vmatpush1.bf16.msra.mxu0 %v23711_v25  ;;  %19715 = vmatpush1.bf16.msra.mxu1 %v23713_v53 }
0x1b85   :  { %19701 = vmatprep.subr.bf16.mxu0 %v23717_v15  ;;  %19717 = vmatprep.subr.bf16.mxu1 %v23719_v31 }
0x1b88   :  { %19703 = vmatpush1.bf16.msra.mxu0 %v23723_v48  ;;  %19719 = vmatpush1.bf16.msra.mxu1 %v23725_v42 }
0x1b89   :  { %19721 = vmatprep.subr.bf16.mxu0 %v23598_v55  ;;  %19729 = vmatprep.subr.bf16.mxu1 %v23600_v14 }
0x1b8b   :  { %17861 = vmatmul.mubr.msk.f32.vlgmr.msra.gmra.mrb[92].mxu0 %vm264_vm0, %v23678_v63  ;;  %17862 = vmatmul.mubr.msk.f32.vlgmr.msra.gmra.mrb[92].mxu1 %vm264_vm0, %v23678_v63 }
0x1b8c   :  { %19723 = vmatpush1.bf16.msra.mxu0 %v23604_v44  ;;  %19731 = vmatpush1.bf16.msra.mxu1 %v23606_v0 }
0x1b8d   :  { %19725 = vmatprep.subr.bf16.mxu0 %v23610_v45  ;;  %19733 = vmatprep.subr.bf16.mxu1 %v23612_v36 }
0x1b8e   :  { %12682 = vmatprep.mubr.f32.mxu0 %v24477_v12  ;;  %12753 = vmatprep.mubr.f32.mxu1 %v24477_v12 }
0x1b90   :  { %19727 = vmatpush1.bf16.msra.mxu0 %v23618_v62  ;;  %19735 = vmatpush1.bf16.msra.mxu1 %v23620_v11 }
0x1b91   :  { %19737 = vmatprep.subr.bf16.mxu0 %v23632_v9  ;;  %19745 = vmatprep.subr.bf16.mxu1 %v23634_v13 }
0x1b93   :  { %17866 = vmatmul.mubr.msk.f32.vlgmr.msra.gmra.mrb[94].mxu0 %vm674_vm1, %v23685_v26  ;;  %17867 = vmatmul.mubr.msk.f32.vlgmr.msra.gmra.mrb[94].mxu1 %vm674_vm1, %v23685_v26 }
0x1b94   :  { %19739 = vmatpush1.bf16.msra.mxu0 %v23636_v20  ;;  %19747 = vmatpush1.bf16.msra.mxu1 %v23639_v47 }
0x1b95   :  { %19741 = vmatprep.subr.bf16.mxu0 %v23643_v60  ;;  %19749 = vmatprep.subr.bf16.mxu1 %v23645_v28 }
0x1b96   :  { %12871 = vmatprep.mubr.f32.mxu0 %v24477_v12  ;;  %12942 = vmatprep.mubr.f32.mxu1 %v24477_v12 }
0x1b98   :  { %19743 = vmatpush1.bf16.msra.mxu0 %v23648_v3  ;;  %19751 = vmatpush1.bf16.msra.mxu1 %v23652_v43 }
0x1b99   :  { %19753 = vmatprep.subr.bf16.mxu0 %v23654_v4  ;;  %19769 = vmatprep.subr.bf16.mxu1 %v23656_v35 }
0x1c5e   :  { %v12497_v63 = vpop.f32.mrb[92].mxu0  ;;  %v12568_v16 = vpop.f32.mrb[92].mxu1 }
0x1c5f   :  { %v20384_v26 = vadd.f32 %v12497_v63, %v23241_v8  ;;  %v12499_v5 = vpop.f32.mrb[93].mxu0  ;;  %v12570_v57 = vpop.f32.mrb[93].mxu1  ;;  %v20386_v27 = vadd.f32 %v12568_v16, %v23249_v46 }
0x1c60   :  { %v20385_v51 = vadd.f32 %v12499_v5, %v23244_v54  ;;  %v20387_v23 = vadd.f32 %v12570_v57, %v23252_v19 }
0x1c61   :  { %v17863_v2 = vmul.f32 -1.442695, %v20384_v26  ;;  %v17865_v58 = vmul.f32 -1.442695, %v20386_v27 }
0x1c62   :  { %v17864_v30 = vmul.f32 -1.442695, %v20385_v51 }
0x1c63   :  { %21158 = vpow2.f32 %v17863_v2 }
0x1c64   :  { %21160 = vpow2.f32 %v17864_v30 }
0x1c66   :  { %v12684_v56 = vpop.f32.mrb[94].mxu0  ;;  %v12755_v21 = vpop.f32.mrb[94].mxu1 }
0x1c67   :  { %v12760_v7 = vadd.f32 %v12684_v56, %v23144_v22  ;;  %v12686_v6 = vpop.f32.mrb[95].mxu0  ;;  %v12757_v37 = vpop.f32.mrb[95].mxu1  ;;  %v12762_v16 = vadd.f32 %v12755_v21, %v23146_v49 }
0x1c68   :  { %v12761_v32 = vadd.f32 %v12686_v6, %v23148_v17  ;;  %v12763_v5 = vadd.f32 %v12757_v37, %v23150_v38 }
0x1c69   :  { %v17868_v10 = vmul.f32 -1.442695, %v12760_v7  ;;  %v17870_v51 = vmul.f32 -1.442695, %v12762_v16 }
0x1c6a   :  { %v17869_v61 = vmul.f32 -1.442695, %v12761_v32 }
0x1c6b   :  { %21162 = vpow2.f32 %v17868_v10 }
0x1c6c   :  { %21164 = vpow2.f32 %v17869_v61 }
0x1c6d   :  { %v21159_v18 = vpop.eup %21158  ;;  %21166 = vtanh.f32 %v20387_v23 }
0x1c6e   :  { %v12586_v29 = vadd.f32 1.0, %v21159_v18  ;;  %v21161_v63 = vpop.eup %21160  ;;  %21168 = vpow2.f32 %v17865_v58 }
0x1c6f   :  { %v12587_v26 = vadd.f32 1.0, %v21161_v63 }
0x1c70   :  { %21170 = vrcp.f32 %v12586_v29 }
0x1c71   :  { %21172 = vrcp.f32 %v12587_v26 }
0x1c72   :  { %21174 = vtanh.f32 %v12763_v5 }
0x1c73   :  { %21176 = vpow2.f32 %v17870_v51 }
0x1c75   :  { %v21163_v2 = vpop.eup %21162 }
0x1c76   :  { %v12773_v30 = vadd.f32 1.0, %v21163_v2  ;;  %v21165_v57 = vpop.eup %21164 }
0x1c77   :  { %v21167_v56 = vpop.eup %21166  ;;  %v12774_v27 = vadd.f32 1.0, %v21165_v57 }
0x1c78   :  { %21178 = vrcp.f32 %v12773_v30  ;;  %v21169_v7 = vpop.eup %21168 }
0x1c79   :  { %21180 = vrcp.f32 %v12774_v27  ;;  %v12588_v21 = vadd.f32 1.0, %v21169_v7 }
0x1c7a   :  { %v21171_v6 = vpop.eup %21170 }
0x1c7b   :  { %v12597_v32 = vmul.f32 %v21171_v6, %v21167_v56  ;;  %v21173_v10 = vpop.eup %21172  ;;  %21182 = vrcp.f32 %v12588_v21 }
0x1c7c   :  { %v12596_v23 = vmul.f32 %v21173_v10, %v23671_v59  ;;  %v21175_v37 = vpop.eup %21174 }
0x1c7d   :  { %v21177_v58 = vpop.eup %21176 }
0x1c7e   :  { %v23770_v61 = vadd.f32 %v12597_v32, %v12596_v23  ;;  %v12775_v16 = vadd.f32 1.0, %v21177_v58 }
0x1c80   :  { %21184 = vtanh.f32 %v23770_v61 }
0x1c81   :  { %21186 = vrcp.f32 %v12775_v16 }
0x1c82   :  { %v21179_v18 = vpop.eup %21178 }
0x1c83   :  { %v12784_v29 = vmul.f32 %v21179_v18, %v21175_v37  ;;  %v21181_v63 = vpop.eup %21180 }
0x1c84   :  { %v12783_v26 = vmul.f32 %v21181_v63, %v23675_v52 }
0x1c85   :  { %v21183_v51 = vpop.eup %21182 }
0x1c86   :  { %v23774_v5 = vadd.f32 %v12784_v29, %v12783_v26 }
0x1c88   :  { %21188 = vtanh.f32 %v23774_v5 }
0x1c8a   :  { %v21185_v59 = vpop.eup %21184 }
0x1c8b   :  { %v12600_v2 = vmul.f32 %v21185_v59, %v21183_v51  ;;  %v21187_v30 = vpop.eup %21186 }
0x1c8d   :  { %12601 = vst [vmem:[#allocation3 + $0x6] sm:$0x1] %v12600_v2 }
0x1c92   :  { %v21189_v57 = vpop.eup %21188 }
0x1c93   :  { %v12787_v56 = vmul.f32 %v21189_v57, %v21187_v30 }
0x1c95   :  { %17871 = vmatmul.mubr.msk.f32.vlgmr.msra.gmra.mrb[96].mxu0 %vm674_vm1, %v12787_v56  ;;  %17872 = vmatmul.mubr.msk.f32.vlgmr.msra.gmra.mrb[96].mxu1 %vm674_vm1, %v12787_v56 }
0x1c96   :  { %19755 = vmatpush1.bf16.msra.mxu0 %v23681_v39  ;;  %19771 = vmatpush1.bf16.msra.mxu1 %v23683_v24 }
0x1c97   :  { %19757 = vmatprep.subr.bf16.mxu0 %v23687_v33  ;;  %19773 = vmatprep.subr.bf16.mxu1 %v23689_v34 }
0x1c98   :  { %13048 = vmatprep.mubr.f32.mxu0 %v24477_v12  ;;  %13119 = vmatprep.mubr.f32.mxu1 %v24477_v12 }
0x1c9a   :  { %19759 = vmatpush1.bf16.msra.mxu0 %v23697_v1  ;;  %19775 = vmatpush1.bf16.msra.mxu1 %v23699_v41 }
0x1c9b   :  { %19761 = vmatprep.subr.bf16.mxu0 %v23703_v50  ;;  %19777 = vmatprep.subr.bf16.mxu1 %v23705_v40 }
0x1c9e   :  { %19763 = vmatpush1.bf16.msra.mxu0 %v23711_v25  ;;  %19779 = vmatpush1.bf16.msra.mxu1 %v23713_v53 }
0x1c9f   :  { %19765 = vmatprep.subr.bf16.mxu0 %v23717_v15  ;;  %19781 = vmatprep.subr.bf16.mxu1 %v23719_v31 }
0x1ca2   :  { %19767 = vmatpush1.bf16.msra.mxu0 %v23723_v48  ;;  %19783 = vmatpush1.bf16.msra.mxu1 %v23725_v42 }
0x1ca3   :  { %19785 = vmatprep.subr.bf16.mxu0 %v23598_v55  ;;  %19793 = vmatprep.subr.bf16.mxu1 %v23600_v14 }
0x1ca5   :  { %17873 = vmatmul.mubr.msk.f32.vlgmr.msra.gmra.mrb[96].mxu0 %vm264_vm0, %v12600_v2  ;;  %17874 = vmatmul.mubr.msk.f32.vlgmr.msra.gmra.mrb[96].mxu1 %vm264_vm0, %v12600_v2 }
0x1ca6   :  { %19787 = vmatpush1.bf16.msra.mxu0 %v23604_v44  ;;  %19795 = vmatpush1.bf16.msra.mxu1 %v23606_v0 }
0x1ca7   :  { %19789 = vmatprep.subr.bf16.mxu0 %v23610_v45  ;;  %19797 = vmatprep.subr.bf16.mxu1 %v23612_v36 }
0x1ca8   :  { %13235 = vmatprep.mubr.f32.mxu0 %v24477_v12  ;;  %13306 = vmatprep.mubr.f32.mxu1 %v24477_v12 }
0x1caa   :  { %19791 = vmatpush1.bf16.msra.mxu0 %v23618_v62  ;;  %19799 = vmatpush1.bf16.msra.mxu1 %v23620_v11 }
0x1cab   :  { %19801 = vmatprep.subr.bf16.mxu0 %v23632_v9  ;;  %19809 = vmatprep.subr.bf16.mxu1 %v23634_v13 }
0x1cad   :  { %17878 = vmatmul.mubr.msk.f32.vlgmr.msra.gmra.mrb[98].mxu0 %vm674_vm1, %v12787_v56  ;;  %17879 = vmatmul.mubr.msk.f32.vlgmr.msra.gmra.mrb[98].mxu1 %vm674_vm1, %v12787_v56 }
0x1cae   :  { %19803 = vmatpush1.bf16.msra.mxu0 %v23636_v20  ;;  %19811 = vmatpush1.bf16.msra.mxu1 %v23639_v47 }
0x1caf   :  { %19805 = vmatprep.subr.bf16.mxu0 %v23643_v60  ;;  %19813 = vmatprep.subr.bf16.mxu1 %v23645_v28 }
0x1cb0   :  { %13424 = vmatprep.mubr.f32.mxu0 %v24477_v12  ;;  %13495 = vmatprep.mubr.f32.mxu1 %v24477_v12 }
0x1cb2   :  { %19807 = vmatpush1.bf16.msra.mxu0 %v23648_v3  ;;  %19815 = vmatpush1.bf16.msra.mxu1 %v23652_v43 }
0x1cb3   :  { %19817 = vmatprep.subr.bf16.mxu0 %v23654_v4  ;;  %19833 = vmatprep.subr.bf16.mxu1 %v23656_v35 }
0x1d78   :  { %v13050_v55 = vpop.f32.mrb[96].mxu0  ;;  %v13121_v14 = vpop.f32.mrb[96].mxu1 }
0x1d79   :  { %v20388_v44 = vadd.f32 %v13050_v55, %v23241_v8  ;;  %v13052_v0 = vpop.f32.mrb[97].mxu0  ;;  %v13123_v45 = vpop.f32.mrb[97].mxu1  ;;  %v20390_v20 = vadd.f32 %v13121_v14, %v23249_v46 }
0x1d7a   :  { %v20389_v36 = vadd.f32 %v13052_v0, %v23244_v54  ;;  %v20391_v4 = vadd.f32 %v13123_v45, %v23252_v19 }
0x1d7b   :  { %v17875_v62 = vmul.f32 -1.442695, %v20388_v44  ;;  %v17877_v52 = vmul.f32 -1.442695, %v20390_v20 }
0x1d7c   :  { %v17876_v11 = vmul.f32 -1.442695, %v20389_v36 }
0x1d7d   :  { %21190 = vpow2.f32 %v17875_v62 }
0x1d7e   :  { %21192 = vpow2.f32 %v17876_v11 }
0x1d80   :  { %v13237_v9 = vpop.f32.mrb[98].mxu0  ;;  %v13308_v13 = vpop.f32.mrb[98].mxu1 }
0x1d81   :  { %v13313_v47 = vadd.f32 %v13237_v9, %v23144_v22  ;;  %v13239_v60 = vpop.f32.mrb[99].mxu0  ;;  %v13310_v28 = vpop.f32.mrb[99].mxu1  ;;  %v13315_v32 = vadd.f32 %v13308_v13, %v23146_v49 }
0x1d82   :  { %v13314_v3 = vadd.f32 %v13239_v60, %v23148_v17  ;;  %v13316_v21 = vadd.f32 %v13310_v28, %v23150_v38 }
0x1d83   :  { %v17880_v43 = vmul.f32 -1.442695, %v13313_v47  ;;  %v17882_v23 = vmul.f32 -1.442695, %v13315_v32  ;;  %v17974_v47 = vld [vmem:[%s24441_s13] ss:$0 sm:$0xff] }
0x1d84   :  { %v17881_v35 = vmul.f32 -1.442695, %v13314_v3  ;;  %v13713_v3 = vld [vmem:[#allocation13 + $0x28] sm:$0xff]  ;;  %v13718_v32 = vld [vmem:[#allocation13 + $0x50] sm:$0xff] }
0x1d85   :  { %21194 = vpow2.f32 %v17880_v43  ;;  %v13715_v43 = vld [vmem:[#allocation13 + $0x38] sm:$0xff] }
0x1d86   :  { %21196 = vpow2.f32 %v17881_v35  ;;  %v13721_v35 = vld [vmem:[#allocation13 + $0x68] sm:$0xff] }
0x1d87   :  { %v21191_v27 = vpop.eup %21190  ;;  %21198 = vtanh.f32 %v20391_v4  ;;  %v13717_v4 = vld [vmem:[#allocation13 + $0x48] sm:$0xff] }
0x1d88   :  { %v13139_v7 = vadd.f32 1.0, %v21191_v27  ;;  %v21193_v6 = vpop.eup %21192  ;;  %21200 = vpow2.f32 %v17877_v52  ;;  %v13719_v52 = vld [vmem:[#allocation13 + $0x58] sm:$0xff] }
0x1d89   :  { %v13140_v10 = vadd.f32 1.0, %v21193_v6  ;;  %v13723_v27 = vld [vmem:[#allocation13 + $0x78] sm:$0xff]  ;;  %v13720_v6 = vld [vmem:[#allocation13 + $0x60] sm:$0xff] }
0x1d8a   :  { %21202 = vrcp.f32 %v13139_v7  ;;  %v23870_v7 = vpack.c.bf16 %v13723_v27, %v13719_v52 }
0x1d8b   :  { %21204 = vrcp.f32 %v13140_v10  ;;  %v13722_v10 = vld [vmem:[#allocation13 + $0x70] sm:$0xff] }
0x1d8c   :  { %21206 = vtanh.f32 %v13316_v21  ;;  %v17975_v21 = vld [vmem:[#allocation4] ss:$0 sm:$0xff] }
0x1d8d   :  { %21208 = vpow2.f32 %v17882_v23  ;;  %v13895_v23 = vld [vmem:[#allocation14 + $0x8] sm:$0xff] }
0x1d8f   :  { %v21195_v37 = vpop.eup %21194 }
0x1d90   :  { %v13326_v58 = vadd.f32 1.0, %v21195_v37  ;;  %v21197_v18 = vpop.eup %21196  ;;  %v13899_v37 = vld [vmem:[#allocation14 + $0x28] sm:$0xff] }
0x1d91   :  { %v21199_v29 = vpop.eup %21198  ;;  %v13327_v63 = vadd.f32 1.0, %v21197_v18 }
0x1d92   :  { %21210 = vrcp.f32 %v13326_v58  ;;  %v21201_v16 = vpop.eup %21200  ;;  %v13897_v58 = vld [vmem:[#allocation14 + $0x18] sm:$0xff] }
0x1d93   :  { %21212 = vrcp.f32 %v13327_v63  ;;  %v13141_v2 = vadd.f32 1.0, %v21201_v16  ;;  %v13901_v63 = vld [vmem:[#allocation14 + $0x38] sm:$0xff]  ;;  %v13894_v16 = vld [vmem:[#allocation14] sm:$0xff] }
0x1d94   :  { %v21203_v26 = vpop.eup %21202 }
0x1d95   :  { %v13150_v51 = vmul.f32 %v21203_v26, %v21199_v29  ;;  %v21205_v59 = vpop.eup %21204  ;;  %21214 = vrcp.f32 %v13141_v2  ;;  %v23890_v29 = vpack.c.bf16 %v13899_v37, %v13895_v23  ;;  %v13898_v26 = vld [vmem:[#allocation14 + $0x20] sm:$0xff] }
0x1d96   :  { %v13149_v30 = vmul.f32 %v21205_v59, %v23770_v61  ;;  %v21207_v56 = vpop.eup %21206  ;;  %v23892_v59 = vpack.c.bf16 %v13901_v63, %v13897_v58  ;;  %v23894_v2 = vpack.c.bf16 %v13898_v26, %v13894_v16 }
0x1d97   :  { %v21209_v55 = vpop.eup %21208 }
0x1d98   :  { %v23830_v57 = vadd.f32 %v13150_v51, %v13149_v30  ;;  %v13328_v45 = vadd.f32 1.0, %v21209_v55  ;;  %v13896_v30 = vld [vmem:[#allocation14 + $0x10] sm:$0xff]  ;;  %v13903_v55 = vld [vmem:[#allocation14 + $0x48] sm:$0xff] }
0x1d9a   :  { %21216 = vtanh.f32 %v23830_v57 }
0x1d9b   :  { %21218 = vrcp.f32 %v13328_v45  ;;  %v13909_v45 = vld [vmem:[#allocation14 + $0x78] sm:$0xff] }
0x1d9c   :  { %v21211_v14 = vpop.eup %21210 }
0x1d9d   :  { %v13337_v44 = vmul.f32 %v21211_v14, %v21207_v56  ;;  %v21213_v0 = vpop.eup %21212  ;;  %v13900_v56 = vld [vmem:[#allocation14 + $0x30] sm:$0xff] }
0x1d9e   :  { %v13336_v36 = vmul.f32 %v21213_v0, %v23774_v5  ;;  %v23897_v14 = vpack.c.bf16 %v13900_v56, %v13896_v30  ;;  %v13905_v0 = vld [vmem:[#allocation14 + $0x58] sm:$0xff] }
0x1d9f   :  { %v21215_v11 = vpop.eup %21214 }
0x1da0   :  { %v23834_v62 = vadd.f32 %v13337_v44, %v13336_v36  ;;  %v13907_v44 = vld [vmem:[#allocation14 + $0x68] sm:$0xff] }
0x1da1   :  { %v23905_v36 = vpack.c.bf16 %v13907_v44, %v13903_v55 }
0x1da2   :  { %21220 = vtanh.f32 %v23834_v62 }
0x1da4   :  { %v21217_v61 = vpop.eup %21216 }
0x1da5   :  { %v13153_v9 = vmul.f32 %v21217_v61, %v21215_v11  ;;  %v21219_v13 = vpop.eup %21218  ;;  %v23907_v11 = vpack.c.bf16 %v13909_v45, %v13905_v0  ;;  %v13902_v61 = vld [vmem:[#allocation14 + $0x40] sm:$0xff] }
0x1da7   :  { %13154 = vst [vmem:[#allocation3 + $0x7] sm:$0x1] %v13153_v9 }
0x1dac   :  { %v21221_v20 = vpop.eup %21220 }
0x1dad   :  { %v13340_v60 = vmul.f32 %v21221_v20, %v21219_v13  ;;  %v13904_v13 = vld [vmem:[#allocation14 + $0x50] sm:$0xff] }
0x1dae   :  { %v17579_v28 = vld [vmem:[#allocation3] sm:$0xff] }
0x1daf   :  { %17883 = vmatmul.mubr.msk.f32.vlgmr.msra.gmra.mrb[100].mxu0 %vm674_vm1, %v13340_v60  ;;  %17884 = vmatmul.mubr.msk.f32.vlgmr.msra.gmra.mrb[100].mxu1 %vm674_vm1, %v13340_v60  ;;  %v17588_v5 = vmul.f32 %v17974_v47, %v17579_v28  ;;  %v13908_v47 = vld [vmem:[#allocation14 + $0x70] sm:$0xff]  ;;  %v14060_v28 = vld [vmem:[#allocation16 + $0x28] sm:$0xff] }
0x1db0   :  { %19819 = vmatpush1.bf16.msra.mxu0 %v23681_v39  ;;  %19835 = vmatpush1.bf16.msra.mxu1 %v23683_v24  ;;  %v13709_v39 = vld [vmem:[#allocation13 + $0x8] sm:$0xff]  ;;  %v13711_v24 = vld [vmem:[#allocation13 + $0x18] sm:$0xff] }
0x1db1   :  { %17590 = vadd.xlane.f32.xlu1 %v17588_v5  ;;  %19821 = vmatprep.subr.bf16.mxu0 %v23687_v33  ;;  %v13708_v33 = vld [vmem:[#allocation13] sm:$0xff]  ;;  %v23914_v5 = vpack.c.bf16 %v13908_v47, %v13904_v13 }
0x1db2   :  { %19837 = vmatprep.subr.bf16.mxu1 %v23689_v34  ;;  %13601 = vmatprep.mubr.f32.mxu0 %v24477_v12  ;;  %v13712_v34 = vld [vmem:[#allocation13 + $0x20] sm:$0xff] }
0x1db3   :  { %13672 = vmatprep.mubr.f32.mxu1 %v24477_v12 }
0x1db4   :  { %19823 = vmatpush1.bf16.msra.mxu0 %v23697_v1  ;;  %19839 = vmatpush1.bf16.msra.mxu1 %v23699_v41  ;;  %v23856_v1 = vpack.c.bf16 %v13713_v3, %v13709_v39  ;;  %v23858_v41 = vpack.c.bf16 %v13715_v43, %v13711_v24  ;;  %v14058_v3 = vld [vmem:[#allocation16 + $0x18] sm:$0xff] }
0x1db5   :  { %19825 = vmatprep.subr.bf16.mxu0 %v23703_v50  ;;  %19841 = vmatprep.subr.bf16.mxu1 %v23705_v40  ;;  %v13710_v50 = vld [vmem:[#allocation13 + $0x10] sm:$0xff]  ;;  %v14062_v24 = vld [vmem:[#allocation16 + $0x38] sm:$0xff] }
0x1db6   :  { %v13714_v40 = vld [vmem:[#allocation13 + $0x30] sm:$0xff]  ;;  %v23918_v43 = vpack.c.bf16 %v14062_v24, %v14058_v3 }
0x1db8   :  { %19827 = vmatpush1.bf16.msra.mxu0 %v23711_v25  ;;  %19843 = vmatpush1.bf16.msra.mxu1 %v23713_v53  ;;  %v23862_v25 = vpack.c.bf16 %v13712_v34, %v13708_v33  ;;  %v23864_v53 = vpack.c.bf16 %v13714_v40, %v13710_v50 }
0x1db9   :  { %19829 = vmatprep.subr.bf16.mxu0 %v23717_v15  ;;  %19845 = vmatprep.subr.bf16.mxu1 %v23719_v31  ;;  %v13716_v15 = vld [vmem:[#allocation13 + $0x40] sm:$0xff]  ;;  %v23868_v31 = vpack.c.bf16 %v13721_v35, %v13717_v4 }
0x1dbc   :  { %19831 = vmatpush1.bf16.msra.mxu0 %v23723_v48  ;;  %19847 = vmatpush1.bf16.msra.mxu1 %v23725_v42  ;;  %v23876_v48 = vpack.c.bf16 %v13720_v6, %v13716_v15  ;;  %v23878_v42 = vpack.c.bf16 %v13722_v10, %v13718_v32 }
0x1dbd   :  { %19849 = vmatprep.subr.bf16.mxu0 %v23856_v1  ;;  %19857 = vmatprep.subr.bf16.mxu1 %v23858_v41 }
0x1dbf   :  { %17885 = vmatmul.mubr.msk.f32.vlgmr.msra.gmra.mrb[100].mxu0 %vm264_vm0, %v13153_v9  ;;  %17886 = vmatmul.mubr.msk.f32.vlgmr.msra.gmra.mrb[100].mxu1 %vm264_vm0, %v13153_v9  ;;  %v13906_v9 = vld [vmem:[#allocation14 + $0x60] sm:$0xff] }
0x1dc0   :  { %19851 = vmatpush1.bf16.msra.mxu0 %v23862_v25  ;;  %19859 = vmatpush1.bf16.msra.mxu1 %v23864_v53  ;;  %v23910_v20 = vpack.c.bf16 %v13906_v9, %v13902_v61 }
0x1dc1   :  { %19853 = vmatprep.subr.bf16.mxu0 %v23868_v31  ;;  %19861 = vmatprep.subr.bf16.mxu1 %v23870_v7 }
0x1dc2   :  { %13788 = vmatprep.mubr.f32.mxu0 %v24477_v12  ;;  %13859 = vmatprep.mubr.f32.mxu1 %v24477_v12 }
0x1dc4   :  { %19855 = vmatpush1.bf16.msra.mxu0 %v23876_v48  ;;  %19863 = vmatpush1.bf16.msra.mxu1 %v23878_v42 }
0x1dc5   :  { %19865 = vmatprep.subr.bf16.mxu0 %v23890_v29  ;;  %19873 = vmatprep.subr.bf16.mxu1 %v23892_v59 }
0x1dc7   :  { %17890 = vmatmul.mubr.msk.f32.vlgmr.msra.gmra.mrb[102].mxu0 %vm674_vm1, %v13340_v60  ;;  %17891 = vmatmul.mubr.msk.f32.vlgmr.msra.gmra.mrb[102].mxu1 %vm674_vm1, %v13340_v60  ;;  %v14056_v60 = vld [vmem:[#allocation16 + $0x8] sm:$0xff] }
0x1dc8   :  { %13977 = vmatprep.mubr.f32.mxu0 %v24477_v12  ;;  %14048 = vmatprep.mubr.f32.mxu1 %v24477_v12  ;;  %v23916_v39 = vpack.c.bf16 %v14060_v28, %v14056_v60 }
0x1dc9   :  { %19867 = vmatpush1.bf16.msra.mxu0 %v23894_v2  ;;  %19875 = vmatpush1.bf16.msra.mxu1 %v23897_v14 }
0x1dca   :  { %19869 = vmatprep.subr.bf16.mxu0 %v23905_v36  ;;  %19877 = vmatprep.subr.bf16.mxu1 %v23907_v11 }
0x1dcd   :  { %19871 = vmatpush1.bf16.msra.mxu0 %v23910_v20  ;;  %19879 = vmatpush1.bf16.msra.mxu1 %v23914_v5 }
0x1dce   :  { %19881 = vmatprep.subr.bf16.mxu0 %v23916_v39  ;;  %19897 = vmatprep.subr.bf16.mxu1 %v23918_v43 }
0x1e3e   :  { %v17591_v18 = vpop.xlane.xlu1 %17590 }
0x1e3f   :  { %v17601_v51 = vadd.f32 %v17975_v21, %v17591_v18 }
0x1e41   :  { %17604 = vst.msk [vmem:[%s24443_s15] sm:$0xff] %vm17603_vm3, %v17601_v51 }
0x1e92   :  { %v13603_v33 = vpop.f32.mrb[100].mxu0  ;;  %v13674_v34 = vpop.f32.mrb[100].mxu1 }
0x1e93   :  { %v20392_v50 = vadd.f32 %v13603_v33, %v23241_v8  ;;  %v13605_v40 = vpop.f32.mrb[101].mxu0  ;;  %v13676_v4 = vpop.f32.mrb[101].mxu1  ;;  %v20394_v32 = vadd.f32 %v13674_v34, %v23249_v46 }
0x1e94   :  { %v20393_v35 = vadd.f32 %v13605_v40, %v23244_v54  ;;  %v20395_v18 = vadd.f32 %v13676_v4, %v23252_v19 }
0x1e95   :  { %v17887_v52 = vmul.f32 -1.442695, %v20392_v50  ;;  %v17889_v16 = vmul.f32 -1.442695, %v20394_v32 }
0x1e96   :  { %v17888_v27 = vmul.f32 -1.442695, %v20393_v35 }
0x1e97   :  { %21222 = vpow2.f32 %v17887_v52 }
0x1e98   :  { %21224 = vpow2.f32 %v17888_v27 }
0x1e9a   :  { %v13790_v15 = vpop.f32.mrb[102].mxu0  ;;  %v13861_v6 = vpop.f32.mrb[102].mxu1 }
0x1e9b   :  { %v13866_v10 = vadd.f32 %v13790_v15, %v23144_v22  ;;  %v13792_v21 = vpop.f32.mrb[103].mxu0  ;;  %v13863_v23 = vpop.f32.mrb[103].mxu1  ;;  %v13868_v56 = vadd.f32 %v13861_v6, %v23146_v49 }
0x1e9c   :  { %v13867_v37 = vadd.f32 %v13792_v21, %v23148_v17  ;;  %v13869_v44 = vadd.f32 %v13863_v23, %v23150_v38  ;;  %v14055_v23 = vld [vmem:[#allocation16] sm:$0xff] }
0x1e9d   :  { %v17892_v58 = vmul.f32 -1.442695, %v13866_v10  ;;  %v17894_v0 = vmul.f32 -1.442695, %v13868_v56 }
0x1e9e   :  { %v17893_v63 = vmul.f32 -1.442695, %v13867_v37  ;;  %v14059_v37 = vld [vmem:[#allocation16 + $0x20] sm:$0xff] }
0x1e9f   :  { %21226 = vpow2.f32 %v17892_v58  ;;  %v14057_v58 = vld [vmem:[#allocation16 + $0x10] sm:$0xff]  ;;  %v23943_v56 = vpack.c.bf16 %v14059_v37, %v14055_v23  ;;  %v14086_v23 = vld [vmem:[#allocation16 + $0xf8] sm:$0xff] }
0x1ea0   :  { %21228 = vpow2.f32 %v17893_v63  ;;  %v14064_v63 = vld [vmem:[#allocation16 + $0x48] sm:$0xff] }
0x1ea1   :  { %v21223_v26 = vpop.eup %21222  ;;  %21230 = vtanh.f32 %v20395_v18  ;;  %v14061_v18 = vld [vmem:[#allocation16 + $0x30] sm:$0xff] }
0x1ea2   :  { %v13692_v51 = vadd.f32 1.0, %v21223_v26  ;;  %v21225_v30 = vpop.eup %21224  ;;  %21232 = vpow2.f32 %v17889_v16  ;;  %v14068_v16 = vld [vmem:[#allocation16 + $0x68] sm:$0xff]  ;;  %v14066_v26 = vld [vmem:[#allocation16 + $0x58] sm:$0xff] }
0x1ea3   :  { %v13693_v55 = vadd.f32 1.0, %v21225_v30 }
0x1ea4   :  { %21234 = vrcp.f32 %v13692_v51  ;;  %v14070_v51 = vld [vmem:[#allocation16 + $0x78] sm:$0xff] }
0x1ea5   :  { %21236 = vrcp.f32 %v13693_v55  ;;  %v23945_v55 = vpack.c.bf16 %v14061_v18, %v14057_v58  ;;  %v14079_v18 = vld [vmem:[#allocation16 + $0xc0] sm:$0xff] }
0x1ea6   :  { %21238 = vtanh.f32 %v13869_v44  ;;  %v14063_v44 = vld [vmem:[#allocation16 + $0x40] sm:$0xff] }
0x1ea7   :  { %21240 = vpow2.f32 %v17894_v0  ;;  %v14067_v0 = vld [vmem:[#allocation16 + $0x60] sm:$0xff] }
0x1ea9   :  { %v21227_v45 = vpop.eup %21226 }
0x1eaa   :  { %v13879_v61 = vadd.f32 1.0, %v21227_v45  ;;  %v21229_v9 = vpop.eup %21228 }
0x1eab   :  { %v21231_v13 = vpop.eup %21230  ;;  %v13880_v47 = vadd.f32 1.0, %v21229_v9  ;;  %v23951_v9 = vpack.c.bf16 %v14070_v51, %v14066_v26  ;;  %v14083_v26 = vld [vmem:[#allocation16 + $0xe0] sm:$0xff]  ;;  %v14081_v51 = vld [vmem:[#allocation16 + $0xd0] sm:$0xff] }
0x1eac   :  { %21242 = vrcp.f32 %v13879_v61  ;;  %v21233_v60 = vpop.eup %21232  ;;  %v23949_v61 = vpack.c.bf16 %v14068_v16, %v14064_v63 }
0x1ead   :  { %21244 = vrcp.f32 %v13880_v47  ;;  %v13694_v33 = vadd.f32 1.0, %v21233_v60  ;;  %v14069_v47 = vld [vmem:[#allocation16 + $0x70] sm:$0xff]  ;;  %v14072_v60 = vld [vmem:[#allocation16 + $0x88] sm:$0xff] }
0x1eae   :  { %v21235_v28 = vpop.eup %21234 }
0x1eaf   :  { %v13703_v3 = vmul.f32 %v21235_v28, %v21231_v13  ;;  %v21237_v24 = vpop.eup %21236  ;;  %21246 = vrcp.f32 %v13694_v33  ;;  %v14065_v13 = vld [vmem:[#allocation16 + $0x50] sm:$0xff]  ;;  %v14076_v28 = vld [vmem:[#allocation16 + $0xa8] sm:$0xff]  ;;  %v23959_v33 = vpack.c.bf16 %v14067_v0, %v14063_v44 }
0x1eb0   :  { %v13702_v34 = vmul.f32 %v21237_v24, %v23830_v57  ;;  %v21239_v40 = vpop.eup %21238  ;;  %v14078_v24 = vld [vmem:[#allocation16 + $0xb8] sm:$0xff] }
0x1eb1   :  { %v21241_v4 = vpop.eup %21240 }
0x1eb2   :  { %v23933_v50 = vadd.f32 %v13703_v3, %v13702_v34  ;;  %v13881_v15 = vadd.f32 1.0, %v21241_v4  ;;  %v14074_v3 = vld [vmem:[#allocation16 + $0x98] sm:$0xff]  ;;  %v23961_v34 = vpack.c.bf16 %v14069_v47, %v14065_v13  ;;  %v14075_v4 = vld [vmem:[#allocation16 + $0xa0] sm:$0xff] }
0x1eb4   :  { %21248 = vtanh.f32 %v23933_v50 }
0x1eb5   :  { %21250 = vrcp.f32 %v13881_v15  ;;  %v14077_v15 = vld [vmem:[#allocation16 + $0xb0] sm:$0xff] }
0x1eb6   :  { %v21243_v35 = vpop.eup %21242 }
0x1eb7   :  { %v13890_v52 = vmul.f32 %v21243_v35, %v21239_v40  ;;  %v21245_v27 = vpop.eup %21244  ;;  %v14071_v40 = vld [vmem:[#allocation16 + $0x80] sm:$0xff]  ;;  %v23965_v35 = vpack.c.bf16 %v14076_v28, %v14072_v60 }
0x1eb8   :  { %v13889_v6 = vmul.f32 %v21245_v27, %v23834_v62  ;;  %v14073_v27 = vld [vmem:[#allocation16 + $0x90] sm:$0xff]  ;;  %v23973_v37 = vpack.c.bf16 %v14075_v4, %v14071_v40 }
0x1eb9   :  { %v21247_v10 = vpop.eup %21246  ;;  %v23975_v58 = vpack.c.bf16 %v14077_v15, %v14073_v27 }
0x1eba   :  { %v23937_v32 = vadd.f32 %v13890_v52, %v13889_v6  ;;  %v23967_v52 = vpack.c.bf16 %v14078_v24, %v14074_v3  ;;  %v14080_v6 = vld [vmem:[#allocation16 + $0xc8] sm:$0xff] }
0x1ebc   :  { %21252 = vtanh.f32 %v23937_v32 }
0x1ebe   :  { %v21249_v57 = vpop.eup %21248 }
0x1ebf   :  { %v23940_v21 = vmul.f32 %v21249_v57, %v21247_v10  ;;  %v21251_v62 = vpop.eup %21250  ;;  %v14084_v10 = vld [vmem:[#allocation16 + $0xe8] sm:$0xff]  ;;  %v14082_v57 = vld [vmem:[#allocation16 + $0xd8] sm:$0xff] }
0x1ec0   :  { %v23979_v63 = vpack.c.bf16 %v14084_v10, %v14080_v6  ;;  %v23981_v16 = vpack.c.bf16 %v14086_v23, %v14082_v57 }
0x1ec1   :  { %13707 = vst [vmem:[#allocation3 + $0x8] sm:$0x1] %v23940_v21 }
0x1ec6   :  { %v21253_v30 = vpop.eup %21252 }
0x1ec7   :  { %v23947_v45 = vmul.f32 %v21253_v30, %v21251_v62  ;;  %v14085_v62 = vld [vmem:[#allocation16 + $0xf0] sm:$0xff]  ;;  %v23985_v30 = vpack.c.bf16 %v14083_v26, %v14079_v18 }
0x1ec8   :  { %v23987_v44 = vpack.c.bf16 %v14085_v62, %v14081_v51 }
0x1ec9   :  { %17895 = vmatmul.mubr.msk.f32.vlgmr.msra.gmra.mrb[104].mxu0 %vm674_vm1, %v23947_v45  ;;  %17896 = vmatmul.mubr.msk.f32.vlgmr.msra.gmra.mrb[104].mxu1 %vm674_vm1, %v23947_v45 }
0x1eca   :  { %19883 = vmatpush1.bf16.msra.mxu0 %v23943_v56  ;;  %19899 = vmatpush1.bf16.msra.mxu1 %v23945_v55 }
0x1ecb   :  { %19885 = vmatprep.subr.bf16.mxu0 %v23949_v61  ;;  %19901 = vmatprep.subr.bf16.mxu1 %v23951_v9 }
0x1ecc   :  { %14154 = vmatprep.mubr.f32.mxu0 %v24477_v12  ;;  %14225 = vmatprep.mubr.f32.mxu1 %v24477_v12 }
0x1ece   :  { %19887 = vmatpush1.bf16.msra.mxu0 %v23959_v33  ;;  %19903 = vmatpush1.bf16.msra.mxu1 %v23961_v34 }
0x1ecf   :  { %19889 = vmatprep.subr.bf16.mxu0 %v23965_v35  ;;  %19905 = vmatprep.subr.bf16.mxu1 %v23967_v52 }
0x1ed2   :  { %19891 = vmatpush1.bf16.msra.mxu0 %v23973_v37  ;;  %19907 = vmatpush1.bf16.msra.mxu1 %v23975_v58 }
0x1ed3   :  { %19893 = vmatprep.subr.bf16.mxu0 %v23979_v63  ;;  %19909 = vmatprep.subr.bf16.mxu1 %v23981_v16 }
0x1ed6   :  { %19895 = vmatpush1.bf16.msra.mxu0 %v23985_v30  ;;  %19911 = vmatpush1.bf16.msra.mxu1 %v23987_v44 }
0x1ed7   :  { %19913 = vmatprep.subr.bf16.mxu0 %v23856_v1  ;;  %19921 = vmatprep.subr.bf16.mxu1 %v23858_v41 }
0x1ed9   :  { %17897 = vmatmul.mubr.msk.f32.vlgmr.msra.gmra.mrb[104].mxu0 %vm264_vm0, %v23940_v21  ;;  %17898 = vmatmul.mubr.msk.f32.vlgmr.msra.gmra.mrb[104].mxu1 %vm264_vm0, %v23940_v21 }
0x1eda   :  { %19915 = vmatpush1.bf16.msra.mxu0 %v23862_v25  ;;  %19923 = vmatpush1.bf16.msra.mxu1 %v23864_v53 }
0x1edb   :  { %19917 = vmatprep.subr.bf16.mxu0 %v23868_v31  ;;  %19925 = vmatprep.subr.bf16.mxu1 %v23870_v7 }
0x1edc   :  { %14341 = vmatprep.mubr.f32.mxu0 %v24477_v12  ;;  %14412 = vmatprep.mubr.f32.mxu1 %v24477_v12 }
0x1ede   :  { %19919 = vmatpush1.bf16.msra.mxu0 %v23876_v48  ;;  %19927 = vmatpush1.bf16.msra.mxu1 %v23878_v42 }
0x1edf   :  { %19929 = vmatprep.subr.bf16.mxu0 %v23890_v29  ;;  %19937 = vmatprep.subr.bf16.mxu1 %v23892_v59 }
0x1ee1   :  { %17902 = vmatmul.mubr.msk.f32.vlgmr.msra.gmra.mrb[106].mxu0 %vm674_vm1, %v23947_v45  ;;  %17903 = vmatmul.mubr.msk.f32.vlgmr.msra.gmra.mrb[106].mxu1 %vm674_vm1, %v23947_v45 }
0x1ee2   :  { %19931 = vmatpush1.bf16.msra.mxu0 %v23894_v2  ;;  %19939 = vmatpush1.bf16.msra.mxu1 %v23897_v14 }
0x1ee3   :  { %19933 = vmatprep.subr.bf16.mxu0 %v23905_v36  ;;  %19941 = vmatprep.subr.bf16.mxu1 %v23907_v11 }
0x1ee4   :  { %14530 = vmatprep.mubr.f32.mxu0 %v24477_v12  ;;  %14601 = vmatprep.mubr.f32.mxu1 %v24477_v12 }
0x1ee6   :  { %19935 = vmatpush1.bf16.msra.mxu0 %v23910_v20  ;;  %19943 = vmatpush1.bf16.msra.mxu1 %v23914_v5 }
0x1ee7   :  { %19945 = vmatprep.subr.bf16.mxu0 %v23916_v39  ;;  %19961 = vmatprep.subr.bf16.mxu1 %v23918_v43 }
0x1fac   :  { %v14156_v21 = vpop.f32.mrb[104].mxu0  ;;  %v14227_v0 = vpop.f32.mrb[104].mxu1 }
0x1fad   :  { %v20396_v45 = vadd.f32 %v14156_v21, %v23241_v8  ;;  %v14158_v13 = vpop.f32.mrb[105].mxu0  ;;  %v14229_v47 = vpop.f32.mrb[105].mxu1  ;;  %v20398_v4 = vadd.f32 %v14227_v0, %v23249_v46 }
0x1fae   :  { %v20397_v60 = vadd.f32 %v14158_v13, %v23244_v54  ;;  %v20399_v23 = vadd.f32 %v14229_v47, %v23252_v19 }
0x1faf   :  { %v17899_v28 = vmul.f32 -1.442695, %v20396_v45  ;;  %v17901_v26 = vmul.f32 -1.442695, %v20398_v4 }
0x1fb0   :  { %v17900_v3 = vmul.f32 -1.442695, %v20397_v60 }
0x1fb1   :  { %21254 = vpow2.f32 %v17899_v28 }
0x1fb2   :  { %21256 = vpow2.f32 %v17900_v3 }
0x1fb4   :  { %v14343_v24 = vpop.f32.mrb[106].mxu0  ;;  %v14414_v40 = vpop.f32.mrb[106].mxu1 }
0x1fb5   :  { %v14419_v27 = vadd.f32 %v14343_v24, %v23144_v22  ;;  %v14345_v15 = vpop.f32.mrb[107].mxu0  ;;  %v14416_v6 = vpop.f32.mrb[107].mxu1  ;;  %v14421_v0 = vadd.f32 %v14414_v40, %v23146_v49 }
0x1fb6   :  { %v14420_v10 = vadd.f32 %v14345_v15, %v23148_v17  ;;  %v14422_v13 = vadd.f32 %v14416_v6, %v23150_v38 }
0x1fb7   :  { %v17904_v57 = vmul.f32 -1.442695, %v14419_v27  ;;  %v17906_v60 = vmul.f32 -1.442695, %v14421_v0 }
0x1fb8   :  { %v17905_v18 = vmul.f32 -1.442695, %v14420_v10 }
0x1fb9   :  { %21258 = vpow2.f32 %v17904_v57 }
0x1fba   :  { %21260 = vpow2.f32 %v17905_v18 }
0x1fbb   :  { %v21255_v51 = vpop.eup %21254  ;;  %21262 = vtanh.f32 %v20399_v23 }
0x1fbc   :  { %v14245_v62 = vadd.f32 1.0, %v21255_v51  ;;  %v21257_v21 = vpop.eup %21256  ;;  %21264 = vpow2.f32 %v17901_v26 }
0x1fbd   :  { %v14246_v45 = vadd.f32 1.0, %v21257_v21 }
0x1fbe   :  { %21266 = vrcp.f32 %v14245_v62 }
0x1fbf   :  { %21268 = vrcp.f32 %v14246_v45 }
0x1fc0   :  { %21270 = vtanh.f32 %v14422_v13 }
0x1fc1   :  { %21272 = vpow2.f32 %v17906_v60 }
0x1fc3   :  { %v21259_v28 = vpop.eup %21258 }
0x1fc4   :  { %v14432_v3 = vadd.f32 1.0, %v21259_v28  ;;  %v21261_v47 = vpop.eup %21260 }
0x1fc5   :  { %v21263_v24 = vpop.eup %21262  ;;  %v14433_v4 = vadd.f32 1.0, %v21261_v47 }
0x1fc6   :  { %21274 = vrcp.f32 %v14432_v3  ;;  %v21265_v27 = vpop.eup %21264 }
0x1fc7   :  { %21276 = vrcp.f32 %v14433_v4  ;;  %v14247_v40 = vadd.f32 1.0, %v21265_v27 }
0x1fc8   :  { %v21267_v15 = vpop.eup %21266 }
0x1fc9   :  { %v14256_v10 = vmul.f32 %v21267_v15, %v21263_v24  ;;  %v21269_v57 = vpop.eup %21268  ;;  %21278 = vrcp.f32 %v14247_v40 }
0x1fca   :  { %v14255_v23 = vmul.f32 %v21269_v57, %v23933_v50  ;;  %v21271_v6 = vpop.eup %21270 }
0x1fcb   :  { %v21273_v26 = vpop.eup %21272 }
0x1fcc   :  { %v24032_v18 = vadd.f32 %v14256_v10, %v14255_v23  ;;  %v14434_v0 = vadd.f32 1.0, %v21273_v26 }
0x1fce   :  { %21280 = vtanh.f32 %v24032_v18 }
0x1fcf   :  { %21282 = vrcp.f32 %v14434_v0 }
0x1fd0   :  { %v21275_v51 = vpop.eup %21274 }
0x1fd1   :  { %v14443_v62 = vmul.f32 %v21275_v51, %v21271_v6  ;;  %v21277_v21 = vpop.eup %21276 }
0x1fd2   :  { %v14442_v45 = vmul.f32 %v21277_v21, %v23937_v32 }
0x1fd3   :  { %v21279_v60 = vpop.eup %21278 }
0x1fd4   :  { %v24036_v13 = vadd.f32 %v14443_v62, %v14442_v45 }
0x1fd6   :  { %21284 = vtanh.f32 %v24036_v13 }
0x1fd8   :  { %v21281_v50 = vpop.eup %21280 }
0x1fd9   :  { %v14259_v28 = vmul.f32 %v21281_v50, %v21279_v60  ;;  %v21283_v3 = vpop.eup %21282 }
0x1fdb   :  { %14260 = vst [vmem:[#allocation3 + $0x9] sm:$0x1] %v14259_v28 }
0x1fe0   :  { %v21285_v47 = vpop.eup %21284 }
0x1fe1   :  { %v14446_v24 = vmul.f32 %v21285_v47, %v21283_v3 }
0x1fe3   :  { %17907 = vmatmul.mubr.msk.f32.vlgmr.msra.gmra.mrb[108].mxu0 %vm674_vm1, %v14446_v24  ;;  %17908 = vmatmul.mubr.msk.f32.vlgmr.msra.gmra.mrb[108].mxu1 %vm674_vm1, %v14446_v24 }
0x1fe4   :  { %19947 = vmatpush1.bf16.msra.mxu0 %v23943_v56  ;;  %19963 = vmatpush1.bf16.msra.mxu1 %v23945_v55 }
0x1fe5   :  { %19949 = vmatprep.subr.bf16.mxu0 %v23949_v61  ;;  %19965 = vmatprep.subr.bf16.mxu1 %v23951_v9 }
0x1fe6   :  { %14707 = vmatprep.mubr.f32.mxu0 %v24477_v12  ;;  %14778 = vmatprep.mubr.f32.mxu1 %v24477_v12 }
0x1fe8   :  { %19951 = vmatpush1.bf16.msra.mxu0 %v23959_v33  ;;  %19967 = vmatpush1.bf16.msra.mxu1 %v23961_v34 }
0x1fe9   :  { %19953 = vmatprep.subr.bf16.mxu0 %v23965_v35  ;;  %19969 = vmatprep.subr.bf16.mxu1 %v23967_v52 }
0x1fec   :  { %19955 = vmatpush1.bf16.msra.mxu0 %v23973_v37  ;;  %19971 = vmatpush1.bf16.msra.mxu1 %v23975_v58 }
0x1fed   :  { %19957 = vmatprep.subr.bf16.mxu0 %v23979_v63  ;;  %19973 = vmatprep.subr.bf16.mxu1 %v23981_v16 }
0x1ff0   :  { %19959 = vmatpush1.bf16.msra.mxu0 %v23985_v30  ;;  %19975 = vmatpush1.bf16.msra.mxu1 %v23987_v44 }
0x1ff1   :  { %19977 = vmatprep.subr.bf16.mxu0 %v23856_v1  ;;  %19985 = vmatprep.subr.bf16.mxu1 %v23858_v41 }
0x1ff3   :  { %17909 = vmatmul.mubr.msk.f32.vlgmr.msra.gmra.mrb[108].mxu0 %vm264_vm0, %v14259_v28  ;;  %17910 = vmatmul.mubr.msk.f32.vlgmr.msra.gmra.mrb[108].mxu1 %vm264_vm0, %v14259_v28 }
0x1ff4   :  { %19979 = vmatpush1.bf16.msra.mxu0 %v23862_v25  ;;  %19987 = vmatpush1.bf16.msra.mxu1 %v23864_v53 }
0x1ff5   :  { %19981 = vmatprep.subr.bf16.mxu0 %v23868_v31  ;;  %19989 = vmatprep.subr.bf16.mxu1 %v23870_v7 }
0x1ff6   :  { %14894 = vmatprep.mubr.f32.mxu0 %v24477_v12  ;;  %14965 = vmatprep.mubr.f32.mxu1 %v24477_v12 }
0x1ff8   :  { %19983 = vmatpush1.bf16.msra.mxu0 %v23876_v48  ;;  %19991 = vmatpush1.bf16.msra.mxu1 %v23878_v42 }
0x1ff9   :  { %19993 = vmatprep.subr.bf16.mxu0 %v23890_v29  ;;  %20001 = vmatprep.subr.bf16.mxu1 %v23892_v59 }
0x1ffb   :  { %17914 = vmatmul.mubr.msk.f32.vlgmr.msra.gmra.mrb[110].mxu0 %vm674_vm1, %v14446_v24  ;;  %17915 = vmatmul.mubr.msk.f32.vlgmr.msra.gmra.mrb[110].mxu1 %vm674_vm1, %v14446_v24 }
0x1ffc   :  { %19995 = vmatpush1.bf16.msra.mxu0 %v23894_v2  ;;  %20003 = vmatpush1.bf16.msra.mxu1 %v23897_v14 }
0x1ffd   :  { %19997 = vmatprep.subr.bf16.mxu0 %v23905_v36  ;;  %20005 = vmatprep.subr.bf16.mxu1 %v23907_v11 }
0x1ffe   :  { %15083 = vmatprep.mubr.f32.mxu0 %v24477_v12  ;;  %15154 = vmatprep.mubr.f32.mxu1 %v24477_v12 }
0x2000   :  { %19999 = vmatpush1.bf16.msra.mxu0 %v23910_v20  ;;  %20007 = vmatpush1.bf16.msra.mxu1 %v23914_v5 }
0x2001   :  { %20009 = vmatprep.subr.bf16.mxu0 %v23916_v39  ;;  %20025 = vmatprep.subr.bf16.mxu1 %v23918_v43 }
0x20c6   :  { %v14709_v1 = vpop.f32.mrb[108].mxu0  ;;  %v14780_v41 = vpop.f32.mrb[108].mxu1 }
0x20c7   :  { %v20400_v25 = vadd.f32 %v14709_v1, %v23241_v8  ;;  %v14711_v53 = vpop.f32.mrb[109].mxu0  ;;  %v14782_v31 = vpop.f32.mrb[109].mxu1  ;;  %v20402_v2 = vadd.f32 %v14780_v41, %v23249_v46 }
0x20c8   :  { %v20401_v7 = vadd.f32 %v14711_v53, %v23244_v54  ;;  %v20403_v39 = vadd.f32 %v14782_v31, %v23252_v19 }
0x20c9   :  { %v17911_v48 = vmul.f32 -1.442695, %v20400_v25  ;;  %v17913_v32 = vmul.f32 -1.442695, %v20402_v2 }
0x20ca   :  { %v17912_v42 = vmul.f32 -1.442695, %v20401_v7 }
0x20cb   :  { %21286 = vpow2.f32 %v17911_v48 }
0x20cc   :  { %21288 = vpow2.f32 %v17912_v42 }
0x20ce   :  { %v14896_v29 = vpop.f32.mrb[110].mxu0  ;;  %v14967_v59 = vpop.f32.mrb[110].mxu1 }
0x20cf   :  { %v14972_v14 = vadd.f32 %v14896_v29, %v23144_v22  ;;  %v14898_v36 = vpop.f32.mrb[111].mxu0  ;;  %v14969_v11 = vpop.f32.mrb[111].mxu1  ;;  %v14974_v10 = vadd.f32 %v14967_v59, %v23146_v49 }
0x20d0   :  { %v14973_v20 = vadd.f32 %v14898_v36, %v23148_v17  ;;  %v14975_v40 = vadd.f32 %v14969_v11, %v23150_v38  ;;  %v15370_v36 = vld [vmem:[#allocation13 + $0x18] sm:$0xff]  ;;  %v15376_v11 = vld [vmem:[#allocation13 + $0x48] sm:$0xff] }
0x20d1   :  { %v17916_v5 = vmul.f32 -1.442695, %v14972_v14  ;;  %v17918_v23 = vmul.f32 -1.442695, %v14974_v10  ;;  %v15558_v10 = vld [vmem:[#allocation14 + $0x28] sm:$0xff] }
0x20d2   :  { %v17917_v43 = vmul.f32 -1.442695, %v14973_v20  ;;  %v15380_v20 = vld [vmem:[#allocation13 + $0x68] sm:$0xff] }
0x20d3   :  { %21290 = vpow2.f32 %v17916_v5  ;;  %v15378_v5 = vld [vmem:[#allocation13 + $0x58] sm:$0xff] }
0x20d4   :  { %21292 = vpow2.f32 %v17917_v43 }
0x20d5   :  { %v21287_v4 = vpop.eup %21286  ;;  %21294 = vtanh.f32 %v20403_v39  ;;  %v15382_v39 = vld [vmem:[#allocation13 + $0x78] sm:$0xff] }
0x20d6   :  { %v14798_v27 = vadd.f32 1.0, %v21287_v4  ;;  %v21289_v15 = vpop.eup %21288  ;;  %21296 = vpow2.f32 %v17913_v32  ;;  %v24129_v43 = vpack.c.bf16 %v15382_v39, %v15378_v5  ;;  %v15379_v32 = vld [vmem:[#allocation13 + $0x60] sm:$0xff]  ;;  %v15377_v4 = vld [vmem:[#allocation13 + $0x50] sm:$0xff] }
0x20d7   :  { %v14799_v57 = vadd.f32 1.0, %v21289_v15  ;;  %v15554_v15 = vld [vmem:[#allocation14 + $0x8] sm:$0xff] }
0x20d8   :  { %21298 = vrcp.f32 %v14798_v27  ;;  %v15381_v27 = vld [vmem:[#allocation13 + $0x70] sm:$0xff] }
0x20d9   :  { %21300 = vrcp.f32 %v14799_v57  ;;  %v15556_v57 = vld [vmem:[#allocation14 + $0x18] sm:$0xff] }
0x20da   :  { %21302 = vtanh.f32 %v14975_v40  ;;  %v24149_v40 = vpack.c.bf16 %v15558_v10, %v15554_v15 }
0x20db   :  { %21304 = vpow2.f32 %v17918_v23  ;;  %v15560_v23 = vld [vmem:[#allocation14 + $0x38] sm:$0xff] }
0x20dd   :  { %v21291_v6 = vpop.eup %21290 }
0x20de   :  { %v14985_v26 = vadd.f32 1.0, %v21291_v6  ;;  %v21293_v51 = vpop.eup %21292  ;;  %v15553_v6 = vld [vmem:[#allocation14] sm:$0xff] }
0x20df   :  { %v21295_v62 = vpop.eup %21294  ;;  %v14986_v21 = vadd.f32 1.0, %v21293_v51  ;;  %v24151_v51 = vpack.c.bf16 %v15560_v23, %v15556_v57 }
0x20e0   :  { %21306 = vrcp.f32 %v14985_v26  ;;  %v21297_v0 = vpop.eup %21296  ;;  %v15557_v26 = vld [vmem:[#allocation14 + $0x20] sm:$0xff] }
0x20e1   :  { %21308 = vrcp.f32 %v14986_v21  ;;  %v14800_v28 = vadd.f32 1.0, %v21297_v0  ;;  %v15555_v21 = vld [vmem:[#allocation14 + $0x10] sm:$0xff] }
0x20e2   :  { %v21299_v45 = vpop.eup %21298  ;;  %v15559_v0 = vld [vmem:[#allocation14 + $0x30] sm:$0xff] }
0x20e3   :  { %v14809_v60 = vmul.f32 %v21299_v45, %v21295_v62  ;;  %v21301_v50 = vpop.eup %21300  ;;  %21310 = vrcp.f32 %v14800_v28  ;;  %v24153_v62 = vpack.c.bf16 %v15557_v26, %v15553_v6  ;;  %v15562_v45 = vld [vmem:[#allocation14 + $0x48] sm:$0xff]  ;;  %v15564_v28 = vld [vmem:[#allocation14 + $0x58] sm:$0xff] }
0x20e4   :  { %v14808_v3 = vmul.f32 %v21301_v50, %v24032_v18  ;;  %v21303_v24 = vpop.eup %21302  ;;  %v15566_v50 = vld [vmem:[#allocation14 + $0x68] sm:$0xff] }
0x20e5   :  { %v21305_v1 = vpop.eup %21304 }
0x20e6   :  { %v24092_v47 = vadd.f32 %v14809_v60, %v14808_v3  ;;  %v14987_v31 = vadd.f32 1.0, %v21305_v1  ;;  %v24156_v60 = vpack.c.bf16 %v15559_v0, %v15555_v21  ;;  %v15568_v3 = vld [vmem:[#allocation14 + $0x78] sm:$0xff] }
0x20e7   :  { %v24162_v1 = vpack.c.bf16 %v15568_v3, %v15564_v28 }
0x20e8   :  { %21312 = vtanh.f32 %v24092_v47 }
0x20e9   :  { %21314 = vrcp.f32 %v14987_v31 }
0x20ea   :  { %v21307_v41 = vpop.eup %21306 }
0x20eb   :  { %v14996_v25 = vmul.f32 %v21307_v41, %v21303_v24  ;;  %v21309_v53 = vpop.eup %21308  ;;  %v24160_v24 = vpack.c.bf16 %v15566_v50, %v15562_v45  ;;  %v15561_v41 = vld [vmem:[#allocation14 + $0x40] sm:$0xff] }
0x20ec   :  { %v14995_v7 = vmul.f32 %v21309_v53, %v24036_v13  ;;  %v15368_v13 = vld [vmem:[#allocation13 + $0x8] sm:$0xff]  ;;  %v15563_v53 = vld [vmem:[#allocation14 + $0x50] sm:$0xff] }
0x20ed   :  { %v21311_v42 = vpop.eup %21310 }
0x20ee   :  { %v24096_v48 = vadd.f32 %v14996_v25, %v14995_v7  ;;  %v15565_v25 = vld [vmem:[#allocation14 + $0x60] sm:$0xff]  ;;  %v15567_v7 = vld [vmem:[#allocation14 + $0x70] sm:$0xff] }
0x20ef   :  { %v24165_v31 = vpack.c.bf16 %v15565_v25, %v15561_v41 }
0x20f0   :  { %21316 = vtanh.f32 %v24096_v48 }
0x20f2   :  { %v21313_v18 = vpop.eup %21312 }
0x20f3   :  { %v14812_v29 = vmul.f32 %v21313_v18, %v21311_v42  ;;  %v21315_v59 = vpop.eup %21314  ;;  %v15715_v42 = vld [vmem:[#allocation16 + $0x8] sm:$0xff] }
0x20f4   :  { %v15719_v18 = vld [vmem:[#allocation16 + $0x28] sm:$0xff] }
0x20f5   :  { %14813 = vst [vmem:[#allocation3 + $0xa] sm:$0x1] %v14812_v29 }
0x20fa   :  { %v21317_v2 = vpop.eup %21316 }
0x20fb   :  { %v14999_v14 = vmul.f32 %v21317_v2, %v21315_v59  ;;  %v24171_v59 = vpack.c.bf16 %v15719_v18, %v15715_v42  ;;  %v15717_v2 = vld [vmem:[#allocation16 + $0x18] sm:$0xff] }
0x20fd   :  { %17919 = vmatmul.mubr.msk.f32.vlgmr.msra.gmra.mrb[112].mxu0 %vm674_vm1, %v14999_v14  ;;  %17920 = vmatmul.mubr.msk.f32.vlgmr.msra.gmra.mrb[112].mxu1 %vm674_vm1, %v14999_v14 }
0x20fe   :  { %20011 = vmatpush1.bf16.msra.mxu0 %v23943_v56  ;;  %20027 = vmatpush1.bf16.msra.mxu1 %v23945_v55  ;;  %v15372_v56 = vld [vmem:[#allocation13 + $0x28] sm:$0xff]  ;;  %v15374_v55 = vld [vmem:[#allocation13 + $0x38] sm:$0xff] }
0x20ff   :  { %20013 = vmatprep.subr.bf16.mxu0 %v23949_v61  ;;  %20029 = vmatprep.subr.bf16.mxu1 %v23951_v9  ;;  %v15367_v61 = vld [vmem:[#allocation13] sm:$0xff] }
0x2100   :  { %15260 = vmatprep.mubr.f32.mxu0 %v24477_v12  ;;  %15331 = vmatprep.mubr.f32.mxu1 %v24477_v12  ;;  %v15371_v9 = vld [vmem:[#allocation13 + $0x20] sm:$0xff] }
0x2102   :  { %20015 = vmatpush1.bf16.msra.mxu0 %v23959_v33  ;;  %20031 = vmatpush1.bf16.msra.mxu1 %v23961_v34  ;;  %v24115_v33 = vpack.c.bf16 %v15372_v56, %v15368_v13  ;;  %v24117_v34 = vpack.c.bf16 %v15374_v55, %v15370_v36 }
0x2103   :  { %20017 = vmatprep.subr.bf16.mxu0 %v23965_v35  ;;  %20033 = vmatprep.subr.bf16.mxu1 %v23967_v52  ;;  %v15369_v35 = vld [vmem:[#allocation13 + $0x10] sm:$0xff] }
0x2104   :  { %v15373_v52 = vld [vmem:[#allocation13 + $0x30] sm:$0xff] }
0x2106   :  { %20019 = vmatpush1.bf16.msra.mxu0 %v23973_v37  ;;  %20035 = vmatpush1.bf16.msra.mxu1 %v23975_v58  ;;  %v24121_v37 = vpack.c.bf16 %v15371_v9, %v15367_v61  ;;  %v24123_v58 = vpack.c.bf16 %v15373_v52, %v15369_v35 }
0x2107   :  { %20021 = vmatprep.subr.bf16.mxu0 %v23979_v63  ;;  %20037 = vmatprep.subr.bf16.mxu1 %v23981_v16  ;;  %v15375_v63 = vld [vmem:[#allocation13 + $0x40] sm:$0xff]  ;;  %v24127_v16 = vpack.c.bf16 %v15380_v20, %v15376_v11 }
0x210a   :  { %20023 = vmatpush1.bf16.msra.mxu0 %v23985_v30  ;;  %20039 = vmatpush1.bf16.msra.mxu1 %v23987_v44  ;;  %v24135_v30 = vpack.c.bf16 %v15379_v32, %v15375_v63  ;;  %v24137_v44 = vpack.c.bf16 %v15381_v27, %v15377_v4 }
0x210b   :  { %20041 = vmatprep.subr.bf16.mxu0 %v24115_v33  ;;  %20049 = vmatprep.subr.bf16.mxu1 %v24117_v34 }
0x210d   :  { %17921 = vmatmul.mubr.msk.f32.vlgmr.msra.gmra.mrb[112].mxu0 %vm264_vm0, %v14812_v29  ;;  %17922 = vmatmul.mubr.msk.f32.vlgmr.msra.gmra.mrb[112].mxu1 %vm264_vm0, %v14812_v29  ;;  %v24169_v29 = vpack.c.bf16 %v15567_v7, %v15563_v53 }
0x210e   :  { %20043 = vmatpush1.bf16.msra.mxu0 %v24121_v37  ;;  %20051 = vmatpush1.bf16.msra.mxu1 %v24123_v58 }
0x210f   :  { %20045 = vmatprep.subr.bf16.mxu0 %v24127_v16  ;;  %20053 = vmatprep.subr.bf16.mxu1 %v24129_v43 }
0x2110   :  { %15447 = vmatprep.mubr.f32.mxu0 %v24477_v12  ;;  %15518 = vmatprep.mubr.f32.mxu1 %v24477_v12 }
0x2112   :  { %20047 = vmatpush1.bf16.msra.mxu0 %v24135_v30  ;;  %20055 = vmatpush1.bf16.msra.mxu1 %v24137_v44 }
0x2113   :  { %20057 = vmatprep.subr.bf16.mxu0 %v24149_v40  ;;  %20065 = vmatprep.subr.bf16.mxu1 %v24151_v51 }
0x2115   :  { %17926 = vmatmul.mubr.msk.f32.vlgmr.msra.gmra.mrb[114].mxu0 %vm674_vm1, %v14999_v14  ;;  %17927 = vmatmul.mubr.msk.f32.vlgmr.msra.gmra.mrb[114].mxu1 %vm674_vm1, %v14999_v14  ;;  %v15721_v14 = vld [vmem:[#allocation16 + $0x38] sm:$0xff] }
0x2116   :  { %15636 = vmatprep.mubr.f32.mxu0 %v24477_v12  ;;  %15707 = vmatprep.mubr.f32.mxu1 %v24477_v12  ;;  %v24173_v13 = vpack.c.bf16 %v15721_v14, %v15717_v2 }
0x2117   :  { %20059 = vmatpush1.bf16.msra.mxu0 %v24153_v62  ;;  %20067 = vmatpush1.bf16.msra.mxu1 %v24156_v60 }
0x2118   :  { %20061 = vmatprep.subr.bf16.mxu0 %v24160_v24  ;;  %20069 = vmatprep.subr.bf16.mxu1 %v24162_v1 }
0x211b   :  { %20063 = vmatpush1.bf16.msra.mxu0 %v24165_v31  ;;  %20071 = vmatpush1.bf16.msra.mxu1 %v24169_v29 }
0x211c   :  { %20073 = vmatprep.subr.bf16.mxu0 %v24171_v59  ;;  %20089 = vmatprep.subr.bf16.mxu1 %v24173_v13 }
0x21e0   :  { %v15262_v56 = vpop.f32.mrb[112].mxu0  ;;  %v15333_v36 = vpop.f32.mrb[112].mxu1 }
0x21e1   :  { %v20404_v55 = vadd.f32 %v15262_v56, %v23241_v8  ;;  %v15264_v61 = vpop.f32.mrb[113].mxu0  ;;  %v15335_v9 = vpop.f32.mrb[113].mxu1  ;;  %v20406_v39 = vadd.f32 %v15333_v36, %v23249_v46 }
0x21e2   :  { %v20405_v35 = vadd.f32 %v15264_v61, %v23244_v54  ;;  %v20407_v10 = vadd.f32 %v15335_v9, %v23252_v19 }
0x21e3   :  { %v17923_v52 = vmul.f32 -1.442695, %v20404_v55  ;;  %v17925_v23 = vmul.f32 -1.442695, %v20406_v39 }
0x21e4   :  { %v17924_v11 = vmul.f32 -1.442695, %v20405_v35 }
0x21e5   :  { %21318 = vpow2.f32 %v17923_v52 }
0x21e6   :  { %21320 = vpow2.f32 %v17924_v11 }
0x21e8   :  { %v15449_v20 = vpop.f32.mrb[114].mxu0  ;;  %v15520_v5 = vpop.f32.mrb[114].mxu1 }
0x21e9   :  { %v15525_v63 = vadd.f32 %v15449_v20, %v23144_v22  ;;  %v15451_v32 = vpop.f32.mrb[115].mxu0  ;;  %v15522_v4 = vpop.f32.mrb[115].mxu1  ;;  %v15527_v0 = vadd.f32 %v15520_v5, %v23146_v49 }
0x21ea   :  { %v15526_v27 = vadd.f32 %v15451_v32, %v23148_v17  ;;  %v15528_v50 = vadd.f32 %v15522_v4, %v23150_v38  ;;  %v15714_v4 = vld [vmem:[#allocation16] sm:$0xff] }
0x21eb   :  { %v17928_v15 = vmul.f32 -1.442695, %v15525_v63  ;;  %v17930_v28 = vmul.f32 -1.442695, %v15527_v0 }
0x21ec   :  { %v17929_v57 = vmul.f32 -1.442695, %v15526_v27  ;;  %v15718_v27 = vld [vmem:[#allocation16 + $0x20] sm:$0xff] }
0x21ed   :  { %21322 = vpow2.f32 %v17928_v15  ;;  %v15716_v15 = vld [vmem:[#allocation16 + $0x10] sm:$0xff]  ;;  %v24198_v0 = vpack.c.bf16 %v15718_v27, %v15714_v4  ;;  %v15745_v4 = vld [vmem:[#allocation16 + $0xf8] sm:$0xff] }
0x21ee   :  { %21324 = vpow2.f32 %v17929_v57  ;;  %v15723_v57 = vld [vmem:[#allocation16 + $0x48] sm:$0xff] }
0x21ef   :  { %v21319_v6 = vpop.eup %21318  ;;  %21326 = vtanh.f32 %v20407_v10  ;;  %v15720_v10 = vld [vmem:[#allocation16 + $0x30] sm:$0xff] }
0x21f0   :  { %v15351_v26 = vadd.f32 1.0, %v21319_v6  ;;  %v21321_v21 = vpop.eup %21320  ;;  %21328 = vpow2.f32 %v17925_v23  ;;  %v15727_v23 = vld [vmem:[#allocation16 + $0x68] sm:$0xff]  ;;  %v15725_v6 = vld [vmem:[#allocation16 + $0x58] sm:$0xff] }
0x21f1   :  { %v15352_v45 = vadd.f32 1.0, %v21321_v21 }
0x21f2   :  { %21330 = vrcp.f32 %v15351_v26  ;;  %v15729_v26 = vld [vmem:[#allocation16 + $0x78] sm:$0xff] }
0x21f3   :  { %21332 = vrcp.f32 %v15352_v45  ;;  %v24200_v45 = vpack.c.bf16 %v15720_v10, %v15716_v15  ;;  %v15738_v10 = vld [vmem:[#allocation16 + $0xc0] sm:$0xff] }
0x21f4   :  { %21334 = vtanh.f32 %v15528_v50  ;;  %v15722_v50 = vld [vmem:[#allocation16 + $0x40] sm:$0xff] }
0x21f5   :  { %21336 = vpow2.f32 %v17930_v28  ;;  %v15726_v28 = vld [vmem:[#allocation16 + $0x60] sm:$0xff] }
0x21f7   :  { %v21323_v3 = vpop.eup %21322 }
0x21f8   :  { %v15538_v41 = vadd.f32 1.0, %v21323_v3  ;;  %v21325_v25 = vpop.eup %21324 }
0x21f9   :  { %v21327_v53 = vpop.eup %21326  ;;  %v15539_v7 = vadd.f32 1.0, %v21325_v25  ;;  %v24206_v25 = vpack.c.bf16 %v15729_v26, %v15725_v6  ;;  %v15742_v6 = vld [vmem:[#allocation16 + $0xe0] sm:$0xff]  ;;  %v15740_v26 = vld [vmem:[#allocation16 + $0xd0] sm:$0xff] }
0x21fa   :  { %21338 = vrcp.f32 %v15538_v41  ;;  %v21329_v42 = vpop.eup %21328  ;;  %v24204_v41 = vpack.c.bf16 %v15727_v23, %v15723_v57 }
0x21fb   :  { %21340 = vrcp.f32 %v15539_v7  ;;  %v15353_v56 = vadd.f32 1.0, %v21329_v42  ;;  %v15728_v7 = vld [vmem:[#allocation16 + $0x70] sm:$0xff]  ;;  %v15731_v42 = vld [vmem:[#allocation16 + $0x88] sm:$0xff] }
0x21fc   :  { %v21331_v18 = vpop.eup %21330 }
0x21fd   :  { %v15362_v2 = vmul.f32 %v21331_v18, %v21327_v53  ;;  %v21333_v14 = vpop.eup %21332  ;;  %21342 = vrcp.f32 %v15353_v56  ;;  %v15724_v53 = vld [vmem:[#allocation16 + $0x50] sm:$0xff]  ;;  %v15735_v18 = vld [vmem:[#allocation16 + $0xa8] sm:$0xff]  ;;  %v24214_v56 = vpack.c.bf16 %v15726_v28, %v15722_v50 }
0x21fe   :  { %v15361_v36 = vmul.f32 %v21333_v14, %v24092_v47  ;;  %v21335_v61 = vpop.eup %21334  ;;  %v15737_v14 = vld [vmem:[#allocation16 + $0xb8] sm:$0xff] }
0x21ff   :  { %v21337_v9 = vpop.eup %21336 }
0x2200   :  { %v24188_v55 = vadd.f32 %v15362_v2, %v15361_v36  ;;  %v15540_v20 = vadd.f32 1.0, %v21337_v9  ;;  %v15733_v2 = vld [vmem:[#allocation16 + $0x98] sm:$0xff]  ;;  %v24216_v36 = vpack.c.bf16 %v15728_v7, %v15724_v53  ;;  %v15734_v9 = vld [vmem:[#allocation16 + $0xa0] sm:$0xff] }
0x2202   :  { %21344 = vtanh.f32 %v24188_v55 }
0x2203   :  { %21346 = vrcp.f32 %v15540_v20  ;;  %v15736_v20 = vld [vmem:[#allocation16 + $0xb0] sm:$0xff] }
0x2204   :  { %v21339_v35 = vpop.eup %21338 }
0x2205   :  { %v15549_v52 = vmul.f32 %v21339_v35, %v21335_v61  ;;  %v21341_v11 = vpop.eup %21340  ;;  %v15730_v61 = vld [vmem:[#allocation16 + $0x80] sm:$0xff]  ;;  %v24220_v35 = vpack.c.bf16 %v15735_v18, %v15731_v42 }
0x2206   :  { %v15548_v5 = vmul.f32 %v21341_v11, %v24096_v48  ;;  %v15732_v11 = vld [vmem:[#allocation16 + $0x90] sm:$0xff]  ;;  %v24228_v27 = vpack.c.bf16 %v15734_v9, %v15730_v61 }
0x2207   :  { %v21343_v63 = vpop.eup %21342  ;;  %v24230_v15 = vpack.c.bf16 %v15736_v20, %v15732_v11 }
0x2208   :  { %v24192_v39 = vadd.f32 %v15549_v52, %v15548_v5  ;;  %v24222_v52 = vpack.c.bf16 %v15737_v14, %v15733_v2  ;;  %v15739_v5 = vld [vmem:[#allocation16 + $0xc8] sm:$0xff] }
0x220a   :  { %21348 = vtanh.f32 %v24192_v39 }
0x220c   :  { %v21345_v47 = vpop.eup %21344 }
0x220d   :  { %v24195_v32 = vmul.f32 %v21345_v47, %v21343_v63  ;;  %v21347_v48 = vpop.eup %21346  ;;  %v15743_v63 = vld [vmem:[#allocation16 + $0xe8] sm:$0xff]  ;;  %v15741_v47 = vld [vmem:[#allocation16 + $0xd8] sm:$0xff] }
0x220e   :  { %v24234_v57 = vpack.c.bf16 %v15743_v63, %v15739_v5  ;;  %v24236_v23 = vpack.c.bf16 %v15745_v4, %v15741_v47 }
0x220f   :  { %15366 = vst [vmem:[#allocation3 + $0xb] sm:$0x1] %v24195_v32 }
0x2214   :  { %v21349_v21 = vpop.eup %21348 }
0x2215   :  { %v24202_v3 = vmul.f32 %v21349_v21, %v21347_v48  ;;  %v15744_v48 = vld [vmem:[#allocation16 + $0xf0] sm:$0xff]  ;;  %v24240_v21 = vpack.c.bf16 %v15742_v6, %v15738_v10 }
0x2216   :  { %v24242_v50 = vpack.c.bf16 %v15744_v48, %v15740_v26 }
0x2217   :  { %17931 = vmatmul.mubr.msk.f32.vlgmr.msra.gmra.mrb[116].mxu0 %vm674_vm1, %v24202_v3  ;;  %17932 = vmatmul.mubr.msk.f32.vlgmr.msra.gmra.mrb[116].mxu1 %vm674_vm1, %v24202_v3 }
0x2218   :  { %20075 = vmatpush1.bf16.msra.mxu0 %v24198_v0  ;;  %20091 = vmatpush1.bf16.msra.mxu1 %v24200_v45 }
0x2219   :  { %20077 = vmatprep.subr.bf16.mxu0 %v24204_v41  ;;  %20093 = vmatprep.subr.bf16.mxu1 %v24206_v25 }
0x221a   :  { %15813 = vmatprep.mubr.f32.mxu0 %v24477_v12  ;;  %15884 = vmatprep.mubr.f32.mxu1 %v24477_v12 }
0x221c   :  { %20079 = vmatpush1.bf16.msra.mxu0 %v24214_v56  ;;  %20095 = vmatpush1.bf16.msra.mxu1 %v24216_v36 }
0x221d   :  { %20081 = vmatprep.subr.bf16.mxu0 %v24220_v35  ;;  %20097 = vmatprep.subr.bf16.mxu1 %v24222_v52 }
0x2220   :  { %20083 = vmatpush1.bf16.msra.mxu0 %v24228_v27  ;;  %20099 = vmatpush1.bf16.msra.mxu1 %v24230_v15 }
0x2221   :  { %20085 = vmatprep.subr.bf16.mxu0 %v24234_v57  ;;  %20101 = vmatprep.subr.bf16.mxu1 %v24236_v23 }
0x2224   :  { %20087 = vmatpush1.bf16.msra.mxu0 %v24240_v21  ;;  %20103 = vmatpush1.bf16.msra.mxu1 %v24242_v50 }
0x2225   :  { %20105 = vmatprep.subr.bf16.mxu0 %v24115_v33  ;;  %20113 = vmatprep.subr.bf16.mxu1 %v24117_v34 }
0x2227   :  { %17933 = vmatmul.mubr.msk.f32.vlgmr.msra.gmra.mrb[116].mxu0 %vm264_vm0, %v24195_v32  ;;  %17934 = vmatmul.mubr.msk.f32.vlgmr.msra.gmra.mrb[116].mxu1 %vm264_vm0, %v24195_v32 }
0x2228   :  { %20107 = vmatpush1.bf16.msra.mxu0 %v24121_v37  ;;  %20115 = vmatpush1.bf16.msra.mxu1 %v24123_v58 }
0x2229   :  { %20109 = vmatprep.subr.bf16.mxu0 %v24127_v16  ;;  %20117 = vmatprep.subr.bf16.mxu1 %v24129_v43 }
0x222a   :  { %16000 = vmatprep.mubr.f32.mxu0 %v24477_v12  ;;  %16071 = vmatprep.mubr.f32.mxu1 %v24477_v12 }
0x222c   :  { %20111 = vmatpush1.bf16.msra.mxu0 %v24135_v30  ;;  %20119 = vmatpush1.bf16.msra.mxu1 %v24137_v44 }
0x222d   :  { %20121 = vmatprep.subr.bf16.mxu0 %v24149_v40  ;;  %20129 = vmatprep.subr.bf16.mxu1 %v24151_v51 }
0x222f   :  { %17938 = vmatmul.mubr.msk.f32.vlgmr.msra.gmra.mrb[118].mxu0 %vm674_vm1, %v24202_v3  ;;  %17939 = vmatmul.mubr.msk.f32.vlgmr.msra.gmra.mrb[118].mxu1 %vm674_vm1, %v24202_v3 }
0x2230   :  { %20123 = vmatpush1.bf16.msra.mxu0 %v24153_v62  ;;  %20131 = vmatpush1.bf16.msra.mxu1 %v24156_v60 }
0x2231   :  { %20125 = vmatprep.subr.bf16.mxu0 %v24160_v24  ;;  %20133 = vmatprep.subr.bf16.mxu1 %v24162_v1 }
0x2232   :  { %16189 = vmatprep.mubr.f32.mxu0 %v24477_v12  ;;  %16260 = vmatprep.mubr.f32.mxu1 %v24477_v12 }
0x2234   :  { %20127 = vmatpush1.bf16.msra.mxu0 %v24165_v31  ;;  %20135 = vmatpush1.bf16.msra.mxu1 %v24169_v29 }
0x2235   :  { %20137 = vmatprep.subr.bf16.mxu0 %v24171_v59  ;;  %20153 = vmatprep.subr.bf16.mxu1 %v24173_v13 }
0x22fa   :  { %v15815_v32 = vpop.f32.mrb[116].mxu0  ;;  %v15886_v28 = vpop.f32.mrb[116].mxu1 }
0x22fb   :  { %v20408_v3 = vadd.f32 %v15815_v32, %v23241_v8  ;;  %v15817_v53 = vpop.f32.mrb[117].mxu0  ;;  %v15888_v7 = vpop.f32.mrb[117].mxu1  ;;  %v20410_v9 = vadd.f32 %v15886_v28, %v23249_v46 }
0x22fc   :  { %v20409_v42 = vadd.f32 %v15817_v53, %v23244_v54  ;;  %v20411_v4 = vadd.f32 %v15888_v7, %v23252_v19 }
0x22fd   :  { %v17935_v18 = vmul.f32 -1.442695, %v20408_v3  ;;  %v17937_v6 = vmul.f32 -1.442695, %v20410_v9 }
0x22fe   :  { %v17936_v2 = vmul.f32 -1.442695, %v20409_v42 }
0x22ff   :  { %21350 = vpow2.f32 %v17935_v18 }
0x2300   :  { %21352 = vpow2.f32 %v17936_v2 }
0x2302   :  { %v16002_v14 = vpop.f32.mrb[118].mxu0  ;;  %v16073_v61 = vpop.f32.mrb[118].mxu1 }
0x2303   :  { %v16078_v11 = vadd.f32 %v16002_v14, %v23144_v22  ;;  %v16004_v20 = vpop.f32.mrb[119].mxu0  ;;  %v16075_v5 = vpop.f32.mrb[119].mxu1  ;;  %v16080_v28 = vadd.f32 %v16073_v61, %v23146_v49 }
0x2304   :  { %v16079_v63 = vadd.f32 %v16004_v20, %v23148_v17  ;;  %v16081_v53 = vadd.f32 %v16075_v5, %v23150_v38 }
0x2305   :  { %v17940_v47 = vmul.f32 -1.442695, %v16078_v11  ;;  %v17942_v42 = vmul.f32 -1.442695, %v16080_v28 }
0x2306   :  { %v17941_v10 = vmul.f32 -1.442695, %v16079_v63 }
0x2307   :  { %21354 = vpow2.f32 %v17940_v47 }
0x2308   :  { %21356 = vpow2.f32 %v17941_v10 }
0x2309   :  { %v21351_v26 = vpop.eup %21350  ;;  %21358 = vtanh.f32 %v20411_v4 }
0x230a   :  { %v15904_v48 = vadd.f32 1.0, %v21351_v26  ;;  %v21353_v32 = vpop.eup %21352  ;;  %21360 = vpow2.f32 %v17937_v6 }
0x230b   :  { %v15905_v3 = vadd.f32 1.0, %v21353_v32 }
0x230c   :  { %21362 = vrcp.f32 %v15904_v48 }
0x230d   :  { %21364 = vrcp.f32 %v15905_v3 }
0x230e   :  { %21366 = vtanh.f32 %v16081_v53 }
0x230f   :  { %21368 = vpow2.f32 %v17942_v42 }
0x2311   :  { %v21355_v18 = vpop.eup %21354 }
0x2312   :  { %v16091_v2 = vadd.f32 1.0, %v21355_v18  ;;  %v21357_v7 = vpop.eup %21356 }
0x2313   :  { %v21359_v14 = vpop.eup %21358  ;;  %v16092_v9 = vadd.f32 1.0, %v21357_v7 }
0x2314   :  { %21370 = vrcp.f32 %v16091_v2  ;;  %v21361_v11 = vpop.eup %21360 }
0x2315   :  { %21372 = vrcp.f32 %v16092_v9  ;;  %v15906_v61 = vadd.f32 1.0, %v21361_v11 }
0x2316   :  { %v21363_v20 = vpop.eup %21362 }
0x2317   :  { %v15915_v63 = vmul.f32 %v21363_v20, %v21359_v14  ;;  %v21365_v47 = vpop.eup %21364  ;;  %21374 = vrcp.f32 %v15906_v61 }
0x2318   :  { %v15914_v4 = vmul.f32 %v21365_v47, %v24188_v55  ;;  %v21367_v5 = vpop.eup %21366 }
0x2319   :  { %v21369_v6 = vpop.eup %21368 }
0x231a   :  { %v24287_v10 = vadd.f32 %v15915_v63, %v15914_v4  ;;  %v16093_v28 = vadd.f32 1.0, %v21369_v6 }
0x231c   :  { %21376 = vtanh.f32 %v24287_v10 }
0x231d   :  { %21378 = vrcp.f32 %v16093_v28 }
0x231e   :  { %v21371_v26 = vpop.eup %21370 }
0x231f   :  { %v16102_v48 = vmul.f32 %v21371_v26, %v21367_v5  ;;  %v21373_v32 = vpop.eup %21372 }
0x2320   :  { %v16101_v3 = vmul.f32 %v21373_v32, %v24192_v39 }
0x2321   :  { %v21375_v42 = vpop.eup %21374 }
0x2322   :  { %v24291_v53 = vadd.f32 %v16102_v48, %v16101_v3 }
0x2324   :  { %21380 = vtanh.f32 %v24291_v53 }
0x2326   :  { %v21377_v55 = vpop.eup %21376 }
0x2327   :  { %v15918_v18 = vmul.f32 %v21377_v55, %v21375_v42  ;;  %v21379_v2 = vpop.eup %21378 }
0x2329   :  { %15919 = vst [vmem:[#allocation3 + $0xc] sm:$0x1] %v15918_v18 }
0x232e   :  { %v21381_v7 = vpop.eup %21380 }
0x232f   :  { %v16105_v14 = vmul.f32 %v21381_v7, %v21379_v2 }
0x2331   :  { %17943 = vmatmul.mubr.msk.f32.vlgmr.msra.gmra.mrb[120].mxu0 %vm674_vm1, %v16105_v14  ;;  %17944 = vmatmul.mubr.msk.f32.vlgmr.msra.gmra.mrb[120].mxu1 %vm674_vm1, %v16105_v14 }
0x2332   :  { %20139 = vmatpush1.bf16.msra.mxu0 %v24198_v0  ;;  %20155 = vmatpush1.bf16.msra.mxu1 %v24200_v45 }
0x2333   :  { %20141 = vmatprep.subr.bf16.mxu0 %v24204_v41  ;;  %20157 = vmatprep.subr.bf16.mxu1 %v24206_v25 }
0x2334   :  { %16366 = vmatprep.mubr.f32.mxu0 %v24477_v12  ;;  %16437 = vmatprep.mubr.f32.mxu1 %v24477_v12 }
0x2336   :  { %20143 = vmatpush1.bf16.msra.mxu0 %v24214_v56  ;;  %20159 = vmatpush1.bf16.msra.mxu1 %v24216_v36 }
0x2337   :  { %20145 = vmatprep.subr.bf16.mxu0 %v24220_v35  ;;  %20161 = vmatprep.subr.bf16.mxu1 %v24222_v52 }
0x233a   :  { %20147 = vmatpush1.bf16.msra.mxu0 %v24228_v27  ;;  %20163 = vmatpush1.bf16.msra.mxu1 %v24230_v15 }
0x233b   :  { %20149 = vmatprep.subr.bf16.mxu0 %v24234_v57  ;;  %20165 = vmatprep.subr.bf16.mxu1 %v24236_v23 }
0x233e   :  { %20151 = vmatpush1.bf16.msra.mxu0 %v24240_v21  ;;  %20167 = vmatpush1.bf16.msra.mxu1 %v24242_v50 }
0x233f   :  { %20169 = vmatprep.subr.bf16.mxu0 %v24115_v33  ;;  %20177 = vmatprep.subr.bf16.mxu1 %v24117_v34 }
0x2341   :  { %17945 = vmatmul.mubr.msk.f32.vlgmr.msra.gmra.mrb[120].mxu0 %vm264_vm0, %v15918_v18  ;;  %17946 = vmatmul.mubr.msk.f32.vlgmr.msra.gmra.mrb[120].mxu1 %vm264_vm0, %v15918_v18 }
0x2342   :  { %20171 = vmatpush1.bf16.msra.mxu0 %v24121_v37  ;;  %20179 = vmatpush1.bf16.msra.mxu1 %v24123_v58 }
0x2343   :  { %20173 = vmatprep.subr.bf16.mxu0 %v24127_v16  ;;  %20181 = vmatprep.subr.bf16.mxu1 %v24129_v43 }
0x2344   :  { %16553 = vmatprep.mubr.f32.mxu0 %v24477_v12  ;;  %16624 = vmatprep.mubr.f32.mxu1 %v24477_v12 }
0x2346   :  { %20175 = vmatpush1.bf16.msra.mxu0 %v24135_v30  ;;  %20183 = vmatpush1.bf16.msra.mxu1 %v24137_v44 }
0x2347   :  { %20185 = vmatprep.subr.bf16.mxu0 %v24149_v40  ;;  %20193 = vmatprep.subr.bf16.mxu1 %v24151_v51 }
0x2349   :  { %17950 = vmatmul.mubr.msk.f32.vlgmr.msra.gmra.mrb[122].mxu0 %vm674_vm1, %v16105_v14  ;;  %17951 = vmatmul.mubr.msk.f32.vlgmr.msra.gmra.mrb[122].mxu1 %vm674_vm1, %v16105_v14 }
0x234a   :  { %20187 = vmatpush1.bf16.msra.mxu0 %v24153_v62  ;;  %20195 = vmatpush1.bf16.msra.mxu1 %v24156_v60 }
0x234b   :  { %20189 = vmatprep.subr.bf16.mxu0 %v24160_v24  ;;  %20197 = vmatprep.subr.bf16.mxu1 %v24162_v1 }
0x234c   :  { %16742 = vmatprep.mubr.f32.mxu0 %v24477_v12  ;;  %16813 = vmatprep.mubr.f32.mxu1 %v24477_v12 }
0x234e   :  { %20191 = vmatpush1.bf16.msra.mxu0 %v24165_v31  ;;  %20199 = vmatpush1.bf16.msra.mxu1 %v24169_v29 }
0x234f   :  { %20201 = vmatprep.subr.bf16.mxu0 %v24171_v59  ;;  %20217 = vmatprep.subr.bf16.mxu1 %v24173_v13 }
0x2414   :  { %v16368_v33 = vpop.f32.mrb[120].mxu0  ;;  %v16439_v34 = vpop.f32.mrb[120].mxu1 }
0x2415   :  { %v20412_v37 = vadd.f32 %v16368_v33, %v23241_v8  ;;  %v16370_v58 = vpop.f32.mrb[121].mxu0  ;;  %v16441_v16 = vpop.f32.mrb[121].mxu1  ;;  %v20414_v62 = vadd.f32 %v16439_v34, %v23249_v46 }
0x2416   :  { %v20413_v43 = vadd.f32 %v16370_v58, %v23244_v54  ;;  %v20415_v59 = vadd.f32 %v16441_v16, %v23252_v19 }
0x2417   :  { %v17947_v30 = vmul.f32 -1.442695, %v20412_v37  ;;  %v17949_v39 = vmul.f32 -1.442695, %v20414_v62 }
0x2418   :  { %v17948_v44 = vmul.f32 -1.442695, %v20413_v43 }
0x2419   :  { %21382 = vpow2.f32 %v17947_v30 }
0x241a   :  { %21384 = vpow2.f32 %v17948_v44 }
0x241c   :  { %v16555_v40 = vpop.f32.mrb[122].mxu0  ;;  %v16626_v51 = vpop.f32.mrb[122].mxu1 }
0x241d   :  { %v16631_v60 = vadd.f32 %v16555_v40, %v23144_v22  ;;  %v16557_v24 = vpop.f32.mrb[123].mxu0  ;;  %v16628_v1 = vpop.f32.mrb[123].mxu1  ;;  %v16633_v63 = vadd.f32 %v16626_v51, %v23146_v49 }
0x241e   :  { %v16632_v31 = vadd.f32 %v16557_v24, %v23148_v17  ;;  %v16634_v61 = vadd.f32 %v16628_v1, %v23150_v38  ;;  %v17029_v24 = vld [vmem:[#allocation13 + $0x18] sm:$0xff]  ;;  %v17028_v1 = vld [vmem:[#allocation13 + $0x10] sm:$0xff] }
0x241f   :  { %v17952_v29 = vmul.f32 -1.442695, %v16631_v60  ;;  %v17954_v4 = vmul.f32 -1.442695, %v16633_v63  ;;  %v17217_v63 = vld [vmem:[#allocation14 + $0x28] sm:$0xff] }
0x2420   :  { %v17953_v13 = vmul.f32 -1.442695, %v16632_v31  ;;  %v17035_v31 = vld [vmem:[#allocation13 + $0x48] sm:$0xff] }
0x2421   :  { %21386 = vpow2.f32 %v17952_v29  ;;  %v17037_v29 = vld [vmem:[#allocation13 + $0x58] sm:$0xff] }
0x2422   :  { %21388 = vpow2.f32 %v17953_v13  ;;  %v17034_v13 = vld [vmem:[#allocation13 + $0x40] sm:$0xff] }
0x2423   :  { %v21383_v9 = vpop.eup %21382  ;;  %21390 = vtanh.f32 %v20415_v59  ;;  %v17041_v59 = vld [vmem:[#allocation13 + $0x78] sm:$0xff] }
0x2424   :  { %v16457_v11 = vadd.f32 1.0, %v21383_v9  ;;  %v21385_v20 = vpop.eup %21384  ;;  %21392 = vpow2.f32 %v17949_v39  ;;  %v20244_v39 = vpack.c.bf16 %v17041_v59, %v17037_v29  ;;  %v17036_v9 = vld [vmem:[#allocation13 + $0x50] sm:$0xff] }
0x2425   :  { %v16458_v47 = vadd.f32 1.0, %v21385_v20 }
0x2426   :  { %21394 = vrcp.f32 %v16457_v11  ;;  %v17040_v11 = vld [vmem:[#allocation13 + $0x70] sm:$0xff] }
0x2427   :  { %21396 = vrcp.f32 %v16458_v47  ;;  %v17215_v47 = vld [vmem:[#allocation14 + $0x18] sm:$0xff] }
0x2428   :  { %21398 = vtanh.f32 %v16634_v61 }
0x2429   :  { %21400 = vpow2.f32 %v17954_v4  ;;  %v17219_v4 = vld [vmem:[#allocation14 + $0x38] sm:$0xff] }
0x242b   :  { %v21387_v5 = vpop.eup %21386 }
0x242c   :  { %v16644_v6 = vadd.f32 1.0, %v21387_v5  ;;  %v21389_v26 = vpop.eup %21388  ;;  %v17212_v5 = vld [vmem:[#allocation14] sm:$0xff] }
0x242d   :  { %v21391_v48 = vpop.eup %21390  ;;  %v16645_v32 = vadd.f32 1.0, %v21389_v26  ;;  %v20256_v26 = vpack.c.bf16 %v17219_v4, %v17215_v47 }
0x242e   :  { %21402 = vrcp.f32 %v16644_v6  ;;  %v21393_v28 = vpop.eup %21392  ;;  %v17216_v6 = vld [vmem:[#allocation14 + $0x20] sm:$0xff] }
0x242f   :  { %21404 = vrcp.f32 %v16645_v32  ;;  %v16459_v18 = vadd.f32 1.0, %v21393_v28  ;;  %v17214_v32 = vld [vmem:[#allocation14 + $0x10] sm:$0xff] }
0x2430   :  { %v21395_v3 = vpop.eup %21394  ;;  %v17218_v28 = vld [vmem:[#allocation14 + $0x30] sm:$0xff] }
0x2431   :  { %v16468_v42 = vmul.f32 %v21395_v3, %v21391_v48  ;;  %v21397_v55 = vpop.eup %21396  ;;  %21406 = vrcp.f32 %v16459_v18  ;;  %v20250_v48 = vpack.c.bf16 %v17216_v6, %v17212_v5  ;;  %v17221_v3 = vld [vmem:[#allocation14 + $0x48] sm:$0xff]  ;;  %v17223_v18 = vld [vmem:[#allocation14 + $0x58] sm:$0xff] }
0x2432   :  { %v16467_v2 = vmul.f32 %v21397_v55, %v24287_v10  ;;  %v21399_v14 = vpop.eup %21398  ;;  %v17225_v55 = vld [vmem:[#allocation14 + $0x68] sm:$0xff] }
0x2433   :  { %v21401_v33 = vpop.eup %21400 }
0x2434   :  { %v24347_v7 = vadd.f32 %v16468_v42, %v16467_v2  ;;  %v16646_v16 = vadd.f32 1.0, %v21401_v33  ;;  %v20258_v42 = vpack.c.bf16 %v17218_v28, %v17214_v32  ;;  %v17227_v2 = vld [vmem:[#allocation14 + $0x78] sm:$0xff] }
0x2435   :  { %v20260_v33 = vpack.c.bf16 %v17227_v2, %v17223_v18 }
0x2436   :  { %21408 = vtanh.f32 %v24347_v7 }
0x2437   :  { %21410 = vrcp.f32 %v16646_v16 }
0x2438   :  { %v21403_v34 = vpop.eup %21402 }
0x2439   :  { %v16655_v37 = vmul.f32 %v21403_v34, %v21399_v14  ;;  %v21405_v58 = vpop.eup %21404  ;;  %v20252_v14 = vpack.c.bf16 %v17225_v55, %v17221_v3  ;;  %v17220_v34 = vld [vmem:[#allocation14 + $0x40] sm:$0xff] }
0x243a   :  { %v16654_v43 = vmul.f32 %v21405_v58, %v24291_v53  ;;  %v17027_v53 = vld [vmem:[#allocation13 + $0x8] sm:$0xff]  ;;  %v17222_v58 = vld [vmem:[#allocation14 + $0x50] sm:$0xff] }
0x243b   :  { %v21407_v44 = vpop.eup %21406 }
0x243c   :  { %v24351_v30 = vadd.f32 %v16655_v37, %v16654_v43  ;;  %v17224_v37 = vld [vmem:[#allocation14 + $0x60] sm:$0xff]  ;;  %v17226_v43 = vld [vmem:[#allocation14 + $0x70] sm:$0xff] }
0x243d   :  { %v20254_v16 = vpack.c.bf16 %v17224_v37, %v17220_v34 }
0x243e   :  { %21412 = vtanh.f32 %v24351_v30 }
0x2440   :  { %v21409_v10 = vpop.eup %21408 }
0x2441   :  { %v16471_v40 = vmul.f32 %v21409_v10, %v21407_v44  ;;  %v21411_v51 = vpop.eup %21410  ;;  %v17374_v44 = vld [vmem:[#allocation16 + $0x8] sm:$0xff] }
0x2442   :  { %v17378_v10 = vld [vmem:[#allocation16 + $0x28] sm:$0xff] }
0x2443   :  { %16472 = vst [vmem:[#allocation3 + $0xd] sm:$0x1] %v16471_v40 }
0x2448   :  { %v21413_v62 = vpop.eup %21412 }
0x2449   :  { %v16658_v60 = vmul.f32 %v21413_v62, %v21411_v51  ;;  %v20264_v51 = vpack.c.bf16 %v17378_v10, %v17374_v44  ;;  %v17376_v62 = vld [vmem:[#allocation16 + $0x18] sm:$0xff]  ;;  %v17375_v44 = vld [vmem:[#allocation16 + $0x10] sm:$0xff] }
0x244a   :  { %v17379_v10 = vld [vmem:[#allocation16 + $0x30] sm:$0xff] }
0x244b   :  { %17955 = vmatmul.mubr.msk.f32.vlgmr.msra.gmra.mrb[124].mxu0 %vm674_vm1, %v16658_v60  ;;  %17956 = vmatmul.mubr.msk.f32.vlgmr.msra.gmra.mrb[124].mxu1 %vm674_vm1, %v16658_v60 }
0x244c   :  { %20203 = vmatpush1.bf16.msra.mxu0 %v24198_v0  ;;  %20219 = vmatpush1.bf16.msra.mxu1 %v24200_v45  ;;  %v17031_v0 = vld [vmem:[#allocation13 + $0x28] sm:$0xff]  ;;  %v17033_v45 = vld [vmem:[#allocation13 + $0x38] sm:$0xff] }
0x244d   :  { %20205 = vmatprep.subr.bf16.mxu0 %v24204_v41  ;;  %20221 = vmatprep.subr.bf16.mxu1 %v24206_v25  ;;  %v17026_v41 = vld [vmem:[#allocation13] sm:$0xff] }
0x244e   :  { %16919 = vmatprep.mubr.f32.mxu0 %v24477_v12  ;;  %16990 = vmatprep.mubr.f32.mxu1 %v24477_v12  ;;  %v17030_v25 = vld [vmem:[#allocation13 + $0x20] sm:$0xff] }
0x2450   :  { %20207 = vmatpush1.bf16.msra.mxu0 %v24214_v56  ;;  %20223 = vmatpush1.bf16.msra.mxu1 %v24216_v36  ;;  %v20232_v56 = vpack.c.bf16 %v17031_v0, %v17027_v53  ;;  %v20240_v36 = vpack.c.bf16 %v17033_v45, %v17029_v24 }
0x2451   :  { %20209 = vmatprep.subr.bf16.mxu0 %v24220_v35  ;;  %20225 = vmatprep.subr.bf16.mxu1 %v24222_v52  ;;  %v17032_v35 = vld [vmem:[#allocation13 + $0x30] sm:$0xff]  ;;  %v17039_v52 = vld [vmem:[#allocation13 + $0x68] sm:$0xff] }
0x2454   :  { %20211 = vmatpush1.bf16.msra.mxu0 %v24228_v27  ;;  %20227 = vmatpush1.bf16.msra.mxu1 %v24230_v15  ;;  %v20234_v27 = vpack.c.bf16 %v17030_v25, %v17026_v41  ;;  %v20242_v15 = vpack.c.bf16 %v17032_v35, %v17028_v1 }
0x2455   :  { %20213 = vmatprep.subr.bf16.mxu0 %v24234_v57  ;;  %20229 = vmatprep.subr.bf16.mxu1 %v24236_v23  ;;  %v20236_v57 = vpack.c.bf16 %v17039_v52, %v17035_v31  ;;  %v17038_v23 = vld [vmem:[#allocation13 + $0x60] sm:$0xff] }
0x2456   :  { %v20238_v20 = vpack.c.bf16 %v17038_v23, %v17034_v13 }
0x2458   :  { %20215 = vmatpush1.bf16.msra.mxu0 %v24240_v21  ;;  %20231 = vmatpush1.bf16.msra.mxu1 %v24242_v50  ;;  %v20246_v21 = vpack.c.bf16 %v17040_v11, %v17036_v9  ;;  %v17213_v50 = vld [vmem:[#allocation14 + $0x8] sm:$0xff] }
0x2459   :  { %20233 = vmatprep.subr.bf16.mxu0 %v20232_v56  ;;  %20241 = vmatprep.subr.bf16.mxu1 %v20240_v36  ;;  %v20248_v61 = vpack.c.bf16 %v17217_v63, %v17213_v50 }
0x245b   :  { %17957 = vmatmul.mubr.msk.f32.vlgmr.msra.gmra.mrb[124].mxu0 %vm264_vm0, %v16471_v40  ;;  %17958 = vmatmul.mubr.msk.f32.vlgmr.msra.gmra.mrb[124].mxu1 %vm264_vm0, %v16471_v40  ;;  %v20262_v40 = vpack.c.bf16 %v17226_v43, %v17222_v58  ;;  %v17377_v43 = vld [vmem:[#allocation16 + $0x20] sm:$0xff] }
0x245c   :  { %20235 = vmatpush1.bf16.msra.mxu0 %v20234_v27  ;;  %20243 = vmatpush1.bf16.msra.mxu1 %v20242_v15 }
0x245d   :  { %20237 = vmatprep.subr.bf16.mxu0 %v20236_v57  ;;  %20245 = vmatprep.subr.bf16.mxu1 %v20244_v39 }
0x245e   :  { %17106 = vmatprep.mubr.f32.mxu0 %v24477_v12  ;;  %17177 = vmatprep.mubr.f32.mxu1 %v24477_v12 }
0x2460   :  { %20239 = vmatpush1.bf16.msra.mxu0 %v20238_v20  ;;  %20247 = vmatpush1.bf16.msra.mxu1 %v20246_v21 }
0x2461   :  { %20249 = vmatprep.subr.bf16.mxu0 %v20248_v61  ;;  %20257 = vmatprep.subr.bf16.mxu1 %v20256_v26 }
0x2463   :  { %17962 = vmatmul.mubr.msk.f32.vlgmr.msra.gmra.mrb[126].mxu0 %vm674_vm1, %v16658_v60  ;;  %17963 = vmatmul.mubr.msk.f32.vlgmr.msra.gmra.mrb[126].mxu1 %vm674_vm1, %v16658_v60  ;;  %v17380_v60 = vld [vmem:[#allocation16 + $0x38] sm:$0xff] }
0x2464   :  { %17295 = vmatprep.mubr.f32.mxu0 %v24477_v12  ;;  %17366 = vmatprep.mubr.f32.mxu1 %v24477_v12  ;;  %v20280_v53 = vpack.c.bf16 %v17380_v60, %v17376_v62  ;;  %v17384_v62 = vld [vmem:[#allocation16 + $0x58] sm:$0xff] }
0x2465   :  { %20251 = vmatpush1.bf16.msra.mxu0 %v20250_v48  ;;  %20259 = vmatpush1.bf16.msra.mxu1 %v20258_v42  ;;  %v17388_v60 = vld [vmem:[#allocation16 + $0x78] sm:$0xff] }
0x2466   :  { %20253 = vmatprep.subr.bf16.mxu0 %v20252_v14  ;;  %20261 = vmatprep.subr.bf16.mxu1 %v20260_v33 }
0x2469   :  { %20255 = vmatpush1.bf16.msra.mxu0 %v20254_v16  ;;  %20263 = vmatpush1.bf16.msra.mxu1 %v20262_v40  ;;  %v17382_v40 = vld [vmem:[#allocation16 + $0x48] sm:$0xff] }
0x246a   :  { %20265 = vmatprep.subr.bf16.mxu0 %v20264_v51  ;;  %20281 = vmatprep.subr.bf16.mxu1 %v20280_v53  ;;  %v17386_v51 = vld [vmem:[#allocation16 + $0x68] sm:$0xff] }
0x252e   :  { %v16921_v0 = vpop.f32.mrb[124].mxu0  ;;  %v16992_v24 = vpop.f32.mrb[124].mxu1 }
0x252f   :  { %v20416_v45 = vadd.f32 %v16921_v0, %v23241_v8  ;;  %v16923_v41 = vpop.f32.mrb[125].mxu0  ;;  %v16994_v25 = vpop.f32.mrb[125].mxu1  ;;  %v20418_v52 = vadd.f32 %v16992_v24, %v23249_v46  ;;  %v20282_v24 = vpack.c.bf16 %v17379_v10, %v17375_v44 }
0x2530   :  { %v20417_v56 = vadd.f32 %v16923_v41, %v23244_v54  ;;  %v20419_v57 = vadd.f32 %v16994_v25, %v23252_v19  ;;  %v17385_v41 = vld [vmem:[#allocation16 + $0x60] sm:$0xff] }
0x2531   :  { %v17959_v36 = vmul.f32 -1.442695, %v20416_v45  ;;  %v17961_v23 = vmul.f32 -1.442695, %v20418_v52  ;;  %v17381_v45 = vld [vmem:[#allocation16 + $0x40] sm:$0xff]  ;;  %v17394_v52 = vld [vmem:[#allocation16 + $0xa8] sm:$0xff] }
0x2532   :  { %v17960_v1 = vmul.f32 -1.442695, %v20417_v56  ;;  %v20268_v56 = vpack.c.bf16 %v17386_v51, %v17382_v40 }
0x2533   :  { %21414 = vpow2.f32 %v17959_v36  ;;  %v20284_v36 = vpack.c.bf16 %v17388_v60, %v17384_v62 }
0x2534   :  { %21416 = vpow2.f32 %v17960_v1  ;;  %v17383_v1 = vld [vmem:[#allocation16 + $0x50] sm:$0xff] }
0x2536   :  { %v17108_v35 = vpop.f32.mrb[126].mxu0  ;;  %v17179_v31 = vpop.f32.mrb[126].mxu1 }
0x2537   :  { %v17184_v29 = vadd.f32 %v17108_v35, %v23144_v22  ;;  %v17110_v59 = vpop.f32.mrb[127].mxu0  ;;  %v17181_v27 = vpop.f32.mrb[127].mxu1  ;;  %v17186_v21 = vadd.f32 %v17179_v31, %v23146_v49  ;;  %v17387_v35 = vld [vmem:[#allocation16 + $0x70] sm:$0xff]  ;;  %v17390_v31 = vld [vmem:[#allocation16 + $0x88] sm:$0xff] }
0x2538   :  { %v17185_v15 = vadd.f32 %v17110_v59, %v23148_v17  ;;  %v17187_v50 = vadd.f32 %v17181_v27, %v23150_v38  ;;  %v17396_v59 = vld [vmem:[#allocation16 + $0xb8] sm:$0xff]  ;;  %v20270_v27 = vpack.c.bf16 %v17385_v41, %v17381_v45 }
0x2539   :  { %v17964_v13 = vmul.f32 -1.442695, %v17184_v29  ;;  %v17966_v17 = vmul.f32 -1.442695, %v17186_v21  ;;  %v17392_v29 = vld [vmem:[#allocation16 + $0x98] sm:$0xff]  ;;  %v17402_v21 = vld [vmem:[#allocation16 + $0xe8] sm:$0xff] }
0x253a   :  { %v17965_v39 = vmul.f32 -1.442695, %v17185_v15  ;;  %v20286_v15 = vpack.c.bf16 %v17387_v35, %v17383_v1 }
0x253b   :  { %21418 = vpow2.f32 %v17964_v13  ;;  %v17389_v13 = vld [vmem:[#allocation16 + $0x80] sm:$0xff] }
0x253c   :  { %21420 = vpow2.f32 %v17965_v39  ;;  %v20272_v39 = vpack.c.bf16 %v17394_v52, %v17390_v31 }
0x253d   :  { %v21415_v9 = vpop.eup %21414  ;;  %21422 = vtanh.f32 %v20419_v57  ;;  %v17393_v57 = vld [vmem:[#allocation16 + $0xa0] sm:$0xff] }
0x253e   :  { %v17010_v11 = vadd.f32 1.0, %v21415_v9  ;;  %v21417_v20 = vpop.eup %21416  ;;  %21424 = vpow2.f32 %v17961_v23  ;;  %v20288_v23 = vpack.c.bf16 %v17396_v59, %v17392_v29  ;;  %v17391_v9 = vld [vmem:[#allocation16 + $0x90] sm:$0xff] }
0x253f   :  { %v17011_v22 = vadd.f32 1.0, %v21417_v20  ;;  %v17398_v20 = vld [vmem:[#allocation16 + $0xc8] sm:$0xff] }
0x2540   :  { %21426 = vrcp.f32 %v17010_v11  ;;  %v17395_v11 = vld [vmem:[#allocation16 + $0xb0] sm:$0xff] }
0x2541   :  { %21428 = vrcp.f32 %v17011_v22  ;;  %v17400_v22 = vld [vmem:[#allocation16 + $0xd8] sm:$0xff] }
0x2542   :  { %21430 = vtanh.f32 %v17187_v50  ;;  %v17404_v50 = vld [vmem:[#allocation16 + $0xf8] sm:$0xff] }
0x2543   :  { %21432 = vpow2.f32 %v17966_v17  ;;  %v20274_v17 = vpack.c.bf16 %v17393_v57, %v17389_v13 }
0x2545   :  { %v21419_v63 = vpop.eup %21418 }
0x2546   :  { %v17197_v47 = vadd.f32 1.0, %v21419_v63  ;;  %v21421_v61 = vpop.eup %21420  ;;  %v20290_v63 = vpack.c.bf16 %v17395_v11, %v17391_v9 }
0x2547   :  { %v21423_v4 = vpop.eup %21422  ;;  %v17198_v5 = vadd.f32 1.0, %v21421_v61  ;;  %v20276_v61 = vpack.c.bf16 %v17402_v21, %v17398_v20 }
0x2548   :  { %21434 = vrcp.f32 %v17197_v47  ;;  %v21425_v6 = vpop.eup %21424  ;;  %v17397_v47 = vld [vmem:[#allocation16 + $0xc0] sm:$0xff] }
0x2549   :  { %21436 = vrcp.f32 %v17198_v5  ;;  %v17012_v49 = vadd.f32 1.0, %v21425_v6  ;;  %v17401_v5 = vld [vmem:[#allocation16 + $0xe0] sm:$0xff]  ;;  %v17399_v6 = vld [vmem:[#allocation16 + $0xd0] sm:$0xff] }
0x254a   :  { %v21427_v26 = vpop.eup %21426 }
0x254b   :  { %v17021_v48 = vmul.f32 %v21427_v26, %v21423_v4  ;;  %v21429_v32 = vpop.eup %21428  ;;  %21438 = vrcp.f32 %v17012_v49  ;;  %v20292_v4 = vpack.c.bf16 %v17404_v50, %v17400_v22  ;;  %v17403_v26 = vld [vmem:[#allocation16 + $0xf0] sm:$0xff] }
0x254c   :  { %v17020_v28 = vmul.f32 %v21429_v32, %v24347_v7  ;;  %v21431_v38 = vpop.eup %21430  ;;  %v17373_v7 = vld [vmem:[#allocation16] sm:$0xff]  ;;  %v20294_v32 = vpack.c.bf16 %v17403_v26, %v17399_v6 }
0x254d   :  { %v21433_v42 = vpop.eup %21432 }
0x254e   :  { %v24389_v3 = vadd.f32 %v17021_v48, %v17020_v28  ;;  %v17199_v14 = vadd.f32 1.0, %v21433_v42  ;;  %v20278_v48 = vpack.c.bf16 %v17401_v5, %v17397_v47 }
0x2550   :  { %21440 = vtanh.f32 %v24389_v3 }
0x2551   :  { %21442 = vrcp.f32 %v17199_v14 }
0x2552   :  { %v21435_v55 = vpop.eup %21434 }
0x2553   :  { %v17208_v18 = vmul.f32 %v21435_v55, %v21431_v38  ;;  %v21437_v2 = vpop.eup %21436 }
0x2554   :  { %v17207_v33 = vmul.f32 %v21437_v2, %v24351_v30  ;;  %v20266_v30 = vpack.c.bf16 %v17377_v43, %v17373_v7 }
0x2555   :  { %v21439_v37 = vpop.eup %21438 }
0x2556   :  { %v17209_v34 = vadd.f32 %v17208_v18, %v17207_v33 }
0x2558   :  { %21444 = vtanh.f32 %v17209_v34 }
0x255a   :  { %v21441_v58 = vpop.eup %21440 }
0x255b   :  { %v24393_v16 = vmul.f32 %v21441_v58, %v21439_v37  ;;  %v21443_v53 = vpop.eup %21442 }
0x255d   :  { %17025 = vst [vmem:[#allocation3 + $0xe] sm:$0x1] %v24393_v16 }
0x2562   :  { %v21445_v0 = vpop.eup %21444 }
0x2563   :  { %v17211_v25 = vmul.f32 %v21445_v0, %v21443_v53  ;;  %v21462_v0 = vld [vmem:[%s24441_s13] ss:$0 sm:$0xff] }
0x2565   :  { %17967 = vmatmul.mubr.msk.f32.vlgmr.msra.gmra.mrb[128].mxu0 %vm674_vm1, %v17211_v25  ;;  %17968 = vmatmul.mubr.msk.f32.vlgmr.msra.gmra.mrb[128].mxu1 %vm674_vm1, %v17211_v25 }
0x2566   :  { %20267 = vmatpush1.bf16.msra.mxu0 %v20266_v30  ;;  %20283 = vmatpush1.bf16.msra.mxu1 %v20282_v24 }
0x2567   :  { %20269 = vmatprep.subr.bf16.mxu0 %v20268_v56  ;;  %20285 = vmatprep.subr.bf16.mxu1 %v20284_v36 }
0x2568   :  { %17472 = vmatprep.mubr.f32.mxu0 %v24477_v12  ;;  %17543 = vmatprep.mubr.f32.mxu1 %v24477_v12 }
0x256a   :  { %20271 = vmatpush1.bf16.msra.mxu0 %v20270_v27  ;;  %20287 = vmatpush1.bf16.msra.mxu1 %v20286_v15 }
0x256b   :  { %20273 = vmatprep.subr.bf16.mxu0 %v20272_v39  ;;  %20289 = vmatprep.subr.bf16.mxu1 %v20288_v23 }
0x256e   :  { %20275 = vmatpush1.bf16.msra.mxu0 %v20274_v17  ;;  %20291 = vmatpush1.bf16.msra.mxu1 %v20290_v63 }
0x256f   :  { %20277 = vmatprep.subr.bf16.mxu0 %v20276_v61  ;;  %20293 = vmatprep.subr.bf16.mxu1 %v20292_v4 }
0x2572   :  { %20279 = vmatpush1.bf16.msra.mxu0 %v20278_v48  ;;  %20295 = vmatpush1.bf16.msra.mxu1 %v20294_v32 }
0x2575   :  { %17969 = vmatmul.mubr.msk.f32.vlgmr.msra.gmra.mrb[128].mxu0 %vm264_vm0, %v24393_v16  ;;  %17970 = vmatmul.mubr.msk.f32.vlgmr.msra.gmra.mrb[128].mxu1 %vm264_vm0, %v24393_v16 }
0x2648   :  { %v17474_v12 = vpop.f32.mrb[128].mxu0  ;;  %v17545_v49 = vpop.f32.mrb[128].mxu1 }
0x2649   :  { %v20420_v28 = vadd.f32 %v17474_v12, %v23241_v8  ;;  %v17476_v38 = vpop.f32.mrb[129].mxu0  ;;  %v17547_v42 = vpop.f32.mrb[129].mxu1  ;;  %v20422_v14 = vadd.f32 %v17545_v49, %v23249_v46 }
0x264a   :  { %v20421_v55 = vadd.f32 %v17476_v38, %v23244_v54  ;;  %v20423_v33 = vadd.f32 %v17547_v42, %v23252_v19 }
0x264b   :  { %v17971_v18 = vmul.f32 -1.442695, %v20420_v28  ;;  %v17973_v34 = vmul.f32 -1.442695, %v20422_v14 }
0x264c   :  { %v17972_v2 = vmul.f32 -1.442695, %v20421_v55 }
0x264d   :  { %21446 = vpow2.f32 %v17971_v18 }
0x264e   :  { %21448 = vpow2.f32 %v17972_v2 }
0x264f   :  { %21450 = vtanh.f32 %v20423_v33 }
0x2650   :  { %21452 = vpow2.f32 %v17973_v34 }
0x2657   :  { %v21447_v37 = vpop.eup %21446 }
0x2658   :  { %v17563_v58 = vadd.f32 1.0, %v21447_v37  ;;  %v21449_v16 = vpop.eup %21448 }
0x2659   :  { %v17564_v8 = vadd.f32 1.0, %v21449_v16  ;;  %v21451_v7 = vpop.eup %21450 }
0x265a   :  { %21454 = vrcp.f32 %v17563_v58  ;;  %v21453_v43 = vpop.eup %21452 }
0x265b   :  { %21456 = vrcp.f32 %v17564_v8  ;;  %v17565_v40 = vadd.f32 1.0, %v21453_v43 }
0x265d   :  { %21458 = vrcp.f32 %v17565_v40 }
0x2664   :  { %v21455_v54 = vpop.eup %21454 }
0x2665   :  { %v17574_v44 = vmul.f32 %v21455_v54, %v21451_v7  ;;  %v21457_v10 = vpop.eup %21456 }
0x2666   :  { %v17573_v51 = vmul.f32 %v21457_v10, %v24389_v3 }
0x2667   :  { %v21459_v19 = vpop.eup %21458 }
0x2668   :  { %v17575_v46 = vadd.f32 %v17574_v44, %v17573_v51 }
0x266a   :  { %21460 = vtanh.f32 %v17575_v46 }
0x2674   :  { %v21461_v62 = vpop.eup %21460 }
0x2675   :  { %v17577_v60 = vmul.f32 %v21461_v62, %v21459_v19 }
0x2677   :  { %17578 = vst [vmem:[#allocation3 + $0xf] sm:$0x1] %v17577_v60 }
0x267e   :  { %v17580_v53 = vld [vmem:[#allocation3 + $0x8] sm:$0xff] }
0x267f   :  { %v17589_v30 = vmul.f32 %v21462_v0, %v17580_v53 }
0x2681   :  { %17592 = vadd.xlane.f32.xlu1 %v17589_v30 }
0x2682   :  { %21629 = shalt.err (!%p21626_p4)
}
0x2683   :  { %s21630_s7 = scalar_lea.hbm %s24444_s16, 16 }
0x2684   :  { %p21631_p5 = scmp.ne.s32.totalorder %s24444_s16, %s21630_s7  ;;  %p21634_p6 = scmp.lt.u32.totalorder %s21630_s7, %s24444_s16 }
0x2686   :  { %p21636_p7 = pnand %p21634_p6, %p21631_p5 }
0x2688   :  { %21639 = shalt.err (!%p21636_p7)
}
0x2689   :  { %17617 = dma.vmem_to_hbm [thread:$0]  %s17615_s22, 16, %s24444_s16, [#allocation7]   ;;  %v21463_v24 = vld [vmem:[#allocation4] ss:$0 sm:$0xff] }
0x270e   :  { %v17593_v3 = vpop.xlane.xlu1 %17592 }
0x270f   :  { %v17602_v45 = vadd.f32 %v21463_v24, %v17593_v3 }
0x2711   :  { %17605 = vst.msk [vmem:[%s24443_s15 + $0x8] sm:$0xff] %vm17603_vm3, %v17602_v45 }
0x2712   :  { %21648 = dma.done.wait [#allocation7], 16  }
0x2713   :  { %21649 = vsyncadd [#allocation7], 4294967280 }
0x2714   :  { %17623 = vsyncpa [#allocation6], 1 }
0x2715   :  { %17624 = vsyncpa [#allocation9], 1 }
0x2716   :  { %17625 = vsyncpa [#allocation12], 1 }
0x2717   :  { %17626 = vsyncpa [#allocation15], 1 }
0x2718   :  { %17627 = vsyncpa [#allocation7], 1 }

</bundles_post_ra>
